<compile_context>
chip_gen: v5e
topology: v5e:2x2
jax: 0.10.0
libtpu: 0.0.40
codegen_flags: <defaults>
</compile_context>

<pallas_src>
import functools

import jax
import jax.numpy as jnp
from jax import lax
from jax.experimental import pallas as pl
from jax.experimental.pallas import tpu as pltpu


# ---------------------------------------------------------------------------
# Fused kernel: trans1 -> RNN/ReLU/degrade -> Frame embedding -> residual -> trans2
# grid = (1,): single program, everything resident in VMEM.
# ---------------------------------------------------------------------------
def _fused_kernel(x_ref, xt_ref,
                  wih_ref, whh_ref, bh_ref,
                  wd_ref, bd_ref,
                  we_ref, be_ref,
                  ln1g_ref, ln1b_ref, wqkv_ref, wo_ref,
                  ln2g_ref, ln2b_ref, fw1_ref, fb1_ref, fw2_ref, fb2_ref,
                  xr_ref, xtout_ref,
                  m0_s, m1_s, x2_s,
                  *, patch_size, patch_num, stride):
    B, T, _ = x_ref.shape
    _, N, D = xt_ref.shape
    H = whh_ref.shape[0]
    f32 = jnp.float32

    # ---- hoisted weight loads (stay in vregs across the unrolled loops) ----
    wih = wih_ref[...].astype(f32)
    whh = whh_ref[...].astype(f32)
    bh = bh_ref[...].astype(f32)
    wd = wd_ref[...].astype(f32)
    bd = bd_ref[...].astype(f32)
    we = we_ref[...].astype(f32)
    be = be_ref[...].astype(f32)
    we_c0 = we[0:patch_size, :]               # Embedding rows for channel 0 of a patch
    we_c1 = we[patch_size:2 * patch_size, :]  # Embedding rows for channel 1 of a patch

    def layer_norm(v, g, b):
        mu = jnp.mean(v, axis=-1, keepdims=True)
        var = jnp.mean(jnp.square(v - mu), axis=-1, keepdims=True)
        return (v - mu) * lax.rsqrt(var + 1e-5) * g + b

    inv_sqrt_d = 1.0 / (float(D) ** 0.5)   # single head: head_dim == d_model

    def transformer(xin, l):
        # pre-LN single-head self-attention + ReLU FFN; l in {0, 1} selects the layer
        h = layer_norm(xin, ln1g_ref[l].astype(f32), ln1b_ref[l].astype(f32))
        qkv = jnp.dot(h, wqkv_ref[l].astype(f32), preferred_element_type=f32)  # (N, 3D)
        q = qkv[:, 0:D]
        k = qkv[:, D:2 * D]
        v = qkv[:, 2 * D:3 * D]
        s = jnp.dot(q, k.T, preferred_element_type=f32) * inv_sqrt_d
        s = s - jnp.max(s, axis=-1, keepdims=True)
        p = jnp.exp(s)
        p = p * pl.reciprocal(jnp.sum(p, axis=-1, keepdims=True), approx=True)
        attn = jnp.dot(jnp.dot(p, v, preferred_element_type=f32),
                       wo_ref[l].astype(f32), preferred_element_type=f32)
        y = xin + attn
        h2 = layer_norm(y, ln2g_ref[l].astype(f32), ln2b_ref[l].astype(f32))
        ff = jnp.maximum(jnp.dot(h2, fw1_ref[l].astype(f32),
                                 preferred_element_type=f32)
                         + fb1_ref[l].astype(f32), 0.0)
        ff = jnp.dot(ff, fw2_ref[l].astype(f32),
                     preferred_element_type=f32) + fb2_ref[l].astype(f32)
        return y + ff

    # ---- Phase 1: RNN (tanh) -> ReLU -> degrade, fully unrolled (B, T static) ----
    for b in range(B):
        xb = x_ref[b].astype(f32)                                         # (T, Din)
        # whole-sequence input projection hoisted out of the serial recurrence
        u = jnp.dot(xb, wih, preferred_element_type=f32) + bh             # (T, H)
        h_state = jnp.zeros((1, H), f32)
        for t in range(T):
            h_state = jnp.tanh(u[t:t + 1, :] +
                               jnp.dot(h_state, whh, preferred_element_type=f32))
            r = jnp.maximum(h_state, 0.0)                                 # self.act = ReLU
            xr_ref[b:b + 1, t * H:(t + 1) * H] = r.astype(xr_ref.dtype)   # lane-dense x_r
            m = jnp.dot(r, wd, preferred_element_type=f32) + bd           # degrade: (1, 2)
            m0_s[b:b + 1, t:t + 1] = m[:, 0:1]                            # x_r_m chan 0
            m1_s[b:b + 1, t:t + 1] = m[:, 1:2]                            # x_r_m chan 1

    # ---- Phase 2: trans1 + Frame embedding + residual sum + trans2 (per batch) ----
    for b in range(B):
        xt_b = xt_ref[b].astype(f32)                                      # (N, D)
        xt1_b = transformer(xt_b, 0)                                      # trans_block1
        base = xt_b + xt1_b                                               # x_t + x_t_1
        # token 0 of x_t_r is x_t[:, 0]  =>  sum row 0 = 2*x_t[0] + x_t_1[0]
        x2_s[0:1, :] = base[0:1, :] + xt_b[0:1, :]
        m0_b = m0_s[b:b + 1, :]                                           # (1, T)
        m1_b = m1_s[b:b + 1, :]
        for i in range(patch_num):
            s0 = i * stride
            p0 = m0_b[:, s0:s0 + patch_size]                              # (1, P) chan 0
            p1 = m1_b[:, s0:s0 + patch_size]                              # (1, P) chan 1
            # Frame feature = [p0 | p1]; Embedding applied as split matmul (no concat)
            emb = (jnp.dot(p0, we_c0, preferred_element_type=f32)
                   + jnp.dot(p1, we_c1, preferred_element_type=f32) + be)  # (1, D)
            x2_s[i + 1:i + 2, :] = base[i + 1:i + 2, :] + emb
        xtout_ref[b] = transformer(x2_s[...], 1).astype(xtout_ref.dtype)  # trans_block2


def _full_spec(a):
    nd = a.ndim
    return pl.BlockSpec(a.shape, lambda *_: (0,) * nd)


# ---------------------------------------------------------------------------
# RNNTransBlock forward (single pallas_call)
# ---------------------------------------------------------------------------
def rnn_trans_block_forward(params, x, x_t, patch_size, patch_num):
    """Fused forward of RNNTransBlock. Returns (x_r, x_t_out)."""
    stride = int(patch_size * 0.5)
    B, T, _ = x.shape
    _, N, D = x_t.shape
    H = params["rnn"]["whh"].shape[0]
    assert N == patch_num + 1
    assert (patch_num - 1) * stride + patch_size <= T

    tp = params["trans"]
    inputs = (x, x_t,
              params["rnn"]["wih"], params["rnn"]["whh"], params["rnn"]["bh"],
              params["degrade"]["w"], params["degrade"]["b"],
              params["frame"]["w"], params["frame"]["b"],
              tp["ln1g"], tp["ln1b"], tp["wqkv"], tp["wo"],
              tp["ln2g"], tp["ln2b"], tp["w1"], tp["b1"], tp["w2"], tp["b2"])

    kernel = functools.partial(_fused_kernel, patch_size=patch_size,
                               patch_num=patch_num, stride=stride)

    xr_flat, xt_out = pl.pallas_call(
        kernel,
        out_shape=(jax.ShapeDtypeStruct((B, T * H), x.dtype),      # lane-dense x_r
                   jax.ShapeDtypeStruct((B, N, D), x_t.dtype)),
        grid=(1,),
        in_specs=[_full_spec(a) for a in inputs],
        out_specs=(pl.BlockSpec((B, T * H), lambda *_: (0, 0)),
                   pl.BlockSpec((B, N, D), lambda *_: (0, 0, 0))),
        scratch_shapes=[pltpu.VMEM((B, T), jnp.float32),            # degrade chan 0
                        pltpu.VMEM((B, T), jnp.float32),            # degrade chan 1
                        pltpu.VMEM((N, D), jnp.float32)],           # trans2 input staging
        compiler_params=pltpu.CompilerParams(dimension_semantics=("arbitrary",)),
    )(*inputs)

    return xr_flat.reshape(B, T, H), xt_out


# ---------------------------------------------------------------------------
# Deterministic parameter construction + demo run
# ---------------------------------------------------------------------------
def _init(key, shape, scale=0.2):
    return (scale * jax.random.normal(key, shape)).astype(jnp.float32)


def make_trans_params(key, d_model, d_ff):
    ks = jax.random.split(key, 6)
    return dict(
        ln1g=jnp.ones((1, d_model), jnp.float32),
        ln1b=jnp.zeros((1, d_model), jnp.float32),
        wq=_init(ks[0], (d_model, d_model)),
        wk=_init(ks[1], (d_model, d_model)),
        wv=_init(ks[2], (d_model, d_model)),
        wo=_init(ks[3], (d_model, d_model)),
        ln2g=jnp.ones((1, d_model), jnp.float32),
        ln2b=jnp.zeros((1, d_model), jnp.float32),
        w1=_init(ks[4], (d_model, d_ff)),
        b1=jnp.zeros((1, d_ff), jnp.float32),
        w2=_init(ks[5], (d_ff, d_model)),
        b2=jnp.zeros((1, d_model), jnp.float32),
    )


def fuse_trans_params(p1, p2):
    """Stack trans1/trans2 on a leading axis of 2 and fuse Wq|Wk|Wv -> Wqkv.
    Done once at init time (outside jit) so the forward has zero XLA glue."""
    def st(name):
        return jnp.stack([p1[name], p2[name]], axis=0)
    wqkv = jnp.stack(
        [jnp.concatenate([p1["wq"], p1["wk"], p1["wv"]], axis=1),
         jnp.concatenate([p2["wq"], p2["wk"], p2["wv"]], axis=1)], axis=0)
    return dict(ln1g=st("ln1g"), ln1b=st("ln1b"), wqkv=wqkv, wo=st("wo"),
                ln2g=st("ln2g"), ln2b=st("ln2b"),
                w1=st("w1"), b1=st("b1"), w2=st("w2"), b2=st("b2"))


if __name__ == "__main__":
    # small, forward-consistent shapes
    B, T, DIN, H = 2, 18, 6, 16          # degrade = Linear(16, 2) -> hidden must be 16
    PATCH_SIZE, PATCH_NUM, CH = 4, 8, 2  # Frame(channel=2, ...)
    STRIDE = int(PATCH_SIZE * 0.5)
    D_MODEL = PATCH_SIZE * CH            # 8
    N_TOK = PATCH_NUM + 1                # 9  (x_t must broadcast-add with cat result)
    D_FF = 4 * D_MODEL

    root = jax.random.PRNGKey(0)
    k_x, k_xt, k_rnn1, k_rnn2, k_deg, k_emb, k_t1, k_t2 = jax.random.split(root, 8)

    x = jax.random.normal(k_x, (B, T, DIN), dtype=jnp.float32)
    x_t = jax.random.normal(k_xt, (B, N_TOK, D_MODEL), dtype=jnp.float32)

    params = dict(
        rnn=dict(wih=_init(k_rnn1, (DIN, H)),
                 whh=_init(k_rnn2, (H, H)),
                 bh=jnp.zeros((1, H), jnp.float32)),   # bh == b_ih + b_hh of nn.RNN
        degrade=dict(w=_init(k_deg, (H, 2)),
                     b=jnp.zeros((1, 2), jnp.float32)),
        frame=dict(w=_init(k_emb, (PATCH_SIZE * CH, PATCH_SIZE * CH)),
                   b=jnp.zeros((1, PATCH_SIZE * CH), jnp.float32)),
        trans=fuse_trans_params(make_trans_params(k_t1, D_MODEL, D_FF),
                                make_trans_params(k_t2, D_MODEL, D_FF)),
    )

    fwd = jax.jit(functools.partial(rnn_trans_block_forward,
                                    patch_size=PATCH_SIZE, patch_num=PATCH_NUM))
    x_r, x_t_out = fwd(params, x, x_t)
    jax.block_until_ready((x_r, x_t_out))

    assert x_r.shape == (B, T, H)
    assert x_t_out.shape == (B, N_TOK, D_MODEL)
    print("KERNEL_OK")
</pallas_src>

<mosaic_0001>
module attributes {stable_mosaic.version = 11 : i64} {
  func.func @_fused_kernel(%arg0: i32, %arg1: memref<2x18x6xf32, #tpu.memory_space<vmem>>, %arg2: memref<2x9x8xf32, #tpu.memory_space<vmem>>, %arg3: memref<6x16xf32, #tpu.memory_space<vmem>>, %arg4: memref<16x16xf32, #tpu.memory_space<vmem>>, %arg5: memref<1x16xf32, #tpu.memory_space<vmem>>, %arg6: memref<16x2xf32, #tpu.memory_space<vmem>>, %arg7: memref<1x2xf32, #tpu.memory_space<vmem>>, %arg8: memref<8x8xf32, #tpu.memory_space<vmem>>, %arg9: memref<1x8xf32, #tpu.memory_space<vmem>>, %arg10: memref<2x1x8xf32, #tpu.memory_space<vmem>>, %arg11: memref<2x1x8xf32, #tpu.memory_space<vmem>>, %arg12: memref<2x8x24xf32, #tpu.memory_space<vmem>>, %arg13: memref<2x8x8xf32, #tpu.memory_space<vmem>>, %arg14: memref<2x1x8xf32, #tpu.memory_space<vmem>>, %arg15: memref<2x1x8xf32, #tpu.memory_space<vmem>>, %arg16: memref<2x8x32xf32, #tpu.memory_space<vmem>>, %arg17: memref<2x1x32xf32, #tpu.memory_space<vmem>>, %arg18: memref<2x32x8xf32, #tpu.memory_space<vmem>>, %arg19: memref<2x1x8xf32, #tpu.memory_space<vmem>>, %arg20: memref<2x288xf32, #tpu.memory_space<vmem>>, %arg21: memref<2x9x8xf32, #tpu.memory_space<vmem>>, %arg22: memref<2x18xf32, #tpu.memory_space<vmem>>, %arg23: memref<2x18xf32, #tpu.memory_space<vmem>>, %arg24: memref<9x8xf32, #tpu.memory_space<vmem>>) attributes {dimension_semantics = [#tpu.dimension_semantics<arbitrary>], iteration_bounds = array<i64: 1>, scalar_prefetch = 0 : i64, scratch_operands = 3 : i64, tpu.core_type = #tpu.core_type<tc>, window_params = [{pipeline_mode = #tpu.pipeline_mode<synchronous>, transform_indices = @transform_0, window_bounds = array<i64: 2, 18, 6>}, {pipeline_mode = #tpu.pipeline_mode<synchronous>, transform_indices = @transform_1, window_bounds = array<i64: 2, 9, 8>}, {pipeline_mode = #tpu.pipeline_mode<synchronous>, transform_indices = @transform_2, window_bounds = array<i64: 6, 16>}, {pipeline_mode = #tpu.pipeline_mode<synchronous>, transform_indices = @transform_3, window_bounds = array<i64: 16, 16>}, {pipeline_mode = #tpu.pipeline_mode<synchronous>, transform_indices = @transform_4, window_bounds = array<i64: 1, 16>}, {pipeline_mode = #tpu.pipeline_mode<synchronous>, transform_indices = @transform_5, window_bounds = array<i64: 16, 2>}, {pipeline_mode = #tpu.pipeline_mode<synchronous>, transform_indices = @transform_6, window_bounds = array<i64: 1, 2>}, {pipeline_mode = #tpu.pipeline_mode<synchronous>, transform_indices = @transform_7, window_bounds = array<i64: 8, 8>}, {pipeline_mode = #tpu.pipeline_mode<synchronous>, transform_indices = @transform_8, window_bounds = array<i64: 1, 8>}, {pipeline_mode = #tpu.pipeline_mode<synchronous>, transform_indices = @transform_9, window_bounds = array<i64: 2, 1, 8>}, {pipeline_mode = #tpu.pipeline_mode<synchronous>, transform_indices = @transform_10, window_bounds = array<i64: 2, 1, 8>}, {pipeline_mode = #tpu.pipeline_mode<synchronous>, transform_indices = @transform_11, window_bounds = array<i64: 2, 8, 24>}, {pipeline_mode = #tpu.pipeline_mode<synchronous>, transform_indices = @transform_12, window_bounds = array<i64: 2, 8, 8>}, {pipeline_mode = #tpu.pipeline_mode<synchronous>, transform_indices = @transform_13, window_bounds = array<i64: 2, 1, 8>}, {pipeline_mode = #tpu.pipeline_mode<synchronous>, transform_indices = @transform_14, window_bounds = array<i64: 2, 1, 8>}, {pipeline_mode = #tpu.pipeline_mode<synchronous>, transform_indices = @transform_15, window_bounds = array<i64: 2, 8, 32>}, {pipeline_mode = #tpu.pipeline_mode<synchronous>, transform_indices = @transform_16, window_bounds = array<i64: 2, 1, 32>}, {pipeline_mode = #tpu.pipeline_mode<synchronous>, transform_indices = @transform_17, window_bounds = array<i64: 2, 32, 8>}, {pipeline_mode = #tpu.pipeline_mode<synchronous>, transform_indices = @transform_18, window_bounds = array<i64: 2, 1, 8>}, {pipeline_mode = #tpu.pipeline_mode<synchronous>, transform_indices = @transform_19, window_bounds = array<i64: 2, 288>}, {pipeline_mode = #tpu.pipeline_mode<synchronous>, transform_indices = @transform_20, window_bounds = array<i64: 2, 9, 8>}]} {
    %c0 = arith.constant 0 : index
    %c0_0 = arith.constant 0 : index
    %0 = vector.load %arg3[%c0, %c0_0] : memref<6x16xf32, #tpu.memory_space<vmem>>, vector<6x16xf32>
    %c0_1 = arith.constant 0 : index
    %c0_2 = arith.constant 0 : index
    %1 = vector.load %arg4[%c0_1, %c0_2] : memref<16x16xf32, #tpu.memory_space<vmem>>, vector<16x16xf32>
    %c0_3 = arith.constant 0 : index
    %c0_4 = arith.constant 0 : index
    %2 = vector.load %arg5[%c0_3, %c0_4] : memref<1x16xf32, #tpu.memory_space<vmem>>, vector<1x16xf32>
    %c0_5 = arith.constant 0 : index
    %c0_6 = arith.constant 0 : index
    %3 = vector.load %arg6[%c0_5, %c0_6] : memref<16x2xf32, #tpu.memory_space<vmem>>, vector<16x2xf32>
    %c0_7 = arith.constant 0 : index
    %c0_8 = arith.constant 0 : index
    %4 = vector.load %arg7[%c0_7, %c0_8] : memref<1x2xf32, #tpu.memory_space<vmem>>, vector<1x2xf32>
    %c0_9 = arith.constant 0 : index
    %c0_10 = arith.constant 0 : index
    %5 = vector.load %arg8[%c0_9, %c0_10] : memref<8x8xf32, #tpu.memory_space<vmem>>, vector<8x8xf32>
    %c0_11 = arith.constant 0 : index
    %c0_12 = arith.constant 0 : index
    %6 = vector.load %arg9[%c0_11, %c0_12] : memref<1x8xf32, #tpu.memory_space<vmem>>, vector<1x8xf32>
    %7 = vector.extract_strided_slice %5 {offsets = [0, 0], sizes = [4, 8], strides = [1, 1]} : vector<8x8xf32> to vector<4x8xf32>
    %8 = vector.extract_strided_slice %5 {offsets = [4, 0], sizes = [4, 8], strides = [1, 1]} : vector<8x8xf32> to vector<4x8xf32>
    %c0_13 = arith.constant 0 : index
    %c0_14 = arith.constant 0 : index
    %c0_15 = arith.constant 0 : index
    %9 = vector.load %arg1[%c0_13, %c0_14, %c0_15] : memref<2x18x6xf32, #tpu.memory_space<vmem>>, vector<1x18x6xf32>
    %10 = vector.shape_cast %9 : vector<1x18x6xf32> to vector<18x6xf32>
    %cst = arith.constant dense<0.000000e+00> : vector<18x16xf32>
    %11 = tpu.matmul %10, %0, %cst {dimension_numbers = #tpu.dot_dimension_numbers<[1], [0], [0], [1], [0, 0, 1, 1], [], []>} : vector<18x6xf32>, vector<6x16xf32>, vector<18x16xf32> -> vector<18x16xf32>
    %12 = vector.broadcast %2 : vector<1x16xf32> to vector<18x16xf32>
    %13 = arith.addf %11, %12 : vector<18x16xf32>
    %cst_16 = arith.constant 0.000000e+00 : f32
    %14 = vector.broadcast %cst_16 : f32 to vector<1x16xf32>
    %15 = vector.extract_strided_slice %13 {offsets = [0, 0], sizes = [1, 16], strides = [1, 1]} : vector<18x16xf32> to vector<1x16xf32>
    %cst_17 = arith.constant dense<0.000000e+00> : vector<1x16xf32>
    %16 = tpu.matmul %14, %1, %cst_17 {dimension_numbers = #tpu.dot_dimension_numbers<[1], [0], [0], [1], [0, 0, 1, 1], [], []>} : vector<1x16xf32>, vector<16x16xf32>, vector<1x16xf32> -> vector<1x16xf32>
    %17 = arith.addf %15, %16 : vector<1x16xf32>
    %18 = math.tanh %17 : vector<1x16xf32>
    %cst_18 = arith.constant 0.000000e+00 : f32
    %19 = vector.broadcast %cst_18 : f32 to vector<1x16xf32>
    %20 = arith.maximumf %18, %19 : vector<1x16xf32>
    %c0_19 = arith.constant 0 : index
    %c0_20 = arith.constant 0 : index
    %21 = vector.load %arg20[%c0_19, %c0_20] : memref<2x288xf32, #tpu.memory_space<vmem>>, vector<1x16xf32>
    tpu.vector_store %arg20[%c0_19, %c0_20], %20 {strides = array<i32>} : memref<2x288xf32, #tpu.memory_space<vmem>>, vector<1x16xf32>,
    %cst_21 = arith.constant dense<0.000000e+00> : vector<1x2xf32>
    %22 = tpu.matmul %20, %3, %cst_21 {dimension_numbers = #tpu.dot_dimension_numbers<[1], [0], [0], [1], [0, 0, 1, 1], [], []>} : vector<1x16xf32>, vector<16x2xf32>, vector<1x2xf32> -> vector<1x2xf32>
    %23 = arith.addf %22, %4 : vector<1x2xf32>
    %24 = vector.extract_strided_slice %23 {offsets = [0, 0], sizes = [1, 1], strides = [1, 1]} : vector<1x2xf32> to vector<1x1xf32>
    %c0_22 = arith.constant 0 : index
    %c0_23 = arith.constant 0 : index
    %25 = vector.load %arg22[%c0_22, %c0_23] : memref<2x18xf32, #tpu.memory_space<vmem>>, vector<1x1xf32>
    tpu.vector_store %arg22[%c0_22, %c0_23], %24 {strides = array<i32>} : memref<2x18xf32, #tpu.memory_space<vmem>>, vector<1x1xf32>,
    %26 = vector.extract_strided_slice %23 {offsets = [0, 1], sizes = [1, 1], strides = [1, 1]} : vector<1x2xf32> to vector<1x1xf32>
    %c0_24 = arith.constant 0 : index
    %c0_25 = arith.constant 0 : index
    %27 = vector.load %arg23[%c0_24, %c0_25] : memref<2x18xf32, #tpu.memory_space<vmem>>, vector<1x1xf32>
    tpu.vector_store %arg23[%c0_24, %c0_25], %26 {strides = array<i32>} : memref<2x18xf32, #tpu.memory_space<vmem>>, vector<1x1xf32>,
    %28 = vector.extract_strided_slice %13 {offsets = [1, 0], sizes = [1, 16], strides = [1, 1]} : vector<18x16xf32> to vector<1x16xf32>
    %cst_26 = arith.constant dense<0.000000e+00> : vector<1x16xf32>
    %29 = tpu.matmul %18, %1, %cst_26 {dimension_numbers = #tpu.dot_dimension_numbers<[1], [0], [0], [1], [0, 0, 1, 1], [], []>} : vector<1x16xf32>, vector<16x16xf32>, vector<1x16xf32> -> vector<1x16xf32>
    %30 = arith.addf %28, %29 : vector<1x16xf32>
    %31 = math.tanh %30 : vector<1x16xf32>
    %cst_27 = arith.constant 0.000000e+00 : f32
    %32 = vector.broadcast %cst_27 : f32 to vector<1x16xf32>
    %33 = arith.maximumf %31, %32 : vector<1x16xf32>
    %c0_28 = arith.constant 0 : index
    %c16 = arith.constant 16 : index
    %34 = vector.load %arg20[%c0_28, %c16] : memref<2x288xf32, #tpu.memory_space<vmem>>, vector<1x16xf32>
    tpu.vector_store %arg20[%c0_28, %c16], %33 {strides = array<i32>} : memref<2x288xf32, #tpu.memory_space<vmem>>, vector<1x16xf32>,
    %cst_29 = arith.constant dense<0.000000e+00> : vector<1x2xf32>
    %35 = tpu.matmul %33, %3, %cst_29 {dimension_numbers = #tpu.dot_dimension_numbers<[1], [0], [0], [1], [0, 0, 1, 1], [], []>} : vector<1x16xf32>, vector<16x2xf32>, vector<1x2xf32> -> vector<1x2xf32>
    %36 = arith.addf %35, %4 : vector<1x2xf32>
    %37 = vector.extract_strided_slice %36 {offsets = [0, 0], sizes = [1, 1], strides = [1, 1]} : vector<1x2xf32> to vector<1x1xf32>
    %c0_30 = arith.constant 0 : index
    %c1 = arith.constant 1 : index
    %38 = vector.load %arg22[%c0_30, %c1] : memref<2x18xf32, #tpu.memory_space<vmem>>, vector<1x1xf32>
    tpu.vector_store %arg22[%c0_30, %c1], %37 {strides = array<i32>} : memref<2x18xf32, #tpu.memory_space<vmem>>, vector<1x1xf32>,
    %39 = vector.extract_strided_slice %36 {offsets = [0, 1], sizes = [1, 1], strides = [1, 1]} : vector<1x2xf32> to vector<1x1xf32>
    %c0_31 = arith.constant 0 : index
    %c1_32 = arith.constant 1 : index
    %40 = vector.load %arg23[%c0_31, %c1_32] : memref<2x18xf32, #tpu.memory_space<vmem>>, vector<1x1xf32>
    tpu.vector_store %arg23[%c0_31, %c1_32], %39 {strides = array<i32>} : memref<2x18xf32, #tpu.memory_space<vmem>>, vector<1x1xf32>,
    %41 = vector.extract_strided_slice %13 {offsets = [2, 0], sizes = [1, 16], strides = [1, 1]} : vector<18x16xf32> to vector<1x16xf32>
    %cst_33 = arith.constant dense<0.000000e+00> : vector<1x16xf32>
    %42 = tpu.matmul %31, %1, %cst_33 {dimension_numbers = #tpu.dot_dimension_numbers<[1], [0], [0], [1], [0, 0, 1, 1], [], []>} : vector<1x16xf32>, vector<16x16xf32>, vector<1x16xf32> -> vector<1x16xf32>
    %43 = arith.addf %41, %42 : vector<1x16xf32>
    %44 = math.tanh %43 : vector<1x16xf32>
    %cst_34 = arith.constant 0.000000e+00 : f32
    %45 = vector.broadcast %cst_34 : f32 to vector<1x16xf32>
    %46 = arith.maximumf %44, %45 : vector<1x16xf32>
    %c0_35 = arith.constant 0 : index
    %c32 = arith.constant 32 : index
    %47 = vector.load %arg20[%c0_35, %c32] : memref<2x288xf32, #tpu.memory_space<vmem>>, vector<1x16xf32>
    tpu.vector_store %arg20[%c0_35, %c32], %46 {strides = array<i32>} : memref<2x288xf32, #tpu.memory_space<vmem>>, vector<1x16xf32>,
    %cst_36 = arith.constant dense<0.000000e+00> : vector<1x2xf32>
    %48 = tpu.matmul %46, %3, %cst_36 {dimension_numbers = #tpu.dot_dimension_numbers<[1], [0], [0], [1], [0, 0, 1, 1], [], []>} : vector<1x16xf32>, vector<16x2xf32>, vector<1x2xf32> -> vector<1x2xf32>
    %49 = arith.addf %48, %4 : vector<1x2xf32>
    %50 = vector.extract_strided_slice %49 {offsets = [0, 0], sizes = [1, 1], strides = [1, 1]} : vector<1x2xf32> to vector<1x1xf32>
    %c0_37 = arith.constant 0 : index
    %c2 = arith.constant 2 : index
    %51 = vector.load %arg22[%c0_37, %c2] : memref<2x18xf32, #tpu.memory_space<vmem>>, vector<1x1xf32>
    tpu.vector_store %arg22[%c0_37, %c2], %50 {strides = array<i32>} : memref<2x18xf32, #tpu.memory_space<vmem>>, vector<1x1xf32>,
    %52 = vector.extract_strided_slice %49 {offsets = [0, 1], sizes = [1, 1], strides = [1, 1]} : vector<1x2xf32> to vector<1x1xf32>
    %c0_38 = arith.constant 0 : index
    %c2_39 = arith.constant 2 : index
    %53 = vector.load %arg23[%c0_38, %c2_39] : memref<2x18xf32, #tpu.memory_space<vmem>>, vector<1x1xf32>
    tpu.vector_store %arg23[%c0_38, %c2_39], %52 {strides = array<i32>} : memref<2x18xf32, #tpu.memory_space<vmem>>, vector<1x1xf32>,
    %54 = vector.extract_strided_slice %13 {offsets = [3, 0], sizes = [1, 16], strides = [1, 1]} : vector<18x16xf32> to vector<1x16xf32>
    %cst_40 = arith.constant dense<0.000000e+00> : vector<1x16xf32>
    %55 = tpu.matmul %44, %1, %cst_40 {dimension_numbers = #tpu.dot_dimension_numbers<[1], [0], [0], [1], [0, 0, 1, 1], [], []>} : vector<1x16xf32>, vector<16x16xf32>, vector<1x16xf32> -> vector<1x16xf32>
    %56 = arith.addf %54, %55 : vector<1x16xf32>
    %57 = math.tanh %56 : vector<1x16xf32>
    %cst_41 = arith.constant 0.000000e+00 : f32
    %58 = vector.broadcast %cst_41 : f32 to vector<1x16xf32>
    %59 = arith.maximumf %57, %58 : vector<1x16xf32>
    %c0_42 = arith.constant 0 : index
    %c48 = arith.constant 48 : index
    %60 = vector.load %arg20[%c0_42, %c48] : memref<2x288xf32, #tpu.memory_space<vmem>>, vector<1x16xf32>
    tpu.vector_store %arg20[%c0_42, %c48], %59 {strides = array<i32>} : memref<2x288xf32, #tpu.memory_space<vmem>>, vector<1x16xf32>,
    %cst_43 = arith.constant dense<0.000000e+00> : vector<1x2xf32>
    %61 = tpu.matmul %59, %3, %cst_43 {dimension_numbers = #tpu.dot_dimension_numbers<[1], [0], [0], [1], [0, 0, 1, 1], [], []>} : vector<1x16xf32>, vector<16x2xf32>, vector<1x2xf32> -> vector<1x2xf32>
    %62 = arith.addf %61, %4 : vector<1x2xf32>
    %63 = vector.extract_strided_slice %62 {offsets = [0, 0], sizes = [1, 1], strides = [1, 1]} : vector<1x2xf32> to vector<1x1xf32>
    %c0_44 = arith.constant 0 : index
    %c3 = arith.constant 3 : index
    %64 = vector.load %arg22[%c0_44, %c3] : memref<2x18xf32, #tpu.memory_space<vmem>>, vector<1x1xf32>
    tpu.vector_store %arg22[%c0_44, %c3], %63 {strides = array<i32>} : memref<2x18xf32, #tpu.memory_space<vmem>>, vector<1x1xf32>,
    %65 = vector.extract_strided_slice %62 {offsets = [0, 1], sizes = [1, 1], strides = [1, 1]} : vector<1x2xf32> to vector<1x1xf32>
    %c0_45 = arith.constant 0 : index
    %c3_46 = arith.constant 3 : index
    %66 = vector.load %arg23[%c0_45, %c3_46] : memref<2x18xf32, #tpu.memory_space<vmem>>, vector<1x1xf32>
    tpu.vector_store %arg23[%c0_45, %c3_46], %65 {strides = array<i32>} : memref<2x18xf32, #tpu.memory_space<vmem>>, vector<1x1xf32>,
    %67 = vector.extract_strided_slice %13 {offsets = [4, 0], sizes = [1, 16], strides = [1, 1]} : vector<18x16xf32> to vector<1x16xf32>
    %cst_47 = arith.constant dense<0.000000e+00> : vector<1x16xf32>
    %68 = tpu.matmul %57, %1, %cst_47 {dimension_numbers = #tpu.dot_dimension_numbers<[1], [0], [0], [1], [0, 0, 1, 1], [], []>} : vector<1x16xf32>, vector<16x16xf32>, vector<1x16xf32> -> vector<1x16xf32>
    %69 = arith.addf %67, %68 : vector<1x16xf32>
    %70 = math.tanh %69 : vector<1x16xf32>
    %cst_48 = arith.constant 0.000000e+00 : f32
    %71 = vector.broadcast %cst_48 : f32 to vector<1x16xf32>
    %72 = arith.maximumf %70, %71 : vector<1x16xf32>
    %c0_49 = arith.constant 0 : index
    %c64 = arith.constant 64 : index
    %73 = vector.load %arg20[%c0_49, %c64] : memref<2x288xf32, #tpu.memory_space<vmem>>, vector<1x16xf32>
    tpu.vector_store %arg20[%c0_49, %c64], %72 {strides = array<i32>} : memref<2x288xf32, #tpu.memory_space<vmem>>, vector<1x16xf32>,
    %cst_50 = arith.constant dense<0.000000e+00> : vector<1x2xf32>
    %74 = tpu.matmul %72, %3, %cst_50 {dimension_numbers = #tpu.dot_dimension_numbers<[1], [0], [0], [1], [0, 0, 1, 1], [], []>} : vector<1x16xf32>, vector<16x2xf32>, vector<1x2xf32> -> vector<1x2xf32>
    %75 = arith.addf %74, %4 : vector<1x2xf32>
    %76 = vector.extract_strided_slice %75 {offsets = [0, 0], sizes = [1, 1], strides = [1, 1]} : vector<1x2xf32> to vector<1x1xf32>
    %c0_51 = arith.constant 0 : index
    %c4 = arith.constant 4 : index
    %77 = vector.load %arg22[%c0_51, %c4] : memref<2x18xf32, #tpu.memory_space<vmem>>, vector<1x1xf32>
    tpu.vector_store %arg22[%c0_51, %c4], %76 {strides = array<i32>} : memref<2x18xf32, #tpu.memory_space<vmem>>, vector<1x1xf32>,
    %78 = vector.extract_strided_slice %75 {offsets = [0, 1], sizes = [1, 1], strides = [1, 1]} : vector<1x2xf32> to vector<1x1xf32>
    %c0_52 = arith.constant 0 : index
    %c4_53 = arith.constant 4 : index
    %79 = vector.load %arg23[%c0_52, %c4_53] : memref<2x18xf32, #tpu.memory_space<vmem>>, vector<1x1xf32>
    tpu.vector_store %arg23[%c0_52, %c4_53], %78 {strides = array<i32>} : memref<2x18xf32, #tpu.memory_space<vmem>>, vector<1x1xf32>,
    %80 = vector.extract_strided_slice %13 {offsets = [5, 0], sizes = [1, 16], strides = [1, 1]} : vector<18x16xf32> to vector<1x16xf32>
    %cst_54 = arith.constant dense<0.000000e+00> : vector<1x16xf32>
    %81 = tpu.matmul %70, %1, %cst_54 {dimension_numbers = #tpu.dot_dimension_numbers<[1], [0], [0], [1], [0, 0, 1, 1], [], []>} : vector<1x16xf32>, vector<16x16xf32>, vector<1x16xf32> -> vector<1x16xf32>
    %82 = arith.addf %80, %81 : vector<1x16xf32>
    %83 = math.tanh %82 : vector<1x16xf32>
    %cst_55 = arith.constant 0.000000e+00 : f32
    %84 = vector.broadcast %cst_55 : f32 to vector<1x16xf32>
    %85 = arith.maximumf %83, %84 : vector<1x16xf32>
    %c0_56 = arith.constant 0 : index
    %c80 = arith.constant 80 : index
    %86 = vector.load %arg20[%c0_56, %c80] : memref<2x288xf32, #tpu.memory_space<vmem>>, vector<1x16xf32>
    tpu.vector_store %arg20[%c0_56, %c80], %85 {strides = array<i32>} : memref<2x288xf32, #tpu.memory_space<vmem>>, vector<1x16xf32>,
    %cst_57 = arith.constant dense<0.000000e+00> : vector<1x2xf32>
    %87 = tpu.matmul %85, %3, %cst_57 {dimension_numbers = #tpu.dot_dimension_numbers<[1], [0], [0], [1], [0, 0, 1, 1], [], []>} : vector<1x16xf32>, vector<16x2xf32>, vector<1x2xf32> -> vector<1x2xf32>
    %88 = arith.addf %87, %4 : vector<1x2xf32>
    %89 = vector.extract_strided_slice %88 {offsets = [0, 0], sizes = [1, 1], strides = [1, 1]} : vector<1x2xf32> to vector<1x1xf32>
    %c0_58 = arith.constant 0 : index
    %c5 = arith.constant 5 : index
    %90 = vector.load %arg22[%c0_58, %c5] : memref<2x18xf32, #tpu.memory_space<vmem>>, vector<1x1xf32>
    tpu.vector_store %arg22[%c0_58, %c5], %89 {strides = array<i32>} : memref<2x18xf32, #tpu.memory_space<vmem>>, vector<1x1xf32>,
    %91 = vector.extract_strided_slice %88 {offsets = [0, 1], sizes = [1, 1], strides = [1, 1]} : vector<1x2xf32> to vector<1x1xf32>
    %c0_59 = arith.constant 0 : index
    %c5_60 = arith.constant 5 : index
    %92 = vector.load %arg23[%c0_59, %c5_60] : memref<2x18xf32, #tpu.memory_space<vmem>>, vector<1x1xf32>
    tpu.vector_store %arg23[%c0_59, %c5_60], %91 {strides = array<i32>} : memref<2x18xf32, #tpu.memory_space<vmem>>, vector<1x1xf32>,
    %93 = vector.extract_strided_slice %13 {offsets = [6, 0], sizes = [1, 16], strides = [1, 1]} : vector<18x16xf32> to vector<1x16xf32>
    %cst_61 = arith.constant dense<0.000000e+00> : vector<1x16xf32>
    %94 = tpu.matmul %83, %1, %cst_61 {dimension_numbers = #tpu.dot_dimension_numbers<[1], [0], [0], [1], [0, 0, 1, 1], [], []>} : vector<1x16xf32>, vector<16x16xf32>, vector<1x16xf32> -> vector<1x16xf32>
    %95 = arith.addf %93, %94 : vector<1x16xf32>
    %96 = math.tanh %95 : vector<1x16xf32>
    %cst_62 = arith.constant 0.000000e+00 : f32
    %97 = vector.broadcast %cst_62 : f32 to vector<1x16xf32>
    %98 = arith.maximumf %96, %97 : vector<1x16xf32>
    %c0_63 = arith.constant 0 : index
    %c96 = arith.constant 96 : index
    %99 = vector.load %arg20[%c0_63, %c96] : memref<2x288xf32, #tpu.memory_space<vmem>>, vector<1x16xf32>
    tpu.vector_store %arg20[%c0_63, %c96], %98 {strides = array<i32>} : memref<2x288xf32, #tpu.memory_space<vmem>>, vector<1x16xf32>,
    %cst_64 = arith.constant dense<0.000000e+00> : vector<1x2xf32>
    %100 = tpu.matmul %98, %3, %cst_64 {dimension_numbers = #tpu.dot_dimension_numbers<[1], [0], [0], [1], [0, 0, 1, 1], [], []>} : vector<1x16xf32>, vector<16x2xf32>, vector<1x2xf32> -> vector<1x2xf32>
    %101 = arith.addf %100, %4 : vector<1x2xf32>
    %102 = vector.extract_strided_slice %101 {offsets = [0, 0], sizes = [1, 1], strides = [1, 1]} : vector<1x2xf32> to vector<1x1xf32>
    %c0_65 = arith.constant 0 : index
    %c6 = arith.constant 6 : index
    %103 = vector.load %arg22[%c0_65, %c6] : memref<2x18xf32, #tpu.memory_space<vmem>>, vector<1x1xf32>
    tpu.vector_store %arg22[%c0_65, %c6], %102 {strides = array<i32>} : memref<2x18xf32, #tpu.memory_space<vmem>>, vector<1x1xf32>,
    %104 = vector.extract_strided_slice %101 {offsets = [0, 1], sizes = [1, 1], strides = [1, 1]} : vector<1x2xf32> to vector<1x1xf32>
    %c0_66 = arith.constant 0 : index
    %c6_67 = arith.constant 6 : index
    %105 = vector.load %arg23[%c0_66, %c6_67] : memref<2x18xf32, #tpu.memory_space<vmem>>, vector<1x1xf32>
    tpu.vector_store %arg23[%c0_66, %c6_67], %104 {strides = array<i32>} : memref<2x18xf32, #tpu.memory_space<vmem>>, vector<1x1xf32>,
    %106 = vector.extract_strided_slice %13 {offsets = [7, 0], sizes = [1, 16], strides = [1, 1]} : vector<18x16xf32> to vector<1x16xf32>
    %cst_68 = arith.constant dense<0.000000e+00> : vector<1x16xf32>
    %107 = tpu.matmul %96, %1, %cst_68 {dimension_numbers = #tpu.dot_dimension_numbers<[1], [0], [0], [1], [0, 0, 1, 1], [], []>} : vector<1x16xf32>, vector<16x16xf32>, vector<1x16xf32> -> vector<1x16xf32>
    %108 = arith.addf %106, %107 : vector<1x16xf32>
    %109 = math.tanh %108 : vector<1x16xf32>
    %cst_69 = arith.constant 0.000000e+00 : f32
    %110 = vector.broadcast %cst_69 : f32 to vector<1x16xf32>
    %111 = arith.maximumf %109, %110 : vector<1x16xf32>
    %c0_70 = arith.constant 0 : index
    %c112 = arith.constant 112 : index
    %112 = vector.load %arg20[%c0_70, %c112] : memref<2x288xf32, #tpu.memory_space<vmem>>, vector<1x16xf32>
    tpu.vector_store %arg20[%c0_70, %c112], %111 {strides = array<i32>} : memref<2x288xf32, #tpu.memory_space<vmem>>, vector<1x16xf32>,
    %cst_71 = arith.constant dense<0.000000e+00> : vector<1x2xf32>
    %113 = tpu.matmul %111, %3, %cst_71 {dimension_numbers = #tpu.dot_dimension_numbers<[1], [0], [0], [1], [0, 0, 1, 1], [], []>} : vector<1x16xf32>, vector<16x2xf32>, vector<1x2xf32> -> vector<1x2xf32>
    %114 = arith.addf %113, %4 : vector<1x2xf32>
    %115 = vector.extract_strided_slice %114 {offsets = [0, 0], sizes = [1, 1], strides = [1, 1]} : vector<1x2xf32> to vector<1x1xf32>
    %c0_72 = arith.constant 0 : index
    %c7 = arith.constant 7 : index
    %116 = vector.load %arg22[%c0_72, %c7] : memref<2x18xf32, #tpu.memory_space<vmem>>, vector<1x1xf32>
    tpu.vector_store %arg22[%c0_72, %c7], %115 {strides = array<i32>} : memref<2x18xf32, #tpu.memory_space<vmem>>, vector<1x1xf32>,
    %117 = vector.extract_strided_slice %114 {offsets = [0, 1], sizes = [1, 1], strides = [1, 1]} : vector<1x2xf32> to vector<1x1xf32>
    %c0_73 = arith.constant 0 : index
    %c7_74 = arith.constant 7 : index
    %118 = vector.load %arg23[%c0_73, %c7_74] : memref<2x18xf32, #tpu.memory_space<vmem>>, vector<1x1xf32>
    tpu.vector_store %arg23[%c0_73, %c7_74], %117 {strides = array<i32>} : memref<2x18xf32, #tpu.memory_space<vmem>>, vector<1x1xf32>,
    %119 = vector.extract_strided_slice %13 {offsets = [8, 0], sizes = [1, 16], strides = [1, 1]} : vector<18x16xf32> to vector<1x16xf32>
    %cst_75 = arith.constant dense<0.000000e+00> : vector<1x16xf32>
    %120 = tpu.matmul %109, %1, %cst_75 {dimension_numbers = #tpu.dot_dimension_numbers<[1], [0], [0], [1], [0, 0, 1, 1], [], []>} : vector<1x16xf32>, vector<16x16xf32>, vector<1x16xf32> -> vector<1x16xf32>
    %121 = arith.addf %119, %120 : vector<1x16xf32>
    %122 = math.tanh %121 : vector<1x16xf32>
    %cst_76 = arith.constant 0.000000e+00 : f32
    %123 = vector.broadcast %cst_76 : f32 to vector<1x16xf32>
    %124 = arith.maximumf %122, %123 : vector<1x16xf32>
    %c0_77 = arith.constant 0 : index
    %c128 = arith.constant 128 : index
    %125 = vector.load %arg20[%c0_77, %c128] : memref<2x288xf32, #tpu.memory_space<vmem>>, vector<1x16xf32>
    tpu.vector_store %arg20[%c0_77, %c128], %124 {strides = array<i32>} : memref<2x288xf32, #tpu.memory_space<vmem>>, vector<1x16xf32>,
    %cst_78 = arith.constant dense<0.000000e+00> : vector<1x2xf32>
    %126 = tpu.matmul %124, %3, %cst_78 {dimension_numbers = #tpu.dot_dimension_numbers<[1], [0], [0], [1], [0, 0, 1, 1], [], []>} : vector<1x16xf32>, vector<16x2xf32>, vector<1x2xf32> -> vector<1x2xf32>
    %127 = arith.addf %126, %4 : vector<1x2xf32>
    %128 = vector.extract_strided_slice %127 {offsets = [0, 0], sizes = [1, 1], strides = [1, 1]} : vector<1x2xf32> to vector<1x1xf32>
    %c0_79 = arith.constant 0 : index
    %c8 = arith.constant 8 : index
    %129 = vector.load %arg22[%c0_79, %c8] : memref<2x18xf32, #tpu.memory_space<vmem>>, vector<1x1xf32>
    tpu.vector_store %arg22[%c0_79, %c8], %128 {strides = array<i32>} : memref<2x18xf32, #tpu.memory_space<vmem>>, vector<1x1xf32>,
    %130 = vector.extract_strided_slice %127 {offsets = [0, 1], sizes = [1, 1], strides = [1, 1]} : vector<1x2xf32> to vector<1x1xf32>
    %c0_80 = arith.constant 0 : index
    %c8_81 = arith.constant 8 : index
    %131 = vector.load %arg23[%c0_80, %c8_81] : memref<2x18xf32, #tpu.memory_space<vmem>>, vector<1x1xf32>
    tpu.vector_store %arg23[%c0_80, %c8_81], %130 {strides = array<i32>} : memref<2x18xf32, #tpu.memory_space<vmem>>, vector<1x1xf32>,
    %132 = vector.extract_strided_slice %13 {offsets = [9, 0], sizes = [1, 16], strides = [1, 1]} : vector<18x16xf32> to vector<1x16xf32>
    %cst_82 = arith.constant dense<0.000000e+00> : vector<1x16xf32>
    %133 = tpu.matmul %122, %1, %cst_82 {dimension_numbers = #tpu.dot_dimension_numbers<[1], [0], [0], [1], [0, 0, 1, 1], [], []>} : vector<1x16xf32>, vector<16x16xf32>, vector<1x16xf32> -> vector<1x16xf32>
    %134 = arith.addf %132, %133 : vector<1x16xf32>
    %135 = math.tanh %134 : vector<1x16xf32>
    %cst_83 = arith.constant 0.000000e+00 : f32
    %136 = vector.broadcast %cst_83 : f32 to vector<1x16xf32>
    %137 = arith.maximumf %135, %136 : vector<1x16xf32>
    %c0_84 = arith.constant 0 : index
    %c144 = arith.constant 144 : index
    %138 = vector.load %arg20[%c0_84, %c144] : memref<2x288xf32, #tpu.memory_space<vmem>>, vector<1x16xf32>
    tpu.vector_store %arg20[%c0_84, %c144], %137 {strides = array<i32>} : memref<2x288xf32, #tpu.memory_space<vmem>>, vector<1x16xf32>,
    %cst_85 = arith.constant dense<0.000000e+00> : vector<1x2xf32>
    %139 = tpu.matmul %137, %3, %cst_85 {dimension_numbers = #tpu.dot_dimension_numbers<[1], [0], [0], [1], [0, 0, 1, 1], [], []>} : vector<1x16xf32>, vector<16x2xf32>, vector<1x2xf32> -> vector<1x2xf32>
    %140 = arith.addf %139, %4 : vector<1x2xf32>
    %141 = vector.extract_strided_slice %140 {offsets = [0, 0], sizes = [1, 1], strides = [1, 1]} : vector<1x2xf32> to vector<1x1xf32>
    %c0_86 = arith.constant 0 : index
    %c9 = arith.constant 9 : index
    %142 = vector.load %arg22[%c0_86, %c9] : memref<2x18xf32, #tpu.memory_space<vmem>>, vector<1x1xf32>
    tpu.vector_store %arg22[%c0_86, %c9], %141 {strides = array<i32>} : memref<2x18xf32, #tpu.memory_space<vmem>>, vector<1x1xf32>,
    %143 = vector.extract_strided_slice %140 {offsets = [0, 1], sizes = [1, 1], strides = [1, 1]} : vector<1x2xf32> to vector<1x1xf32>
    %c0_87 = arith.constant 0 : index
    %c9_88 = arith.constant 9 : index
    %144 = vector.load %arg23[%c0_87, %c9_88] : memref<2x18xf32, #tpu.memory_space<vmem>>, vector<1x1xf32>
    tpu.vector_store %arg23[%c0_87, %c9_88], %143 {strides = array<i32>} : memref<2x18xf32, #tpu.memory_space<vmem>>, vector<1x1xf32>,
    %145 = vector.extract_strided_slice %13 {offsets = [10, 0], sizes = [1, 16], strides = [1, 1]} : vector<18x16xf32> to vector<1x16xf32>
    %cst_89 = arith.constant dense<0.000000e+00> : vector<1x16xf32>
    %146 = tpu.matmul %135, %1, %cst_89 {dimension_numbers = #tpu.dot_dimension_numbers<[1], [0], [0], [1], [0, 0, 1, 1], [], []>} : vector<1x16xf32>, vector<16x16xf32>, vector<1x16xf32> -> vector<1x16xf32>
    %147 = arith.addf %145, %146 : vector<1x16xf32>
    %148 = math.tanh %147 : vector<1x16xf32>
    %cst_90 = arith.constant 0.000000e+00 : f32
    %149 = vector.broadcast %cst_90 : f32 to vector<1x16xf32>
    %150 = arith.maximumf %148, %149 : vector<1x16xf32>
    %c0_91 = arith.constant 0 : index
    %c160 = arith.constant 160 : index
    %151 = vector.load %arg20[%c0_91, %c160] : memref<2x288xf32, #tpu.memory_space<vmem>>, vector<1x16xf32>
    tpu.vector_store %arg20[%c0_91, %c160], %150 {strides = array<i32>} : memref<2x288xf32, #tpu.memory_space<vmem>>, vector<1x16xf32>,
    %cst_92 = arith.constant dense<0.000000e+00> : vector<1x2xf32>
    %152 = tpu.matmul %150, %3, %cst_92 {dimension_numbers = #tpu.dot_dimension_numbers<[1], [0], [0], [1], [0, 0, 1, 1], [], []>} : vector<1x16xf32>, vector<16x2xf32>, vector<1x2xf32> -> vector<1x2xf32>
    %153 = arith.addf %152, %4 : vector<1x2xf32>
    %154 = vector.extract_strided_slice %153 {offsets = [0, 0], sizes = [1, 1], strides = [1, 1]} : vector<1x2xf32> to vector<1x1xf32>
    %c0_93 = arith.constant 0 : index
    %c10 = arith.constant 10 : index
    %155 = vector.load %arg22[%c0_93, %c10] : memref<2x18xf32, #tpu.memory_space<vmem>>, vector<1x1xf32>
    tpu.vector_store %arg22[%c0_93, %c10], %154 {strides = array<i32>} : memref<2x18xf32, #tpu.memory_space<vmem>>, vector<1x1xf32>,
    %156 = vector.extract_strided_slice %153 {offsets = [0, 1], sizes = [1, 1], strides = [1, 1]} : vector<1x2xf32> to vector<1x1xf32>
    %c0_94 = arith.constant 0 : index
    %c10_95 = arith.constant 10 : index
    %157 = vector.load %arg23[%c0_94, %c10_95] : memref<2x18xf32, #tpu.memory_space<vmem>>, vector<1x1xf32>
    tpu.vector_store %arg23[%c0_94, %c10_95], %156 {strides = array<i32>} : memref<2x18xf32, #tpu.memory_space<vmem>>, vector<1x1xf32>,
    %158 = vector.extract_strided_slice %13 {offsets = [11, 0], sizes = [1, 16], strides = [1, 1]} : vector<18x16xf32> to vector<1x16xf32>
    %cst_96 = arith.constant dense<0.000000e+00> : vector<1x16xf32>
    %159 = tpu.matmul %148, %1, %cst_96 {dimension_numbers = #tpu.dot_dimension_numbers<[1], [0], [0], [1], [0, 0, 1, 1], [], []>} : vector<1x16xf32>, vector<16x16xf32>, vector<1x16xf32> -> vector<1x16xf32>
    %160 = arith.addf %158, %159 : vector<1x16xf32>
    %161 = math.tanh %160 : vector<1x16xf32>
    %cst_97 = arith.constant 0.000000e+00 : f32
    %162 = vector.broadcast %cst_97 : f32 to vector<1x16xf32>
    %163 = arith.maximumf %161, %162 : vector<1x16xf32>
    %c0_98 = arith.constant 0 : index
    %c176 = arith.constant 176 : index
    %164 = vector.load %arg20[%c0_98, %c176] : memref<2x288xf32, #tpu.memory_space<vmem>>, vector<1x16xf32>
    tpu.vector_store %arg20[%c0_98, %c176], %163 {strides = array<i32>} : memref<2x288xf32, #tpu.memory_space<vmem>>, vector<1x16xf32>,
    %cst_99 = arith.constant dense<0.000000e+00> : vector<1x2xf32>
    %165 = tpu.matmul %163, %3, %cst_99 {dimension_numbers = #tpu.dot_dimension_numbers<[1], [0], [0], [1], [0, 0, 1, 1], [], []>} : vector<1x16xf32>, vector<16x2xf32>, vector<1x2xf32> -> vector<1x2xf32>
    %166 = arith.addf %165, %4 : vector<1x2xf32>
    %167 = vector.extract_strided_slice %166 {offsets = [0, 0], sizes = [1, 1], strides = [1, 1]} : vector<1x2xf32> to vector<1x1xf32>
    %c0_100 = arith.constant 0 : index
    %c11 = arith.constant 11 : index
    %168 = vector.load %arg22[%c0_100, %c11] : memref<2x18xf32, #tpu.memory_space<vmem>>, vector<1x1xf32>
    tpu.vector_store %arg22[%c0_100, %c11], %167 {strides = array<i32>} : memref<2x18xf32, #tpu.memory_space<vmem>>, vector<1x1xf32>,
    %169 = vector.extract_strided_slice %166 {offsets = [0, 1], sizes = [1, 1], strides = [1, 1]} : vector<1x2xf32> to vector<1x1xf32>
    %c0_101 = arith.constant 0 : index
    %c11_102 = arith.constant 11 : index
    %170 = vector.load %arg23[%c0_101, %c11_102] : memref<2x18xf32, #tpu.memory_space<vmem>>, vector<1x1xf32>
    tpu.vector_store %arg23[%c0_101, %c11_102], %169 {strides = array<i32>} : memref<2x18xf32, #tpu.memory_space<vmem>>, vector<1x1xf32>,
    %171 = vector.extract_strided_slice %13 {offsets = [12, 0], sizes = [1, 16], strides = [1, 1]} : vector<18x16xf32> to vector<1x16xf32>
    %cst_103 = arith.constant dense<0.000000e+00> : vector<1x16xf32>
    %172 = tpu.matmul %161, %1, %cst_103 {dimension_numbers = #tpu.dot_dimension_numbers<[1], [0], [0], [1], [0, 0, 1, 1], [], []>} : vector<1x16xf32>, vector<16x16xf32>, vector<1x16xf32> -> vector<1x16xf32>
    %173 = arith.addf %171, %172 : vector<1x16xf32>
    %174 = math.tanh %173 : vector<1x16xf32>
    %cst_104 = arith.constant 0.000000e+00 : f32
    %175 = vector.broadcast %cst_104 : f32 to vector<1x16xf32>
    %176 = arith.maximumf %174, %175 : vector<1x16xf32>
    %c0_105 = arith.constant 0 : index
    %c192 = arith.constant 192 : index
    %177 = vector.load %arg20[%c0_105, %c192] : memref<2x288xf32, #tpu.memory_space<vmem>>, vector<1x16xf32>
    tpu.vector_store %arg20[%c0_105, %c192], %176 {strides = array<i32>} : memref<2x288xf32, #tpu.memory_space<vmem>>, vector<1x16xf32>,
    %cst_106 = arith.constant dense<0.000000e+00> : vector<1x2xf32>
    %178 = tpu.matmul %176, %3, %cst_106 {dimension_numbers = #tpu.dot_dimension_numbers<[1], [0], [0], [1], [0, 0, 1, 1], [], []>} : vector<1x16xf32>, vector<16x2xf32>, vector<1x2xf32> -> vector<1x2xf32>
    %179 = arith.addf %178, %4 : vector<1x2xf32>
    %180 = vector.extract_strided_slice %179 {offsets = [0, 0], sizes = [1, 1], strides = [1, 1]} : vector<1x2xf32> to vector<1x1xf32>
    %c0_107 = arith.constant 0 : index
    %c12 = arith.constant 12 : index
    %181 = vector.load %arg22[%c0_107, %c12] : memref<2x18xf32, #tpu.memory_space<vmem>>, vector<1x1xf32>
    tpu.vector_store %arg22[%c0_107, %c12], %180 {strides = array<i32>} : memref<2x18xf32, #tpu.memory_space<vmem>>, vector<1x1xf32>,
    %182 = vector.extract_strided_slice %179 {offsets = [0, 1], sizes = [1, 1], strides = [1, 1]} : vector<1x2xf32> to vector<1x1xf32>
    %c0_108 = arith.constant 0 : index
    %c12_109 = arith.constant 12 : index
    %183 = vector.load %arg23[%c0_108, %c12_109] : memref<2x18xf32, #tpu.memory_space<vmem>>, vector<1x1xf32>
    tpu.vector_store %arg23[%c0_108, %c12_109], %182 {strides = array<i32>} : memref<2x18xf32, #tpu.memory_space<vmem>>, vector<1x1xf32>,
    %184 = vector.extract_strided_slice %13 {offsets = [13, 0], sizes = [1, 16], strides = [1, 1]} : vector<18x16xf32> to vector<1x16xf32>
    %cst_110 = arith.constant dense<0.000000e+00> : vector<1x16xf32>
    %185 = tpu.matmul %174, %1, %cst_110 {dimension_numbers = #tpu.dot_dimension_numbers<[1], [0], [0], [1], [0, 0, 1, 1], [], []>} : vector<1x16xf32>, vector<16x16xf32>, vector<1x16xf32> -> vector<1x16xf32>
    %186 = arith.addf %184, %185 : vector<1x16xf32>
    %187 = math.tanh %186 : vector<1x16xf32>
    %cst_111 = arith.constant 0.000000e+00 : f32
    %188 = vector.broadcast %cst_111 : f32 to vector<1x16xf32>
    %189 = arith.maximumf %187, %188 : vector<1x16xf32>
    %c0_112 = arith.constant 0 : index
    %c208 = arith.constant 208 : index
    %190 = vector.load %arg20[%c0_112, %c208] : memref<2x288xf32, #tpu.memory_space<vmem>>, vector<1x16xf32>
    tpu.vector_store %arg20[%c0_112, %c208], %189 {strides = array<i32>} : memref<2x288xf32, #tpu.memory_space<vmem>>, vector<1x16xf32>,
    %cst_113 = arith.constant dense<0.000000e+00> : vector<1x2xf32>
    %191 = tpu.matmul %189, %3, %cst_113 {dimension_numbers = #tpu.dot_dimension_numbers<[1], [0], [0], [1], [0, 0, 1, 1], [], []>} : vector<1x16xf32>, vector<16x2xf32>, vector<1x2xf32> -> vector<1x2xf32>
    %192 = arith.addf %191, %4 : vector<1x2xf32>
    %193 = vector.extract_strided_slice %192 {offsets = [0, 0], sizes = [1, 1], strides = [1, 1]} : vector<1x2xf32> to vector<1x1xf32>
    %c0_114 = arith.constant 0 : index
    %c13 = arith.constant 13 : index
    %194 = vector.load %arg22[%c0_114, %c13] : memref<2x18xf32, #tpu.memory_space<vmem>>, vector<1x1xf32>
    tpu.vector_store %arg22[%c0_114, %c13], %193 {strides = array<i32>} : memref<2x18xf32, #tpu.memory_space<vmem>>, vector<1x1xf32>,
    %195 = vector.extract_strided_slice %192 {offsets = [0, 1], sizes = [1, 1], strides = [1, 1]} : vector<1x2xf32> to vector<1x1xf32>
    %c0_115 = arith.constant 0 : index
    %c13_116 = arith.constant 13 : index
    %196 = vector.load %arg23[%c0_115, %c13_116] : memref<2x18xf32, #tpu.memory_space<vmem>>, vector<1x1xf32>
    tpu.vector_store %arg23[%c0_115, %c13_116], %195 {strides = array<i32>} : memref<2x18xf32, #tpu.memory_space<vmem>>, vector<1x1xf32>,
    %197 = vector.extract_strided_slice %13 {offsets = [14, 0], sizes = [1, 16], strides = [1, 1]} : vector<18x16xf32> to vector<1x16xf32>
    %cst_117 = arith.constant dense<0.000000e+00> : vector<1x16xf32>
    %198 = tpu.matmul %187, %1, %cst_117 {dimension_numbers = #tpu.dot_dimension_numbers<[1], [0], [0], [1], [0, 0, 1, 1], [], []>} : vector<1x16xf32>, vector<16x16xf32>, vector<1x16xf32> -> vector<1x16xf32>
    %199 = arith.addf %197, %198 : vector<1x16xf32>
    %200 = math.tanh %199 : vector<1x16xf32>
    %cst_118 = arith.constant 0.000000e+00 : f32
    %201 = vector.broadcast %cst_118 : f32 to vector<1x16xf32>
    %202 = arith.maximumf %200, %201 : vector<1x16xf32>
    %c0_119 = arith.constant 0 : index
    %c224 = arith.constant 224 : index
    %203 = vector.load %arg20[%c0_119, %c224] : memref<2x288xf32, #tpu.memory_space<vmem>>, vector<1x16xf32>
    tpu.vector_store %arg20[%c0_119, %c224], %202 {strides = array<i32>} : memref<2x288xf32, #tpu.memory_space<vmem>>, vector<1x16xf32>,
    %cst_120 = arith.constant dense<0.000000e+00> : vector<1x2xf32>
    %204 = tpu.matmul %202, %3, %cst_120 {dimension_numbers = #tpu.dot_dimension_numbers<[1], [0], [0], [1], [0, 0, 1, 1], [], []>} : vector<1x16xf32>, vector<16x2xf32>, vector<1x2xf32> -> vector<1x2xf32>
    %205 = arith.addf %204, %4 : vector<1x2xf32>
    %206 = vector.extract_strided_slice %205 {offsets = [0, 0], sizes = [1, 1], strides = [1, 1]} : vector<1x2xf32> to vector<1x1xf32>
    %c0_121 = arith.constant 0 : index
    %c14 = arith.constant 14 : index
    %207 = vector.load %arg22[%c0_121, %c14] : memref<2x18xf32, #tpu.memory_space<vmem>>, vector<1x1xf32>
    tpu.vector_store %arg22[%c0_121, %c14], %206 {strides = array<i32>} : memref<2x18xf32, #tpu.memory_space<vmem>>, vector<1x1xf32>,
    %208 = vector.extract_strided_slice %205 {offsets = [0, 1], sizes = [1, 1], strides = [1, 1]} : vector<1x2xf32> to vector<1x1xf32>
    %c0_122 = arith.constant 0 : index
    %c14_123 = arith.constant 14 : index
    %209 = vector.load %arg23[%c0_122, %c14_123] : memref<2x18xf32, #tpu.memory_space<vmem>>, vector<1x1xf32>
    tpu.vector_store %arg23[%c0_122, %c14_123], %208 {strides = array<i32>} : memref<2x18xf32, #tpu.memory_space<vmem>>, vector<1x1xf32>,
    %210 = vector.extract_strided_slice %13 {offsets = [15, 0], sizes = [1, 16], strides = [1, 1]} : vector<18x16xf32> to vector<1x16xf32>
    %cst_124 = arith.constant dense<0.000000e+00> : vector<1x16xf32>
    %211 = tpu.matmul %200, %1, %cst_124 {dimension_numbers = #tpu.dot_dimension_numbers<[1], [0], [0], [1], [0, 0, 1, 1], [], []>} : vector<1x16xf32>, vector<16x16xf32>, vector<1x16xf32> -> vector<1x16xf32>
    %212 = arith.addf %210, %211 : vector<1x16xf32>
    %213 = math.tanh %212 : vector<1x16xf32>
    %cst_125 = arith.constant 0.000000e+00 : f32
    %214 = vector.broadcast %cst_125 : f32 to vector<1x16xf32>
    %215 = arith.maximumf %213, %214 : vector<1x16xf32>
    %c0_126 = arith.constant 0 : index
    %c240 = arith.constant 240 : index
    %216 = vector.load %arg20[%c0_126, %c240] : memref<2x288xf32, #tpu.memory_space<vmem>>, vector<1x16xf32>
    tpu.vector_store %arg20[%c0_126, %c240], %215 {strides = array<i32>} : memref<2x288xf32, #tpu.memory_space<vmem>>, vector<1x16xf32>,
    %cst_127 = arith.constant dense<0.000000e+00> : vector<1x2xf32>
    %217 = tpu.matmul %215, %3, %cst_127 {dimension_numbers = #tpu.dot_dimension_numbers<[1], [0], [0], [1], [0, 0, 1, 1], [], []>} : vector<1x16xf32>, vector<16x2xf32>, vector<1x2xf32> -> vector<1x2xf32>
    %218 = arith.addf %217, %4 : vector<1x2xf32>
    %219 = vector.extract_strided_slice %218 {offsets = [0, 0], sizes = [1, 1], strides = [1, 1]} : vector<1x2xf32> to vector<1x1xf32>
    %c0_128 = arith.constant 0 : index
    %c15 = arith.constant 15 : index
    %220 = vector.load %arg22[%c0_128, %c15] : memref<2x18xf32, #tpu.memory_space<vmem>>, vector<1x1xf32>
    tpu.vector_store %arg22[%c0_128, %c15], %219 {strides = array<i32>} : memref<2x18xf32, #tpu.memory_space<vmem>>, vector<1x1xf32>,
    %221 = vector.extract_strided_slice %218 {offsets = [0, 1], sizes = [1, 1], strides = [1, 1]} : vector<1x2xf32> to vector<1x1xf32>
    %c0_129 = arith.constant 0 : index
    %c15_130 = arith.constant 15 : index
    %222 = vector.load %arg23[%c0_129, %c15_130] : memref<2x18xf32, #tpu.memory_space<vmem>>, vector<1x1xf32>
    tpu.vector_store %arg23[%c0_129, %c15_130], %221 {strides = array<i32>} : memref<2x18xf32, #tpu.memory_space<vmem>>, vector<1x1xf32>,
    %223 = vector.extract_strided_slice %13 {offsets = [16, 0], sizes = [1, 16], strides = [1, 1]} : vector<18x16xf32> to vector<1x16xf32>
    %cst_131 = arith.constant dense<0.000000e+00> : vector<1x16xf32>
    %224 = tpu.matmul %213, %1, %cst_131 {dimension_numbers = #tpu.dot_dimension_numbers<[1], [0], [0], [1], [0, 0, 1, 1], [], []>} : vector<1x16xf32>, vector<16x16xf32>, vector<1x16xf32> -> vector<1x16xf32>
    %225 = arith.addf %223, %224 : vector<1x16xf32>
    %226 = math.tanh %225 : vector<1x16xf32>
    %cst_132 = arith.constant 0.000000e+00 : f32
    %227 = vector.broadcast %cst_132 : f32 to vector<1x16xf32>
    %228 = arith.maximumf %226, %227 : vector<1x16xf32>
    %c0_133 = arith.constant 0 : index
    %c256 = arith.constant 256 : index
    %229 = vector.load %arg20[%c0_133, %c256] : memref<2x288xf32, #tpu.memory_space<vmem>>, vector<1x16xf32>
    tpu.vector_store %arg20[%c0_133, %c256], %228 {strides = array<i32>} : memref<2x288xf32, #tpu.memory_space<vmem>>, vector<1x16xf32>,
    %cst_134 = arith.constant dense<0.000000e+00> : vector<1x2xf32>
    %230 = tpu.matmul %228, %3, %cst_134 {dimension_numbers = #tpu.dot_dimension_numbers<[1], [0], [0], [1], [0, 0, 1, 1], [], []>} : vector<1x16xf32>, vector<16x2xf32>, vector<1x2xf32> -> vector<1x2xf32>
    %231 = arith.addf %230, %4 : vector<1x2xf32>
    %232 = vector.extract_strided_slice %231 {offsets = [0, 0], sizes = [1, 1], strides = [1, 1]} : vector<1x2xf32> to vector<1x1xf32>
    %c0_135 = arith.constant 0 : index
    %c16_136 = arith.constant 16 : index
    %233 = vector.load %arg22[%c0_135, %c16_136] : memref<2x18xf32, #tpu.memory_space<vmem>>, vector<1x1xf32>
    tpu.vector_store %arg22[%c0_135, %c16_136], %232 {strides = array<i32>} : memref<2x18xf32, #tpu.memory_space<vmem>>, vector<1x1xf32>,
    %234 = vector.extract_strided_slice %231 {offsets = [0, 1], sizes = [1, 1], strides = [1, 1]} : vector<1x2xf32> to vector<1x1xf32>
    %c0_137 = arith.constant 0 : index
    %c16_138 = arith.constant 16 : index
    %235 = vector.load %arg23[%c0_137, %c16_138] : memref<2x18xf32, #tpu.memory_space<vmem>>, vector<1x1xf32>
    tpu.vector_store %arg23[%c0_137, %c16_138], %234 {strides = array<i32>} : memref<2x18xf32, #tpu.memory_space<vmem>>, vector<1x1xf32>,
    %236 = vector.extract_strided_slice %13 {offsets = [17, 0], sizes = [1, 16], strides = [1, 1]} : vector<18x16xf32> to vector<1x16xf32>
    %cst_139 = arith.constant dense<0.000000e+00> : vector<1x16xf32>
    %237 = tpu.matmul %226, %1, %cst_139 {dimension_numbers = #tpu.dot_dimension_numbers<[1], [0], [0], [1], [0, 0, 1, 1], [], []>} : vector<1x16xf32>, vector<16x16xf32>, vector<1x16xf32> -> vector<1x16xf32>
    %238 = arith.addf %236, %237 : vector<1x16xf32>
    %239 = math.tanh %238 : vector<1x16xf32>
    %cst_140 = arith.constant 0.000000e+00 : f32
    %240 = vector.broadcast %cst_140 : f32 to vector<1x16xf32>
    %241 = arith.maximumf %239, %240 : vector<1x16xf32>
    %c0_141 = arith.constant 0 : index
    %c272 = arith.constant 272 : index
    %242 = vector.load %arg20[%c0_141, %c272] : memref<2x288xf32, #tpu.memory_space<vmem>>, vector<1x16xf32>
    tpu.vector_store %arg20[%c0_141, %c272], %241 {strides = array<i32>} : memref<2x288xf32, #tpu.memory_space<vmem>>, vector<1x16xf32>,
    %cst_142 = arith.constant dense<0.000000e+00> : vector<1x2xf32>
    %243 = tpu.matmul %241, %3, %cst_142 {dimension_numbers = #tpu.dot_dimension_numbers<[1], [0], [0], [1], [0, 0, 1, 1], [], []>} : vector<1x16xf32>, vector<16x2xf32>, vector<1x2xf32> -> vector<1x2xf32>
    %244 = arith.addf %243, %4 : vector<1x2xf32>
    %245 = vector.extract_strided_slice %244 {offsets = [0, 0], sizes = [1, 1], strides = [1, 1]} : vector<1x2xf32> to vector<1x1xf32>
    %c0_143 = arith.constant 0 : index
    %c17 = arith.constant 17 : index
    %246 = vector.load %arg22[%c0_143, %c17] : memref<2x18xf32, #tpu.memory_space<vmem>>, vector<1x1xf32>
    tpu.vector_store %arg22[%c0_143, %c17], %245 {strides = array<i32>} : memref<2x18xf32, #tpu.memory_space<vmem>>, vector<1x1xf32>,
    %247 = vector.extract_strided_slice %244 {offsets = [0, 1], sizes = [1, 1], strides = [1, 1]} : vector<1x2xf32> to vector<1x1xf32>
    %c0_144 = arith.constant 0 : index
    %c17_145 = arith.constant 17 : index
    %248 = vector.load %arg23[%c0_144, %c17_145] : memref<2x18xf32, #tpu.memory_space<vmem>>, vector<1x1xf32>
    tpu.vector_store %arg23[%c0_144, %c17_145], %247 {strides = array<i32>} : memref<2x18xf32, #tpu.memory_space<vmem>>, vector<1x1xf32>,
    %c1_146 = arith.constant 1 : index
    %c0_147 = arith.constant 0 : index
    %c0_148 = arith.constant 0 : index
    %249 = vector.load %arg1[%c1_146, %c0_147, %c0_148] : memref<2x18x6xf32, #tpu.memory_space<vmem>>, vector<1x18x6xf32>
    %250 = vector.shape_cast %249 : vector<1x18x6xf32> to vector<18x6xf32>
    %cst_149 = arith.constant dense<0.000000e+00> : vector<18x16xf32>
    %251 = tpu.matmul %250, %0, %cst_149 {dimension_numbers = #tpu.dot_dimension_numbers<[1], [0], [0], [1], [0, 0, 1, 1], [], []>} : vector<18x6xf32>, vector<6x16xf32>, vector<18x16xf32> -> vector<18x16xf32>
    %252 = vector.broadcast %2 : vector<1x16xf32> to vector<18x16xf32>
    %253 = arith.addf %251, %252 : vector<18x16xf32>
    %cst_150 = arith.constant 0.000000e+00 : f32
    %254 = vector.broadcast %cst_150 : f32 to vector<1x16xf32>
    %255 = vector.extract_strided_slice %253 {offsets = [0, 0], sizes = [1, 16], strides = [1, 1]} : vector<18x16xf32> to vector<1x16xf32>
    %cst_151 = arith.constant dense<0.000000e+00> : vector<1x16xf32>
    %256 = tpu.matmul %254, %1, %cst_151 {dimension_numbers = #tpu.dot_dimension_numbers<[1], [0], [0], [1], [0, 0, 1, 1], [], []>} : vector<1x16xf32>, vector<16x16xf32>, vector<1x16xf32> -> vector<1x16xf32>
    %257 = arith.addf %255, %256 : vector<1x16xf32>
    %258 = math.tanh %257 : vector<1x16xf32>
    %cst_152 = arith.constant 0.000000e+00 : f32
    %259 = vector.broadcast %cst_152 : f32 to vector<1x16xf32>
    %260 = arith.maximumf %258, %259 : vector<1x16xf32>
    %c1_153 = arith.constant 1 : index
    %c0_154 = arith.constant 0 : index
    %261 = vector.load %arg20[%c1_153, %c0_154] : memref<2x288xf32, #tpu.memory_space<vmem>>, vector<1x16xf32>
    tpu.vector_store %arg20[%c1_153, %c0_154], %260 {strides = array<i32>} : memref<2x288xf32, #tpu.memory_space<vmem>>, vector<1x16xf32>,
    %cst_155 = arith.constant dense<0.000000e+00> : vector<1x2xf32>
    %262 = tpu.matmul %260, %3, %cst_155 {dimension_numbers = #tpu.dot_dimension_numbers<[1], [0], [0], [1], [0, 0, 1, 1], [], []>} : vector<1x16xf32>, vector<16x2xf32>, vector<1x2xf32> -> vector<1x2xf32>
    %263 = arith.addf %262, %4 : vector<1x2xf32>
    %264 = vector.extract_strided_slice %263 {offsets = [0, 0], sizes = [1, 1], strides = [1, 1]} : vector<1x2xf32> to vector<1x1xf32>
    %c1_156 = arith.constant 1 : index
    %c0_157 = arith.constant 0 : index
    %265 = vector.load %arg22[%c1_156, %c0_157] : memref<2x18xf32, #tpu.memory_space<vmem>>, vector<1x1xf32>
    tpu.vector_store %arg22[%c1_156, %c0_157], %264 {strides = array<i32>} : memref<2x18xf32, #tpu.memory_space<vmem>>, vector<1x1xf32>,
    %266 = vector.extract_strided_slice %263 {offsets = [0, 1], sizes = [1, 1], strides = [1, 1]} : vector<1x2xf32> to vector<1x1xf32>
    %c1_158 = arith.constant 1 : index
    %c0_159 = arith.constant 0 : index
    %267 = vector.load %arg23[%c1_158, %c0_159] : memref<2x18xf32, #tpu.memory_space<vmem>>, vector<1x1xf32>
    tpu.vector_store %arg23[%c1_158, %c0_159], %266 {strides = array<i32>} : memref<2x18xf32, #tpu.memory_space<vmem>>, vector<1x1xf32>,
    %268 = vector.extract_strided_slice %253 {offsets = [1, 0], sizes = [1, 16], strides = [1, 1]} : vector<18x16xf32> to vector<1x16xf32>
    %cst_160 = arith.constant dense<0.000000e+00> : vector<1x16xf32>
    %269 = tpu.matmul %258, %1, %cst_160 {dimension_numbers = #tpu.dot_dimension_numbers<[1], [0], [0], [1], [0, 0, 1, 1], [], []>} : vector<1x16xf32>, vector<16x16xf32>, vector<1x16xf32> -> vector<1x16xf32>
    %270 = arith.addf %268, %269 : vector<1x16xf32>
    %271 = math.tanh %270 : vector<1x16xf32>
    %cst_161 = arith.constant 0.000000e+00 : f32
    %272 = vector.broadcast %cst_161 : f32 to vector<1x16xf32>
    %273 = arith.maximumf %271, %272 : vector<1x16xf32>
    %c1_162 = arith.constant 1 : index
    %c16_163 = arith.constant 16 : index
    %274 = vector.load %arg20[%c1_162, %c16_163] : memref<2x288xf32, #tpu.memory_space<vmem>>, vector<1x16xf32>
    tpu.vector_store %arg20[%c1_162, %c16_163], %273 {strides = array<i32>} : memref<2x288xf32, #tpu.memory_space<vmem>>, vector<1x16xf32>,
    %cst_164 = arith.constant dense<0.000000e+00> : vector<1x2xf32>
    %275 = tpu.matmul %273, %3, %cst_164 {dimension_numbers = #tpu.dot_dimension_numbers<[1], [0], [0], [1], [0, 0, 1, 1], [], []>} : vector<1x16xf32>, vector<16x2xf32>, vector<1x2xf32> -> vector<1x2xf32>
    %276 = arith.addf %275, %4 : vector<1x2xf32>
    %277 = vector.extract_strided_slice %276 {offsets = [0, 0], sizes = [1, 1], strides = [1, 1]} : vector<1x2xf32> to vector<1x1xf32>
    %c1_165 = arith.constant 1 : index
    %c1_166 = arith.constant 1 : index
    %278 = vector.load %arg22[%c1_165, %c1_166] : memref<2x18xf32, #tpu.memory_space<vmem>>, vector<1x1xf32>
    tpu.vector_store %arg22[%c1_165, %c1_166], %277 {strides = array<i32>} : memref<2x18xf32, #tpu.memory_space<vmem>>, vector<1x1xf32>,
    %279 = vector.extract_strided_slice %276 {offsets = [0, 1], sizes = [1, 1], strides = [1, 1]} : vector<1x2xf32> to vector<1x1xf32>
    %c1_167 = arith.constant 1 : index
    %c1_168 = arith.constant 1 : index
    %280 = vector.load %arg23[%c1_167, %c1_168] : memref<2x18xf32, #tpu.memory_space<vmem>>, vector<1x1xf32>
    tpu.vector_store %arg23[%c1_167, %c1_168], %279 {strides = array<i32>} : memref<2x18xf32, #tpu.memory_space<vmem>>, vector<1x1xf32>,
    %281 = vector.extract_strided_slice %253 {offsets = [2, 0], sizes = [1, 16], strides = [1, 1]} : vector<18x16xf32> to vector<1x16xf32>
    %cst_169 = arith.constant dense<0.000000e+00> : vector<1x16xf32>
    %282 = tpu.matmul %271, %1, %cst_169 {dimension_numbers = #tpu.dot_dimension_numbers<[1], [0], [0], [1], [0, 0, 1, 1], [], []>} : vector<1x16xf32>, vector<16x16xf32>, vector<1x16xf32> -> vector<1x16xf32>
    %283 = arith.addf %281, %282 : vector<1x16xf32>
    %284 = math.tanh %283 : vector<1x16xf32>
    %cst_170 = arith.constant 0.000000e+00 : f32
    %285 = vector.broadcast %cst_170 : f32 to vector<1x16xf32>
    %286 = arith.maximumf %284, %285 : vector<1x16xf32>
    %c1_171 = arith.constant 1 : index
    %c32_172 = arith.constant 32 : index
    %287 = vector.load %arg20[%c1_171, %c32_172] : memref<2x288xf32, #tpu.memory_space<vmem>>, vector<1x16xf32>
    tpu.vector_store %arg20[%c1_171, %c32_172], %286 {strides = array<i32>} : memref<2x288xf32, #tpu.memory_space<vmem>>, vector<1x16xf32>,
    %cst_173 = arith.constant dense<0.000000e+00> : vector<1x2xf32>
    %288 = tpu.matmul %286, %3, %cst_173 {dimension_numbers = #tpu.dot_dimension_numbers<[1], [0], [0], [1], [0, 0, 1, 1], [], []>} : vector<1x16xf32>, vector<16x2xf32>, vector<1x2xf32> -> vector<1x2xf32>
    %289 = arith.addf %288, %4 : vector<1x2xf32>
    %290 = vector.extract_strided_slice %289 {offsets = [0, 0], sizes = [1, 1], strides = [1, 1]} : vector<1x2xf32> to vector<1x1xf32>
    %c1_174 = arith.constant 1 : index
    %c2_175 = arith.constant 2 : index
    %291 = vector.load %arg22[%c1_174, %c2_175] : memref<2x18xf32, #tpu.memory_space<vmem>>, vector<1x1xf32>
    tpu.vector_store %arg22[%c1_174, %c2_175], %290 {strides = array<i32>} : memref<2x18xf32, #tpu.memory_space<vmem>>, vector<1x1xf32>,
    %292 = vector.extract_strided_slice %289 {offsets = [0, 1], sizes = [1, 1], strides = [1, 1]} : vector<1x2xf32> to vector<1x1xf32>
    %c1_176 = arith.constant 1 : index
    %c2_177 = arith.constant 2 : index
    %293 = vector.load %arg23[%c1_176, %c2_177] : memref<2x18xf32, #tpu.memory_space<vmem>>, vector<1x1xf32>
    tpu.vector_store %arg23[%c1_176, %c2_177], %292 {strides = array<i32>} : memref<2x18xf32, #tpu.memory_space<vmem>>, vector<1x1xf32>,
    %294 = vector.extract_strided_slice %253 {offsets = [3, 0], sizes = [1, 16], strides = [1, 1]} : vector<18x16xf32> to vector<1x16xf32>
    %cst_178 = arith.constant dense<0.000000e+00> : vector<1x16xf32>
    %295 = tpu.matmul %284, %1, %cst_178 {dimension_numbers = #tpu.dot_dimension_numbers<[1], [0], [0], [1], [0, 0, 1, 1], [], []>} : vector<1x16xf32>, vector<16x16xf32>, vector<1x16xf32> -> vector<1x16xf32>
    %296 = arith.addf %294, %295 : vector<1x16xf32>
    %297 = math.tanh %296 : vector<1x16xf32>
    %cst_179 = arith.constant 0.000000e+00 : f32
    %298 = vector.broadcast %cst_179 : f32 to vector<1x16xf32>
    %299 = arith.maximumf %297, %298 : vector<1x16xf32>
    %c1_180 = arith.constant 1 : index
    %c48_181 = arith.constant 48 : index
    %300 = vector.load %arg20[%c1_180, %c48_181] : memref<2x288xf32, #tpu.memory_space<vmem>>, vector<1x16xf32>
    tpu.vector_store %arg20[%c1_180, %c48_181], %299 {strides = array<i32>} : memref<2x288xf32, #tpu.memory_space<vmem>>, vector<1x16xf32>,
    %cst_182 = arith.constant dense<0.000000e+00> : vector<1x2xf32>
    %301 = tpu.matmul %299, %3, %cst_182 {dimension_numbers = #tpu.dot_dimension_numbers<[1], [0], [0], [1], [0, 0, 1, 1], [], []>} : vector<1x16xf32>, vector<16x2xf32>, vector<1x2xf32> -> vector<1x2xf32>
    %302 = arith.addf %301, %4 : vector<1x2xf32>
    %303 = vector.extract_strided_slice %302 {offsets = [0, 0], sizes = [1, 1], strides = [1, 1]} : vector<1x2xf32> to vector<1x1xf32>
    %c1_183 = arith.constant 1 : index
    %c3_184 = arith.constant 3 : index
    %304 = vector.load %arg22[%c1_183, %c3_184] : memref<2x18xf32, #tpu.memory_space<vmem>>, vector<1x1xf32>
    tpu.vector_store %arg22[%c1_183, %c3_184], %303 {strides = array<i32>} : memref<2x18xf32, #tpu.memory_space<vmem>>, vector<1x1xf32>,
    %305 = vector.extract_strided_slice %302 {offsets = [0, 1], sizes = [1, 1], strides = [1, 1]} : vector<1x2xf32> to vector<1x1xf32>
    %c1_185 = arith.constant 1 : index
    %c3_186 = arith.constant 3 : index
    %306 = vector.load %arg23[%c1_185, %c3_186] : memref<2x18xf32, #tpu.memory_space<vmem>>, vector<1x1xf32>
    tpu.vector_store %arg23[%c1_185, %c3_186], %305 {strides = array<i32>} : memref<2x18xf32, #tpu.memory_space<vmem>>, vector<1x1xf32>,
    %307 = vector.extract_strided_slice %253 {offsets = [4, 0], sizes = [1, 16], strides = [1, 1]} : vector<18x16xf32> to vector<1x16xf32>
    %cst_187 = arith.constant dense<0.000000e+00> : vector<1x16xf32>
    %308 = tpu.matmul %297, %1, %cst_187 {dimension_numbers = #tpu.dot_dimension_numbers<[1], [0], [0], [1], [0, 0, 1, 1], [], []>} : vector<1x16xf32>, vector<16x16xf32>, vector<1x16xf32> -> vector<1x16xf32>
    %309 = arith.addf %307, %308 : vector<1x16xf32>
    %310 = math.tanh %309 : vector<1x16xf32>
    %cst_188 = arith.constant 0.000000e+00 : f32
    %311 = vector.broadcast %cst_188 : f32 to vector<1x16xf32>
    %312 = arith.maximumf %310, %311 : vector<1x16xf32>
    %c1_189 = arith.constant 1 : index
    %c64_190 = arith.constant 64 : index
    %313 = vector.load %arg20[%c1_189, %c64_190] : memref<2x288xf32, #tpu.memory_space<vmem>>, vector<1x16xf32>
    tpu.vector_store %arg20[%c1_189, %c64_190], %312 {strides = array<i32>} : memref<2x288xf32, #tpu.memory_space<vmem>>, vector<1x16xf32>,
    %cst_191 = arith.constant dense<0.000000e+00> : vector<1x2xf32>
    %314 = tpu.matmul %312, %3, %cst_191 {dimension_numbers = #tpu.dot_dimension_numbers<[1], [0], [0], [1], [0, 0, 1, 1], [], []>} : vector<1x16xf32>, vector<16x2xf32>, vector<1x2xf32> -> vector<1x2xf32>
    %315 = arith.addf %314, %4 : vector<1x2xf32>
    %316 = vector.extract_strided_slice %315 {offsets = [0, 0], sizes = [1, 1], strides = [1, 1]} : vector<1x2xf32> to vector<1x1xf32>
    %c1_192 = arith.constant 1 : index
    %c4_193 = arith.constant 4 : index
    %317 = vector.load %arg22[%c1_192, %c4_193] : memref<2x18xf32, #tpu.memory_space<vmem>>, vector<1x1xf32>
    tpu.vector_store %arg22[%c1_192, %c4_193], %316 {strides = array<i32>} : memref<2x18xf32, #tpu.memory_space<vmem>>, vector<1x1xf32>,
    %318 = vector.extract_strided_slice %315 {offsets = [0, 1], sizes = [1, 1], strides = [1, 1]} : vector<1x2xf32> to vector<1x1xf32>
    %c1_194 = arith.constant 1 : index
    %c4_195 = arith.constant 4 : index
    %319 = vector.load %arg23[%c1_194, %c4_195] : memref<2x18xf32, #tpu.memory_space<vmem>>, vector<1x1xf32>
    tpu.vector_store %arg23[%c1_194, %c4_195], %318 {strides = array<i32>} : memref<2x18xf32, #tpu.memory_space<vmem>>, vector<1x1xf32>,
    %320 = vector.extract_strided_slice %253 {offsets = [5, 0], sizes = [1, 16], strides = [1, 1]} : vector<18x16xf32> to vector<1x16xf32>
    %cst_196 = arith.constant dense<0.000000e+00> : vector<1x16xf32>
    %321 = tpu.matmul %310, %1, %cst_196 {dimension_numbers = #tpu.dot_dimension_numbers<[1], [0], [0], [1], [0, 0, 1, 1], [], []>} : vector<1x16xf32>, vector<16x16xf32>, vector<1x16xf32> -> vector<1x16xf32>
    %322 = arith.addf %320, %321 : vector<1x16xf32>
    %323 = math.tanh %322 : vector<1x16xf32>
    %cst_197 = arith.constant 0.000000e+00 : f32
    %324 = vector.broadcast %cst_197 : f32 to vector<1x16xf32>
    %325 = arith.maximumf %323, %324 : vector<1x16xf32>
    %c1_198 = arith.constant 1 : index
    %c80_199 = arith.constant 80 : index
    %326 = vector.load %arg20[%c1_198, %c80_199] : memref<2x288xf32, #tpu.memory_space<vmem>>, vector<1x16xf32>
    tpu.vector_store %arg20[%c1_198, %c80_199], %325 {strides = array<i32>} : memref<2x288xf32, #tpu.memory_space<vmem>>, vector<1x16xf32>,
    %cst_200 = arith.constant dense<0.000000e+00> : vector<1x2xf32>
    %327 = tpu.matmul %325, %3, %cst_200 {dimension_numbers = #tpu.dot_dimension_numbers<[1], [0], [0], [1], [0, 0, 1, 1], [], []>} : vector<1x16xf32>, vector<16x2xf32>, vector<1x2xf32> -> vector<1x2xf32>
    %328 = arith.addf %327, %4 : vector<1x2xf32>
    %329 = vector.extract_strided_slice %328 {offsets = [0, 0], sizes = [1, 1], strides = [1, 1]} : vector<1x2xf32> to vector<1x1xf32>
    %c1_201 = arith.constant 1 : index
    %c5_202 = arith.constant 5 : index
    %330 = vector.load %arg22[%c1_201, %c5_202] : memref<2x18xf32, #tpu.memory_space<vmem>>, vector<1x1xf32>
    tpu.vector_store %arg22[%c1_201, %c5_202], %329 {strides = array<i32>} : memref<2x18xf32, #tpu.memory_space<vmem>>, vector<1x1xf32>,
    %331 = vector.extract_strided_slice %328 {offsets = [0, 1], sizes = [1, 1], strides = [1, 1]} : vector<1x2xf32> to vector<1x1xf32>
    %c1_203 = arith.constant 1 : index
    %c5_204 = arith.constant 5 : index
    %332 = vector.load %arg23[%c1_203, %c5_204] : memref<2x18xf32, #tpu.memory_space<vmem>>, vector<1x1xf32>
    tpu.vector_store %arg23[%c1_203, %c5_204], %331 {strides = array<i32>} : memref<2x18xf32, #tpu.memory_space<vmem>>, vector<1x1xf32>,
    %333 = vector.extract_strided_slice %253 {offsets = [6, 0], sizes = [1, 16], strides = [1, 1]} : vector<18x16xf32> to vector<1x16xf32>
    %cst_205 = arith.constant dense<0.000000e+00> : vector<1x16xf32>
    %334 = tpu.matmul %323, %1, %cst_205 {dimension_numbers = #tpu.dot_dimension_numbers<[1], [0], [0], [1], [0, 0, 1, 1], [], []>} : vector<1x16xf32>, vector<16x16xf32>, vector<1x16xf32> -> vector<1x16xf32>
    %335 = arith.addf %333, %334 : vector<1x16xf32>
    %336 = math.tanh %335 : vector<1x16xf32>
    %cst_206 = arith.constant 0.000000e+00 : f32
    %337 = vector.broadcast %cst_206 : f32 to vector<1x16xf32>
    %338 = arith.maximumf %336, %337 : vector<1x16xf32>
    %c1_207 = arith.constant 1 : index
    %c96_208 = arith.constant 96 : index
    %339 = vector.load %arg20[%c1_207, %c96_208] : memref<2x288xf32, #tpu.memory_space<vmem>>, vector<1x16xf32>
    tpu.vector_store %arg20[%c1_207, %c96_208], %338 {strides = array<i32>} : memref<2x288xf32, #tpu.memory_space<vmem>>, vector<1x16xf32>,
    %cst_209 = arith.constant dense<0.000000e+00> : vector<1x2xf32>
    %340 = tpu.matmul %338, %3, %cst_209 {dimension_numbers = #tpu.dot_dimension_numbers<[1], [0], [0], [1], [0, 0, 1, 1], [], []>} : vector<1x16xf32>, vector<16x2xf32>, vector<1x2xf32> -> vector<1x2xf32>
    %341 = arith.addf %340, %4 : vector<1x2xf32>
    %342 = vector.extract_strided_slice %341 {offsets = [0, 0], sizes = [1, 1], strides = [1, 1]} : vector<1x2xf32> to vector<1x1xf32>
    %c1_210 = arith.constant 1 : index
    %c6_211 = arith.constant 6 : index
    %343 = vector.load %arg22[%c1_210, %c6_211] : memref<2x18xf32, #tpu.memory_space<vmem>>, vector<1x1xf32>
    tpu.vector_store %arg22[%c1_210, %c6_211], %342 {strides = array<i32>} : memref<2x18xf32, #tpu.memory_space<vmem>>, vector<1x1xf32>,
    %344 = vector.extract_strided_slice %341 {offsets = [0, 1], sizes = [1, 1], strides = [1, 1]} : vector<1x2xf32> to vector<1x1xf32>
    %c1_212 = arith.constant 1 : index
    %c6_213 = arith.constant 6 : index
    %345 = vector.load %arg23[%c1_212, %c6_213] : memref<2x18xf32, #tpu.memory_space<vmem>>, vector<1x1xf32>
    tpu.vector_store %arg23[%c1_212, %c6_213], %344 {strides = array<i32>} : memref<2x18xf32, #tpu.memory_space<vmem>>, vector<1x1xf32>,
    %346 = vector.extract_strided_slice %253 {offsets = [7, 0], sizes = [1, 16], strides = [1, 1]} : vector<18x16xf32> to vector<1x16xf32>
    %cst_214 = arith.constant dense<0.000000e+00> : vector<1x16xf32>
    %347 = tpu.matmul %336, %1, %cst_214 {dimension_numbers = #tpu.dot_dimension_numbers<[1], [0], [0], [1], [0, 0, 1, 1], [], []>} : vector<1x16xf32>, vector<16x16xf32>, vector<1x16xf32> -> vector<1x16xf32>
    %348 = arith.addf %346, %347 : vector<1x16xf32>
    %349 = math.tanh %348 : vector<1x16xf32>
    %cst_215 = arith.constant 0.000000e+00 : f32
    %350 = vector.broadcast %cst_215 : f32 to vector<1x16xf32>
    %351 = arith.maximumf %349, %350 : vector<1x16xf32>
    %c1_216 = arith.constant 1 : index
    %c112_217 = arith.constant 112 : index
    %352 = vector.load %arg20[%c1_216, %c112_217] : memref<2x288xf32, #tpu.memory_space<vmem>>, vector<1x16xf32>
    tpu.vector_store %arg20[%c1_216, %c112_217], %351 {strides = array<i32>} : memref<2x288xf32, #tpu.memory_space<vmem>>, vector<1x16xf32>,
    %cst_218 = arith.constant dense<0.000000e+00> : vector<1x2xf32>
    %353 = tpu.matmul %351, %3, %cst_218 {dimension_numbers = #tpu.dot_dimension_numbers<[1], [0], [0], [1], [0, 0, 1, 1], [], []>} : vector<1x16xf32>, vector<16x2xf32>, vector<1x2xf32> -> vector<1x2xf32>
    %354 = arith.addf %353, %4 : vector<1x2xf32>
    %355 = vector.extract_strided_slice %354 {offsets = [0, 0], sizes = [1, 1], strides = [1, 1]} : vector<1x2xf32> to vector<1x1xf32>
    %c1_219 = arith.constant 1 : index
    %c7_220 = arith.constant 7 : index
    %356 = vector.load %arg22[%c1_219, %c7_220] : memref<2x18xf32, #tpu.memory_space<vmem>>, vector<1x1xf32>
    tpu.vector_store %arg22[%c1_219, %c7_220], %355 {strides = array<i32>} : memref<2x18xf32, #tpu.memory_space<vmem>>, vector<1x1xf32>,
    %357 = vector.extract_strided_slice %354 {offsets = [0, 1], sizes = [1, 1], strides = [1, 1]} : vector<1x2xf32> to vector<1x1xf32>
    %c1_221 = arith.constant 1 : index
    %c7_222 = arith.constant 7 : index
    %358 = vector.load %arg23[%c1_221, %c7_222] : memref<2x18xf32, #tpu.memory_space<vmem>>, vector<1x1xf32>
    tpu.vector_store %arg23[%c1_221, %c7_222], %357 {strides = array<i32>} : memref<2x18xf32, #tpu.memory_space<vmem>>, vector<1x1xf32>,
    %359 = vector.extract_strided_slice %253 {offsets = [8, 0], sizes = [1, 16], strides = [1, 1]} : vector<18x16xf32> to vector<1x16xf32>
    %cst_223 = arith.constant dense<0.000000e+00> : vector<1x16xf32>
    %360 = tpu.matmul %349, %1, %cst_223 {dimension_numbers = #tpu.dot_dimension_numbers<[1], [0], [0], [1], [0, 0, 1, 1], [], []>} : vector<1x16xf32>, vector<16x16xf32>, vector<1x16xf32> -> vector<1x16xf32>
    %361 = arith.addf %359, %360 : vector<1x16xf32>
    %362 = math.tanh %361 : vector<1x16xf32>
    %cst_224 = arith.constant 0.000000e+00 : f32
    %363 = vector.broadcast %cst_224 : f32 to vector<1x16xf32>
    %364 = arith.maximumf %362, %363 : vector<1x16xf32>
    %c1_225 = arith.constant 1 : index
    %c128_226 = arith.constant 128 : index
    %365 = vector.load %arg20[%c1_225, %c128_226] : memref<2x288xf32, #tpu.memory_space<vmem>>, vector<1x16xf32>
    tpu.vector_store %arg20[%c1_225, %c128_226], %364 {strides = array<i32>} : memref<2x288xf32, #tpu.memory_space<vmem>>, vector<1x16xf32>,
    %cst_227 = arith.constant dense<0.000000e+00> : vector<1x2xf32>
    %366 = tpu.matmul %364, %3, %cst_227 {dimension_numbers = #tpu.dot_dimension_numbers<[1], [0], [0], [1], [0, 0, 1, 1], [], []>} : vector<1x16xf32>, vector<16x2xf32>, vector<1x2xf32> -> vector<1x2xf32>
    %367 = arith.addf %366, %4 : vector<1x2xf32>
    %368 = vector.extract_strided_slice %367 {offsets = [0, 0], sizes = [1, 1], strides = [1, 1]} : vector<1x2xf32> to vector<1x1xf32>
    %c1_228 = arith.constant 1 : index
    %c8_229 = arith.constant 8 : index
    %369 = vector.load %arg22[%c1_228, %c8_229] : memref<2x18xf32, #tpu.memory_space<vmem>>, vector<1x1xf32>
    tpu.vector_store %arg22[%c1_228, %c8_229], %368 {strides = array<i32>} : memref<2x18xf32, #tpu.memory_space<vmem>>, vector<1x1xf32>,
    %370 = vector.extract_strided_slice %367 {offsets = [0, 1], sizes = [1, 1], strides = [1, 1]} : vector<1x2xf32> to vector<1x1xf32>
    %c1_230 = arith.constant 1 : index
    %c8_231 = arith.constant 8 : index
    %371 = vector.load %arg23[%c1_230, %c8_231] : memref<2x18xf32, #tpu.memory_space<vmem>>, vector<1x1xf32>
    tpu.vector_store %arg23[%c1_230, %c8_231], %370 {strides = array<i32>} : memref<2x18xf32, #tpu.memory_space<vmem>>, vector<1x1xf32>,
    %372 = vector.extract_strided_slice %253 {offsets = [9, 0], sizes = [1, 16], strides = [1, 1]} : vector<18x16xf32> to vector<1x16xf32>
    %cst_232 = arith.constant dense<0.000000e+00> : vector<1x16xf32>
    %373 = tpu.matmul %362, %1, %cst_232 {dimension_numbers = #tpu.dot_dimension_numbers<[1], [0], [0], [1], [0, 0, 1, 1], [], []>} : vector<1x16xf32>, vector<16x16xf32>, vector<1x16xf32> -> vector<1x16xf32>
    %374 = arith.addf %372, %373 : vector<1x16xf32>
    %375 = math.tanh %374 : vector<1x16xf32>
    %cst_233 = arith.constant 0.000000e+00 : f32
    %376 = vector.broadcast %cst_233 : f32 to vector<1x16xf32>
    %377 = arith.maximumf %375, %376 : vector<1x16xf32>
    %c1_234 = arith.constant 1 : index
    %c144_235 = arith.constant 144 : index
    %378 = vector.load %arg20[%c1_234, %c144_235] : memref<2x288xf32, #tpu.memory_space<vmem>>, vector<1x16xf32>
    tpu.vector_store %arg20[%c1_234, %c144_235], %377 {strides = array<i32>} : memref<2x288xf32, #tpu.memory_space<vmem>>, vector<1x16xf32>,
    %cst_236 = arith.constant dense<0.000000e+00> : vector<1x2xf32>
    %379 = tpu.matmul %377, %3, %cst_236 {dimension_numbers = #tpu.dot_dimension_numbers<[1], [0], [0], [1], [0, 0, 1, 1], [], []>} : vector<1x16xf32>, vector<16x2xf32>, vector<1x2xf32> -> vector<1x2xf32>
    %380 = arith.addf %379, %4 : vector<1x2xf32>
    %381 = vector.extract_strided_slice %380 {offsets = [0, 0], sizes = [1, 1], strides = [1, 1]} : vector<1x2xf32> to vector<1x1xf32>
    %c1_237 = arith.constant 1 : index
    %c9_238 = arith.constant 9 : index
    %382 = vector.load %arg22[%c1_237, %c9_238] : memref<2x18xf32, #tpu.memory_space<vmem>>, vector<1x1xf32>
    tpu.vector_store %arg22[%c1_237, %c9_238], %381 {strides = array<i32>} : memref<2x18xf32, #tpu.memory_space<vmem>>, vector<1x1xf32>,
    %383 = vector.extract_strided_slice %380 {offsets = [0, 1], sizes = [1, 1], strides = [1, 1]} : vector<1x2xf32> to vector<1x1xf32>
    %c1_239 = arith.constant 1 : index
    %c9_240 = arith.constant 9 : index
    %384 = vector.load %arg23[%c1_239, %c9_240] : memref<2x18xf32, #tpu.memory_space<vmem>>, vector<1x1xf32>
    tpu.vector_store %arg23[%c1_239, %c9_240], %383 {strides = array<i32>} : memref<2x18xf32, #tpu.memory_space<vmem>>, vector<1x1xf32>,
    %385 = vector.extract_strided_slice %253 {offsets = [10, 0], sizes = [1, 16], strides = [1, 1]} : vector<18x16xf32> to vector<1x16xf32>
    %cst_241 = arith.constant dense<0.000000e+00> : vector<1x16xf32>
    %386 = tpu.matmul %375, %1, %cst_241 {dimension_numbers = #tpu.dot_dimension_numbers<[1], [0], [0], [1], [0, 0, 1, 1], [], []>} : vector<1x16xf32>, vector<16x16xf32>, vector<1x16xf32> -> vector<1x16xf32>
    %387 = arith.addf %385, %386 : vector<1x16xf32>
    %388 = math.tanh %387 : vector<1x16xf32>
    %cst_242 = arith.constant 0.000000e+00 : f32
    %389 = vector.broadcast %cst_242 : f32 to vector<1x16xf32>
    %390 = arith.maximumf %388, %389 : vector<1x16xf32>
    %c1_243 = arith.constant 1 : index
    %c160_244 = arith.constant 160 : index
    %391 = vector.load %arg20[%c1_243, %c160_244] : memref<2x288xf32, #tpu.memory_space<vmem>>, vector<1x16xf32>
    tpu.vector_store %arg20[%c1_243, %c160_244], %390 {strides = array<i32>} : memref<2x288xf32, #tpu.memory_space<vmem>>, vector<1x16xf32>,
    %cst_245 = arith.constant dense<0.000000e+00> : vector<1x2xf32>
    %392 = tpu.matmul %390, %3, %cst_245 {dimension_numbers = #tpu.dot_dimension_numbers<[1], [0], [0], [1], [0, 0, 1, 1], [], []>} : vector<1x16xf32>, vector<16x2xf32>, vector<1x2xf32> -> vector<1x2xf32>
    %393 = arith.addf %392, %4 : vector<1x2xf32>
    %394 = vector.extract_strided_slice %393 {offsets = [0, 0], sizes = [1, 1], strides = [1, 1]} : vector<1x2xf32> to vector<1x1xf32>
    %c1_246 = arith.constant 1 : index
    %c10_247 = arith.constant 10 : index
    %395 = vector.load %arg22[%c1_246, %c10_247] : memref<2x18xf32, #tpu.memory_space<vmem>>, vector<1x1xf32>
    tpu.vector_store %arg22[%c1_246, %c10_247], %394 {strides = array<i32>} : memref<2x18xf32, #tpu.memory_space<vmem>>, vector<1x1xf32>,
    %396 = vector.extract_strided_slice %393 {offsets = [0, 1], sizes = [1, 1], strides = [1, 1]} : vector<1x2xf32> to vector<1x1xf32>
    %c1_248 = arith.constant 1 : index
    %c10_249 = arith.constant 10 : index
    %397 = vector.load %arg23[%c1_248, %c10_249] : memref<2x18xf32, #tpu.memory_space<vmem>>, vector<1x1xf32>
    tpu.vector_store %arg23[%c1_248, %c10_249], %396 {strides = array<i32>} : memref<2x18xf32, #tpu.memory_space<vmem>>, vector<1x1xf32>,
    %398 = vector.extract_strided_slice %253 {offsets = [11, 0], sizes = [1, 16], strides = [1, 1]} : vector<18x16xf32> to vector<1x16xf32>
    %cst_250 = arith.constant dense<0.000000e+00> : vector<1x16xf32>
    %399 = tpu.matmul %388, %1, %cst_250 {dimension_numbers = #tpu.dot_dimension_numbers<[1], [0], [0], [1], [0, 0, 1, 1], [], []>} : vector<1x16xf32>, vector<16x16xf32>, vector<1x16xf32> -> vector<1x16xf32>
    %400 = arith.addf %398, %399 : vector<1x16xf32>
    %401 = math.tanh %400 : vector<1x16xf32>
    %cst_251 = arith.constant 0.000000e+00 : f32
    %402 = vector.broadcast %cst_251 : f32 to vector<1x16xf32>
    %403 = arith.maximumf %401, %402 : vector<1x16xf32>
    %c1_252 = arith.constant 1 : index
    %c176_253 = arith.constant 176 : index
    %404 = vector.load %arg20[%c1_252, %c176_253] : memref<2x288xf32, #tpu.memory_space<vmem>>, vector<1x16xf32>
    tpu.vector_store %arg20[%c1_252, %c176_253], %403 {strides = array<i32>} : memref<2x288xf32, #tpu.memory_space<vmem>>, vector<1x16xf32>,
    %cst_254 = arith.constant dense<0.000000e+00> : vector<1x2xf32>
    %405 = tpu.matmul %403, %3, %cst_254 {dimension_numbers = #tpu.dot_dimension_numbers<[1], [0], [0], [1], [0, 0, 1, 1], [], []>} : vector<1x16xf32>, vector<16x2xf32>, vector<1x2xf32> -> vector<1x2xf32>
    %406 = arith.addf %405, %4 : vector<1x2xf32>
    %407 = vector.extract_strided_slice %406 {offsets = [0, 0], sizes = [1, 1], strides = [1, 1]} : vector<1x2xf32> to vector<1x1xf32>
    %c1_255 = arith.constant 1 : index
    %c11_256 = arith.constant 11 : index
    %408 = vector.load %arg22[%c1_255, %c11_256] : memref<2x18xf32, #tpu.memory_space<vmem>>, vector<1x1xf32>
    tpu.vector_store %arg22[%c1_255, %c11_256], %407 {strides = array<i32>} : memref<2x18xf32, #tpu.memory_space<vmem>>, vector<1x1xf32>,
    %409 = vector.extract_strided_slice %406 {offsets = [0, 1], sizes = [1, 1], strides = [1, 1]} : vector<1x2xf32> to vector<1x1xf32>
    %c1_257 = arith.constant 1 : index
    %c11_258 = arith.constant 11 : index
    %410 = vector.load %arg23[%c1_257, %c11_258] : memref<2x18xf32, #tpu.memory_space<vmem>>, vector<1x1xf32>
    tpu.vector_store %arg23[%c1_257, %c11_258], %409 {strides = array<i32>} : memref<2x18xf32, #tpu.memory_space<vmem>>, vector<1x1xf32>,
    %411 = vector.extract_strided_slice %253 {offsets = [12, 0], sizes = [1, 16], strides = [1, 1]} : vector<18x16xf32> to vector<1x16xf32>
    %cst_259 = arith.constant dense<0.000000e+00> : vector<1x16xf32>
    %412 = tpu.matmul %401, %1, %cst_259 {dimension_numbers = #tpu.dot_dimension_numbers<[1], [0], [0], [1], [0, 0, 1, 1], [], []>} : vector<1x16xf32>, vector<16x16xf32>, vector<1x16xf32> -> vector<1x16xf32>
    %413 = arith.addf %411, %412 : vector<1x16xf32>
    %414 = math.tanh %413 : vector<1x16xf32>
    %cst_260 = arith.constant 0.000000e+00 : f32
    %415 = vector.broadcast %cst_260 : f32 to vector<1x16xf32>
    %416 = arith.maximumf %414, %415 : vector<1x16xf32>
    %c1_261 = arith.constant 1 : index
    %c192_262 = arith.constant 192 : index
    %417 = vector.load %arg20[%c1_261, %c192_262] : memref<2x288xf32, #tpu.memory_space<vmem>>, vector<1x16xf32>
    tpu.vector_store %arg20[%c1_261, %c192_262], %416 {strides = array<i32>} : memref<2x288xf32, #tpu.memory_space<vmem>>, vector<1x16xf32>,
    %cst_263 = arith.constant dense<0.000000e+00> : vector<1x2xf32>
    %418 = tpu.matmul %416, %3, %cst_263 {dimension_numbers = #tpu.dot_dimension_numbers<[1], [0], [0], [1], [0, 0, 1, 1], [], []>} : vector<1x16xf32>, vector<16x2xf32>, vector<1x2xf32> -> vector<1x2xf32>
    %419 = arith.addf %418, %4 : vector<1x2xf32>
    %420 = vector.extract_strided_slice %419 {offsets = [0, 0], sizes = [1, 1], strides = [1, 1]} : vector<1x2xf32> to vector<1x1xf32>
    %c1_264 = arith.constant 1 : index
    %c12_265 = arith.constant 12 : index
    %421 = vector.load %arg22[%c1_264, %c12_265] : memref<2x18xf32, #tpu.memory_space<vmem>>, vector<1x1xf32>
    tpu.vector_store %arg22[%c1_264, %c12_265], %420 {strides = array<i32>} : memref<2x18xf32, #tpu.memory_space<vmem>>, vector<1x1xf32>,
    %422 = vector.extract_strided_slice %419 {offsets = [0, 1], sizes = [1, 1], strides = [1, 1]} : vector<1x2xf32> to vector<1x1xf32>
    %c1_266 = arith.constant 1 : index
    %c12_267 = arith.constant 12 : index
    %423 = vector.load %arg23[%c1_266, %c12_267] : memref<2x18xf32, #tpu.memory_space<vmem>>, vector<1x1xf32>
    tpu.vector_store %arg23[%c1_266, %c12_267], %422 {strides = array<i32>} : memref<2x18xf32, #tpu.memory_space<vmem>>, vector<1x1xf32>,
    %424 = vector.extract_strided_slice %253 {offsets = [13, 0], sizes = [1, 16], strides = [1, 1]} : vector<18x16xf32> to vector<1x16xf32>
    %cst_268 = arith.constant dense<0.000000e+00> : vector<1x16xf32>
    %425 = tpu.matmul %414, %1, %cst_268 {dimension_numbers = #tpu.dot_dimension_numbers<[1], [0], [0], [1], [0, 0, 1, 1], [], []>} : vector<1x16xf32>, vector<16x16xf32>, vector<1x16xf32> -> vector<1x16xf32>
    %426 = arith.addf %424, %425 : vector<1x16xf32>
    %427 = math.tanh %426 : vector<1x16xf32>
    %cst_269 = arith.constant 0.000000e+00 : f32
    %428 = vector.broadcast %cst_269 : f32 to vector<1x16xf32>
    %429 = arith.maximumf %427, %428 : vector<1x16xf32>
    %c1_270 = arith.constant 1 : index
    %c208_271 = arith.constant 208 : index
    %430 = vector.load %arg20[%c1_270, %c208_271] : memref<2x288xf32, #tpu.memory_space<vmem>>, vector<1x16xf32>
    tpu.vector_store %arg20[%c1_270, %c208_271], %429 {strides = array<i32>} : memref<2x288xf32, #tpu.memory_space<vmem>>, vector<1x16xf32>,
    %cst_272 = arith.constant dense<0.000000e+00> : vector<1x2xf32>
    %431 = tpu.matmul %429, %3, %cst_272 {dimension_numbers = #tpu.dot_dimension_numbers<[1], [0], [0], [1], [0, 0, 1, 1], [], []>} : vector<1x16xf32>, vector<16x2xf32>, vector<1x2xf32> -> vector<1x2xf32>
    %432 = arith.addf %431, %4 : vector<1x2xf32>
    %433 = vector.extract_strided_slice %432 {offsets = [0, 0], sizes = [1, 1], strides = [1, 1]} : vector<1x2xf32> to vector<1x1xf32>
    %c1_273 = arith.constant 1 : index
    %c13_274 = arith.constant 13 : index
    %434 = vector.load %arg22[%c1_273, %c13_274] : memref<2x18xf32, #tpu.memory_space<vmem>>, vector<1x1xf32>
    tpu.vector_store %arg22[%c1_273, %c13_274], %433 {strides = array<i32>} : memref<2x18xf32, #tpu.memory_space<vmem>>, vector<1x1xf32>,
    %435 = vector.extract_strided_slice %432 {offsets = [0, 1], sizes = [1, 1], strides = [1, 1]} : vector<1x2xf32> to vector<1x1xf32>
    %c1_275 = arith.constant 1 : index
    %c13_276 = arith.constant 13 : index
    %436 = vector.load %arg23[%c1_275, %c13_276] : memref<2x18xf32, #tpu.memory_space<vmem>>, vector<1x1xf32>
    tpu.vector_store %arg23[%c1_275, %c13_276], %435 {strides = array<i32>} : memref<2x18xf32, #tpu.memory_space<vmem>>, vector<1x1xf32>,
    %437 = vector.extract_strided_slice %253 {offsets = [14, 0], sizes = [1, 16], strides = [1, 1]} : vector<18x16xf32> to vector<1x16xf32>
    %cst_277 = arith.constant dense<0.000000e+00> : vector<1x16xf32>
    %438 = tpu.matmul %427, %1, %cst_277 {dimension_numbers = #tpu.dot_dimension_numbers<[1], [0], [0], [1], [0, 0, 1, 1], [], []>} : vector<1x16xf32>, vector<16x16xf32>, vector<1x16xf32> -> vector<1x16xf32>
    %439 = arith.addf %437, %438 : vector<1x16xf32>
    %440 = math.tanh %439 : vector<1x16xf32>
    %cst_278 = arith.constant 0.000000e+00 : f32
    %441 = vector.broadcast %cst_278 : f32 to vector<1x16xf32>
    %442 = arith.maximumf %440, %441 : vector<1x16xf32>
    %c1_279 = arith.constant 1 : index
    %c224_280 = arith.constant 224 : index
    %443 = vector.load %arg20[%c1_279, %c224_280] : memref<2x288xf32, #tpu.memory_space<vmem>>, vector<1x16xf32>
    tpu.vector_store %arg20[%c1_279, %c224_280], %442 {strides = array<i32>} : memref<2x288xf32, #tpu.memory_space<vmem>>, vector<1x16xf32>,
    %cst_281 = arith.constant dense<0.000000e+00> : vector<1x2xf32>
    %444 = tpu.matmul %442, %3, %cst_281 {dimension_numbers = #tpu.dot_dimension_numbers<[1], [0], [0], [1], [0, 0, 1, 1], [], []>} : vector<1x16xf32>, vector<16x2xf32>, vector<1x2xf32> -> vector<1x2xf32>
    %445 = arith.addf %444, %4 : vector<1x2xf32>
    %446 = vector.extract_strided_slice %445 {offsets = [0, 0], sizes = [1, 1], strides = [1, 1]} : vector<1x2xf32> to vector<1x1xf32>
    %c1_282 = arith.constant 1 : index
    %c14_283 = arith.constant 14 : index
    %447 = vector.load %arg22[%c1_282, %c14_283] : memref<2x18xf32, #tpu.memory_space<vmem>>, vector<1x1xf32>
    tpu.vector_store %arg22[%c1_282, %c14_283], %446 {strides = array<i32>} : memref<2x18xf32, #tpu.memory_space<vmem>>, vector<1x1xf32>,
    %448 = vector.extract_strided_slice %445 {offsets = [0, 1], sizes = [1, 1], strides = [1, 1]} : vector<1x2xf32> to vector<1x1xf32>
    %c1_284 = arith.constant 1 : index
    %c14_285 = arith.constant 14 : index
    %449 = vector.load %arg23[%c1_284, %c14_285] : memref<2x18xf32, #tpu.memory_space<vmem>>, vector<1x1xf32>
    tpu.vector_store %arg23[%c1_284, %c14_285], %448 {strides = array<i32>} : memref<2x18xf32, #tpu.memory_space<vmem>>, vector<1x1xf32>,
    %450 = vector.extract_strided_slice %253 {offsets = [15, 0], sizes = [1, 16], strides = [1, 1]} : vector<18x16xf32> to vector<1x16xf32>
    %cst_286 = arith.constant dense<0.000000e+00> : vector<1x16xf32>
    %451 = tpu.matmul %440, %1, %cst_286 {dimension_numbers = #tpu.dot_dimension_numbers<[1], [0], [0], [1], [0, 0, 1, 1], [], []>} : vector<1x16xf32>, vector<16x16xf32>, vector<1x16xf32> -> vector<1x16xf32>
    %452 = arith.addf %450, %451 : vector<1x16xf32>
    %453 = math.tanh %452 : vector<1x16xf32>
    %cst_287 = arith.constant 0.000000e+00 : f32
    %454 = vector.broadcast %cst_287 : f32 to vector<1x16xf32>
    %455 = arith.maximumf %453, %454 : vector<1x16xf32>
    %c1_288 = arith.constant 1 : index
    %c240_289 = arith.constant 240 : index
    %456 = vector.load %arg20[%c1_288, %c240_289] : memref<2x288xf32, #tpu.memory_space<vmem>>, vector<1x16xf32>
    tpu.vector_store %arg20[%c1_288, %c240_289], %455 {strides = array<i32>} : memref<2x288xf32, #tpu.memory_space<vmem>>, vector<1x16xf32>,
    %cst_290 = arith.constant dense<0.000000e+00> : vector<1x2xf32>
    %457 = tpu.matmul %455, %3, %cst_290 {dimension_numbers = #tpu.dot_dimension_numbers<[1], [0], [0], [1], [0, 0, 1, 1], [], []>} : vector<1x16xf32>, vector<16x2xf32>, vector<1x2xf32> -> vector<1x2xf32>
    %458 = arith.addf %457, %4 : vector<1x2xf32>
    %459 = vector.extract_strided_slice %458 {offsets = [0, 0], sizes = [1, 1], strides = [1, 1]} : vector<1x2xf32> to vector<1x1xf32>
    %c1_291 = arith.constant 1 : index
    %c15_292 = arith.constant 15 : index
    %460 = vector.load %arg22[%c1_291, %c15_292] : memref<2x18xf32, #tpu.memory_space<vmem>>, vector<1x1xf32>
    tpu.vector_store %arg22[%c1_291, %c15_292], %459 {strides = array<i32>} : memref<2x18xf32, #tpu.memory_space<vmem>>, vector<1x1xf32>,
    %461 = vector.extract_strided_slice %458 {offsets = [0, 1], sizes = [1, 1], strides = [1, 1]} : vector<1x2xf32> to vector<1x1xf32>
    %c1_293 = arith.constant 1 : index
    %c15_294 = arith.constant 15 : index
    %462 = vector.load %arg23[%c1_293, %c15_294] : memref<2x18xf32, #tpu.memory_space<vmem>>, vector<1x1xf32>
    tpu.vector_store %arg23[%c1_293, %c15_294], %461 {strides = array<i32>} : memref<2x18xf32, #tpu.memory_space<vmem>>, vector<1x1xf32>,
    %463 = vector.extract_strided_slice %253 {offsets = [16, 0], sizes = [1, 16], strides = [1, 1]} : vector<18x16xf32> to vector<1x16xf32>
    %cst_295 = arith.constant dense<0.000000e+00> : vector<1x16xf32>
    %464 = tpu.matmul %453, %1, %cst_295 {dimension_numbers = #tpu.dot_dimension_numbers<[1], [0], [0], [1], [0, 0, 1, 1], [], []>} : vector<1x16xf32>, vector<16x16xf32>, vector<1x16xf32> -> vector<1x16xf32>
    %465 = arith.addf %463, %464 : vector<1x16xf32>
    %466 = math.tanh %465 : vector<1x16xf32>
    %cst_296 = arith.constant 0.000000e+00 : f32
    %467 = vector.broadcast %cst_296 : f32 to vector<1x16xf32>
    %468 = arith.maximumf %466, %467 : vector<1x16xf32>
    %c1_297 = arith.constant 1 : index
    %c256_298 = arith.constant 256 : index
    %469 = vector.load %arg20[%c1_297, %c256_298] : memref<2x288xf32, #tpu.memory_space<vmem>>, vector<1x16xf32>
    tpu.vector_store %arg20[%c1_297, %c256_298], %468 {strides = array<i32>} : memref<2x288xf32, #tpu.memory_space<vmem>>, vector<1x16xf32>,
    %cst_299 = arith.constant dense<0.000000e+00> : vector<1x2xf32>
    %470 = tpu.matmul %468, %3, %cst_299 {dimension_numbers = #tpu.dot_dimension_numbers<[1], [0], [0], [1], [0, 0, 1, 1], [], []>} : vector<1x16xf32>, vector<16x2xf32>, vector<1x2xf32> -> vector<1x2xf32>
    %471 = arith.addf %470, %4 : vector<1x2xf32>
    %472 = vector.extract_strided_slice %471 {offsets = [0, 0], sizes = [1, 1], strides = [1, 1]} : vector<1x2xf32> to vector<1x1xf32>
    %c1_300 = arith.constant 1 : index
    %c16_301 = arith.constant 16 : index
    %473 = vector.load %arg22[%c1_300, %c16_301] : memref<2x18xf32, #tpu.memory_space<vmem>>, vector<1x1xf32>
    tpu.vector_store %arg22[%c1_300, %c16_301], %472 {strides = array<i32>} : memref<2x18xf32, #tpu.memory_space<vmem>>, vector<1x1xf32>,
    %474 = vector.extract_strided_slice %471 {offsets = [0, 1], sizes = [1, 1], strides = [1, 1]} : vector<1x2xf32> to vector<1x1xf32>
    %c1_302 = arith.constant 1 : index
    %c16_303 = arith.constant 16 : index
    %475 = vector.load %arg23[%c1_302, %c16_303] : memref<2x18xf32, #tpu.memory_space<vmem>>, vector<1x1xf32>
    tpu.vector_store %arg23[%c1_302, %c16_303], %474 {strides = array<i32>} : memref<2x18xf32, #tpu.memory_space<vmem>>, vector<1x1xf32>,
    %476 = vector.extract_strided_slice %253 {offsets = [17, 0], sizes = [1, 16], strides = [1, 1]} : vector<18x16xf32> to vector<1x16xf32>
    %cst_304 = arith.constant dense<0.000000e+00> : vector<1x16xf32>
    %477 = tpu.matmul %466, %1, %cst_304 {dimension_numbers = #tpu.dot_dimension_numbers<[1], [0], [0], [1], [0, 0, 1, 1], [], []>} : vector<1x16xf32>, vector<16x16xf32>, vector<1x16xf32> -> vector<1x16xf32>
    %478 = arith.addf %476, %477 : vector<1x16xf32>
    %479 = math.tanh %478 : vector<1x16xf32>
    %cst_305 = arith.constant 0.000000e+00 : f32
    %480 = vector.broadcast %cst_305 : f32 to vector<1x16xf32>
    %481 = arith.maximumf %479, %480 : vector<1x16xf32>
    %c1_306 = arith.constant 1 : index
    %c272_307 = arith.constant 272 : index
    %482 = vector.load %arg20[%c1_306, %c272_307] : memref<2x288xf32, #tpu.memory_space<vmem>>, vector<1x16xf32>
    tpu.vector_store %arg20[%c1_306, %c272_307], %481 {strides = array<i32>} : memref<2x288xf32, #tpu.memory_space<vmem>>, vector<1x16xf32>,
    %cst_308 = arith.constant dense<0.000000e+00> : vector<1x2xf32>
    %483 = tpu.matmul %481, %3, %cst_308 {dimension_numbers = #tpu.dot_dimension_numbers<[1], [0], [0], [1], [0, 0, 1, 1], [], []>} : vector<1x16xf32>, vector<16x2xf32>, vector<1x2xf32> -> vector<1x2xf32>
    %484 = arith.addf %483, %4 : vector<1x2xf32>
    %485 = vector.extract_strided_slice %484 {offsets = [0, 0], sizes = [1, 1], strides = [1, 1]} : vector<1x2xf32> to vector<1x1xf32>
    %c1_309 = arith.constant 1 : index
    %c17_310 = arith.constant 17 : index
    %486 = vector.load %arg22[%c1_309, %c17_310] : memref<2x18xf32, #tpu.memory_space<vmem>>, vector<1x1xf32>
    tpu.vector_store %arg22[%c1_309, %c17_310], %485 {strides = array<i32>} : memref<2x18xf32, #tpu.memory_space<vmem>>, vector<1x1xf32>,
    %487 = vector.extract_strided_slice %484 {offsets = [0, 1], sizes = [1, 1], strides = [1, 1]} : vector<1x2xf32> to vector<1x1xf32>
    %c1_311 = arith.constant 1 : index
    %c17_312 = arith.constant 17 : index
    %488 = vector.load %arg23[%c1_311, %c17_312] : memref<2x18xf32, #tpu.memory_space<vmem>>, vector<1x1xf32>
    tpu.vector_store %arg23[%c1_311, %c17_312], %487 {strides = array<i32>} : memref<2x18xf32, #tpu.memory_space<vmem>>, vector<1x1xf32>,
    %c0_313 = arith.constant 0 : index
    %c0_314 = arith.constant 0 : index
    %c0_315 = arith.constant 0 : index
    %489 = vector.load %arg2[%c0_313, %c0_314, %c0_315] : memref<2x9x8xf32, #tpu.memory_space<vmem>>, vector<1x9x8xf32>
    %490 = vector.shape_cast %489 : vector<1x9x8xf32> to vector<9x8xf32>
    %c0_316 = arith.constant 0 : index
    %c0_317 = arith.constant 0 : index
    %c0_318 = arith.constant 0 : index
    %491 = vector.load %arg10[%c0_316, %c0_317, %c0_318] : memref<2x1x8xf32, #tpu.memory_space<vmem>>, vector<1x1x8xf32>
    %492 = vector.shape_cast %491 : vector<1x1x8xf32> to vector<1x8xf32>
    %c0_319 = arith.constant 0 : index
    %c0_320 = arith.constant 0 : index
    %c0_321 = arith.constant 0 : index
    %493 = vector.load %arg11[%c0_319, %c0_320, %c0_321] : memref<2x1x8xf32, #tpu.memory_space<vmem>>, vector<1x1x8xf32>
    %494 = vector.shape_cast %493 : vector<1x1x8xf32> to vector<1x8xf32>
    %cst_322 = arith.constant dense<0.000000e+00> : vector<9xf32>
    %495 = vector.multi_reduction <add>, %490, %cst_322 [1] : vector<9x8xf32> to vector<9xf32>
    %496 = vector.shape_cast %495 : vector<9xf32> to vector<9x1xf32>
    %cst_323 = arith.constant 8.000000e+00 : f32
    %497 = vector.broadcast %cst_323 : f32 to vector<9x1xf32>
    %498 = arith.divf %496, %497 : vector<9x1xf32>
    %499 = vector.broadcast %498 : vector<9x1xf32> to vector<9x8xf32>
    %500 = arith.subf %490, %499 : vector<9x8xf32>
    %501 = arith.mulf %500, %500 : vector<9x8xf32>
    %cst_324 = arith.constant dense<0.000000e+00> : vector<9xf32>
    %502 = vector.multi_reduction <add>, %501, %cst_324 [1] : vector<9x8xf32> to vector<9xf32>
    %503 = vector.shape_cast %502 : vector<9xf32> to vector<9x1xf32>
    %cst_325 = arith.constant 8.000000e+00 : f32
    %504 = vector.broadcast %cst_325 : f32 to vector<9x1xf32>
    %505 = arith.divf %503, %504 : vector<9x1xf32>
    %506 = vector.broadcast %498 : vector<9x1xf32> to vector<9x8xf32>
    %507 = arith.subf %490, %506 : vector<9x8xf32>
    %cst_326 = arith.constant 9.99999974E-6 : f32
    %508 = vector.broadcast %cst_326 : f32 to vector<9x1xf32>
    %509 = arith.addf %505, %508 : vector<9x1xf32>
    %510 = math.rsqrt %509 : vector<9x1xf32>
    %511 = vector.broadcast %510 : vector<9x1xf32> to vector<9x8xf32>
    %512 = arith.mulf %507, %511 : vector<9x8xf32>
    %513 = vector.broadcast %492 : vector<1x8xf32> to vector<9x8xf32>
    %514 = arith.mulf %512, %513 : vector<9x8xf32>
    %515 = vector.broadcast %494 : vector<1x8xf32> to vector<9x8xf32>
    %516 = arith.addf %514, %515 : vector<9x8xf32>
    %c0_327 = arith.constant 0 : index
    %c0_328 = arith.constant 0 : index
    %c0_329 = arith.constant 0 : index
    %517 = vector.load %arg12[%c0_327, %c0_328, %c0_329] : memref<2x8x24xf32, #tpu.memory_space<vmem>>, vector<1x8x24xf32>
    %518 = vector.shape_cast %517 : vector<1x8x24xf32> to vector<8x24xf32>
    %cst_330 = arith.constant dense<0.000000e+00> : vector<9x24xf32>
    %519 = tpu.matmul %516, %518, %cst_330 {dimension_numbers = #tpu.dot_dimension_numbers<[1], [0], [0], [1], [0, 0, 1, 1], [], []>} : vector<9x8xf32>, vector<8x24xf32>, vector<9x24xf32> -> vector<9x24xf32>
    %520 = vector.extract_strided_slice %519 {offsets = [0, 0], sizes = [9, 8], strides = [1, 1]} : vector<9x24xf32> to vector<9x8xf32>
    %521 = vector.extract_strided_slice %519 {offsets = [0, 8], sizes = [9, 8], strides = [1, 1]} : vector<9x24xf32> to vector<9x8xf32>
    %522 = vector.extract_strided_slice %519 {offsets = [0, 16], sizes = [9, 8], strides = [1, 1]} : vector<9x24xf32> to vector<9x8xf32>
    %523 = tpu.transpose %521, [1, 0] : vector<9x8xf32> -> vector<8x9xf32>
    %cst_331 = arith.constant dense<0.000000e+00> : vector<9x9xf32>
    %524 = tpu.matmul %520, %523, %cst_331 {dimension_numbers = #tpu.dot_dimension_numbers<[1], [0], [0], [1], [0, 0, 1, 1], [], []>} : vector<9x8xf32>, vector<8x9xf32>, vector<9x9xf32> -> vector<9x9xf32>
    %cst_332 = arith.constant 0.353553385 : f32
    %525 = vector.broadcast %cst_332 : f32 to vector<9x9xf32>
    %526 = arith.mulf %524, %525 : vector<9x9xf32>
    %cst_333 = arith.constant dense<0xFF800000> : vector<9xf32>
    %527 = vector.multi_reduction <maximumf>, %526, %cst_333 [1] : vector<9x9xf32> to vector<9xf32>
    %528 = vector.shape_cast %527 : vector<9xf32> to vector<9x1xf32>
    %529 = vector.broadcast %528 : vector<9x1xf32> to vector<9x9xf32>
    %530 = arith.subf %526, %529 : vector<9x9xf32>
    %531 = math.exp %530 : vector<9x9xf32>
    %cst_334 = arith.constant dense<0.000000e+00> : vector<9xf32>
    %532 = vector.multi_reduction <add>, %531, %cst_334 [1] : vector<9x9xf32> to vector<9xf32>
    %533 = vector.shape_cast %532 : vector<9xf32> to vector<9x1xf32>
    %534 = tpu.reciprocal %533 {approx = true} : vector<9x1xf32> -> vector<9x1xf32>
    %535 = vector.broadcast %534 : vector<9x1xf32> to vector<9x9xf32>
    %536 = arith.mulf %531, %535 : vector<9x9xf32>
    %cst_335 = arith.constant dense<0.000000e+00> : vector<9x8xf32>
    %537 = tpu.matmul %536, %522, %cst_335 {dimension_numbers = #tpu.dot_dimension_numbers<[1], [0], [0], [1], [0, 0, 1, 1], [], []>} : vector<9x9xf32>, vector<9x8xf32>, vector<9x8xf32> -> vector<9x8xf32>
    %c0_336 = arith.constant 0 : index
    %c0_337 = arith.constant 0 : index
    %c0_338 = arith.constant 0 : index
    %538 = vector.load %arg13[%c0_336, %c0_337, %c0_338] : memref<2x8x8xf32, #tpu.memory_space<vmem>>, vector<1x8x8xf32>
    %539 = vector.shape_cast %538 : vector<1x8x8xf32> to vector<8x8xf32>
    %cst_339 = arith.constant dense<0.000000e+00> : vector<9x8xf32>
    %540 = tpu.matmul %537, %539, %cst_339 {dimension_numbers = #tpu.dot_dimension_numbers<[1], [0], [0], [1], [0, 0, 1, 1], [], []>} : vector<9x8xf32>, vector<8x8xf32>, vector<9x8xf32> -> vector<9x8xf32>
    %541 = arith.addf %490, %540 : vector<9x8xf32>
    %c0_340 = arith.constant 0 : index
    %c0_341 = arith.constant 0 : index
    %c0_342 = arith.constant 0 : index
    %542 = vector.load %arg14[%c0_340, %c0_341, %c0_342] : memref<2x1x8xf32, #tpu.memory_space<vmem>>, vector<1x1x8xf32>
    %543 = vector.shape_cast %542 : vector<1x1x8xf32> to vector<1x8xf32>
    %c0_343 = arith.constant 0 : index
    %c0_344 = arith.constant 0 : index
    %c0_345 = arith.constant 0 : index
    %544 = vector.load %arg15[%c0_343, %c0_344, %c0_345] : memref<2x1x8xf32, #tpu.memory_space<vmem>>, vector<1x1x8xf32>
    %545 = vector.shape_cast %544 : vector<1x1x8xf32> to vector<1x8xf32>
    %cst_346 = arith.constant dense<0.000000e+00> : vector<9xf32>
    %546 = vector.multi_reduction <add>, %541, %cst_346 [1] : vector<9x8xf32> to vector<9xf32>
    %547 = vector.shape_cast %546 : vector<9xf32> to vector<9x1xf32>
    %cst_347 = arith.constant 8.000000e+00 : f32
    %548 = vector.broadcast %cst_347 : f32 to vector<9x1xf32>
    %549 = arith.divf %547, %548 : vector<9x1xf32>
    %550 = vector.broadcast %549 : vector<9x1xf32> to vector<9x8xf32>
    %551 = arith.subf %541, %550 : vector<9x8xf32>
    %552 = arith.mulf %551, %551 : vector<9x8xf32>
    %cst_348 = arith.constant dense<0.000000e+00> : vector<9xf32>
    %553 = vector.multi_reduction <add>, %552, %cst_348 [1] : vector<9x8xf32> to vector<9xf32>
    %554 = vector.shape_cast %553 : vector<9xf32> to vector<9x1xf32>
    %cst_349 = arith.constant 8.000000e+00 : f32
    %555 = vector.broadcast %cst_349 : f32 to vector<9x1xf32>
    %556 = arith.divf %554, %555 : vector<9x1xf32>
    %557 = vector.broadcast %549 : vector<9x1xf32> to vector<9x8xf32>
    %558 = arith.subf %541, %557 : vector<9x8xf32>
    %cst_350 = arith.constant 9.99999974E-6 : f32
    %559 = vector.broadcast %cst_350 : f32 to vector<9x1xf32>
    %560 = arith.addf %556, %559 : vector<9x1xf32>
    %561 = math.rsqrt %560 : vector<9x1xf32>
    %562 = vector.broadcast %561 : vector<9x1xf32> to vector<9x8xf32>
    %563 = arith.mulf %558, %562 : vector<9x8xf32>
    %564 = vector.broadcast %543 : vector<1x8xf32> to vector<9x8xf32>
    %565 = arith.mulf %563, %564 : vector<9x8xf32>
    %566 = vector.broadcast %545 : vector<1x8xf32> to vector<9x8xf32>
    %567 = arith.addf %565, %566 : vector<9x8xf32>
    %c0_351 = arith.constant 0 : index
    %c0_352 = arith.constant 0 : index
    %c0_353 = arith.constant 0 : index
    %568 = vector.load %arg16[%c0_351, %c0_352, %c0_353] : memref<2x8x32xf32, #tpu.memory_space<vmem>>, vector<1x8x32xf32>
    %569 = vector.shape_cast %568 : vector<1x8x32xf32> to vector<8x32xf32>
    %cst_354 = arith.constant dense<0.000000e+00> : vector<9x32xf32>
    %570 = tpu.matmul %567, %569, %cst_354 {dimension_numbers = #tpu.dot_dimension_numbers<[1], [0], [0], [1], [0, 0, 1, 1], [], []>} : vector<9x8xf32>, vector<8x32xf32>, vector<9x32xf32> -> vector<9x32xf32>
    %c0_355 = arith.constant 0 : index
    %c0_356 = arith.constant 0 : index
    %c0_357 = arith.constant 0 : index
    %571 = vector.load %arg17[%c0_355, %c0_356, %c0_357] : memref<2x1x32xf32, #tpu.memory_space<vmem>>, vector<1x1x32xf32>
    %572 = vector.shape_cast %571 : vector<1x1x32xf32> to vector<1x32xf32>
    %573 = vector.broadcast %572 : vector<1x32xf32> to vector<9x32xf32>
    %574 = arith.addf %570, %573 : vector<9x32xf32>
    %cst_358 = arith.constant 0.000000e+00 : f32
    %575 = vector.broadcast %cst_358 : f32 to vector<9x32xf32>
    %576 = arith.maximumf %574, %575 : vector<9x32xf32>
    %c0_359 = arith.constant 0 : index
    %c0_360 = arith.constant 0 : index
    %c0_361 = arith.constant 0 : index
    %577 = vector.load %arg18[%c0_359, %c0_360, %c0_361] : memref<2x32x8xf32, #tpu.memory_space<vmem>>, vector<1x32x8xf32>
    %578 = vector.shape_cast %577 : vector<1x32x8xf32> to vector<32x8xf32>
    %cst_362 = arith.constant dense<0.000000e+00> : vector<9x8xf32>
    %579 = tpu.matmul %576, %578, %cst_362 {dimension_numbers = #tpu.dot_dimension_numbers<[1], [0], [0], [1], [0, 0, 1, 1], [], []>} : vector<9x32xf32>, vector<32x8xf32>, vector<9x8xf32> -> vector<9x8xf32>
    %c0_363 = arith.constant 0 : index
    %c0_364 = arith.constant 0 : index
    %c0_365 = arith.constant 0 : index
    %580 = vector.load %arg19[%c0_363, %c0_364, %c0_365] : memref<2x1x8xf32, #tpu.memory_space<vmem>>, vector<1x1x8xf32>
    %581 = vector.shape_cast %580 : vector<1x1x8xf32> to vector<1x8xf32>
    %582 = vector.broadcast %581 : vector<1x8xf32> to vector<9x8xf32>
    %583 = arith.addf %579, %582 : vector<9x8xf32>
    %584 = arith.addf %541, %583 : vector<9x8xf32>
    %585 = arith.addf %490, %584 : vector<9x8xf32>
    %586 = vector.extract_strided_slice %585 {offsets = [0, 0], sizes = [1, 8], strides = [1, 1]} : vector<9x8xf32> to vector<1x8xf32>
    %587 = vector.extract_strided_slice %490 {offsets = [0, 0], sizes = [1, 8], strides = [1, 1]} : vector<9x8xf32> to vector<1x8xf32>
    %588 = arith.addf %586, %587 : vector<1x8xf32>
    %c0_366 = arith.constant 0 : index
    %c0_367 = arith.constant 0 : index
    %589 = vector.load %arg24[%c0_366, %c0_367] : memref<9x8xf32, #tpu.memory_space<vmem>>, vector<1x8xf32>
    tpu.vector_store %arg24[%c0_366, %c0_367], %588 {strides = array<i32>} : memref<9x8xf32, #tpu.memory_space<vmem>>, vector<1x8xf32>,
    %c0_368 = arith.constant 0 : index
    %c0_369 = arith.constant 0 : index
    %590 = vector.load %arg22[%c0_368, %c0_369] : memref<2x18xf32, #tpu.memory_space<vmem>>, vector<1x18xf32>
    %c0_370 = arith.constant 0 : index
    %c0_371 = arith.constant 0 : index
    %591 = vector.load %arg23[%c0_370, %c0_371] : memref<2x18xf32, #tpu.memory_space<vmem>>, vector<1x18xf32>
    %592 = vector.extract_strided_slice %590 {offsets = [0, 0], sizes = [1, 4], strides = [1, 1]} : vector<1x18xf32> to vector<1x4xf32>
    %593 = vector.extract_strided_slice %591 {offsets = [0, 0], sizes = [1, 4], strides = [1, 1]} : vector<1x18xf32> to vector<1x4xf32>
    %cst_372 = arith.constant dense<0.000000e+00> : vector<1x8xf32>
    %594 = tpu.matmul %592, %7, %cst_372 {dimension_numbers = #tpu.dot_dimension_numbers<[1], [0], [0], [1], [0, 0, 1, 1], [], []>} : vector<1x4xf32>, vector<4x8xf32>, vector<1x8xf32> -> vector<1x8xf32>
    %cst_373 = arith.constant dense<0.000000e+00> : vector<1x8xf32>
    %595 = tpu.matmul %593, %8, %cst_373 {dimension_numbers = #tpu.dot_dimension_numbers<[1], [0], [0], [1], [0, 0, 1, 1], [], []>} : vector<1x4xf32>, vector<4x8xf32>, vector<1x8xf32> -> vector<1x8xf32>
    %596 = arith.addf %594, %595 : vector<1x8xf32>
    %597 = arith.addf %596, %6 : vector<1x8xf32>
    %598 = vector.extract_strided_slice %585 {offsets = [1, 0], sizes = [1, 8], strides = [1, 1]} : vector<9x8xf32> to vector<1x8xf32>
    %599 = arith.addf %598, %597 : vector<1x8xf32>
    %c1_374 = arith.constant 1 : index
    %c0_375 = arith.constant 0 : index
    %600 = vector.load %arg24[%c1_374, %c0_375] : memref<9x8xf32, #tpu.memory_space<vmem>>, vector<1x8xf32>
    tpu.vector_store %arg24[%c1_374, %c0_375], %599 {strides = array<i32>} : memref<9x8xf32, #tpu.memory_space<vmem>>, vector<1x8xf32>,
    %601 = vector.extract_strided_slice %590 {offsets = [0, 2], sizes = [1, 4], strides = [1, 1]} : vector<1x18xf32> to vector<1x4xf32>
    %602 = vector.extract_strided_slice %591 {offsets = [0, 2], sizes = [1, 4], strides = [1, 1]} : vector<1x18xf32> to vector<1x4xf32>
    %cst_376 = arith.constant dense<0.000000e+00> : vector<1x8xf32>
    %603 = tpu.matmul %601, %7, %cst_376 {dimension_numbers = #tpu.dot_dimension_numbers<[1], [0], [0], [1], [0, 0, 1, 1], [], []>} : vector<1x4xf32>, vector<4x8xf32>, vector<1x8xf32> -> vector<1x8xf32>
    %cst_377 = arith.constant dense<0.000000e+00> : vector<1x8xf32>
    %604 = tpu.matmul %602, %8, %cst_377 {dimension_numbers = #tpu.dot_dimension_numbers<[1], [0], [0], [1], [0, 0, 1, 1], [], []>} : vector<1x4xf32>, vector<4x8xf32>, vector<1x8xf32> -> vector<1x8xf32>
    %605 = arith.addf %603, %604 : vector<1x8xf32>
    %606 = arith.addf %605, %6 : vector<1x8xf32>
    %607 = vector.extract_strided_slice %585 {offsets = [2, 0], sizes = [1, 8], strides = [1, 1]} : vector<9x8xf32> to vector<1x8xf32>
    %608 = arith.addf %607, %606 : vector<1x8xf32>
    %c2_378 = arith.constant 2 : index
    %c0_379 = arith.constant 0 : index
    %609 = vector.load %arg24[%c2_378, %c0_379] : memref<9x8xf32, #tpu.memory_space<vmem>>, vector<1x8xf32>
    tpu.vector_store %arg24[%c2_378, %c0_379], %608 {strides = array<i32>} : memref<9x8xf32, #tpu.memory_space<vmem>>, vector<1x8xf32>,
    %610 = vector.extract_strided_slice %590 {offsets = [0, 4], sizes = [1, 4], strides = [1, 1]} : vector<1x18xf32> to vector<1x4xf32>
    %611 = vector.extract_strided_slice %591 {offsets = [0, 4], sizes = [1, 4], strides = [1, 1]} : vector<1x18xf32> to vector<1x4xf32>
    %cst_380 = arith.constant dense<0.000000e+00> : vector<1x8xf32>
    %612 = tpu.matmul %610, %7, %cst_380 {dimension_numbers = #tpu.dot_dimension_numbers<[1], [0], [0], [1], [0, 0, 1, 1], [], []>} : vector<1x4xf32>, vector<4x8xf32>, vector<1x8xf32> -> vector<1x8xf32>
    %cst_381 = arith.constant dense<0.000000e+00> : vector<1x8xf32>
    %613 = tpu.matmul %611, %8, %cst_381 {dimension_numbers = #tpu.dot_dimension_numbers<[1], [0], [0], [1], [0, 0, 1, 1], [], []>} : vector<1x4xf32>, vector<4x8xf32>, vector<1x8xf32> -> vector<1x8xf32>
    %614 = arith.addf %612, %613 : vector<1x8xf32>
    %615 = arith.addf %614, %6 : vector<1x8xf32>
    %616 = vector.extract_strided_slice %585 {offsets = [3, 0], sizes = [1, 8], strides = [1, 1]} : vector<9x8xf32> to vector<1x8xf32>
    %617 = arith.addf %616, %615 : vector<1x8xf32>
    %c3_382 = arith.constant 3 : index
    %c0_383 = arith.constant 0 : index
    %618 = vector.load %arg24[%c3_382, %c0_383] : memref<9x8xf32, #tpu.memory_space<vmem>>, vector<1x8xf32>
    tpu.vector_store %arg24[%c3_382, %c0_383], %617 {strides = array<i32>} : memref<9x8xf32, #tpu.memory_space<vmem>>, vector<1x8xf32>,
    %619 = vector.extract_strided_slice %590 {offsets = [0, 6], sizes = [1, 4], strides = [1, 1]} : vector<1x18xf32> to vector<1x4xf32>
    %620 = vector.extract_strided_slice %591 {offsets = [0, 6], sizes = [1, 4], strides = [1, 1]} : vector<1x18xf32> to vector<1x4xf32>
    %cst_384 = arith.constant dense<0.000000e+00> : vector<1x8xf32>
    %621 = tpu.matmul %619, %7, %cst_384 {dimension_numbers = #tpu.dot_dimension_numbers<[1], [0], [0], [1], [0, 0, 1, 1], [], []>} : vector<1x4xf32>, vector<4x8xf32>, vector<1x8xf32> -> vector<1x8xf32>
    %cst_385 = arith.constant dense<0.000000e+00> : vector<1x8xf32>
    %622 = tpu.matmul %620, %8, %cst_385 {dimension_numbers = #tpu.dot_dimension_numbers<[1], [0], [0], [1], [0, 0, 1, 1], [], []>} : vector<1x4xf32>, vector<4x8xf32>, vector<1x8xf32> -> vector<1x8xf32>
    %623 = arith.addf %621, %622 : vector<1x8xf32>
    %624 = arith.addf %623, %6 : vector<1x8xf32>
    %625 = vector.extract_strided_slice %585 {offsets = [4, 0], sizes = [1, 8], strides = [1, 1]} : vector<9x8xf32> to vector<1x8xf32>
    %626 = arith.addf %625, %624 : vector<1x8xf32>
    %c4_386 = arith.constant 4 : index
    %c0_387 = arith.constant 0 : index
    %627 = vector.load %arg24[%c4_386, %c0_387] : memref<9x8xf32, #tpu.memory_space<vmem>>, vector<1x8xf32>
    tpu.vector_store %arg24[%c4_386, %c0_387], %626 {strides = array<i32>} : memref<9x8xf32, #tpu.memory_space<vmem>>, vector<1x8xf32>,
    %628 = vector.extract_strided_slice %590 {offsets = [0, 8], sizes = [1, 4], strides = [1, 1]} : vector<1x18xf32> to vector<1x4xf32>
    %629 = vector.extract_strided_slice %591 {offsets = [0, 8], sizes = [1, 4], strides = [1, 1]} : vector<1x18xf32> to vector<1x4xf32>
    %cst_388 = arith.constant dense<0.000000e+00> : vector<1x8xf32>
    %630 = tpu.matmul %628, %7, %cst_388 {dimension_numbers = #tpu.dot_dimension_numbers<[1], [0], [0], [1], [0, 0, 1, 1], [], []>} : vector<1x4xf32>, vector<4x8xf32>, vector<1x8xf32> -> vector<1x8xf32>
    %cst_389 = arith.constant dense<0.000000e+00> : vector<1x8xf32>
    %631 = tpu.matmul %629, %8, %cst_389 {dimension_numbers = #tpu.dot_dimension_numbers<[1], [0], [0], [1], [0, 0, 1, 1], [], []>} : vector<1x4xf32>, vector<4x8xf32>, vector<1x8xf32> -> vector<1x8xf32>
    %632 = arith.addf %630, %631 : vector<1x8xf32>
    %633 = arith.addf %632, %6 : vector<1x8xf32>
    %634 = vector.extract_strided_slice %585 {offsets = [5, 0], sizes = [1, 8], strides = [1, 1]} : vector<9x8xf32> to vector<1x8xf32>
    %635 = arith.addf %634, %633 : vector<1x8xf32>
    %c5_390 = arith.constant 5 : index
    %c0_391 = arith.constant 0 : index
    %636 = vector.load %arg24[%c5_390, %c0_391] : memref<9x8xf32, #tpu.memory_space<vmem>>, vector<1x8xf32>
    tpu.vector_store %arg24[%c5_390, %c0_391], %635 {strides = array<i32>} : memref<9x8xf32, #tpu.memory_space<vmem>>, vector<1x8xf32>,
    %637 = vector.extract_strided_slice %590 {offsets = [0, 10], sizes = [1, 4], strides = [1, 1]} : vector<1x18xf32> to vector<1x4xf32>
    %638 = vector.extract_strided_slice %591 {offsets = [0, 10], sizes = [1, 4], strides = [1, 1]} : vector<1x18xf32> to vector<1x4xf32>
    %cst_392 = arith.constant dense<0.000000e+00> : vector<1x8xf32>
    %639 = tpu.matmul %637, %7, %cst_392 {dimension_numbers = #tpu.dot_dimension_numbers<[1], [0], [0], [1], [0, 0, 1, 1], [], []>} : vector<1x4xf32>, vector<4x8xf32>, vector<1x8xf32> -> vector<1x8xf32>
    %cst_393 = arith.constant dense<0.000000e+00> : vector<1x8xf32>
    %640 = tpu.matmul %638, %8, %cst_393 {dimension_numbers = #tpu.dot_dimension_numbers<[1], [0], [0], [1], [0, 0, 1, 1], [], []>} : vector<1x4xf32>, vector<4x8xf32>, vector<1x8xf32> -> vector<1x8xf32>
    %641 = arith.addf %639, %640 : vector<1x8xf32>
    %642 = arith.addf %641, %6 : vector<1x8xf32>
    %643 = vector.extract_strided_slice %585 {offsets = [6, 0], sizes = [1, 8], strides = [1, 1]} : vector<9x8xf32> to vector<1x8xf32>
    %644 = arith.addf %643, %642 : vector<1x8xf32>
    %c6_394 = arith.constant 6 : index
    %c0_395 = arith.constant 0 : index
    %645 = vector.load %arg24[%c6_394, %c0_395] : memref<9x8xf32, #tpu.memory_space<vmem>>, vector<1x8xf32>
    tpu.vector_store %arg24[%c6_394, %c0_395], %644 {strides = array<i32>} : memref<9x8xf32, #tpu.memory_space<vmem>>, vector<1x8xf32>,
    %646 = vector.extract_strided_slice %590 {offsets = [0, 12], sizes = [1, 4], strides = [1, 1]} : vector<1x18xf32> to vector<1x4xf32>
    %647 = vector.extract_strided_slice %591 {offsets = [0, 12], sizes = [1, 4], strides = [1, 1]} : vector<1x18xf32> to vector<1x4xf32>
    %cst_396 = arith.constant dense<0.000000e+00> : vector<1x8xf32>
    %648 = tpu.matmul %646, %7, %cst_396 {dimension_numbers = #tpu.dot_dimension_numbers<[1], [0], [0], [1], [0, 0, 1, 1], [], []>} : vector<1x4xf32>, vector<4x8xf32>, vector<1x8xf32> -> vector<1x8xf32>
    %cst_397 = arith.constant dense<0.000000e+00> : vector<1x8xf32>
    %649 = tpu.matmul %647, %8, %cst_397 {dimension_numbers = #tpu.dot_dimension_numbers<[1], [0], [0], [1], [0, 0, 1, 1], [], []>} : vector<1x4xf32>, vector<4x8xf32>, vector<1x8xf32> -> vector<1x8xf32>
    %650 = arith.addf %648, %649 : vector<1x8xf32>
    %651 = arith.addf %650, %6 : vector<1x8xf32>
    %652 = vector.extract_strided_slice %585 {offsets = [7, 0], sizes = [1, 8], strides = [1, 1]} : vector<9x8xf32> to vector<1x8xf32>
    %653 = arith.addf %652, %651 : vector<1x8xf32>
    %c7_398 = arith.constant 7 : index
    %c0_399 = arith.constant 0 : index
    %654 = vector.load %arg24[%c7_398, %c0_399] : memref<9x8xf32, #tpu.memory_space<vmem>>, vector<1x8xf32>
    tpu.vector_store %arg24[%c7_398, %c0_399], %653 {strides = array<i32>} : memref<9x8xf32, #tpu.memory_space<vmem>>, vector<1x8xf32>,
    %655 = vector.extract_strided_slice %590 {offsets = [0, 14], sizes = [1, 4], strides = [1, 1]} : vector<1x18xf32> to vector<1x4xf32>
    %656 = vector.extract_strided_slice %591 {offsets = [0, 14], sizes = [1, 4], strides = [1, 1]} : vector<1x18xf32> to vector<1x4xf32>
    %cst_400 = arith.constant dense<0.000000e+00> : vector<1x8xf32>
    %657 = tpu.matmul %655, %7, %cst_400 {dimension_numbers = #tpu.dot_dimension_numbers<[1], [0], [0], [1], [0, 0, 1, 1], [], []>} : vector<1x4xf32>, vector<4x8xf32>, vector<1x8xf32> -> vector<1x8xf32>
    %cst_401 = arith.constant dense<0.000000e+00> : vector<1x8xf32>
    %658 = tpu.matmul %656, %8, %cst_401 {dimension_numbers = #tpu.dot_dimension_numbers<[1], [0], [0], [1], [0, 0, 1, 1], [], []>} : vector<1x4xf32>, vector<4x8xf32>, vector<1x8xf32> -> vector<1x8xf32>
    %659 = arith.addf %657, %658 : vector<1x8xf32>
    %660 = arith.addf %659, %6 : vector<1x8xf32>
    %661 = vector.extract_strided_slice %585 {offsets = [8, 0], sizes = [1, 8], strides = [1, 1]} : vector<9x8xf32> to vector<1x8xf32>
    %662 = arith.addf %661, %660 : vector<1x8xf32>
    %c8_402 = arith.constant 8 : index
    %c0_403 = arith.constant 0 : index
    %663 = vector.load %arg24[%c8_402, %c0_403] : memref<9x8xf32, #tpu.memory_space<vmem>>, vector<1x8xf32>
    tpu.vector_store %arg24[%c8_402, %c0_403], %662 {strides = array<i32>} : memref<9x8xf32, #tpu.memory_space<vmem>>, vector<1x8xf32>,
    %c0_404 = arith.constant 0 : index
    %c0_405 = arith.constant 0 : index
    %664 = vector.load %arg24[%c0_404, %c0_405] : memref<9x8xf32, #tpu.memory_space<vmem>>, vector<9x8xf32>
    %c1_406 = arith.constant 1 : index
    %c0_407 = arith.constant 0 : index
    %c0_408 = arith.constant 0 : index
    %665 = vector.load %arg10[%c1_406, %c0_407, %c0_408] : memref<2x1x8xf32, #tpu.memory_space<vmem>>, vector<1x1x8xf32>
    %666 = vector.shape_cast %665 : vector<1x1x8xf32> to vector<1x8xf32>
    %c1_409 = arith.constant 1 : index
    %c0_410 = arith.constant 0 : index
    %c0_411 = arith.constant 0 : index
    %667 = vector.load %arg11[%c1_409, %c0_410, %c0_411] : memref<2x1x8xf32, #tpu.memory_space<vmem>>, vector<1x1x8xf32>
    %668 = vector.shape_cast %667 : vector<1x1x8xf32> to vector<1x8xf32>
    %cst_412 = arith.constant dense<0.000000e+00> : vector<9xf32>
    %669 = vector.multi_reduction <add>, %664, %cst_412 [1] : vector<9x8xf32> to vector<9xf32>
    %670 = vector.shape_cast %669 : vector<9xf32> to vector<9x1xf32>
    %cst_413 = arith.constant 8.000000e+00 : f32
    %671 = vector.broadcast %cst_413 : f32 to vector<9x1xf32>
    %672 = arith.divf %670, %671 : vector<9x1xf32>
    %673 = vector.broadcast %672 : vector<9x1xf32> to vector<9x8xf32>
    %674 = arith.subf %664, %673 : vector<9x8xf32>
    %675 = arith.mulf %674, %674 : vector<9x8xf32>
    %cst_414 = arith.constant dense<0.000000e+00> : vector<9xf32>
    %676 = vector.multi_reduction <add>, %675, %cst_414 [1] : vector<9x8xf32> to vector<9xf32>
    %677 = vector.shape_cast %676 : vector<9xf32> to vector<9x1xf32>
    %cst_415 = arith.constant 8.000000e+00 : f32
    %678 = vector.broadcast %cst_415 : f32 to vector<9x1xf32>
    %679 = arith.divf %677, %678 : vector<9x1xf32>
    %680 = vector.broadcast %672 : vector<9x1xf32> to vector<9x8xf32>
    %681 = arith.subf %664, %680 : vector<9x8xf32>
    %cst_416 = arith.constant 9.99999974E-6 : f32
    %682 = vector.broadcast %cst_416 : f32 to vector<9x1xf32>
    %683 = arith.addf %679, %682 : vector<9x1xf32>
    %684 = math.rsqrt %683 : vector<9x1xf32>
    %685 = vector.broadcast %684 : vector<9x1xf32> to vector<9x8xf32>
    %686 = arith.mulf %681, %685 : vector<9x8xf32>
    %687 = vector.broadcast %666 : vector<1x8xf32> to vector<9x8xf32>
    %688 = arith.mulf %686, %687 : vector<9x8xf32>
    %689 = vector.broadcast %668 : vector<1x8xf32> to vector<9x8xf32>
    %690 = arith.addf %688, %689 : vector<9x8xf32>
    %c1_417 = arith.constant 1 : index
    %c0_418 = arith.constant 0 : index
    %c0_419 = arith.constant 0 : index
    %691 = vector.load %arg12[%c1_417, %c0_418, %c0_419] : memref<2x8x24xf32, #tpu.memory_space<vmem>>, vector<1x8x24xf32>
    %692 = vector.shape_cast %691 : vector<1x8x24xf32> to vector<8x24xf32>
    %cst_420 = arith.constant dense<0.000000e+00> : vector<9x24xf32>
    %693 = tpu.matmul %690, %692, %cst_420 {dimension_numbers = #tpu.dot_dimension_numbers<[1], [0], [0], [1], [0, 0, 1, 1], [], []>} : vector<9x8xf32>, vector<8x24xf32>, vector<9x24xf32> -> vector<9x24xf32>
    %694 = vector.extract_strided_slice %693 {offsets = [0, 0], sizes = [9, 8], strides = [1, 1]} : vector<9x24xf32> to vector<9x8xf32>
    %695 = vector.extract_strided_slice %693 {offsets = [0, 8], sizes = [9, 8], strides = [1, 1]} : vector<9x24xf32> to vector<9x8xf32>
    %696 = vector.extract_strided_slice %693 {offsets = [0, 16], sizes = [9, 8], strides = [1, 1]} : vector<9x24xf32> to vector<9x8xf32>
    %697 = tpu.transpose %695, [1, 0] : vector<9x8xf32> -> vector<8x9xf32>
    %cst_421 = arith.constant dense<0.000000e+00> : vector<9x9xf32>
    %698 = tpu.matmul %694, %697, %cst_421 {dimension_numbers = #tpu.dot_dimension_numbers<[1], [0], [0], [1], [0, 0, 1, 1], [], []>} : vector<9x8xf32>, vector<8x9xf32>, vector<9x9xf32> -> vector<9x9xf32>
    %cst_422 = arith.constant 0.353553385 : f32
    %699 = vector.broadcast %cst_422 : f32 to vector<9x9xf32>
    %700 = arith.mulf %698, %699 : vector<9x9xf32>
    %cst_423 = arith.constant dense<0xFF800000> : vector<9xf32>
    %701 = vector.multi_reduction <maximumf>, %700, %cst_423 [1] : vector<9x9xf32> to vector<9xf32>
    %702 = vector.shape_cast %701 : vector<9xf32> to vector<9x1xf32>
    %703 = vector.broadcast %702 : vector<9x1xf32> to vector<9x9xf32>
    %704 = arith.subf %700, %703 : vector<9x9xf32>
    %705 = math.exp %704 : vector<9x9xf32>
    %cst_424 = arith.constant dense<0.000000e+00> : vector<9xf32>
    %706 = vector.multi_reduction <add>, %705, %cst_424 [1] : vector<9x9xf32> to vector<9xf32>
    %707 = vector.shape_cast %706 : vector<9xf32> to vector<9x1xf32>
    %708 = tpu.reciprocal %707 {approx = true} : vector<9x1xf32> -> vector<9x1xf32>
    %709 = vector.broadcast %708 : vector<9x1xf32> to vector<9x9xf32>
    %710 = arith.mulf %705, %709 : vector<9x9xf32>
    %cst_425 = arith.constant dense<0.000000e+00> : vector<9x8xf32>
    %711 = tpu.matmul %710, %696, %cst_425 {dimension_numbers = #tpu.dot_dimension_numbers<[1], [0], [0], [1], [0, 0, 1, 1], [], []>} : vector<9x9xf32>, vector<9x8xf32>, vector<9x8xf32> -> vector<9x8xf32>
    %c1_426 = arith.constant 1 : index
    %c0_427 = arith.constant 0 : index
    %c0_428 = arith.constant 0 : index
    %712 = vector.load %arg13[%c1_426, %c0_427, %c0_428] : memref<2x8x8xf32, #tpu.memory_space<vmem>>, vector<1x8x8xf32>
    %713 = vector.shape_cast %712 : vector<1x8x8xf32> to vector<8x8xf32>
    %cst_429 = arith.constant dense<0.000000e+00> : vector<9x8xf32>
    %714 = tpu.matmul %711, %713, %cst_429 {dimension_numbers = #tpu.dot_dimension_numbers<[1], [0], [0], [1], [0, 0, 1, 1], [], []>} : vector<9x8xf32>, vector<8x8xf32>, vector<9x8xf32> -> vector<9x8xf32>
    %715 = arith.addf %664, %714 : vector<9x8xf32>
    %c1_430 = arith.constant 1 : index
    %c0_431 = arith.constant 0 : index
    %c0_432 = arith.constant 0 : index
    %716 = vector.load %arg14[%c1_430, %c0_431, %c0_432] : memref<2x1x8xf32, #tpu.memory_space<vmem>>, vector<1x1x8xf32>
    %717 = vector.shape_cast %716 : vector<1x1x8xf32> to vector<1x8xf32>
    %c1_433 = arith.constant 1 : index
    %c0_434 = arith.constant 0 : index
    %c0_435 = arith.constant 0 : index
    %718 = vector.load %arg15[%c1_433, %c0_434, %c0_435] : memref<2x1x8xf32, #tpu.memory_space<vmem>>, vector<1x1x8xf32>
    %719 = vector.shape_cast %718 : vector<1x1x8xf32> to vector<1x8xf32>
    %cst_436 = arith.constant dense<0.000000e+00> : vector<9xf32>
    %720 = vector.multi_reduction <add>, %715, %cst_436 [1] : vector<9x8xf32> to vector<9xf32>
    %721 = vector.shape_cast %720 : vector<9xf32> to vector<9x1xf32>
    %cst_437 = arith.constant 8.000000e+00 : f32
    %722 = vector.broadcast %cst_437 : f32 to vector<9x1xf32>
    %723 = arith.divf %721, %722 : vector<9x1xf32>
    %724 = vector.broadcast %723 : vector<9x1xf32> to vector<9x8xf32>
    %725 = arith.subf %715, %724 : vector<9x8xf32>
    %726 = arith.mulf %725, %725 : vector<9x8xf32>
    %cst_438 = arith.constant dense<0.000000e+00> : vector<9xf32>
    %727 = vector.multi_reduction <add>, %726, %cst_438 [1] : vector<9x8xf32> to vector<9xf32>
    %728 = vector.shape_cast %727 : vector<9xf32> to vector<9x1xf32>
    %cst_439 = arith.constant 8.000000e+00 : f32
    %729 = vector.broadcast %cst_439 : f32 to vector<9x1xf32>
    %730 = arith.divf %728, %729 : vector<9x1xf32>
    %731 = vector.broadcast %723 : vector<9x1xf32> to vector<9x8xf32>
    %732 = arith.subf %715, %731 : vector<9x8xf32>
    %cst_440 = arith.constant 9.99999974E-6 : f32
    %733 = vector.broadcast %cst_440 : f32 to vector<9x1xf32>
    %734 = arith.addf %730, %733 : vector<9x1xf32>
    %735 = math.rsqrt %734 : vector<9x1xf32>
    %736 = vector.broadcast %735 : vector<9x1xf32> to vector<9x8xf32>
    %737 = arith.mulf %732, %736 : vector<9x8xf32>
    %738 = vector.broadcast %717 : vector<1x8xf32> to vector<9x8xf32>
    %739 = arith.mulf %737, %738 : vector<9x8xf32>
    %740 = vector.broadcast %719 : vector<1x8xf32> to vector<9x8xf32>
    %741 = arith.addf %739, %740 : vector<9x8xf32>
    %c1_441 = arith.constant 1 : index
    %c0_442 = arith.constant 0 : index
    %c0_443 = arith.constant 0 : index
    %742 = vector.load %arg16[%c1_441, %c0_442, %c0_443] : memref<2x8x32xf32, #tpu.memory_space<vmem>>, vector<1x8x32xf32>
    %743 = vector.shape_cast %742 : vector<1x8x32xf32> to vector<8x32xf32>
    %cst_444 = arith.constant dense<0.000000e+00> : vector<9x32xf32>
    %744 = tpu.matmul %741, %743, %cst_444 {dimension_numbers = #tpu.dot_dimension_numbers<[1], [0], [0], [1], [0, 0, 1, 1], [], []>} : vector<9x8xf32>, vector<8x32xf32>, vector<9x32xf32> -> vector<9x32xf32>
    %c1_445 = arith.constant 1 : index
    %c0_446 = arith.constant 0 : index
    %c0_447 = arith.constant 0 : index
    %745 = vector.load %arg17[%c1_445, %c0_446, %c0_447] : memref<2x1x32xf32, #tpu.memory_space<vmem>>, vector<1x1x32xf32>
    %746 = vector.shape_cast %745 : vector<1x1x32xf32> to vector<1x32xf32>
    %747 = vector.broadcast %746 : vector<1x32xf32> to vector<9x32xf32>
    %748 = arith.addf %744, %747 : vector<9x32xf32>
    %cst_448 = arith.constant 0.000000e+00 : f32
    %749 = vector.broadcast %cst_448 : f32 to vector<9x32xf32>
    %750 = arith.maximumf %748, %749 : vector<9x32xf32>
    %c1_449 = arith.constant 1 : index
    %c0_450 = arith.constant 0 : index
    %c0_451 = arith.constant 0 : index
    %751 = vector.load %arg18[%c1_449, %c0_450, %c0_451] : memref<2x32x8xf32, #tpu.memory_space<vmem>>, vector<1x32x8xf32>
    %752 = vector.shape_cast %751 : vector<1x32x8xf32> to vector<32x8xf32>
    %cst_452 = arith.constant dense<0.000000e+00> : vector<9x8xf32>
    %753 = tpu.matmul %750, %752, %cst_452 {dimension_numbers = #tpu.dot_dimension_numbers<[1], [0], [0], [1], [0, 0, 1, 1], [], []>} : vector<9x32xf32>, vector<32x8xf32>, vector<9x8xf32> -> vector<9x8xf32>
    %c1_453 = arith.constant 1 : index
    %c0_454 = arith.constant 0 : index
    %c0_455 = arith.constant 0 : index
    %754 = vector.load %arg19[%c1_453, %c0_454, %c0_455] : memref<2x1x8xf32, #tpu.memory_space<vmem>>, vector<1x1x8xf32>
    %755 = vector.shape_cast %754 : vector<1x1x8xf32> to vector<1x8xf32>
    %756 = vector.broadcast %755 : vector<1x8xf32> to vector<9x8xf32>
    %757 = arith.addf %753, %756 : vector<9x8xf32>
    %758 = arith.addf %715, %757 : vector<9x8xf32>
    %c0_456 = arith.constant 0 : index
    %c0_457 = arith.constant 0 : index
    %c0_458 = arith.constant 0 : index
    %759 = vector.load %arg21[%c0_456, %c0_457, %c0_458] : memref<2x9x8xf32, #tpu.memory_space<vmem>>, vector<1x9x8xf32>
    %760 = vector.shape_cast %759 : vector<1x9x8xf32> to vector<9x8xf32>
    %761 = vector.shape_cast %758 : vector<9x8xf32> to vector<1x9x8xf32>
    tpu.vector_store %arg21[%c0_456, %c0_457, %c0_458], %761 {strides = array<i32>} : memref<2x9x8xf32, #tpu.memory_space<vmem>>, vector<1x9x8xf32>,
    %c1_459 = arith.constant 1 : index
    %c0_460 = arith.constant 0 : index
    %c0_461 = arith.constant 0 : index
    %762 = vector.load %arg2[%c1_459, %c0_460, %c0_461] : memref<2x9x8xf32, #tpu.memory_space<vmem>>, vector<1x9x8xf32>
    %763 = vector.shape_cast %762 : vector<1x9x8xf32> to vector<9x8xf32>
    %c0_462 = arith.constant 0 : index
    %c0_463 = arith.constant 0 : index
    %c0_464 = arith.constant 0 : index
    %764 = vector.load %arg10[%c0_462, %c0_463, %c0_464] : memref<2x1x8xf32, #tpu.memory_space<vmem>>, vector<1x1x8xf32>
    %765 = vector.shape_cast %764 : vector<1x1x8xf32> to vector<1x8xf32>
    %c0_465 = arith.constant 0 : index
    %c0_466 = arith.constant 0 : index
    %c0_467 = arith.constant 0 : index
    %766 = vector.load %arg11[%c0_465, %c0_466, %c0_467] : memref<2x1x8xf32, #tpu.memory_space<vmem>>, vector<1x1x8xf32>
    %767 = vector.shape_cast %766 : vector<1x1x8xf32> to vector<1x8xf32>
    %cst_468 = arith.constant dense<0.000000e+00> : vector<9xf32>
    %768 = vector.multi_reduction <add>, %763, %cst_468 [1] : vector<9x8xf32> to vector<9xf32>
    %769 = vector.shape_cast %768 : vector<9xf32> to vector<9x1xf32>
    %cst_469 = arith.constant 8.000000e+00 : f32
    %770 = vector.broadcast %cst_469 : f32 to vector<9x1xf32>
    %771 = arith.divf %769, %770 : vector<9x1xf32>
    %772 = vector.broadcast %771 : vector<9x1xf32> to vector<9x8xf32>
    %773 = arith.subf %763, %772 : vector<9x8xf32>
    %774 = arith.mulf %773, %773 : vector<9x8xf32>
    %cst_470 = arith.constant dense<0.000000e+00> : vector<9xf32>
    %775 = vector.multi_reduction <add>, %774, %cst_470 [1] : vector<9x8xf32> to vector<9xf32>
    %776 = vector.shape_cast %775 : vector<9xf32> to vector<9x1xf32>
    %cst_471 = arith.constant 8.000000e+00 : f32
    %777 = vector.broadcast %cst_471 : f32 to vector<9x1xf32>
    %778 = arith.divf %776, %777 : vector<9x1xf32>
    %779 = vector.broadcast %771 : vector<9x1xf32> to vector<9x8xf32>
    %780 = arith.subf %763, %779 : vector<9x8xf32>
    %cst_472 = arith.constant 9.99999974E-6 : f32
    %781 = vector.broadcast %cst_472 : f32 to vector<9x1xf32>
    %782 = arith.addf %778, %781 : vector<9x1xf32>
    %783 = math.rsqrt %782 : vector<9x1xf32>
    %784 = vector.broadcast %783 : vector<9x1xf32> to vector<9x8xf32>
    %785 = arith.mulf %780, %784 : vector<9x8xf32>
    %786 = vector.broadcast %765 : vector<1x8xf32> to vector<9x8xf32>
    %787 = arith.mulf %785, %786 : vector<9x8xf32>
    %788 = vector.broadcast %767 : vector<1x8xf32> to vector<9x8xf32>
    %789 = arith.addf %787, %788 : vector<9x8xf32>
    %c0_473 = arith.constant 0 : index
    %c0_474 = arith.constant 0 : index
    %c0_475 = arith.constant 0 : index
    %790 = vector.load %arg12[%c0_473, %c0_474, %c0_475] : memref<2x8x24xf32, #tpu.memory_space<vmem>>, vector<1x8x24xf32>
    %791 = vector.shape_cast %790 : vector<1x8x24xf32> to vector<8x24xf32>
    %cst_476 = arith.constant dense<0.000000e+00> : vector<9x24xf32>
    %792 = tpu.matmul %789, %791, %cst_476 {dimension_numbers = #tpu.dot_dimension_numbers<[1], [0], [0], [1], [0, 0, 1, 1], [], []>} : vector<9x8xf32>, vector<8x24xf32>, vector<9x24xf32> -> vector<9x24xf32>
    %793 = vector.extract_strided_slice %792 {offsets = [0, 0], sizes = [9, 8], strides = [1, 1]} : vector<9x24xf32> to vector<9x8xf32>
    %794 = vector.extract_strided_slice %792 {offsets = [0, 8], sizes = [9, 8], strides = [1, 1]} : vector<9x24xf32> to vector<9x8xf32>
    %795 = vector.extract_strided_slice %792 {offsets = [0, 16], sizes = [9, 8], strides = [1, 1]} : vector<9x24xf32> to vector<9x8xf32>
    %796 = tpu.transpose %794, [1, 0] : vector<9x8xf32> -> vector<8x9xf32>
    %cst_477 = arith.constant dense<0.000000e+00> : vector<9x9xf32>
    %797 = tpu.matmul %793, %796, %cst_477 {dimension_numbers = #tpu.dot_dimension_numbers<[1], [0], [0], [1], [0, 0, 1, 1], [], []>} : vector<9x8xf32>, vector<8x9xf32>, vector<9x9xf32> -> vector<9x9xf32>
    %cst_478 = arith.constant 0.353553385 : f32
    %798 = vector.broadcast %cst_478 : f32 to vector<9x9xf32>
    %799 = arith.mulf %797, %798 : vector<9x9xf32>
    %cst_479 = arith.constant dense<0xFF800000> : vector<9xf32>
    %800 = vector.multi_reduction <maximumf>, %799, %cst_479 [1] : vector<9x9xf32> to vector<9xf32>
    %801 = vector.shape_cast %800 : vector<9xf32> to vector<9x1xf32>
    %802 = vector.broadcast %801 : vector<9x1xf32> to vector<9x9xf32>
    %803 = arith.subf %799, %802 : vector<9x9xf32>
    %804 = math.exp %803 : vector<9x9xf32>
    %cst_480 = arith.constant dense<0.000000e+00> : vector<9xf32>
    %805 = vector.multi_reduction <add>, %804, %cst_480 [1] : vector<9x9xf32> to vector<9xf32>
    %806 = vector.shape_cast %805 : vector<9xf32> to vector<9x1xf32>
    %807 = tpu.reciprocal %806 {approx = true} : vector<9x1xf32> -> vector<9x1xf32>
    %808 = vector.broadcast %807 : vector<9x1xf32> to vector<9x9xf32>
    %809 = arith.mulf %804, %808 : vector<9x9xf32>
    %cst_481 = arith.constant dense<0.000000e+00> : vector<9x8xf32>
    %810 = tpu.matmul %809, %795, %cst_481 {dimension_numbers = #tpu.dot_dimension_numbers<[1], [0], [0], [1], [0, 0, 1, 1], [], []>} : vector<9x9xf32>, vector<9x8xf32>, vector<9x8xf32> -> vector<9x8xf32>
    %c0_482 = arith.constant 0 : index
    %c0_483 = arith.constant 0 : index
    %c0_484 = arith.constant 0 : index
    %811 = vector.load %arg13[%c0_482, %c0_483, %c0_484] : memref<2x8x8xf32, #tpu.memory_space<vmem>>, vector<1x8x8xf32>
    %812 = vector.shape_cast %811 : vector<1x8x8xf32> to vector<8x8xf32>
    %cst_485 = arith.constant dense<0.000000e+00> : vector<9x8xf32>
    %813 = tpu.matmul %810, %812, %cst_485 {dimension_numbers = #tpu.dot_dimension_numbers<[1], [0], [0], [1], [0, 0, 1, 1], [], []>} : vector<9x8xf32>, vector<8x8xf32>, vector<9x8xf32> -> vector<9x8xf32>
    %814 = arith.addf %763, %813 : vector<9x8xf32>
    %c0_486 = arith.constant 0 : index
    %c0_487 = arith.constant 0 : index
    %c0_488 = arith.constant 0 : index
    %815 = vector.load %arg14[%c0_486, %c0_487, %c0_488] : memref<2x1x8xf32, #tpu.memory_space<vmem>>, vector<1x1x8xf32>
    %816 = vector.shape_cast %815 : vector<1x1x8xf32> to vector<1x8xf32>
    %c0_489 = arith.constant 0 : index
    %c0_490 = arith.constant 0 : index
    %c0_491 = arith.constant 0 : index
    %817 = vector.load %arg15[%c0_489, %c0_490, %c0_491] : memref<2x1x8xf32, #tpu.memory_space<vmem>>, vector<1x1x8xf32>
    %818 = vector.shape_cast %817 : vector<1x1x8xf32> to vector<1x8xf32>
    %cst_492 = arith.constant dense<0.000000e+00> : vector<9xf32>
    %819 = vector.multi_reduction <add>, %814, %cst_492 [1] : vector<9x8xf32> to vector<9xf32>
    %820 = vector.shape_cast %819 : vector<9xf32> to vector<9x1xf32>
    %cst_493 = arith.constant 8.000000e+00 : f32
    %821 = vector.broadcast %cst_493 : f32 to vector<9x1xf32>
    %822 = arith.divf %820, %821 : vector<9x1xf32>
    %823 = vector.broadcast %822 : vector<9x1xf32> to vector<9x8xf32>
    %824 = arith.subf %814, %823 : vector<9x8xf32>
    %825 = arith.mulf %824, %824 : vector<9x8xf32>
    %cst_494 = arith.constant dense<0.000000e+00> : vector<9xf32>
    %826 = vector.multi_reduction <add>, %825, %cst_494 [1] : vector<9x8xf32> to vector<9xf32>
    %827 = vector.shape_cast %826 : vector<9xf32> to vector<9x1xf32>
    %cst_495 = arith.constant 8.000000e+00 : f32
    %828 = vector.broadcast %cst_495 : f32 to vector<9x1xf32>
    %829 = arith.divf %827, %828 : vector<9x1xf32>
    %830 = vector.broadcast %822 : vector<9x1xf32> to vector<9x8xf32>
    %831 = arith.subf %814, %830 : vector<9x8xf32>
    %cst_496 = arith.constant 9.99999974E-6 : f32
    %832 = vector.broadcast %cst_496 : f32 to vector<9x1xf32>
    %833 = arith.addf %829, %832 : vector<9x1xf32>
    %834 = math.rsqrt %833 : vector<9x1xf32>
    %835 = vector.broadcast %834 : vector<9x1xf32> to vector<9x8xf32>
    %836 = arith.mulf %831, %835 : vector<9x8xf32>
    %837 = vector.broadcast %816 : vector<1x8xf32> to vector<9x8xf32>
    %838 = arith.mulf %836, %837 : vector<9x8xf32>
    %839 = vector.broadcast %818 : vector<1x8xf32> to vector<9x8xf32>
    %840 = arith.addf %838, %839 : vector<9x8xf32>
    %c0_497 = arith.constant 0 : index
    %c0_498 = arith.constant 0 : index
    %c0_499 = arith.constant 0 : index
    %841 = vector.load %arg16[%c0_497, %c0_498, %c0_499] : memref<2x8x32xf32, #tpu.memory_space<vmem>>, vector<1x8x32xf32>
    %842 = vector.shape_cast %841 : vector<1x8x32xf32> to vector<8x32xf32>
    %cst_500 = arith.constant dense<0.000000e+00> : vector<9x32xf32>
    %843 = tpu.matmul %840, %842, %cst_500 {dimension_numbers = #tpu.dot_dimension_numbers<[1], [0], [0], [1], [0, 0, 1, 1], [], []>} : vector<9x8xf32>, vector<8x32xf32>, vector<9x32xf32> -> vector<9x32xf32>
    %c0_501 = arith.constant 0 : index
    %c0_502 = arith.constant 0 : index
    %c0_503 = arith.constant 0 : index
    %844 = vector.load %arg17[%c0_501, %c0_502, %c0_503] : memref<2x1x32xf32, #tpu.memory_space<vmem>>, vector<1x1x32xf32>
    %845 = vector.shape_cast %844 : vector<1x1x32xf32> to vector<1x32xf32>
    %846 = vector.broadcast %845 : vector<1x32xf32> to vector<9x32xf32>
    %847 = arith.addf %843, %846 : vector<9x32xf32>
    %cst_504 = arith.constant 0.000000e+00 : f32
    %848 = vector.broadcast %cst_504 : f32 to vector<9x32xf32>
    %849 = arith.maximumf %847, %848 : vector<9x32xf32>
    %c0_505 = arith.constant 0 : index
    %c0_506 = arith.constant 0 : index
    %c0_507 = arith.constant 0 : index
    %850 = vector.load %arg18[%c0_505, %c0_506, %c0_507] : memref<2x32x8xf32, #tpu.memory_space<vmem>>, vector<1x32x8xf32>
    %851 = vector.shape_cast %850 : vector<1x32x8xf32> to vector<32x8xf32>
    %cst_508 = arith.constant dense<0.000000e+00> : vector<9x8xf32>
    %852 = tpu.matmul %849, %851, %cst_508 {dimension_numbers = #tpu.dot_dimension_numbers<[1], [0], [0], [1], [0, 0, 1, 1], [], []>} : vector<9x32xf32>, vector<32x8xf32>, vector<9x8xf32> -> vector<9x8xf32>
    %c0_509 = arith.constant 0 : index
    %c0_510 = arith.constant 0 : index
    %c0_511 = arith.constant 0 : index
    %853 = vector.load %arg19[%c0_509, %c0_510, %c0_511] : memref<2x1x8xf32, #tpu.memory_space<vmem>>, vector<1x1x8xf32>
    %854 = vector.shape_cast %853 : vector<1x1x8xf32> to vector<1x8xf32>
    %855 = vector.broadcast %854 : vector<1x8xf32> to vector<9x8xf32>
    %856 = arith.addf %852, %855 : vector<9x8xf32>
    %857 = arith.addf %814, %856 : vector<9x8xf32>
    %858 = arith.addf %763, %857 : vector<9x8xf32>
    %859 = vector.extract_strided_slice %858 {offsets = [0, 0], sizes = [1, 8], strides = [1, 1]} : vector<9x8xf32> to vector<1x8xf32>
    %860 = vector.extract_strided_slice %763 {offsets = [0, 0], sizes = [1, 8], strides = [1, 1]} : vector<9x8xf32> to vector<1x8xf32>
    %861 = arith.addf %859, %860 : vector<1x8xf32>
    %c0_512 = arith.constant 0 : index
    %c0_513 = arith.constant 0 : index
    %862 = vector.load %arg24[%c0_512, %c0_513] : memref<9x8xf32, #tpu.memory_space<vmem>>, vector<1x8xf32>
    tpu.vector_store %arg24[%c0_512, %c0_513], %861 {strides = array<i32>} : memref<9x8xf32, #tpu.memory_space<vmem>>, vector<1x8xf32>,
    %c1_514 = arith.constant 1 : index
    %c0_515 = arith.constant 0 : index
    %863 = vector.load %arg22[%c1_514, %c0_515] : memref<2x18xf32, #tpu.memory_space<vmem>>, vector<1x18xf32>
    %c1_516 = arith.constant 1 : index
    %c0_517 = arith.constant 0 : index
    %864 = vector.load %arg23[%c1_516, %c0_517] : memref<2x18xf32, #tpu.memory_space<vmem>>, vector<1x18xf32>
    %865 = vector.extract_strided_slice %863 {offsets = [0, 0], sizes = [1, 4], strides = [1, 1]} : vector<1x18xf32> to vector<1x4xf32>
    %866 = vector.extract_strided_slice %864 {offsets = [0, 0], sizes = [1, 4], strides = [1, 1]} : vector<1x18xf32> to vector<1x4xf32>
    %cst_518 = arith.constant dense<0.000000e+00> : vector<1x8xf32>
    %867 = tpu.matmul %865, %7, %cst_518 {dimension_numbers = #tpu.dot_dimension_numbers<[1], [0], [0], [1], [0, 0, 1, 1], [], []>} : vector<1x4xf32>, vector<4x8xf32>, vector<1x8xf32> -> vector<1x8xf32>
    %cst_519 = arith.constant dense<0.000000e+00> : vector<1x8xf32>
    %868 = tpu.matmul %866, %8, %cst_519 {dimension_numbers = #tpu.dot_dimension_numbers<[1], [0], [0], [1], [0, 0, 1, 1], [], []>} : vector<1x4xf32>, vector<4x8xf32>, vector<1x8xf32> -> vector<1x8xf32>
    %869 = arith.addf %867, %868 : vector<1x8xf32>
    %870 = arith.addf %869, %6 : vector<1x8xf32>
    %871 = vector.extract_strided_slice %858 {offsets = [1, 0], sizes = [1, 8], strides = [1, 1]} : vector<9x8xf32> to vector<1x8xf32>
    %872 = arith.addf %871, %870 : vector<1x8xf32>
    %c1_520 = arith.constant 1 : index
    %c0_521 = arith.constant 0 : index
    %873 = vector.load %arg24[%c1_520, %c0_521] : memref<9x8xf32, #tpu.memory_space<vmem>>, vector<1x8xf32>
    tpu.vector_store %arg24[%c1_520, %c0_521], %872 {strides = array<i32>} : memref<9x8xf32, #tpu.memory_space<vmem>>, vector<1x8xf32>,
    %874 = vector.extract_strided_slice %863 {offsets = [0, 2], sizes = [1, 4], strides = [1, 1]} : vector<1x18xf32> to vector<1x4xf32>
    %875 = vector.extract_strided_slice %864 {offsets = [0, 2], sizes = [1, 4], strides = [1, 1]} : vector<1x18xf32> to vector<1x4xf32>
    %cst_522 = arith.constant dense<0.000000e+00> : vector<1x8xf32>
    %876 = tpu.matmul %874, %7, %cst_522 {dimension_numbers = #tpu.dot_dimension_numbers<[1], [0], [0], [1], [0, 0, 1, 1], [], []>} : vector<1x4xf32>, vector<4x8xf32>, vector<1x8xf32> -> vector<1x8xf32>
    %cst_523 = arith.constant dense<0.000000e+00> : vector<1x8xf32>
    %877 = tpu.matmul %875, %8, %cst_523 {dimension_numbers = #tpu.dot_dimension_numbers<[1], [0], [0], [1], [0, 0, 1, 1], [], []>} : vector<1x4xf32>, vector<4x8xf32>, vector<1x8xf32> -> vector<1x8xf32>
    %878 = arith.addf %876, %877 : vector<1x8xf32>
    %879 = arith.addf %878, %6 : vector<1x8xf32>
    %880 = vector.extract_strided_slice %858 {offsets = [2, 0], sizes = [1, 8], strides = [1, 1]} : vector<9x8xf32> to vector<1x8xf32>
    %881 = arith.addf %880, %879 : vector<1x8xf32>
    %c2_524 = arith.constant 2 : index
    %c0_525 = arith.constant 0 : index
    %882 = vector.load %arg24[%c2_524, %c0_525] : memref<9x8xf32, #tpu.memory_space<vmem>>, vector<1x8xf32>
    tpu.vector_store %arg24[%c2_524, %c0_525], %881 {strides = array<i32>} : memref<9x8xf32, #tpu.memory_space<vmem>>, vector<1x8xf32>,
    %883 = vector.extract_strided_slice %863 {offsets = [0, 4], sizes = [1, 4], strides = [1, 1]} : vector<1x18xf32> to vector<1x4xf32>
    %884 = vector.extract_strided_slice %864 {offsets = [0, 4], sizes = [1, 4], strides = [1, 1]} : vector<1x18xf32> to vector<1x4xf32>
    %cst_526 = arith.constant dense<0.000000e+00> : vector<1x8xf32>
    %885 = tpu.matmul %883, %7, %cst_526 {dimension_numbers = #tpu.dot_dimension_numbers<[1], [0], [0], [1], [0, 0, 1, 1], [], []>} : vector<1x4xf32>, vector<4x8xf32>, vector<1x8xf32> -> vector<1x8xf32>
    %cst_527 = arith.constant dense<0.000000e+00> : vector<1x8xf32>
    %886 = tpu.matmul %884, %8, %cst_527 {dimension_numbers = #tpu.dot_dimension_numbers<[1], [0], [0], [1], [0, 0, 1, 1], [], []>} : vector<1x4xf32>, vector<4x8xf32>, vector<1x8xf32> -> vector<1x8xf32>
    %887 = arith.addf %885, %886 : vector<1x8xf32>
    %888 = arith.addf %887, %6 : vector<1x8xf32>
    %889 = vector.extract_strided_slice %858 {offsets = [3, 0], sizes = [1, 8], strides = [1, 1]} : vector<9x8xf32> to vector<1x8xf32>
    %890 = arith.addf %889, %888 : vector<1x8xf32>
    %c3_528 = arith.constant 3 : index
    %c0_529 = arith.constant 0 : index
    %891 = vector.load %arg24[%c3_528, %c0_529] : memref<9x8xf32, #tpu.memory_space<vmem>>, vector<1x8xf32>
    tpu.vector_store %arg24[%c3_528, %c0_529], %890 {strides = array<i32>} : memref<9x8xf32, #tpu.memory_space<vmem>>, vector<1x8xf32>,
    %892 = vector.extract_strided_slice %863 {offsets = [0, 6], sizes = [1, 4], strides = [1, 1]} : vector<1x18xf32> to vector<1x4xf32>
    %893 = vector.extract_strided_slice %864 {offsets = [0, 6], sizes = [1, 4], strides = [1, 1]} : vector<1x18xf32> to vector<1x4xf32>
    %cst_530 = arith.constant dense<0.000000e+00> : vector<1x8xf32>
    %894 = tpu.matmul %892, %7, %cst_530 {dimension_numbers = #tpu.dot_dimension_numbers<[1], [0], [0], [1], [0, 0, 1, 1], [], []>} : vector<1x4xf32>, vector<4x8xf32>, vector<1x8xf32> -> vector<1x8xf32>
    %cst_531 = arith.constant dense<0.000000e+00> : vector<1x8xf32>
    %895 = tpu.matmul %893, %8, %cst_531 {dimension_numbers = #tpu.dot_dimension_numbers<[1], [0], [0], [1], [0, 0, 1, 1], [], []>} : vector<1x4xf32>, vector<4x8xf32>, vector<1x8xf32> -> vector<1x8xf32>
    %896 = arith.addf %894, %895 : vector<1x8xf32>
    %897 = arith.addf %896, %6 : vector<1x8xf32>
    %898 = vector.extract_strided_slice %858 {offsets = [4, 0], sizes = [1, 8], strides = [1, 1]} : vector<9x8xf32> to vector<1x8xf32>
    %899 = arith.addf %898, %897 : vector<1x8xf32>
    %c4_532 = arith.constant 4 : index
    %c0_533 = arith.constant 0 : index
    %900 = vector.load %arg24[%c4_532, %c0_533] : memref<9x8xf32, #tpu.memory_space<vmem>>, vector<1x8xf32>
    tpu.vector_store %arg24[%c4_532, %c0_533], %899 {strides = array<i32>} : memref<9x8xf32, #tpu.memory_space<vmem>>, vector<1x8xf32>,
    %901 = vector.extract_strided_slice %863 {offsets = [0, 8], sizes = [1, 4], strides = [1, 1]} : vector<1x18xf32> to vector<1x4xf32>
    %902 = vector.extract_strided_slice %864 {offsets = [0, 8], sizes = [1, 4], strides = [1, 1]} : vector<1x18xf32> to vector<1x4xf32>
    %cst_534 = arith.constant dense<0.000000e+00> : vector<1x8xf32>
    %903 = tpu.matmul %901, %7, %cst_534 {dimension_numbers = #tpu.dot_dimension_numbers<[1], [0], [0], [1], [0, 0, 1, 1], [], []>} : vector<1x4xf32>, vector<4x8xf32>, vector<1x8xf32> -> vector<1x8xf32>
    %cst_535 = arith.constant dense<0.000000e+00> : vector<1x8xf32>
    %904 = tpu.matmul %902, %8, %cst_535 {dimension_numbers = #tpu.dot_dimension_numbers<[1], [0], [0], [1], [0, 0, 1, 1], [], []>} : vector<1x4xf32>, vector<4x8xf32>, vector<1x8xf32> -> vector<1x8xf32>
    %905 = arith.addf %903, %904 : vector<1x8xf32>
    %906 = arith.addf %905, %6 : vector<1x8xf32>
    %907 = vector.extract_strided_slice %858 {offsets = [5, 0], sizes = [1, 8], strides = [1, 1]} : vector<9x8xf32> to vector<1x8xf32>
    %908 = arith.addf %907, %906 : vector<1x8xf32>
    %c5_536 = arith.constant 5 : index
    %c0_537 = arith.constant 0 : index
    %909 = vector.load %arg24[%c5_536, %c0_537] : memref<9x8xf32, #tpu.memory_space<vmem>>, vector<1x8xf32>
    tpu.vector_store %arg24[%c5_536, %c0_537], %908 {strides = array<i32>} : memref<9x8xf32, #tpu.memory_space<vmem>>, vector<1x8xf32>,
    %910 = vector.extract_strided_slice %863 {offsets = [0, 10], sizes = [1, 4], strides = [1, 1]} : vector<1x18xf32> to vector<1x4xf32>
    %911 = vector.extract_strided_slice %864 {offsets = [0, 10], sizes = [1, 4], strides = [1, 1]} : vector<1x18xf32> to vector<1x4xf32>
    %cst_538 = arith.constant dense<0.000000e+00> : vector<1x8xf32>
    %912 = tpu.matmul %910, %7, %cst_538 {dimension_numbers = #tpu.dot_dimension_numbers<[1], [0], [0], [1], [0, 0, 1, 1], [], []>} : vector<1x4xf32>, vector<4x8xf32>, vector<1x8xf32> -> vector<1x8xf32>
    %cst_539 = arith.constant dense<0.000000e+00> : vector<1x8xf32>
    %913 = tpu.matmul %911, %8, %cst_539 {dimension_numbers = #tpu.dot_dimension_numbers<[1], [0], [0], [1], [0, 0, 1, 1], [], []>} : vector<1x4xf32>, vector<4x8xf32>, vector<1x8xf32> -> vector<1x8xf32>
    %914 = arith.addf %912, %913 : vector<1x8xf32>
    %915 = arith.addf %914, %6 : vector<1x8xf32>
    %916 = vector.extract_strided_slice %858 {offsets = [6, 0], sizes = [1, 8], strides = [1, 1]} : vector<9x8xf32> to vector<1x8xf32>
    %917 = arith.addf %916, %915 : vector<1x8xf32>
    %c6_540 = arith.constant 6 : index
    %c0_541 = arith.constant 0 : index
    %918 = vector.load %arg24[%c6_540, %c0_541] : memref<9x8xf32, #tpu.memory_space<vmem>>, vector<1x8xf32>
    tpu.vector_store %arg24[%c6_540, %c0_541], %917 {strides = array<i32>} : memref<9x8xf32, #tpu.memory_space<vmem>>, vector<1x8xf32>,
    %919 = vector.extract_strided_slice %863 {offsets = [0, 12], sizes = [1, 4], strides = [1, 1]} : vector<1x18xf32> to vector<1x4xf32>
    %920 = vector.extract_strided_slice %864 {offsets = [0, 12], sizes = [1, 4], strides = [1, 1]} : vector<1x18xf32> to vector<1x4xf32>
    %cst_542 = arith.constant dense<0.000000e+00> : vector<1x8xf32>
    %921 = tpu.matmul %919, %7, %cst_542 {dimension_numbers = #tpu.dot_dimension_numbers<[1], [0], [0], [1], [0, 0, 1, 1], [], []>} : vector<1x4xf32>, vector<4x8xf32>, vector<1x8xf32> -> vector<1x8xf32>
    %cst_543 = arith.constant dense<0.000000e+00> : vector<1x8xf32>
    %922 = tpu.matmul %920, %8, %cst_543 {dimension_numbers = #tpu.dot_dimension_numbers<[1], [0], [0], [1], [0, 0, 1, 1], [], []>} : vector<1x4xf32>, vector<4x8xf32>, vector<1x8xf32> -> vector<1x8xf32>
    %923 = arith.addf %921, %922 : vector<1x8xf32>
    %924 = arith.addf %923, %6 : vector<1x8xf32>
    %925 = vector.extract_strided_slice %858 {offsets = [7, 0], sizes = [1, 8], strides = [1, 1]} : vector<9x8xf32> to vector<1x8xf32>
    %926 = arith.addf %925, %924 : vector<1x8xf32>
    %c7_544 = arith.constant 7 : index
    %c0_545 = arith.constant 0 : index
    %927 = vector.load %arg24[%c7_544, %c0_545] : memref<9x8xf32, #tpu.memory_space<vmem>>, vector<1x8xf32>
    tpu.vector_store %arg24[%c7_544, %c0_545], %926 {strides = array<i32>} : memref<9x8xf32, #tpu.memory_space<vmem>>, vector<1x8xf32>,
    %928 = vector.extract_strided_slice %863 {offsets = [0, 14], sizes = [1, 4], strides = [1, 1]} : vector<1x18xf32> to vector<1x4xf32>
    %929 = vector.extract_strided_slice %864 {offsets = [0, 14], sizes = [1, 4], strides = [1, 1]} : vector<1x18xf32> to vector<1x4xf32>
    %cst_546 = arith.constant dense<0.000000e+00> : vector<1x8xf32>
    %930 = tpu.matmul %928, %7, %cst_546 {dimension_numbers = #tpu.dot_dimension_numbers<[1], [0], [0], [1], [0, 0, 1, 1], [], []>} : vector<1x4xf32>, vector<4x8xf32>, vector<1x8xf32> -> vector<1x8xf32>
    %cst_547 = arith.constant dense<0.000000e+00> : vector<1x8xf32>
    %931 = tpu.matmul %929, %8, %cst_547 {dimension_numbers = #tpu.dot_dimension_numbers<[1], [0], [0], [1], [0, 0, 1, 1], [], []>} : vector<1x4xf32>, vector<4x8xf32>, vector<1x8xf32> -> vector<1x8xf32>
    %932 = arith.addf %930, %931 : vector<1x8xf32>
    %933 = arith.addf %932, %6 : vector<1x8xf32>
    %934 = vector.extract_strided_slice %858 {offsets = [8, 0], sizes = [1, 8], strides = [1, 1]} : vector<9x8xf32> to vector<1x8xf32>
    %935 = arith.addf %934, %933 : vector<1x8xf32>
    %c8_548 = arith.constant 8 : index
    %c0_549 = arith.constant 0 : index
    %936 = vector.load %arg24[%c8_548, %c0_549] : memref<9x8xf32, #tpu.memory_space<vmem>>, vector<1x8xf32>
    tpu.vector_store %arg24[%c8_548, %c0_549], %935 {strides = array<i32>} : memref<9x8xf32, #tpu.memory_space<vmem>>, vector<1x8xf32>,
    %c0_550 = arith.constant 0 : index
    %c0_551 = arith.constant 0 : index
    %937 = vector.load %arg24[%c0_550, %c0_551] : memref<9x8xf32, #tpu.memory_space<vmem>>, vector<9x8xf32>
    %c1_552 = arith.constant 1 : index
    %c0_553 = arith.constant 0 : index
    %c0_554 = arith.constant 0 : index
    %938 = vector.load %arg10[%c1_552, %c0_553, %c0_554] : memref<2x1x8xf32, #tpu.memory_space<vmem>>, vector<1x1x8xf32>
    %939 = vector.shape_cast %938 : vector<1x1x8xf32> to vector<1x8xf32>
    %c1_555 = arith.constant 1 : index
    %c0_556 = arith.constant 0 : index
    %c0_557 = arith.constant 0 : index
    %940 = vector.load %arg11[%c1_555, %c0_556, %c0_557] : memref<2x1x8xf32, #tpu.memory_space<vmem>>, vector<1x1x8xf32>
    %941 = vector.shape_cast %940 : vector<1x1x8xf32> to vector<1x8xf32>
    %cst_558 = arith.constant dense<0.000000e+00> : vector<9xf32>
    %942 = vector.multi_reduction <add>, %937, %cst_558 [1] : vector<9x8xf32> to vector<9xf32>
    %943 = vector.shape_cast %942 : vector<9xf32> to vector<9x1xf32>
    %cst_559 = arith.constant 8.000000e+00 : f32
    %944 = vector.broadcast %cst_559 : f32 to vector<9x1xf32>
    %945 = arith.divf %943, %944 : vector<9x1xf32>
    %946 = vector.broadcast %945 : vector<9x1xf32> to vector<9x8xf32>
    %947 = arith.subf %937, %946 : vector<9x8xf32>
    %948 = arith.mulf %947, %947 : vector<9x8xf32>
    %cst_560 = arith.constant dense<0.000000e+00> : vector<9xf32>
    %949 = vector.multi_reduction <add>, %948, %cst_560 [1] : vector<9x8xf32> to vector<9xf32>
    %950 = vector.shape_cast %949 : vector<9xf32> to vector<9x1xf32>
    %cst_561 = arith.constant 8.000000e+00 : f32
    %951 = vector.broadcast %cst_561 : f32 to vector<9x1xf32>
    %952 = arith.divf %950, %951 : vector<9x1xf32>
    %953 = vector.broadcast %945 : vector<9x1xf32> to vector<9x8xf32>
    %954 = arith.subf %937, %953 : vector<9x8xf32>
    %cst_562 = arith.constant 9.99999974E-6 : f32
    %955 = vector.broadcast %cst_562 : f32 to vector<9x1xf32>
    %956 = arith.addf %952, %955 : vector<9x1xf32>
    %957 = math.rsqrt %956 : vector<9x1xf32>
    %958 = vector.broadcast %957 : vector<9x1xf32> to vector<9x8xf32>
    %959 = arith.mulf %954, %958 : vector<9x8xf32>
    %960 = vector.broadcast %939 : vector<1x8xf32> to vector<9x8xf32>
    %961 = arith.mulf %959, %960 : vector<9x8xf32>
    %962 = vector.broadcast %941 : vector<1x8xf32> to vector<9x8xf32>
    %963 = arith.addf %961, %962 : vector<9x8xf32>
    %c1_563 = arith.constant 1 : index
    %c0_564 = arith.constant 0 : index
    %c0_565 = arith.constant 0 : index
    %964 = vector.load %arg12[%c1_563, %c0_564, %c0_565] : memref<2x8x24xf32, #tpu.memory_space<vmem>>, vector<1x8x24xf32>
    %965 = vector.shape_cast %964 : vector<1x8x24xf32> to vector<8x24xf32>
    %cst_566 = arith.constant dense<0.000000e+00> : vector<9x24xf32>
    %966 = tpu.matmul %963, %965, %cst_566 {dimension_numbers = #tpu.dot_dimension_numbers<[1], [0], [0], [1], [0, 0, 1, 1], [], []>} : vector<9x8xf32>, vector<8x24xf32>, vector<9x24xf32> -> vector<9x24xf32>
    %967 = vector.extract_strided_slice %966 {offsets = [0, 0], sizes = [9, 8], strides = [1, 1]} : vector<9x24xf32> to vector<9x8xf32>
    %968 = vector.extract_strided_slice %966 {offsets = [0, 8], sizes = [9, 8], strides = [1, 1]} : vector<9x24xf32> to vector<9x8xf32>
    %969 = vector.extract_strided_slice %966 {offsets = [0, 16], sizes = [9, 8], strides = [1, 1]} : vector<9x24xf32> to vector<9x8xf32>
    %970 = tpu.transpose %968, [1, 0] : vector<9x8xf32> -> vector<8x9xf32>
    %cst_567 = arith.constant dense<0.000000e+00> : vector<9x9xf32>
    %971 = tpu.matmul %967, %970, %cst_567 {dimension_numbers = #tpu.dot_dimension_numbers<[1], [0], [0], [1], [0, 0, 1, 1], [], []>} : vector<9x8xf32>, vector<8x9xf32>, vector<9x9xf32> -> vector<9x9xf32>
    %cst_568 = arith.constant 0.353553385 : f32
    %972 = vector.broadcast %cst_568 : f32 to vector<9x9xf32>
    %973 = arith.mulf %971, %972 : vector<9x9xf32>
    %cst_569 = arith.constant dense<0xFF800000> : vector<9xf32>
    %974 = vector.multi_reduction <maximumf>, %973, %cst_569 [1] : vector<9x9xf32> to vector<9xf32>
    %975 = vector.shape_cast %974 : vector<9xf32> to vector<9x1xf32>
    %976 = vector.broadcast %975 : vector<9x1xf32> to vector<9x9xf32>
    %977 = arith.subf %973, %976 : vector<9x9xf32>
    %978 = math.exp %977 : vector<9x9xf32>
    %cst_570 = arith.constant dense<0.000000e+00> : vector<9xf32>
    %979 = vector.multi_reduction <add>, %978, %cst_570 [1] : vector<9x9xf32> to vector<9xf32>
    %980 = vector.shape_cast %979 : vector<9xf32> to vector<9x1xf32>
    %981 = tpu.reciprocal %980 {approx = true} : vector<9x1xf32> -> vector<9x1xf32>
    %982 = vector.broadcast %981 : vector<9x1xf32> to vector<9x9xf32>
    %983 = arith.mulf %978, %982 : vector<9x9xf32>
    %cst_571 = arith.constant dense<0.000000e+00> : vector<9x8xf32>
    %984 = tpu.matmul %983, %969, %cst_571 {dimension_numbers = #tpu.dot_dimension_numbers<[1], [0], [0], [1], [0, 0, 1, 1], [], []>} : vector<9x9xf32>, vector<9x8xf32>, vector<9x8xf32> -> vector<9x8xf32>
    %c1_572 = arith.constant 1 : index
    %c0_573 = arith.constant 0 : index
    %c0_574 = arith.constant 0 : index
    %985 = vector.load %arg13[%c1_572, %c0_573, %c0_574] : memref<2x8x8xf32, #tpu.memory_space<vmem>>, vector<1x8x8xf32>
    %986 = vector.shape_cast %985 : vector<1x8x8xf32> to vector<8x8xf32>
    %cst_575 = arith.constant dense<0.000000e+00> : vector<9x8xf32>
    %987 = tpu.matmul %984, %986, %cst_575 {dimension_numbers = #tpu.dot_dimension_numbers<[1], [0], [0], [1], [0, 0, 1, 1], [], []>} : vector<9x8xf32>, vector<8x8xf32>, vector<9x8xf32> -> vector<9x8xf32>
    %988 = arith.addf %937, %987 : vector<9x8xf32>
    %c1_576 = arith.constant 1 : index
    %c0_577 = arith.constant 0 : index
    %c0_578 = arith.constant 0 : index
    %989 = vector.load %arg14[%c1_576, %c0_577, %c0_578] : memref<2x1x8xf32, #tpu.memory_space<vmem>>, vector<1x1x8xf32>
    %990 = vector.shape_cast %989 : vector<1x1x8xf32> to vector<1x8xf32>
    %c1_579 = arith.constant 1 : index
    %c0_580 = arith.constant 0 : index
    %c0_581 = arith.constant 0 : index
    %991 = vector.load %arg15[%c1_579, %c0_580, %c0_581] : memref<2x1x8xf32, #tpu.memory_space<vmem>>, vector<1x1x8xf32>
    %992 = vector.shape_cast %991 : vector<1x1x8xf32> to vector<1x8xf32>
    %cst_582 = arith.constant dense<0.000000e+00> : vector<9xf32>
    %993 = vector.multi_reduction <add>, %988, %cst_582 [1] : vector<9x8xf32> to vector<9xf32>
    %994 = vector.shape_cast %993 : vector<9xf32> to vector<9x1xf32>
    %cst_583 = arith.constant 8.000000e+00 : f32
    %995 = vector.broadcast %cst_583 : f32 to vector<9x1xf32>
    %996 = arith.divf %994, %995 : vector<9x1xf32>
    %997 = vector.broadcast %996 : vector<9x1xf32> to vector<9x8xf32>
    %998 = arith.subf %988, %997 : vector<9x8xf32>
    %999 = arith.mulf %998, %998 : vector<9x8xf32>
    %cst_584 = arith.constant dense<0.000000e+00> : vector<9xf32>
    %1000 = vector.multi_reduction <add>, %999, %cst_584 [1] : vector<9x8xf32> to vector<9xf32>
    %1001 = vector.shape_cast %1000 : vector<9xf32> to vector<9x1xf32>
    %cst_585 = arith.constant 8.000000e+00 : f32
    %1002 = vector.broadcast %cst_585 : f32 to vector<9x1xf32>
    %1003 = arith.divf %1001, %1002 : vector<9x1xf32>
    %1004 = vector.broadcast %996 : vector<9x1xf32> to vector<9x8xf32>
    %1005 = arith.subf %988, %1004 : vector<9x8xf32>
    %cst_586 = arith.constant 9.99999974E-6 : f32
    %1006 = vector.broadcast %cst_586 : f32 to vector<9x1xf32>
    %1007 = arith.addf %1003, %1006 : vector<9x1xf32>
    %1008 = math.rsqrt %1007 : vector<9x1xf32>
    %1009 = vector.broadcast %1008 : vector<9x1xf32> to vector<9x8xf32>
    %1010 = arith.mulf %1005, %1009 : vector<9x8xf32>
    %1011 = vector.broadcast %990 : vector<1x8xf32> to vector<9x8xf32>
    %1012 = arith.mulf %1010, %1011 : vector<9x8xf32>
    %1013 = vector.broadcast %992 : vector<1x8xf32> to vector<9x8xf32>
    %1014 = arith.addf %1012, %1013 : vector<9x8xf32>
    %c1_587 = arith.constant 1 : index
    %c0_588 = arith.constant 0 : index
    %c0_589 = arith.constant 0 : index
    %1015 = vector.load %arg16[%c1_587, %c0_588, %c0_589] : memref<2x8x32xf32, #tpu.memory_space<vmem>>, vector<1x8x32xf32>
    %1016 = vector.shape_cast %1015 : vector<1x8x32xf32> to vector<8x32xf32>
    %cst_590 = arith.constant dense<0.000000e+00> : vector<9x32xf32>
    %1017 = tpu.matmul %1014, %1016, %cst_590 {dimension_numbers = #tpu.dot_dimension_numbers<[1], [0], [0], [1], [0, 0, 1, 1], [], []>} : vector<9x8xf32>, vector<8x32xf32>, vector<9x32xf32> -> vector<9x32xf32>
    %c1_591 = arith.constant 1 : index
    %c0_592 = arith.constant 0 : index
    %c0_593 = arith.constant 0 : index
    %1018 = vector.load %arg17[%c1_591, %c0_592, %c0_593] : memref<2x1x32xf32, #tpu.memory_space<vmem>>, vector<1x1x32xf32>
    %1019 = vector.shape_cast %1018 : vector<1x1x32xf32> to vector<1x32xf32>
    %1020 = vector.broadcast %1019 : vector<1x32xf32> to vector<9x32xf32>
    %1021 = arith.addf %1017, %1020 : vector<9x32xf32>
    %cst_594 = arith.constant 0.000000e+00 : f32
    %1022 = vector.broadcast %cst_594 : f32 to vector<9x32xf32>
    %1023 = arith.maximumf %1021, %1022 : vector<9x32xf32>
    %c1_595 = arith.constant 1 : index
    %c0_596 = arith.constant 0 : index
    %c0_597 = arith.constant 0 : index
    %1024 = vector.load %arg18[%c1_595, %c0_596, %c0_597] : memref<2x32x8xf32, #tpu.memory_space<vmem>>, vector<1x32x8xf32>
    %1025 = vector.shape_cast %1024 : vector<1x32x8xf32> to vector<32x8xf32>
    %cst_598 = arith.constant dense<0.000000e+00> : vector<9x8xf32>
    %1026 = tpu.matmul %1023, %1025, %cst_598 {dimension_numbers = #tpu.dot_dimension_numbers<[1], [0], [0], [1], [0, 0, 1, 1], [], []>} : vector<9x32xf32>, vector<32x8xf32>, vector<9x8xf32> -> vector<9x8xf32>
    %c1_599 = arith.constant 1 : index
    %c0_600 = arith.constant 0 : index
    %c0_601 = arith.constant 0 : index
    %1027 = vector.load %arg19[%c1_599, %c0_600, %c0_601] : memref<2x1x8xf32, #tpu.memory_space<vmem>>, vector<1x1x8xf32>
    %1028 = vector.shape_cast %1027 : vector<1x1x8xf32> to vector<1x8xf32>
    %1029 = vector.broadcast %1028 : vector<1x8xf32> to vector<9x8xf32>
    %1030 = arith.addf %1026, %1029 : vector<9x8xf32>
    %1031 = arith.addf %988, %1030 : vector<9x8xf32>
    %c1_602 = arith.constant 1 : index
    %c0_603 = arith.constant 0 : index
    %c0_604 = arith.constant 0 : index
    %1032 = vector.load %arg21[%c1_602, %c0_603, %c0_604] : memref<2x9x8xf32, #tpu.memory_space<vmem>>, vector<1x9x8xf32>
    %1033 = vector.shape_cast %1032 : vector<1x9x8xf32> to vector<9x8xf32>
    %1034 = vector.shape_cast %1031 : vector<9x8xf32> to vector<1x9x8xf32>
    tpu.vector_store %arg21[%c1_602, %c0_603, %c0_604], %1034 {strides = array<i32>} : memref<2x9x8xf32, #tpu.memory_space<vmem>>, vector<1x9x8xf32>,
    return
  }
  func.func @transform_0(%arg0: i32) -> (i32, i32, i32) {
    %c0_i32 = arith.constant 0 : i32
    %c0_i32_0 = arith.constant 0 : i32
    %c0_i32_1 = arith.constant 0 : i32
    %c0_i32_2 = arith.constant 0 : i32
    return %c0_i32, %c0_i32_0, %c0_i32_1 : i32, i32, i32
  }
  func.func @transform_1(%arg0: i32) -> (i32, i32, i32) {
    %c0_i32 = arith.constant 0 : i32
    %c0_i32_0 = arith.constant 0 : i32
    %c0_i32_1 = arith.constant 0 : i32
    %c0_i32_2 = arith.constant 0 : i32
    return %c0_i32, %c0_i32_0, %c0_i32_1 : i32, i32, i32
  }
  func.func @transform_2(%arg0: i32) -> (i32, i32) {
    %c0_i32 = arith.constant 0 : i32
    %c0_i32_0 = arith.constant 0 : i32
    %c0_i32_1 = arith.constant 0 : i32
    return %c0_i32, %c0_i32_0 : i32, i32
  }
  func.func @transform_3(%arg0: i32) -> (i32, i32) {
    %c0_i32 = arith.constant 0 : i32
    %c0_i32_0 = arith.constant 0 : i32
    %c0_i32_1 = arith.constant 0 : i32
    return %c0_i32, %c0_i32_0 : i32, i32
  }
  func.func @transform_4(%arg0: i32) -> (i32, i32) {
    %c0_i32 = arith.constant 0 : i32
    %c0_i32_0 = arith.constant 0 : i32
    %c0_i32_1 = arith.constant 0 : i32
    return %c0_i32, %c0_i32_0 : i32, i32
  }
  func.func @transform_5(%arg0: i32) -> (i32, i32) {
    %c0_i32 = arith.constant 0 : i32
    %c0_i32_0 = arith.constant 0 : i32
    %c0_i32_1 = arith.constant 0 : i32
    return %c0_i32, %c0_i32_0 : i32, i32
  }
  func.func @transform_6(%arg0: i32) -> (i32, i32) {
    %c0_i32 = arith.constant 0 : i32
    %c0_i32_0 = arith.constant 0 : i32
    %c0_i32_1 = arith.constant 0 : i32
    return %c0_i32, %c0_i32_0 : i32, i32
  }
  func.func @transform_7(%arg0: i32) -> (i32, i32) {
    %c0_i32 = arith.constant 0 : i32
    %c0_i32_0 = arith.constant 0 : i32
    %c0_i32_1 = arith.constant 0 : i32
    return %c0_i32, %c0_i32_0 : i32, i32
  }
  func.func @transform_8(%arg0: i32) -> (i32, i32) {
    %c0_i32 = arith.constant 0 : i32
    %c0_i32_0 = arith.constant 0 : i32
    %c0_i32_1 = arith.constant 0 : i32
    return %c0_i32, %c0_i32_0 : i32, i32
  }
  func.func @transform_9(%arg0: i32) -> (i32, i32, i32) {
    %c0_i32 = arith.constant 0 : i32
    %c0_i32_0 = arith.constant 0 : i32
    %c0_i32_1 = arith.constant 0 : i32
    %c0_i32_2 = arith.constant 0 : i32
    return %c0_i32, %c0_i32_0, %c0_i32_1 : i32, i32, i32
  }
  func.func @transform_10(%arg0: i32) -> (i32, i32, i32) {
    %c0_i32 = arith.constant 0 : i32
    %c0_i32_0 = arith.constant 0 : i32
    %c0_i32_1 = arith.constant 0 : i32
    %c0_i32_2 = arith.constant 0 : i32
    return %c0_i32, %c0_i32_0, %c0_i32_1 : i32, i32, i32
  }
  func.func @transform_11(%arg0: i32) -> (i32, i32, i32) {
    %c0_i32 = arith.constant 0 : i32
    %c0_i32_0 = arith.constant 0 : i32
    %c0_i32_1 = arith.constant 0 : i32
    %c0_i32_2 = arith.constant 0 : i32
    return %c0_i32, %c0_i32_0, %c0_i32_1 : i32, i32, i32
  }
  func.func @transform_12(%arg0: i32) -> (i32, i32, i32) {
    %c0_i32 = arith.constant 0 : i32
    %c0_i32_0 = arith.constant 0 : i32
    %c0_i32_1 = arith.constant 0 : i32
    %c0_i32_2 = arith.constant 0 : i32
    return %c0_i32, %c0_i32_0, %c0_i32_1 : i32, i32, i32
  }
  func.func @transform_13(%arg0: i32) -> (i32, i32, i32) {
    %c0_i32 = arith.constant 0 : i32
    %c0_i32_0 = arith.constant 0 : i32
    %c0_i32_1 = arith.constant 0 : i32
    %c0_i32_2 = arith.constant 0 : i32
    return %c0_i32, %c0_i32_0, %c0_i32_1 : i32, i32, i32
  }
  func.func @transform_14(%arg0: i32) -> (i32, i32, i32) {
    %c0_i32 = arith.constant 0 : i32
    %c0_i32_0 = arith.constant 0 : i32
    %c0_i32_1 = arith.constant 0 : i32
    %c0_i32_2 = arith.constant 0 : i32
    return %c0_i32, %c0_i32_0, %c0_i32_1 : i32, i32, i32
  }
  func.func @transform_15(%arg0: i32) -> (i32, i32, i32) {
    %c0_i32 = arith.constant 0 : i32
    %c0_i32_0 = arith.constant 0 : i32
    %c0_i32_1 = arith.constant 0 : i32
    %c0_i32_2 = arith.constant 0 : i32
    return %c0_i32, %c0_i32_0, %c0_i32_1 : i32, i32, i32
  }
  func.func @transform_16(%arg0: i32) -> (i32, i32, i32) {
    %c0_i32 = arith.constant 0 : i32
    %c0_i32_0 = arith.constant 0 : i32
    %c0_i32_1 = arith.constant 0 : i32
    %c0_i32_2 = arith.constant 0 : i32
    return %c0_i32, %c0_i32_0, %c0_i32_1 : i32, i32, i32
  }
  func.func @transform_17(%arg0: i32) -> (i32, i32, i32) {
    %c0_i32 = arith.constant 0 : i32
    %c0_i32_0 = arith.constant 0 : i32
    %c0_i32_1 = arith.constant 0 : i32
    %c0_i32_2 = arith.constant 0 : i32
    return %c0_i32, %c0_i32_0, %c0_i32_1 : i32, i32, i32
  }
  func.func @transform_18(%arg0: i32) -> (i32, i32, i32) {
    %c0_i32 = arith.constant 0 : i32
    %c0_i32_0 = arith.constant 0 : i32
    %c0_i32_1 = arith.constant 0 : i32
    %c0_i32_2 = arith.constant 0 : i32
    return %c0_i32, %c0_i32_0, %c0_i32_1 : i32, i32, i32
  }
  func.func @transform_19(%arg0: i32) -> (i32, i32) {
    %c0_i32 = arith.constant 0 : i32
    %c0_i32_0 = arith.constant 0 : i32
    %c0_i32_1 = arith.constant 0 : i32
    return %c0_i32, %c0_i32_0 : i32, i32
  }
  func.func @transform_20(%arg0: i32) -> (i32, i32, i32) {
    %c0_i32 = arith.constant 0 : i32
    %c0_i32_0 = arith.constant 0 : i32
    %c0_i32_1 = arith.constant 0 : i32
    %c0_i32_2 = arith.constant 0 : i32
    return %c0_i32, %c0_i32_0, %c0_i32_1 : i32, i32, i32
  }
}

</mosaic_0001>

<bundles_post_ra>
// kernel: rnn_trans_block_forward.1
= control target key start
LH: loop header
LB: loop body
LE: loop exit
PB: predicated region body
PF: predicated region fallthrough
CT: control target
= control target key end

     0   :  { %vm89_vm0 = vcmask 1045504   ;;  %vm79_vm1 = vcmask 48128   ;;  %v5392_v4 = vmov 0.0   ;;  %vm119_vm2 = vcmask 130048   ;;  %s5399_s25 = smov 3   ;;  %s7229_s28 = smov 7   ;;  %s7190_s3 = inlined_call_operand.vmem [shape: f32[16,16], index: 3, kind: input, shape index: {}]   ;;  %s7191_s2 = inlined_call_operand.vmem [shape: f32[6,16], index: 2, kind: input, shape index: {}]   ;;  %s7192_s0 = inlined_call_operand.vmem [shape: f32[2,18,6], index: 0, kind: input, shape index: {}]   ;;  %s7193_s4 = inlined_call_operand.vmem [shape: f32[1,16], index: 4, kind: input, shape index: {}]   ;;  %s7194_s5 = inlined_call_operand.vmem [shape: f32[16,2], index: 5, kind: input, shape index: {}]   ;;  %s7195_s19 = inlined_call_operand.vmem [shape: f32[2,288], index: 19, kind: output, shape index: {0}]   ;;  %s7196_s6 = inlined_call_operand.vmem [shape: f32[1,2], index: 6, kind: input, shape index: {}]   ;;  %s7197_s1 = inlined_call_operand.vmem [shape: f32[2,9,8], index: 1, kind: input, shape index: {}]   ;;  %s7198_s9 = inlined_call_operand.vmem [shape: f32[2,1,8], index: 9, kind: input, shape index: {}]   ;;  %s7199_s10 = inlined_call_operand.vmem [shape: f32[2,1,8], index: 10, kind: input, shape index: {}]   ;;  %s7200_s11 = inlined_call_operand.vmem [shape: f32[2,8,24], index: 11, kind: input, shape index: {}]   ;;  %s7201_s12 = inlined_call_operand.vmem [shape: f32[2,8,8], index: 12, kind: input, shape index: {}]   ;;  %s7202_s13 = inlined_call_operand.vmem [shape: f32[2,1,8], index: 13, kind: input, shape index: {}]   ;;  %s7203_s14 = inlined_call_operand.vmem [shape: f32[2,1,8], index: 14, kind: input, shape index: {}]   ;;  %s7204_s15 = inlined_call_operand.vmem [shape: f32[2,8,32], index: 15, kind: input, shape index: {}]   ;;  %s7205_s16 = inlined_call_operand.vmem [shape: f32[2,1,32], index: 16, kind: input, shape index: {}]   ;;  %s7206_s7 = inlined_call_operand.vmem [shape: f32[8,8], index: 7, kind: input, shape index: {}]   ;;  %s7207_s17 = inlined_call_operand.vmem [shape: f32[2,32,8], index: 17, kind: input, shape index: {}]   ;;  %s7208_s18 = inlined_call_operand.vmem [shape: f32[2,1,8], index: 18, kind: input, shape index: {}]   ;;  %s7209_s8 = inlined_call_operand.vmem [shape: f32[1,8], index: 8, kind: input, shape index: {}]   ;;  %s7210_s20 = inlined_call_operand.vmem [shape: f32[2,9,8], index: 20, kind: output, shape index: {1}]  }
   0x1   :  { %7279 = sst [smem:[#allocation16_spill]] %s7190_s3  ;;  %vm146_vm3 = vcmask 122880   ;;  %v5616_v18 = vld [vmem:[%s7196_s6] sm:$0x1]  ;;  %vm171_vm4 = vcmask 0   ;;  %vm2624_vm5 = vcmask 64512  }
   0x2   :  { %7280 = sst [smem:[#allocation17_spill]] %s7191_s2  ;;  %vm2628_vm6 = vcmask 57344   ;;  %vm2756_vm14 = vcmask 72704   ;;  %vm2760_vm15 = vcmask 65536   ;;  %s5396_s3 = smov 127  }
   0x3   :  { %7281 = sst [smem:[#allocation18_spill]] %s7192_s0  ;;  %s5398_s0 = smov 1  }
   0x4   :  { %7282 = sst [smem:[#allocation19_spill]] %s7193_s4  ;;  %s7259_s4 = smov 6  }
   0x5   :  { %7283 = sst [smem:[#allocation20_spill]] %s7194_s5  ;;  %s7257_s29 = smov 9  }
   0x6   :  { %s7284_s23 = sld [smem:[#allocation16_spill]]  ;;  %s7227_s30 = smov 10  }
   0x7   :  { %s7285_s26 = sld [smem:[#allocation17_spill]]  ;;  %s7235_s21 = smov 12  }
   0x8   :  { %s7286_s5 = sld [smem:[#allocation18_spill]]  ;;  %s7233_s2 = smov 15  }
   0x9   :  { %s7287_s24 = sld [smem:[#allocation20_spill]]  ;;  %s7223_s22 = smov 16  }
   0xa   :  { %s7288_s27 = sld [smem:[#allocation19_spill]] }
   0xc   :  { %v5533_v0 = vld [vmem:[%s7284_s23 + $0x8] sm:$0xff]  ;;  %v5538_v1 = vld [vmem:[%s7284_s23] sm:$0xff] }
   0xd   :  { %v5543_v2 = vld [vmem:[%s7285_s26] sm:$0x3f]  ;;  %137 = vmatpush.msra.mxu3 %v5533_v0  ;;  %263 = vmatpush.msra.mxu2 %v5533_v0  ;;  %s7231_s26 = smov 4  }
   0xe   :  { %4930 = vmatpush.msk.msra.mxu0 %vm89_vm0, %v5543_v2  ;;  %v73_v3 = vld [vmem:[%s7286_s5] sm:$0xff]  ;;  %v74_v5 = vld [vmem:[%s7286_s5 + $0x8] sm:$0xff]  ;;  %v75_v6 = vld [vmem:[%s7286_s5 + $0x10] sm:$0x3] }
   0xf   :  { %4931 = vmatmul.msk.f32.vlgmr.msra.gmra.mxu0 %vm79_vm1, %v73_v3  ;;  %138 = vmatpush.msra.mxu3 %v5538_v1  ;;  %v5567_v7 = vld [vmem:[%s7287_s24 + $0x8] sm:$0xff]  ;;  %v5577_v8 = vld [vmem:[%s7287_s24] sm:$0xff] }
  0x10   :  { %139 = vmatmul.f32.vlgmr.msra.gmra.mxu3 %v5392_v4  ;;  %264 = vmatpush.msra.mxu2 %v5538_v1  ;;  %v5590_v9 = vld [vmem:[%s7288_s27] ss:$0 sm:$0xff] }
  0x11   :  { %195 = vmatpush.msrb.mxu3 %v5533_v0  ;;  %232 = vmatpush.msra.mxu1 %v5567_v7 }
  0x12   :  { %165 = vmatpush.msrb.mxu0 %v5567_v7  ;;  %375 = vmatpush.msrb.mxu2 %v5567_v7 }
  0x13   :  { %196 = vmatpush.msrb.mxu3 %v5538_v1  ;;  %233 = vmatpush.msra.mxu1 %v5577_v8 }
  0x14   :  { %166 = vmatpush.msrb.mxu0 %v5577_v8  ;;  %376 = vmatpush.msrb.mxu2 %v5577_v8 }
  0x15   :  { %301 = vmatpush.msra.mxu3 %v5567_v7  ;;  %335 = vmatpush.msrb.mxu1 %v5533_v0 }
  0x16   :  { %447 = vmatpush.msra.mxu0 %v5567_v7 }
  0x17   :  { %4932 = vmatmul.msk.f32.gmra.mxu0 %vm79_vm1, %v74_v5  ;;  %302 = vmatpush.msra.mxu3 %v5577_v8 }
  0x18   :  { %336 = vmatpush.msrb.mxu1 %v5538_v1  ;;  %448 = vmatpush.msra.mxu0 %v5577_v8 }
  0x1f   :  { %4933 = vmatmul.msk.f32.gmra.mxu0 %vm79_vm1, %v75_v6 }
  0x8c   :  { %v110_v10 = vpop.f32.mrf.mxu0 }
  0x8d   :  { %v5593_v11 = vadd.f32 %v5590_v9, %v110_v10 }
  0x93   :  { %v5595_v12 = vpop.f32.mrf.mxu3 }
  0x94   :  { %v143_v13 = vadd.f32 %v5595_v12, %v5593_v11  ;;  %v5609_v16 = vpop.f32.mrf.mxu0 }
  0x96   :  { %5241 = vtanh.f32 %v143_v13 }
  0x9c   :  { %v5242_v14 = vpop.eup %5241  ;;  %v5611_v17 = vpop.f32.mrf.mxu0 }
  0x9d   :  { %4935 = vmatmul.msk.f32.vlgmr.msrb.gmra.mxu3 %vm119_vm2, %v5242_v14  ;;  %v145_v15 = vmax.f32 %v5242_v14, 0.0 }
  0x9e   :  { %409 = vmatpush.msrb.mxu3 %v5533_v0 }
  0x9f   :  { %4934 = vmatmul.msk.f32.vlgmr.msrb.gmra.mxu0 %vm119_vm2, %v145_v15  ;;  %147 = vst.msk [vmem:[%s7195_s19] sm:$0x1] %vm146_vm3, %v145_v15 }
  0xa0   :  { %410 = vmatpush.msrb.mxu3 %v5538_v1  ;;  %593 = vmatpush.msrb.mxu0 %v5567_v7 }
  0xa2   :  { %594 = vmatpush.msrb.mxu0 %v5577_v8 }
 0x11c   :  { %v168_v19 = vpop.f32.mrf.mxu0 }
 0x11d   :  { %v5619_v20 = vadd.f32 %v168_v19, %v5616_v18 }
 0x11f   :  { %172 = vst.msk [vmem:[#allocation2] sm:$0x1] %vm171_vm4, %v5619_v20 }
 0x120   :  { %v198_v21 = vpop.f32.mrf.mxu3 }
 0x121   :  { %v202_v22 = vrot.slane %v198_v21, 7 }
 0x123   :  { %v204_v23 = vadd.f32 %v202_v22, %v5593_v11 }
 0x125   :  { %5243 = vtanh.f32 %v204_v23 }
 0x12b   :  { %v5624_v24 = vpop.eup %5243 }
 0x12c   :  { %v246_v25 = vrot.slane %v5624_v24, 1  ;;  %v7219_v26 = vmax.f32 %v5624_v24, 0.0 }
 0x12e   :  { %4938 = vmatmul.msk.f32.vlgmr.msra.gmra.mxu2 %vm119_vm2, %v246_v25  ;;  %v215_v27 = vrot.slane %v7219_v26, 1 }
 0x12f   :  { %521 = vmatpush.msra.mxu2 %v5567_v7 }
 0x130   :  { %4937 = vmatmul.msk.f32.vlgmr.msra.gmra.mxu1 %vm119_vm2, %v215_v27 }
 0x131   :  { %481 = vmatpush.msra.mxu1 %v5533_v0  ;;  %522 = vmatpush.msra.mxu2 %v5577_v8 }
 0x133   :  { %482 = vmatpush.msra.mxu1 %v5538_v1 }
 0x1ad   :  { %v5643_v35 = vpop.f32.mrf.mxu1 }
 0x1b1   :  { %v266_v28 = vpop.f32.mrf.mxu2 }
 0x1b2   :  { %v270_v29 = vrot.slane %v266_v28, 6 }
 0x1b4   :  { %v272_v30 = vadd.f32 %v270_v29, %v5593_v11 }
 0x1b6   :  { %5245 = vtanh.f32 %v272_v30 }
 0x1bc   :  { %v5246_v31 = vpop.eup %5245 }
 0x1bd   :  { %v274_v32 = vmax.f32 %v5246_v31, 0.0  ;;  %v318_v33 = vrot.slane %v5246_v31, 2 }
 0x1bf   :  { %276 = vst.sshfl [vmem:[#allocation1] sm:$0xff pattern:$0x73625140] %v274_v32  ;;  %4940 = vmatmul.msk.f32.vlgmr.msrb.gmra.mxu1 %vm119_vm2, %v318_v33  ;;  %v284_v34 = vrot.slane %v274_v32, 2 }
 0x1c0   :  { %627 = vmatpush.msrb.mxu1 %v5533_v0 }
 0x1c1   :  { %4939 = vmatmul.msk.f32.vlgmr.msra.gmra.mxu3 %vm119_vm2, %v284_v34 }
 0x1c2   :  { %555 = vmatpush.msra.mxu3 %v5533_v0  ;;  %628 = vmatpush.msrb.mxu1 %v5538_v1 }
 0x1c4   :  { %556 = vmatpush.msra.mxu3 %v5538_v1 }
 0x1c6   :  { %v5646_v42 = vld [vmem:[#allocation1 + $0x1] ss:$4 sm:$0xff] }
 0x23c   :  { %v338_v36 = vpop.f32.mrf.mxu1 }
 0x23d   :  { %v342_v37 = vrot.slane %v338_v36, 5 }
 0x23f   :  { %v344_v38 = vadd.f32 %v342_v37, %v5593_v11 }
 0x241   :  { %5247 = vtanh.f32 %v344_v38 }
 0x244   :  { %v5654_v44 = vpop.f32.mrf.mxu3 }
 0x247   :  { %v5248_v39 = vpop.eup %5247 }
 0x248   :  { %v392_v40 = vrot.slane %v5248_v39, 3  ;;  %v346_v41 = vmax.f32 %v5248_v39, 0.0 }
 0x24a   :  { %4943 = vmatmul.msk.f32.vlgmr.msrb.gmra.mxu3 %vm119_vm2, %v392_v40  ;;  %348 = vst.sshfl [vmem:[#allocation1] sm:$0xff pattern:$0x73625140] %v346_v41  ;;  %v358_v43 = vrot.slane %v346_v41, 3 }
 0x24b   :  { %701 = vmatpush.msrb.mxu3 %v5533_v0 }
 0x24c   :  { %4942 = vmatmul.msk.f32.vlgmr.msrb.gmra.mxu2 %vm119_vm2, %v358_v43 }
 0x24d   :  { %667 = vmatpush.msrb.mxu2 %v5567_v7  ;;  %702 = vmatpush.msrb.mxu3 %v5538_v1 }
 0x24f   :  { %668 = vmatpush.msrb.mxu2 %v5577_v8 }
 0x251   :  { %v5657_v51 = vld [vmem:[#allocation1 + $0x1] ss:$4 sm:$0xff] }
 0x2cd   :  { %v412_v45 = vpop.f32.mrf.mxu3 }
 0x2ce   :  { %v416_v46 = vrot.slane %v412_v45, 4 }
 0x2d0   :  { %v418_v47 = vadd.f32 %v416_v46, %v5593_v11 }
 0x2d2   :  { %5249 = vtanh.f32 %v418_v47 }
 0x2d8   :  { %v5250_v48 = vpop.eup %5249 }
 0x2d9   :  { %v420_v49 = vmax.f32 %v5250_v48, 0.0  ;;  %v464_v50 = vrot.slane %v5250_v48, 4 }
 0x2db   :  { %422 = vst.sshfl [vmem:[#allocation1] sm:$0xff pattern:$0x73625140] %v420_v49  ;;  %4945 = vmatmul.msk.f32.vlgmr.msra.gmra.mxu1 %vm119_vm2, %v464_v50  ;;  %v430_v52 = vrot.slane %v420_v49, 4 }
 0x2dc   :  { %761 = vmatpush.msra.mxu1 %v5533_v0 }
 0x2dd   :  { %4944 = vmatmul.msk.f32.vlgmr.msra.gmra.mxu0 %vm119_vm2, %v430_v52 }
 0x2de   :  { %728 = vmatpush.msra.mxu0 %v5567_v7  ;;  %762 = vmatpush.msra.mxu1 %v5538_v1 }
 0x2e0   :  { %729 = vmatpush.msra.mxu0 %v5577_v8 }
 0x2e2   :  { %v5666_v59 = vld [vmem:[#allocation1 + $0x2] ss:$4 sm:$0xff] }
 0x358   :  { %v484_v53 = vpop.f32.mrf.mxu1 }
 0x359   :  { %v488_v54 = vrot.slane %v484_v53, 3 }
 0x35b   :  { %v490_v55 = vadd.f32 %v488_v54, %v5593_v11 }
 0x35d   :  { %5251 = vtanh.f32 %v490_v55 }
 0x363   :  { %v5252_v56 = vpop.eup %5251 }
 0x364   :  { %v492_v57 = vmax.f32 %v5252_v56, 0.0  ;;  %v538_v58 = vrot.slane %v5252_v56, 5 }
 0x366   :  { %494 = vst.sshfl [vmem:[#allocation1] sm:$0xff pattern:$0x73625140] %v492_v57  ;;  %4948 = vmatmul.msk.f32.vlgmr.msra.gmra.mxu3 %vm119_vm2, %v538_v58  ;;  %v504_v60 = vrot.slane %v492_v57, 5 }
 0x367   :  { %831 = vmatpush.msra.mxu3 %v5533_v0 }
 0x368   :  { %4947 = vmatmul.msk.f32.vlgmr.msra.gmra.mxu2 %vm119_vm2, %v504_v60 }
 0x369   :  { %797 = vmatpush.msra.mxu2 %v5567_v7  ;;  %832 = vmatpush.msra.mxu3 %v5538_v1 }
 0x36b   :  { %798 = vmatpush.msra.mxu2 %v5577_v8 }
 0x36d   :  { %v5675_v6 = vld [vmem:[#allocation1 + $0x2] ss:$4 sm:$0xff] }
 0x36e   :  { %7289 = vst [vmem:[#allocation5_spill] sm:$0xff] %v5675_v6 }
 0x3e9   :  { %v558_v61 = vpop.f32.mrf.mxu3 }
 0x3ea   :  { %v562_v62 = vrot.slane %v558_v61, 2 }
 0x3ec   :  { %v564_v63 = vadd.f32 %v562_v62, %v5593_v11 }
 0x3ee   :  { %5253 = vtanh.f32 %v564_v63 }
 0x3f4   :  { %v5254_v3 = vpop.eup %5253 }
 0x3f5   :  { %v566_v4 = vmax.f32 %v5254_v3, 0.0  ;;  %v610_v5 = vrot.slane %v5254_v3, 6 }
 0x3f7   :  { %568 = vst.sshfl [vmem:[#allocation1] sm:$0xff pattern:$0x73625140] %v566_v4  ;;  %4950 = vmatmul.msk.f32.vlgmr.msrb.gmra.mxu1 %vm119_vm2, %v610_v5  ;;  %v576_v10 = vrot.slane %v566_v4, 6 }
 0x3f8   :  { %902 = vmatpush.msrb.mxu1 %v5533_v0 }
 0x3f9   :  { %4949 = vmatmul.msk.f32.vlgmr.msrb.gmra.mxu0 %vm119_vm2, %v576_v10 }
 0x3fa   :  { %868 = vmatpush.msrb.mxu0 %v5567_v7  ;;  %903 = vmatpush.msrb.mxu1 %v5538_v1 }
 0x3fc   :  { %869 = vmatpush.msrb.mxu0 %v5577_v8 }
 0x3fe   :  { %v5684_v23 = vld [vmem:[#allocation1 + $0x3] ss:$4 sm:$0xff] }
 0x3ff   :  { %7290 = vst [vmem:[#allocation6_spill] sm:$0xff] %v5684_v23 }
 0x474   :  { %v630_v13 = vpop.f32.mrf.mxu1 }
 0x475   :  { %v634_v14 = vrot.slane %v630_v13, 1 }
 0x477   :  { %v636_v15 = vadd.f32 %v634_v14, %v5593_v11  ;;  %v5694_v11 = vadd.f32 %v5590_v9, %v5609_v16 }
 0x479   :  { %5255 = vtanh.f32 %v636_v15 }
 0x47f   :  { %v5256_v19 = vpop.eup %5255 }
 0x480   :  { %v638_v21 = vmax.f32 %v5256_v19, 0.0  ;;  %v684_v22 = vrot.slane %v5256_v19, 7 }
 0x482   :  { %640 = vst.sshfl [vmem:[#allocation1] sm:$0xff pattern:$0x73625140] %v638_v21  ;;  %4953 = vmatmul.msk.f32.vlgmr.msrb.gmra.mxu3 %vm119_vm2, %v684_v22  ;;  %v650_v25 = vrot.slane %v638_v21, 7 }
 0x483   :  { %975 = vmatpush.msrb.mxu3 %v5533_v0 }
 0x484   :  { %4952 = vmatmul.msk.f32.vlgmr.msrb.gmra.mxu2 %vm119_vm2, %v650_v25 }
 0x485   :  { %941 = vmatpush.msrb.mxu2 %v5567_v7  ;;  %976 = vmatpush.msrb.mxu3 %v5538_v1 }
 0x487   :  { %942 = vmatpush.msrb.mxu2 %v5577_v8 }
 0x489   :  { %v5721_v46 = vld [vmem:[#allocation1 + $0x3] ss:$4 sm:$0xff] }
 0x505   :  { %v704_v27 = vpop.f32.mrf.mxu3 }
 0x506   :  { %v707_v28 = vadd.f32 %v704_v27, %v5694_v11 }
 0x508   :  { %5257 = vtanh.f32 %v707_v28 }
 0x50e   :  { %v5258_v29 = vpop.eup %5257 }
 0x50f   :  { %v709_v30 = vmax.f32 %v5258_v29, 0.0  ;;  %4955 = vmatmul.msk.f32.vlgmr.msra.gmra.mxu1 %vm119_vm2, %v5258_v29 }
 0x510   :  { %1046 = vmatpush.msra.mxu1 %v5533_v0 }
 0x511   :  { %4954 = vmatmul.msk.f32.vlgmr.msra.gmra.mxu0 %vm119_vm2, %v709_v30  ;;  %710 = vst.msk [vmem:[%s7195_s19 + $0x2] sm:$0x1] %vm146_vm3, %v709_v30 }
 0x512   :  { %1012 = vmatpush.msra.mxu0 %v5567_v7  ;;  %1047 = vmatpush.msra.mxu1 %v5538_v1 }
 0x514   :  { %1013 = vmatpush.msra.mxu0 %v5577_v8 }
 0x58c   :  { %v764_v16 = vpop.f32.mrf.mxu1 }
 0x58d   :  { %v768_v31 = vrot.slane %v764_v16, 7 }
 0x58f   :  { %v770_v32 = vadd.f32 %v768_v31, %v5694_v11 }
 0x591   :  { %5259 = vtanh.f32 %v770_v32 }
 0x597   :  { %v5708_v33 = vpop.eup %5259 }
 0x598   :  { %v7217_v34 = vmax.f32 %v5708_v33, 0.0  ;;  %v814_v36 = vrot.slane %v5708_v33, 1 }
 0x59a   :  { %4958 = vmatmul.msk.f32.vlgmr.msra.gmra.mxu3 %vm119_vm2, %v814_v36  ;;  %v780_v37 = vrot.slane %v7217_v34, 1 }
 0x59b   :  { %1119 = vmatpush.msra.mxu3 %v5533_v0 }
 0x59c   :  { %4957 = vmatmul.msk.f32.vlgmr.msra.gmra.mxu2 %vm119_vm2, %v780_v37 }
 0x59d   :  { %1085 = vmatpush.msra.mxu2 %v5567_v7  ;;  %1120 = vmatpush.msra.mxu3 %v5538_v1 }
 0x59f   :  { %1086 = vmatpush.msra.mxu2 %v5577_v8 }
 0x61d   :  { %v834_v38 = vpop.f32.mrf.mxu3 }
 0x61e   :  { %v838_v39 = vrot.slane %v834_v38, 6 }
 0x620   :  { %v840_v40 = vadd.f32 %v838_v39, %v5694_v11 }
 0x622   :  { %5261 = vtanh.f32 %v840_v40 }
 0x628   :  { %v5262_v41 = vpop.eup %5261 }
 0x629   :  { %v842_v43 = vmax.f32 %v5262_v41, 0.0  ;;  %v885_v45 = vrot.slane %v5262_v41, 2 }
 0x62b   :  { %844 = vst.sshfl [vmem:[#allocation1] sm:$0xff pattern:$0x73625140] %v842_v43  ;;  %4960 = vmatmul.msk.f32.vlgmr.msrb.gmra.mxu1 %vm119_vm2, %v885_v45  ;;  %v851_v47 = vrot.slane %v842_v43, 2  ;;  %v117_v45 = vadd.f32 %v5590_v9, %v5611_v17 }
 0x62c   :  { %1190 = vmatpush.msrb.mxu1 %v5533_v0 }
 0x62d   :  { %4959 = vmatmul.msk.f32.vlgmr.msrb.gmra.mxu0 %vm119_vm2, %v851_v47 }
 0x62e   :  { %1156 = vmatpush.msrb.mxu0 %v5567_v7  ;;  %1191 = vmatpush.msrb.mxu1 %v5538_v1 }
 0x630   :  { %1157 = vmatpush.msrb.mxu0 %v5577_v8 }
 0x632   :  { %v5730_v55 = vld [vmem:[#allocation1 + $0x1] ss:$4 sm:$0xff] }
 0x6a8   :  { %v905_v48 = vpop.f32.mrf.mxu1 }
 0x6a9   :  { %v909_v49 = vrot.slane %v905_v48, 5 }
 0x6ab   :  { %v911_v50 = vadd.f32 %v909_v49, %v5694_v11 }
 0x6ad   :  { %5263 = vtanh.f32 %v911_v50 }
 0x6b3   :  { %v5264_v52 = vpop.eup %5263 }
 0x6b4   :  { %v913_v53 = vmax.f32 %v5264_v52, 0.0  ;;  %v958_v54 = vrot.slane %v5264_v52, 3 }
 0x6b6   :  { %915 = vst.sshfl [vmem:[#allocation1] sm:$0xff pattern:$0x73625140] %v913_v53  ;;  %4963 = vmatmul.msk.f32.vlgmr.msrb.gmra.mxu3 %vm119_vm2, %v958_v54  ;;  %v924_v56 = vrot.slane %v913_v53, 3 }
 0x6b7   :  { %1263 = vmatpush.msrb.mxu3 %v5533_v0 }
 0x6b8   :  { %4962 = vmatmul.msk.f32.vlgmr.msrb.gmra.mxu2 %vm119_vm2, %v924_v56  ;;  %v5807_v56 = vpop.f32.mrf.mxu0 }
 0x6b9   :  { %1229 = vmatpush.msrb.mxu2 %v5567_v7  ;;  %1264 = vmatpush.msrb.mxu3 %v5538_v1 }
 0x6bb   :  { %1230 = vmatpush.msrb.mxu2 %v5577_v8 }
 0x6bd   :  { %v5739_v3 = vld [vmem:[#allocation1 + $0x1] ss:$4 sm:$0xff] }
 0x739   :  { %v978_v57 = vpop.f32.mrf.mxu3 }
 0x73a   :  { %v982_v58 = vrot.slane %v978_v57, 4  ;;  %v5809_v57 = vpop.f32.mrf.mxu0 }
 0x73c   :  { %v984_v60 = vadd.f32 %v982_v58, %v5694_v11 }
 0x73e   :  { %5265 = vtanh.f32 %v984_v60 }
 0x742   :  { %v5811_v58 = vpop.f32.mrf.mxu0 }
 0x744   :  { %v5266_v61 = vpop.eup %5265 }
 0x745   :  { %v986_v62 = vmax.f32 %v5266_v61, 0.0  ;;  %v1029_v63 = vrot.slane %v5266_v61, 4 }
 0x747   :  { %988 = vst.sshfl [vmem:[#allocation1] sm:$0xff pattern:$0x73625140] %v986_v62  ;;  %4965 = vmatmul.msk.f32.vlgmr.msra.gmra.mxu1 %vm119_vm2, %v1029_v63  ;;  %v995_v4 = vrot.slane %v986_v62, 4 }
 0x748   :  { %1323 = vmatpush.msra.mxu1 %v5533_v0 }
 0x749   :  { %4964 = vmatmul.msk.f32.vlgmr.msra.gmra.mxu0 %vm119_vm2, %v995_v4 }
 0x74a   :  { %1290 = vmatpush.msra.mxu0 %v5567_v7  ;;  %1324 = vmatpush.msra.mxu1 %v5538_v1  ;;  %v5813_v60 = vpop.f32.mrf.mxu0 }
 0x74c   :  { %1291 = vmatpush.msra.mxu0 %v5577_v8 }
 0x74e   :  { %v5748_v21 = vld [vmem:[#allocation1 + $0x2] ss:$4 sm:$0xff] }
 0x74f   :  { %7291 = vst [vmem:[#allocation7_spill] sm:$0xff] %v5748_v21 }
 0x7c4   :  { %v1049_v5 = vpop.f32.mrf.mxu1 }
 0x7c5   :  { %v1053_v10 = vrot.slane %v1049_v5, 3 }
 0x7c6   :  { %v5815_v61 = vpop.f32.mrf.mxu0 }
 0x7c7   :  { %v1055_v13 = vadd.f32 %v1053_v10, %v5694_v11 }
 0x7c9   :  { %5267 = vtanh.f32 %v1055_v13 }
 0x7cf   :  { %v5268_v14 = vpop.eup %5267 }
 0x7d0   :  { %v1057_v15 = vmax.f32 %v5268_v14, 0.0  ;;  %v1102_v19 = vrot.slane %v5268_v14, 5 }
 0x7d2   :  { %1059 = vst.sshfl [vmem:[#allocation1] sm:$0xff pattern:$0x73625140] %v1057_v15  ;;  %4968 = vmatmul.msk.f32.vlgmr.msra.gmra.mxu3 %vm119_vm2, %v1102_v19  ;;  %v1068_v22 = vrot.slane %v1057_v15, 5 }
 0x7d3   :  { %4981 = vmatpush.msk.msra.mxu3 %vm89_vm0, %v5543_v2  ;;  %vm2791_vm0 = vcmask 1040384  }
 0x7d4   :  { %4967 = vmatmul.msk.f32.vlgmr.msra.gmra.mxu2 %vm119_vm2, %v1068_v22 }
 0x7d5   :  { %1359 = vmatpush.msra.mxu2 %v5567_v7 }
 0x7d7   :  { %1360 = vmatpush.msra.mxu2 %v5577_v8 }
 0x7d9   :  { %v5757_v31 = vld [vmem:[#allocation1 + $0x2] ss:$4 sm:$0xff] }
 0x7da   :  { %7292 = vst [vmem:[#allocation8_spill] sm:$0xff] %v5757_v31 }
 0x855   :  { %v1122_v25 = vpop.f32.mrf.mxu3 }
 0x856   :  { %v1126_v27 = vrot.slane %v1122_v25, 2 }
 0x858   :  { %v1128_v28 = vadd.f32 %v1126_v27, %v5694_v11 }
 0x85a   :  { %5269 = vtanh.f32 %v1128_v28 }
 0x860   :  { %v5270_v29 = vpop.eup %5269 }
 0x861   :  { %v1130_v30 = vmax.f32 %v5270_v29, 0.0  ;;  %v1173_v16 = vrot.slane %v5270_v29, 6 }
 0x863   :  { %1132 = vst.sshfl [vmem:[#allocation1] sm:$0xff pattern:$0x73625140] %v1130_v30  ;;  %4970 = vmatmul.msk.f32.vlgmr.msrb.gmra.mxu1 %vm119_vm2, %v1173_v16  ;;  %v1139_v2 = vrot.slane %v1130_v30, 6 }
 0x864   :  { %1464 = vmatpush.msrb.mxu1 %v5533_v0 }
 0x865   :  { %4969 = vmatmul.msk.f32.vlgmr.msrb.gmra.mxu0 %vm119_vm2, %v1139_v2 }
 0x866   :  { %1435 = vmatpush.msrb.mxu0 %v5567_v7  ;;  %1465 = vmatpush.msrb.mxu1 %v5538_v1 }
 0x868   :  { %1436 = vmatpush.msrb.mxu0 %v5577_v8 }
 0x86a   :  { %v5766_v41 = vld [vmem:[#allocation1 + $0x3] ss:$4 sm:$0xff] }
 0x8e0   :  { %v1193_v32 = vpop.f32.mrf.mxu1 }
 0x8e1   :  { %v1197_v36 = vrot.slane %v1193_v32, 1 }
 0x8e2   :  { %v5817_v62 = vpop.f32.mrf.mxu0 }
 0x8e3   :  { %v1199_v37 = vadd.f32 %v1197_v36, %v5694_v11  ;;  %v4978_v11 = vld [vmem:[%s7286_s5 + $0x18] sm:$0xff] }
 0x8e5   :  { %5271 = vtanh.f32 %v1199_v37 }
 0x8eb   :  { %v5272_v38 = vpop.eup %5271 }
 0x8ec   :  { %v1201_v39 = vmax.f32 %v5272_v38, 0.0  ;;  %v1246_v40 = vrot.slane %v5272_v38, 7 }
 0x8ee   :  { %1203 = vst.sshfl [vmem:[#allocation1] sm:$0xff pattern:$0x73625140] %v1201_v39  ;;  %4973 = vmatmul.msk.f32.vlgmr.msrb.gmra.mxu3 %vm119_vm2, %v1246_v40  ;;  %v1212_v43 = vrot.slane %v1201_v39, 7 }
 0x8ef   :  { %1742 = vmatpush.msrb.mxu3 %v5533_v0 }
 0x8f0   :  { %4972 = vmatmul.msk.f32.vlgmr.msrb.gmra.mxu2 %vm119_vm2, %v1212_v43 }
 0x8f1   :  { %1500 = vmatpush.msrb.mxu2 %v5567_v7  ;;  %1743 = vmatpush.msrb.mxu3 %v5538_v1 }
 0x8f3   :  { %1501 = vmatpush.msrb.mxu2 %v5577_v8 }
 0x8f5   :  { %v5848_v40 = vld [vmem:[#allocation1 + $0x3] ss:$4 sm:$0xff] }
 0x8f6   :  { %4982 = vmatmul.msk.f32.vlgmr.msra.gmra.mxu3 %vm79_vm1, %v4978_v11  ;;  %7294 = vst [vmem:[#allocation10_spill] sm:$0xff] %v5848_v40  ;;  %v5856_v11 = vpop.f32.mrf.mxu2 }
 0x8f7   :  { %1884 = vmatpush.msra.mxu3 %v5533_v0 }
 0x8f9   :  { %1885 = vmatpush.msra.mxu3 %v5538_v1 }
 0x971   :  { %v1266_v47 = vpop.f32.mrf.mxu3 }
 0x972   :  { %v1269_v48 = vadd.f32 %v1266_v47, %v117_v45 }
 0x974   :  { %5273 = vtanh.f32 %v1269_v48 }
 0x979   :  { %v1405_v49 = vpop.f32.mrf.mxu3 }
 0x97a   :  { %v5274_v50 = vpop.eup %5273  ;;  %v5783_v52 = vadd.f32 %v5590_v9, %v1405_v49 }
 0x97b   :  { %v1271_v53 = vmax.f32 %v5274_v50, 0.0  ;;  %4975 = vmatmul.msk.f32.vlgmr.msra.gmra.mxu1 %vm119_vm2, %v5274_v50 }
 0x97c   :  { %v1414_v54 = vadd.f32 %v5783_v52, %v5595_v12  ;;  %1567 = vmatpush.msra.mxu1 %v5567_v7 }
 0x97d   :  { %4974 = vmatmul.msk.f32.vlgmr.msra.gmra.mxu0 %vm119_vm2, %v1271_v53  ;;  %1272 = vst.msk [vmem:[%s7195_s19 + $0x4] sm:$0x1] %vm146_vm3, %v1271_v53 }
 0x97e   :  { %5275 = vtanh.f32 %v1414_v54  ;;  %1530 = vmatpush.msra.mxu0 %v5533_v0  ;;  %1568 = vmatpush.msra.mxu1 %v5577_v8 }
 0x980   :  { %1531 = vmatpush.msra.mxu0 %v5538_v1 }
 0x984   :  { %v5276_v17 = vpop.eup %5275 }
 0x985   :  { %4986 = vmatmul.msk.f32.vlgmr.msrb.gmra.mxu1 %vm119_vm2, %v5276_v17  ;;  %v1416_v12 = vmax.f32 %v5276_v17, 0.0  ;;  %v4979_v17 = vld [vmem:[%s7286_s5 + $0x20] sm:$0xff] }
 0x986   :  { %1672 = vmatpush.msrb.mxu1 %v5533_v0  ;;  %4983 = vmatmul.msk.f32.gmra.mxu3 %vm79_vm1, %v4979_v17 }
 0x987   :  { %4985 = vmatmul.msk.f32.vlgmr.msrb.gmra.mxu0 %vm119_vm2, %v1416_v12  ;;  %1417 = vst.msk [vmem:[%s7195_s19 + $0x1] sm:$0x1] %vm146_vm3, %v1416_v12 }
 0x988   :  { %1639 = vmatpush.msrb.mxu0 %v5567_v7  ;;  %1673 = vmatpush.msrb.mxu1 %v5538_v1 }
 0x98a   :  { %1640 = vmatpush.msrb.mxu0 %v5577_v8 }
 0x9f8   :  { %v1326_v63 = vpop.f32.mrf.mxu1 }
 0x9f9   :  { %v1330_v4 = vrot.slane %v1326_v63, 7 }
 0x9fa   :  { %v5819_v10 = vpop.f32.mrf.mxu0 }
 0x9fb   :  { %v1332_v5 = vadd.f32 %v1330_v4, %v117_v45  ;;  %v5858_v45 = vpop.f32.mrf.mxu2 }
 0x9fd   :  { %5277 = vtanh.f32 %v1332_v5 }
 0xa02   :  { %v1467_v13 = vpop.f32.mrf.mxu1 }
 0xa03   :  { %v5821_v14 = vpop.eup %5277  ;;  %v1471_v15 = vrot.slane %v1467_v13, 7  ;;  %v5860_v47 = vpop.f32.mrf.mxu2 }
 0xa04   :  { %7293 = vst [vmem:[#allocation9_spill] sm:$0xff] %v5821_v14  ;;  %v7215_v19 = vmax.f32 %v5821_v14, 0.0  ;;  %v1438_v22 = vpop.f32.mrf.mxu0 }
 0xa05   :  { %v1473_v25 = vadd.f32 %v1471_v15, %v5783_v52  ;;  %v5826_v27 = vadd.f32 %v1438_v22, %v5616_v18 }
 0xa06   :  { %v1342_v28 = vrot.slane %v7215_v19, 1 }
 0xa07   :  { %5279 = vtanh.f32 %v1473_v25  ;;  %1441 = vst.msk [vmem:[#allocation2 + $0x1] sm:$0x1] %vm171_vm4, %v5826_v27 }
 0xa08   :  { %4977 = vmatmul.msk.f32.vlgmr.msra.gmra.mxu2 %vm119_vm2, %v1342_v28 }
 0xa09   :  { %1600 = vmatpush.msra.mxu2 %v5533_v0 }
 0xa0b   :  { %1601 = vmatpush.msra.mxu2 %v5538_v1  ;;  %v5862_v48 = vpop.f32.mrf.mxu2 }
 0xa0d   :  { %v5835_v29 = vpop.eup %5279 }
 0xa0e   :  { %v7218_v30 = vmax.f32 %v5835_v29, 0.0  ;;  %v1513_v18 = vrot.slane %v5835_v29, 1 }
 0xa10   :  { %4989 = vmatmul.msk.f32.vlgmr.msra.gmra.mxu0 %vm119_vm2, %v1513_v18  ;;  %v1483_v16 = vrot.slane %v7218_v30, 1  ;;  %v4980_v18 = vld [vmem:[%s7286_s5 + $0x28] sm:$0x3]  ;;  %s7225_s5 = smov 13  }
 0xa11   :  { %1781 = vmatpush.msra.mxu0 %v5567_v7  ;;  %4984 = vmatmul.msk.f32.gmra.mxu3 %vm79_vm1, %v4980_v18  ;;  %vm242_vm1 = vcmask 8200  }
 0xa12   :  { %4988 = vmatmul.msk.f32.vlgmr.msrb.gmra.mxu2 %vm119_vm2, %v1483_v16 }
 0xa13   :  { %1709 = vmatpush.msrb.mxu2 %v5567_v7  ;;  %1782 = vmatpush.msra.mxu0 %v5577_v8  ;;  %v5864_v49 = vpop.f32.mrf.mxu2 }
 0xa15   :  { %1710 = vmatpush.msrb.mxu2 %v5577_v8 }
 0xa1b   :  { %v5866_v50 = vpop.f32.mrf.mxu2 }
 0xa23   :  { %v5868_v53 = vpop.f32.mrf.mxu2 }
 0xa8b   :  { %v5870_v54 = vpop.f32.mrf.mxu2 }
 0xa8d   :  { %v1533_v2 = vpop.f32.mrf.mxu0 }
 0xa8e   :  { %v1537_v32 = vrot.slane %v1533_v2, 6 }
 0xa90   :  { %v1539_v36 = vadd.f32 %v1537_v32, %v5783_v52 }
 0xa92   :  { %5281 = vtanh.f32 %v1539_v36 }
 0xa95   :  { %v5876_v12 = vpop.f32.mrf.mxu2 }
 0xa98   :  { %v5282_v37 = vpop.eup %5281 }
 0xa99   :  { %v1541_v38 = vmax.f32 %v5282_v37, 0.0  ;;  %v1583_v39 = vrot.slane %v5282_v37, 2 }
 0xa9b   :  { %1543 = vst.sshfl [vmem:[#allocation1] sm:$0xff pattern:$0x73625140] %v1541_v38  ;;  %4991 = vmatmul.msk.f32.vlgmr.msra.gmra.mxu2 %vm119_vm2, %v1583_v39  ;;  %v1550_v43 = vrot.slane %v1541_v38, 2 }
 0xa9c   :  { %1851 = vmatpush.msra.mxu2 %v5567_v7 }
 0xa9d   :  { %4990 = vmatmul.msk.f32.vlgmr.msra.gmra.mxu1 %vm119_vm2, %v1550_v43 }
 0xa9e   :  { %1814 = vmatpush.msra.mxu1 %v5533_v0  ;;  %1852 = vmatpush.msra.mxu2 %v5577_v8 }
 0xaa0   :  { %1815 = vmatpush.msra.mxu1 %v5538_v1 }
 0xaa2   :  { %v5879_v25 = vld [vmem:[#allocation1 + $0x1] ss:$4 sm:$0xff] }
 0xb1a   :  { %v5891_v16 = vpop.f32.mrf.mxu1 }
 0xb1e   :  { %v1603_v63 = vpop.f32.mrf.mxu2 }
 0xb1f   :  { %v1607_v4 = vrot.slane %v1603_v63, 5  ;;  %v1408_v63 = vpop.f32.mrf.mxu3 }
 0xb21   :  { %v1609_v5 = vadd.f32 %v1607_v4, %v5783_v52 }
 0xb23   :  { %5283 = vtanh.f32 %v1609_v5 }
 0xb27   :  { %v5902_v4 = vpop.f32.mrf.mxu3 }
 0xb29   :  { %v5284_v13 = vpop.eup %5283 }
 0xb2a   :  { %v1611_v15 = vmax.f32 %v5284_v13, 0.0  ;;  %v1655_v22 = vrot.slane %v5284_v13, 3 }
 0xb2c   :  { %1613 = vst.sshfl [vmem:[#allocation1] sm:$0xff pattern:$0x73625140] %v1611_v15  ;;  %4994 = vmatmul.msk.f32.vlgmr.msrb.gmra.mxu1 %vm119_vm2, %v1655_v22  ;;  %v1622_v28 = vrot.slane %v1611_v15, 3 }
 0xb2d   :  { %1956 = vmatpush.msrb.mxu1 %v5533_v0 }
 0xb2e   :  { %4993 = vmatmul.msk.f32.vlgmr.msrb.gmra.mxu0 %vm119_vm2, %v1622_v28 }
 0xb2f   :  { %1923 = vmatpush.msrb.mxu0 %v5567_v7  ;;  %1957 = vmatpush.msrb.mxu1 %v5538_v1 }
 0xb31   :  { %1924 = vmatpush.msrb.mxu0 %v5577_v8 }
 0xb33   :  { %v5894_v43 = vld [vmem:[#allocation1 + $0x1] ss:$4 sm:$0xff] }
 0xba9   :  { %v1675_v2 = vpop.f32.mrf.mxu1 }
 0xbaa   :  { %v1679_v32 = vrot.slane %v1675_v2, 4 }
 0xbac   :  { %v1681_v36 = vadd.f32 %v1679_v32, %v5783_v52 }
 0xbae   :  { %5285 = vtanh.f32 %v1681_v36 }
 0xbb4   :  { %v5286_v37 = vpop.eup %5285 }
 0xbb5   :  { %v1683_v38 = vmax.f32 %v5286_v37, 0.0  ;;  %v1725_v39 = vrot.slane %v5286_v37, 4 }
 0xbb7   :  { %1685 = vst.sshfl [vmem:[#allocation1] sm:$0xff pattern:$0x73625140] %v1683_v38  ;;  %4996 = vmatmul.msk.f32.vlgmr.msrb.gmra.mxu3 %vm119_vm2, %v1725_v39  ;;  %v1692_v17 = vrot.slane %v1683_v38, 4 }
 0xbb8   :  { %2015 = vmatpush.msrb.mxu3 %v5533_v0 }
 0xbb9   :  { %4995 = vmatmul.msk.f32.vlgmr.msrb.gmra.mxu2 %vm119_vm2, %v1692_v17 }
 0xbba   :  { %1983 = vmatpush.msrb.mxu2 %v5567_v7  ;;  %2016 = vmatpush.msrb.mxu3 %v5538_v1 }
 0xbbc   :  { %1984 = vmatpush.msrb.mxu2 %v5577_v8 }
 0xbbe   :  { %v5905_v2 = vld [vmem:[#allocation1 + $0x2] ss:$4 sm:$0xff] }
 0xbbf   :  { %7295 = vst [vmem:[#allocation11_spill] sm:$0xff] %v5905_v2 }
 0xc3a   :  { %v1745_v5 = vpop.f32.mrf.mxu3 }
 0xc3b   :  { %v1749_v13 = vrot.slane %v1745_v5, 3 }
 0xc3d   :  { %v1751_v15 = vadd.f32 %v1749_v13, %v5783_v52 }
 0xc3f   :  { %5287 = vtanh.f32 %v1751_v15 }
 0xc45   :  { %v5288_v22 = vpop.eup %5287 }
 0xc46   :  { %v1753_v28 = vmax.f32 %v5288_v22, 0.0  ;;  %v1797_v18 = vrot.slane %v5288_v22, 5 }
 0xc48   :  { %1755 = vst.sshfl [vmem:[#allocation1] sm:$0xff pattern:$0x73625140] %v1753_v28  ;;  %4999 = vmatmul.msk.f32.vlgmr.msra.gmra.mxu1 %vm119_vm2, %v1797_v18  ;;  %v1764_v32 = vrot.slane %v1753_v28, 5 }
 0xc49   :  { %2084 = vmatpush.msra.mxu1 %v5533_v0 }
 0xc4a   :  { %4998 = vmatmul.msk.f32.vlgmr.msra.gmra.mxu0 %vm119_vm2, %v1764_v32 }
 0xc4b   :  { %2051 = vmatpush.msra.mxu0 %v5567_v7  ;;  %2085 = vmatpush.msra.mxu1 %v5538_v1 }
 0xc4d   :  { %2052 = vmatpush.msra.mxu0 %v5577_v8 }
 0xc4f   :  { %v5914_v13 = vld [vmem:[#allocation1 + $0x2] ss:$4 sm:$0xff] }
 0xcc5   :  { %v1817_v36 = vpop.f32.mrf.mxu1 }
 0xcc6   :  { %v1821_v37 = vrot.slane %v1817_v36, 2 }
 0xcc8   :  { %v1823_v38 = vadd.f32 %v1821_v37, %v5783_v52 }
 0xcca   :  { %5289 = vtanh.f32 %v1823_v38 }
 0xcd0   :  { %v5290_v39 = vpop.eup %5289 }
 0xcd1   :  { %v1825_v17 = vmax.f32 %v5290_v39, 0.0  ;;  %v1867_v5 = vrot.slane %v5290_v39, 6 }
 0xcd3   :  { %5001 = vmatmul.msk.f32.vlgmr.msra.gmra.mxu3 %vm119_vm2, %v1867_v5  ;;  %v1834_v15 = vrot.slane %v1825_v17, 6  ;;  %1827 = vst.sshfl [vmem:[#allocation1] sm:$0xff pattern:$0x73625140] %v1825_v17 }
 0xcd4   :  { %2154 = vmatpush.msra.mxu3 %v5533_v0 }
 0xcd5   :  { %5000 = vmatmul.msk.f32.vlgmr.msra.gmra.mxu2 %vm119_vm2, %v1834_v15 }
 0xcd6   :  { %2121 = vmatpush.msra.mxu2 %v5567_v7  ;;  %2155 = vmatpush.msra.mxu3 %v5538_v1 }
 0xcd8   :  { %2122 = vmatpush.msra.mxu2 %v5577_v8 }
 0xcda   :  { %v5923_v38 = vld [vmem:[#allocation1 + $0x3] ss:$4 sm:$0xff] }
 0xcdb   :  { %7296 = vst [vmem:[#allocation12_spill] sm:$0xff] %v5923_v38 }
 0xd56   :  { %v1887_v22 = vpop.f32.mrf.mxu3 }
 0xd57   :  { %v1891_v28 = vrot.slane %v1887_v22, 1 }
 0xd59   :  { %v1893_v18 = vadd.f32 %v1891_v28, %v5783_v52  ;;  %v5932_v52 = vadd.f32 %v5590_v9, %v1408_v63 }
 0xd5b   :  { %5291 = vtanh.f32 %v1893_v18 }
 0xd61   :  { %v5292_v32 = vpop.eup %5291 }
 0xd62   :  { %v1895_v36 = vmax.f32 %v5292_v32, 0.0  ;;  %v1939_v37 = vrot.slane %v5292_v32, 7 }
 0xd64   :  { %5004 = vmatmul.msk.f32.vlgmr.msrb.gmra.mxu1 %vm119_vm2, %v1939_v37  ;;  %v1906_v39 = vrot.slane %v1895_v36, 7  ;;  %1897 = vst.sshfl [vmem:[#allocation1] sm:$0xff pattern:$0x73625140] %v1895_v36 }
 0xd65   :  { %2226 = vmatpush.msrb.mxu1 %v5533_v0 }
 0xd66   :  { %5003 = vmatmul.msk.f32.vlgmr.msrb.gmra.mxu0 %vm119_vm2, %v1906_v39 }
 0xd67   :  { %2193 = vmatpush.msrb.mxu0 %v5567_v7  ;;  %2227 = vmatpush.msrb.mxu1 %v5538_v1 }
 0xd69   :  { %2194 = vmatpush.msrb.mxu0 %v5577_v8 }
 0xde1   :  { %v1959_v17 = vpop.f32.mrf.mxu1 }
 0xde2   :  { %v1962_v5 = vadd.f32 %v1959_v17, %v5932_v52 }
 0xde4   :  { %5293 = vtanh.f32 %v1962_v5 }
 0xdea   :  { %v5294_v15 = vpop.eup %5293 }
 0xdeb   :  { %v1964_v22 = vmax.f32 %v5294_v15, 0.0  ;;  %5006 = vmatmul.msk.f32.vlgmr.msrb.gmra.mxu3 %vm119_vm2, %v5294_v15 }
 0xdec   :  { %2296 = vmatpush.msrb.mxu3 %v5533_v0 }
 0xded   :  { %5005 = vmatmul.msk.f32.vlgmr.msrb.gmra.mxu2 %vm119_vm2, %v1964_v22  ;;  %1965 = vst.msk [vmem:[%s7195_s19 + $0x3] sm:$0x1] %vm146_vm3, %v1964_v22 }
 0xdee   :  { %2263 = vmatpush.msrb.mxu2 %v5567_v7  ;;  %2297 = vmatpush.msrb.mxu3 %v5538_v1 }
 0xdf0   :  { %2264 = vmatpush.msrb.mxu2 %v5577_v8 }
 0xe6e   :  { %v2018_v9 = vpop.f32.mrf.mxu3 }
 0xe6f   :  { %v2022_v63 = vrot.slane %v2018_v9, 7 }
 0xe71   :  { %v2024_v28 = vadd.f32 %v2022_v63, %v5932_v52  ;;  %v5959_v63 = vld [vmem:[#allocation1 + $0x3] ss:$4 sm:$0xff] }
 0xe73   :  { %5295 = vtanh.f32 %v2024_v28 }
 0xe79   :  { %v5946_v18 = vpop.eup %5295 }
 0xe7a   :  { %v7216_v32 = vmax.f32 %v5946_v18, 0.0  ;;  %v2067_v36 = vrot.slane %v5946_v18, 1 }
 0xe7c   :  { %5009 = vmatmul.msk.f32.vlgmr.msra.gmra.mxu1 %vm119_vm2, %v2067_v36  ;;  %v2034_v37 = vrot.slane %v7216_v32, 1 }
 0xe7d   :  { %2368 = vmatpush.msra.mxu1 %v5533_v0 }
 0xe7e   :  { %5008 = vmatmul.msk.f32.vlgmr.msra.gmra.mxu0 %vm119_vm2, %v2034_v37 }
 0xe7f   :  { %2335 = vmatpush.msra.mxu0 %v5567_v7  ;;  %2369 = vmatpush.msra.mxu1 %v5538_v1 }
 0xe81   :  { %2336 = vmatpush.msra.mxu0 %v5577_v8 }
 0xef9   :  { %v2087_v39 = vpop.f32.mrf.mxu1 }
 0xefa   :  { %v2091_v17 = vrot.slane %v2087_v39, 6 }
 0xefc   :  { %v2093_v5 = vadd.f32 %v2091_v17, %v5932_v52 }
 0xefe   :  { %5297 = vtanh.f32 %v2093_v5 }
 0xf04   :  { %v5298_v15 = vpop.eup %5297 }
 0xf05   :  { %v2095_v22 = vmax.f32 %v5298_v15, 0.0  ;;  %v2137_v9 = vrot.slane %v5298_v15, 2 }
 0xf07   :  { %5011 = vmatmul.msk.f32.vlgmr.msra.gmra.mxu3 %vm119_vm2, %v2137_v9  ;;  %v2104_v28 = vrot.slane %v2095_v22, 2  ;;  %2097 = vst.sshfl [vmem:[#allocation1] sm:$0xff pattern:$0x73625140] %v2095_v22  ;;  %v5380_v22 = vld [vmem:[%s7284_s23] sm:$0xff] }
 0xf08   :  { %2438 = vmatpush.msra.mxu3 %v5533_v0 }
 0xf09   :  { %5010 = vmatmul.msk.f32.vlgmr.msra.gmra.mxu2 %vm119_vm2, %v2104_v28  ;;  %v5983_v28 = vld [vmem:[%s7197_s1] sm:$0xff] }
 0xf0a   :  { %2405 = vmatpush.msra.mxu2 %v5567_v7  ;;  %2439 = vmatpush.msra.mxu3 %v5538_v1  ;;  %v5379_v1 = vld [vmem:[%s7284_s23 + $0x8] sm:$0xff]  ;;  %s5395_s23 = smov 112  }
 0xf0c   :  { %2406 = vmatpush.msra.mxu2 %v5577_v8 }
 0xf0e   :  { %v5968_v9 = vld [vmem:[#allocation1 + $0x1] ss:$4 sm:$0xff] }
 0xf8a   :  { %v2157_v36 = vpop.f32.mrf.mxu3 }
 0xf8b   :  { %v2161_v37 = vrot.slane %v2157_v36, 5  ;;  %v2625_v36 = vsel %vm2624_vm5, %v5983_v28, 0.0 }
 0xf8c   :  { %2626 = vadd.xlane.f32.xlu0 %v2625_v36 }
 0xf8d   :  { %v2163_v39 = vadd.f32 %v2161_v37, %v5932_v52 }
 0xf8f   :  { %5299 = vtanh.f32 %v2163_v39 }
 0xf95   :  { %v5300_v17 = vpop.eup %5299 }
 0xf96   :  { %v2165_v5 = vmax.f32 %v5300_v17, 0.0  ;;  %v2209_v15 = vrot.slane %v5300_v17, 3 }
 0xf98   :  { %5014 = vmatmul.msk.f32.vlgmr.msrb.gmra.mxu1 %vm119_vm2, %v2209_v15  ;;  %v2176_v0 = vrot.slane %v2165_v5, 3  ;;  %2167 = vst.sshfl [vmem:[#allocation1] sm:$0xff pattern:$0x73625140] %v2165_v5 }
 0xf99   :  { %2510 = vmatpush.msrb.mxu1 %v5379_v1 }
 0xf9a   :  { %5013 = vmatmul.msk.f32.vlgmr.msrb.gmra.mxu0 %vm119_vm2, %v2176_v0 }
 0xf9b   :  { %2477 = vmatpush.msrb.mxu0 %v5567_v7  ;;  %2511 = vmatpush.msrb.mxu1 %v5380_v22  ;;  %v5990_v7 = vld [vmem:[%s7197_s1 + $0x8] sm:$0x1] }
 0xf9c   :  { %v2629_v37 = vsel %vm2628_vm6, %v5990_v7, 0.0 }
 0xf9d   :  { %2478 = vmatpush.msrb.mxu0 %v5577_v8  ;;  %2630 = vadd.xlane.f32.xlu0 %v2629_v37  ;;  %v5381_v37 = vld [vmem:[%s7287_s24 + $0x8] sm:$0xff] }
 0xf9f   :  { %v5995_v19 = vld [vmem:[#allocation1 + $0x1] ss:$4 sm:$0xff] }
0x1015   :  { %v2229_v8 = vpop.f32.mrf.mxu1 }
0x1016   :  { %v2233_v39 = vrot.slane %v2229_v8, 4  ;;  %v5382_v8 = vld [vmem:[%s7287_s24] sm:$0xff]  ;;  %s5397_s24 = smov 2  }
0x1018   :  { %v2235_v17 = vadd.f32 %v2233_v39, %v5932_v52  ;;  %v5393_v39 = vmov 8.0  }
0x101a   :  { %5301 = vtanh.f32 %v2235_v17 }
0x101b   :  { %5303 = vrcp.f32 %v5393_v39 }
0x1020   :  { %v5302_v5 = vpop.eup %5301 }
0x1021   :  { %v2237_v15 = vmax.f32 %v5302_v5, 0.0  ;;  %v2279_v0 = vrot.slane %v5302_v5, 4  ;;  %v5304_v17 = vpop.eup %5303 }
0x1022   :  { %v2633_v5 = vmul.f32 8.0, %v5304_v17  ;;  %vm2637_vm7 = vweird.f32 %v5304_v17 }
0x1023   :  { %5016 = vmatmul.msk.f32.vlgmr.msrb.gmra.mxu3 %vm119_vm2, %v2279_v0  ;;  %v2246_v36 = vrot.slane %v2237_v15, 4  ;;  %2239 = vst.sshfl [vmem:[#allocation1] sm:$0xff pattern:$0x73625140] %v2237_v15 }
0x1024   :  { %2569 = vmatpush.msrb.mxu3 %v5379_v1  ;;  %v2634_v0 = vsub.f32 1.0, %v2633_v5 }
0x1025   :  { %5015 = vmatmul.msk.f32.vlgmr.msrb.gmra.mxu2 %vm119_vm2, %v2246_v36  ;;  %v2627_v36 = vpop.xlane.xlu0 %2626 }
0x1026   :  { %2537 = vmatpush.msrb.mxu2 %v5381_v37  ;;  %2570 = vmatpush.msrb.mxu3 %v5380_v22  ;;  %v2635_v15 = vmul.f32 %v5304_v17, %v2634_v0 }
0x1028   :  { %2538 = vmatpush.msrb.mxu2 %v5382_v8  ;;  %v2636_v1 = vadd.f32 %v5304_v17, %v2635_v15 }
0x102a   :  { %v6005_v32 = vsel %vm2637_vm7, %v5304_v17, %v2636_v1  ;;  %vm7247_vm7 = vcmask 32800  }
0x102b   :  { %v2639_v34 = vmul.f32 %v6005_v32, %v2627_v36 }
0x102d   :  { %v6009_v22 = vsub.f32 %v5983_v28, %v2639_v34  ;;  %v2631_v39 = vpop.xlane.xlu0 %2630 }
0x102e   :  { %v2640_v5 = vmul.f32 %v6005_v32, %v2631_v39 }
0x102f   :  { %v2643_v30 = vmul.f32 %v6009_v22, %v6009_v22 }
0x1030   :  { %v6016_v0 = vsub.f32 %v5990_v7, %v2640_v5 }
0x1031   :  { %v2645_v26 = vsel %vm2624_vm5, %v2643_v30, 0.0 }
0x1032   :  { %2646 = vadd.xlane.f32.xlu1 %v2645_v26  ;;  %v2644_v17 = vmul.f32 %v6016_v0, %v6016_v0  ;;  %v6022_v26 = vld [vmem:[#allocation1 + $0x2] ss:$4 sm:$0xff] }
0x1034   :  { %v2648_v15 = vsel %vm2628_vm6, %v2644_v17, 0.0 }
0x103a   :  { %2649 = vadd.xlane.f32.xlu1 %v2648_v15 }
0x10a6   :  { %v2299_v34 = vpop.f32.mrf.mxu3 }
0x10a7   :  { %v2303_v1 = vrot.slane %v2299_v34, 3 }
0x10a9   :  { %v2305_v36 = vadd.f32 %v2303_v1, %v5932_v52 }
0x10ab   :  { %5305 = vtanh.f32 %v2305_v36 }
0x10b1   :  { %v5306_v40 = vpop.eup %5305 }
0x10b2   :  { %v2307_v30 = vmax.f32 %v5306_v40, 0.0  ;;  %v2351_v14 = vrot.slane %v5306_v40, 5 }
0x10b4   :  { %5019 = vmatmul.msk.f32.vlgmr.msra.gmra.mxu1 %vm119_vm2, %v2351_v14  ;;  %v2318_v39 = vrot.slane %v2307_v30, 5  ;;  %2309 = vst.sshfl [vmem:[#allocation1] sm:$0xff pattern:$0x73625140] %v2307_v30  ;;  %v2647_v14 = vpop.xlane.xlu1 %2646 }
0x10b6   :  { %5018 = vmatmul.msk.f32.vlgmr.msra.gmra.mxu0 %vm119_vm2, %v2318_v39 }
0x10b7   :  { %2605 = vmatpush.msra.mxu0 %v5381_v37  ;;  %v2651_v37 = vmul.f32 %v2647_v14, %v6005_v32 }
0x10b9   :  { %2606 = vmatpush.msra.mxu0 %v5382_v8  ;;  %v2653_v8 = vadd.f32 1e-05, %v2651_v37 }
0x10bb   :  { %v6027_v38 = vld [vmem:[#allocation1 + $0x2] ss:$4 sm:$0xff]  ;;  %vm2661_vm8 = vweird.f32 %v2653_v8 }
0x10bc   :  { %7297 = vst [vmem:[#allocation13_spill] sm:$0xff] %v6027_v38  ;;  %v2650_v30 = vpop.xlane.xlu1 %2649 }
0x10bd   :  { %v2652_v39 = vmul.f32 %v2650_v30, %v6005_v32 }
0x1131   :  { %v2371_v5 = vpop.f32.mrf.mxu1 }
0x1132   :  { %v2375_v17 = vrot.slane %v2371_v5, 2  ;;  %v2654_v5 = vadd.f32 1e-05, %v2652_v39 }
0x1134   :  { %v2377_v15 = vadd.f32 %v2375_v17, %v5932_v52  ;;  %v2687_v17 = vld [vmem:[%s7200_s11] sm:$0xff]  ;;  %vm2671_vm11 = vweird.f32 %v2654_v5 }
0x1135   :  { %2709 = vmatpush.msra.mxu1 %v2687_v17 }
0x1136   :  { %5307 = vtanh.f32 %v2377_v15 }
0x1137   :  { %5309 = vrsqrt.f32 %v2653_v8 }
0x1138   :  { %5311 = vrsqrt.f32 %v2654_v5 }
0x113c   :  { %v5308_v34 = vpop.eup %5307 }
0x113d   :  { %v2379_v1 = vmax.f32 %v5308_v34, 0.0  ;;  %v2421_v36 = vrot.slane %v5308_v34, 6  ;;  %v5310_v15 = vpop.eup %5309 }
0x113e   :  { %v2656_v34 = vmul.f32 %v5310_v15, %v2653_v8  ;;  %vm2662_vm9 = vweird.f32 %v5310_v15 }
0x113f   :  { %5021 = vmatmul.msk.f32.vlgmr.msra.gmra.mxu3 %vm119_vm2, %v2421_v36  ;;  %v2388_v40 = vrot.slane %v2379_v1, 6  ;;  %2381 = vst.sshfl [vmem:[#allocation1] sm:$0xff pattern:$0x73625140] %v2379_v1  ;;  %v5312_v36 = vpop.eup %5311  ;;  %vm2663_vm10 = vmor %vm2661_vm8, %vm2662_vm9  ;;  %vm7240_vm8 = vcmask 41000  }
0x1140   :  { %v2657_v1 = vmul.f32 %v5310_v15, %v2656_v34  ;;  %v2666_v38 = vmul.f32 %v5312_v36, %v2654_v5  ;;  %vm2672_vm12 = vweird.f32 %v5312_v36  ;;  %v5217_v34 = vld [vmem:[%s7198_s9] ss:$0 sm:$0xff] }
0x1141   :  { %5020 = vmatmul.msk.f32.vlgmr.msra.gmra.mxu2 %vm119_vm2, %v2388_v40  ;;  %vm2673_vm13 = vmor %vm2671_vm11, %vm2672_vm12 }
0x1142   :  { %v2658_v40 = vmul.f32 0.5, %v2657_v1  ;;  %v2667_v37 = vmul.f32 %v5312_v36, %v2666_v38 }
0x1144   :  { %v2659_v14 = vsub.f32 1.5, %v2658_v40  ;;  %v2668_v31 = vmul.f32 0.5, %v2667_v37 }
0x1146   :  { %v2660_v39 = vmul.f32 %v5310_v15, %v2659_v14  ;;  %v2669_v21 = vsub.f32 1.5, %v2668_v31  ;;  %v6041_v40 = vld [vmem:[#allocation1 + $0x3] ss:$4 sm:$0xff]  ;;  %v5383_v14 = vld [vmem:[%s7288_s27] ss:$0 sm:$0xff]  ;;  %s5394_s27 = smov 120  }
0x1147   :  { %7298 = vst [vmem:[#allocation14_spill] sm:$0xff] %v6041_v40  ;;  %v1412_v37 = vadd.f32 %v5383_v14, %v5902_v4 }
0x1148   :  { %v2664_v17 = vsel %vm2663_vm10, %v5310_v15, %v2660_v39  ;;  %v2670_v1 = vmul.f32 %v5312_v36, %v2669_v21 }
0x1149   :  { %v2675_v38 = vmul.f32 %v2664_v17, %v6009_v22 }
0x114a   :  { %v2674_v5 = vsel %vm2673_vm13, %v5312_v36, %v2670_v1 }
0x114b   :  { %v2680_v31 = vmul.f32 %v5217_v34, %v2675_v38  ;;  %v2676_v22 = vmul.f32 %v2674_v5, %v6016_v0  ;;  %v6077_v5 = vpop.f32.mrf.mxu2 }
0x114d   :  { %v2681_v21 = vmul.f32 %v5217_v34, %v2676_v22 }
0x11c2   :  { %v2441_v23 = vpop.f32.mrf.mxu3 }
0x11c3   :  { %v2445_v6 = vrot.slane %v2441_v23, 1 }
0x11c5   :  { %v2447_v30 = vadd.f32 %v2445_v6, %v5932_v52  ;;  %v5218_v52 = vld [vmem:[%s7199_s10] ss:$0 sm:$0xff] }
0x11c6   :  { %v2685_v15 = vadd.f32 %v5218_v52, %v2680_v31 }
0x11c7   :  { %5313 = vtanh.f32 %v2447_v30 }
0x11cd   :  { %v5314_v2 = vpop.eup %5313 }
0x11ce   :  { %v2449_v23 = vmax.f32 %v5314_v2, 0.0  ;;  %v2493_v8 = vrot.slane %v5314_v2, 7  ;;  %v2686_v2 = vadd.f32 %v5218_v52, %v2681_v21 }
0x11d0   :  { %5024 = vmatmul.msk.f32.vlgmr.msrb.gmra.mxu1 %vm119_vm2, %v2493_v8  ;;  %v2460_v6 = vrot.slane %v2449_v23, 7  ;;  %2451 = vst.sshfl [vmem:[#allocation1] sm:$0xff pattern:$0x73625140] %v2449_v23 }
0x11d2   :  { %5023 = vmatmul.msk.f32.vlgmr.msrb.gmra.mxu0 %vm119_vm2, %v2460_v6 }
0x11d8   :  { %5029 = vmatmul.msk.f32.vlgmr.msra.gmra.mxu1 %vm2624_vm5, %v2685_v15  ;;  %v6079_v15 = vpop.f32.mrf.mxu2 }
0x11e0   :  { %5030 = vmatmul.msk.f32.gmra.mxu1 %vm2624_vm5, %v2686_v2  ;;  %v6081_v22 = vpop.f32.mrf.mxu2 }
0x11e8   :  { %v6083_v21 = vpop.f32.mrf.mxu2 }
0x11f0   :  { %v6085_v2 = vpop.f32.mrf.mxu2 }
0x11f8   :  { %v6087_v14 = vpop.f32.mrf.mxu2 }
0x124d   :  { %v2513_v30 = vpop.f32.mrf.mxu1 }
0x124e   :  { %v2516_v39 = vadd.f32 %v2513_v30, %v1412_v37 }
0x1250   :  { %5315 = vtanh.f32 %v2516_v39 }
0x1255   :  { %v6055_v17 = vpop.f32.mrf.mxu1 }
0x1256   :  { %v5316_v36 = vpop.eup %5315 }
0x1257   :  { %v2518_v38 = vmax.f32 %v5316_v36, 0.0  ;;  %5026 = vmatmul.msk.f32.vlgmr.msrb.gmra.mxu3 %vm119_vm2, %v5316_v36 }
0x1259   :  { %5025 = vmatmul.msk.f32.vlgmr.msrb.gmra.mxu2 %vm119_vm2, %v2518_v38  ;;  %2519 = vst.msk [vmem:[%s7195_s19 + $0x5] sm:$0x1] %vm146_vm3, %v2518_v38  ;;  %vm7278_vm3 = vcmask 24600  }
0x125d   :  { %v2714_v0 = vpop.f32.mrf.mxu1 }
0x125e   :  { %2721 = vrot.lane.b32.xlu2 %v2714_v0, %s5394_s27 }
0x1266   :  { %2719 = vrot.lane.b32.xlu2 %v6055_v17, %s5394_s27 }
0x12b8   :  { %v2722_v4 = vpop.permute.xlu2 %2721 }
0x12b9   :  { %5031 = vmatpush.xpose.msk.msra.mxu2 %vm2624_vm5, %v2722_v4 }
0x12c0   :  { %v2720_v34 = vpop.permute.xlu2 %2719 }
0x12c1   :  { %5032 = vmatpush.xpose.msk.msra.mxu2 %vm2624_vm5, %v2720_v34 }
0x12c4   :  { %5033 = vmatmul.msk.f32.vlgmr.msra.gmra.mxu2 %vm2624_vm5, %v6055_v17 }
0x12cc   :  { %5034 = vmatmul.msk.f32.gmra.mxu2 %vm2624_vm5, %v2714_v0 }
0x12da   :  { %v2572_v23 = vpop.f32.mrf.mxu3 }
0x12db   :  { %v2576_v8 = vrot.slane %v2572_v23, 7 }
0x12dd   :  { %v2578_v1 = vadd.f32 %v2576_v8, %v1412_v37  ;;  %v6089_v37 = vpop.f32.mrf.mxu2 }
0x12df   :  { %5317 = vtanh.f32 %v2578_v1 }
0x12e5   :  { %v6071_v6 = vpop.eup %5317 }
0x12e6   :  { %7299 = vst [vmem:[#allocation15_spill] sm:$0xff] %v6071_v6  ;;  %v7221_v31 = vmax.f32 %v6071_v6, 0.0 }
0x12e8   :  { %v2588_v52 = vrot.slane %v7221_v31, 1 }
0x12ea   :  { %5028 = vmatmul.msk.f32.vlgmr.msra.gmra.mxu0 %vm119_vm2, %v2588_v52  ;;  %vm311_vm2 = vcmask 16400  }
0x1347   :  { %v2748_v30 = vpop.f32.mrf.mxu2 }
0x1348   :  { %v2754_v39 = vmul.f32 0.35355338, %v2748_v30 }
0x134a   :  { %v2757_v36 = vsel %vm2756_vm14, %v2754_v39, -inf }
0x134b   :  { %2758 = vmax.xlane.f32.xlu0 %v2757_v36 }
0x134f   :  { %v2751_v38 = vpop.f32.mrf.mxu2 }
0x1350   :  { %v2755_v4 = vmul.f32 0.35355338, %v2751_v38 }
0x1352   :  { %v2761_v34 = vsel %vm2760_vm15, %v2755_v4, -inf }
0x1353   :  { %2762 = vmax.xlane.f32.xlu1 %v2761_v34 }
0x135f   :  { %2782 = vrot.lane.b32.xlu0 %v2714_v0, %s5395_s23  ;;  %v6102_v0 = vld [vmem:[%s7196_s6] sm:$0x1] }
0x13be   :  { %v2759_v23 = vpop.xlane.xlu0 %2758 }
0x13bf   :  { %v2764_v8 = vsub.f32 %v2754_v39, %v2759_v23  ;;  %v236_v39 = vadd.f32 %v6102_v0, %v5643_v35  ;;  %v2817_v35 = vld [vmem:[%s7201_s12] sm:$0xff] }
0x13c0   :  { %2839 = vmatpush.msrb.mxu0 %v2817_v35 }
0x13c1   :  { %v2766_v1 = vmul.f32 1.442695, %v2764_v8 }
0x13c3   :  { %5319 = vpow2.f32 %v2766_v1 }
0x13c6   :  { %v2763_v52 = vpop.xlane.xlu1 %2762 }
0x13c7   :  { %v2765_v31 = vsub.f32 %v2755_v4, %v2763_v52 }
0x13c9   :  { %v5320_v6 = vpop.eup %5319  ;;  %v2768_v30 = vmul.f32 1.442695, %v2765_v31 }
0x13ca   :  { %v2770_v40 = vsel %vm2756_vm14, %v5320_v6, 0.0 }
0x13cb   :  { %5321 = vpow2.f32 %v2768_v30  ;;  %2771 = vadd.xlane.f32.xlu2 %v2770_v40  ;;  %v305_v40 = vadd.f32 %v6102_v0, %v5654_v44 }
0x13d1   :  { %v5322_v36 = vpop.eup %5321  ;;  %v2783_v38 = vpop.permute.xlu0 %2782 }
0x13d2   :  { %5035 = vmatpush.msk.msra.mxu3 %vm2791_vm0, %v2783_v38  ;;  %v2773_v34 = vsel %vm2760_vm15, %v5322_v36, 0.0 }
0x13d3   :  { %2774 = vadd.xlane.f32.xlu1 %v2773_v34 }
0x13e3   :  { %174 = vrot.lane.b32.xlu2 %v5619_v20, %s5396_s3 }
0x13eb   :  { %308 = vrot.lane.b32.xlu2 %v305_v40, %s5397_s24 }
0x13ec   :  { %2780 = vrot.lane.b32.xlu1 %v6055_v17, %s5395_s23 }
0x143e   :  { %v2772_v31 = vpop.xlane.xlu2 %2771 }
0x143f   :  { %5323 = vrcp.f32 %v2772_v31 }
0x1445   :  { %v5324_v23 = vpop.eup %5323 }
0x1446   :  { %v175_v20 = vpop.permute.xlu2 %174  ;;  %v2775_v4 = vpop.xlane.xlu1 %2774  ;;  %v2778_v44 = vmul.f32 %v5324_v23, %v5320_v6 }
0x1447   :  { %177 = vst.msk [vmem:[#allocation3] sm:$0x1] %vm171_vm4, %v175_v20  ;;  %5325 = vrcp.f32 %v2775_v4  ;;  %v6120_v6 = vpop.f32.mrf.mxu0 }
0x1448   :  { %244 = vst.msk [vmem:[#allocation3] sm:$0x1] %vm242_vm1, %v236_v39 }
0x144d   :  { %v5326_v17 = vpop.eup %5325 }
0x144e   :  { %v2779_v1 = vmul.f32 %v5326_v17, %v5322_v36 }
0x144f   :  { %v6122_v38 = vpop.f32.mrf.mxu0 }
0x1457   :  { %v6124_v34 = vpop.f32.mrf.mxu0 }
0x145e   :  { %v2781_v8 = vpop.permute.xlu1 %2780 }
0x145f   :  { %2809 = vmatpush.msra.mxu3 %v2781_v8  ;;  %v6126_v36 = vpop.f32.mrf.mxu0 }
0x1460   :  { %5036 = vmatmul.msk.f32.vlgmr.msra.gmra.mxu3 %vm2756_vm14, %v2778_v44 }
0x1467   :  { %v6128_v31 = vpop.f32.mrf.mxu0 }
0x1468   :  { %5037 = vmatmul.msk.f32.gmra.mxu3 %vm2756_vm14, %v2779_v1 }
0x146f   :  { %v6130_v20 = vpop.f32.mrf.mxu0 }
0x1477   :  { %v6132_v4 = vpop.f32.mrf.mxu0 }
0x147f   :  { %v6134_v23 = vpop.f32.mrf.mxu0 }
0x14e3   :  { %v2811_v52 = vpop.f32.mrf.mxu3 }
0x14e4   :  { %5038 = vmatmul.msk.f32.vlgmr.msrb.gmra.mxu0 %vm2624_vm5, %v2811_v52 }
0x14eb   :  { %v2814_v30 = vpop.f32.mrf.mxu3 }
0x14ec   :  { %5039 = vmatmul.msk.f32.gmra.mxu0 %vm2624_vm5, %v2814_v30  ;;  %v6149_v30 = vadd.f32 %v6102_v0, %v5856_v11  ;;  %v6168_v11 = vadd.f32 %v6102_v0, %v5858_v45  ;;  %v732_v45 = vadd.f32 %v6102_v0, %v5811_v58  ;;  %v1089_v58 = vadd.f32 %v6102_v0, %v5866_v50 }
0x14ed   :  { %v1363_v50 = vadd.f32 %v6102_v0, %v5870_v54 }
0x1561   :  { %v2841_v44 = vpop.f32.mrf.mxu0 }
0x1562   :  { %v6137_v8 = vadd.f32 %v2841_v44, %v5983_v28  ;;  %v6156_v28 = vadd.f32 %v6102_v0, %v5807_v56  ;;  %v671_v56 = vadd.f32 %v6102_v0, %v5860_v47  ;;  %v872_v47 = vadd.f32 %v6102_v0, %v5813_v60 }
0x1563   :  { %v1233_v60 = vadd.f32 %v6102_v0, %v5868_v53 }
0x1564   :  { %v2851_v17 = vsel %vm2624_vm5, %v6137_v8, 0.0 }
0x1565   :  { %2852 = vadd.xlane.f32.xlu0 %v2851_v17 }
0x1569   :  { %v2844_v1 = vpop.f32.mrf.mxu0 }
0x156a   :  { %v6142_v35 = vadd.f32 %v2844_v1, %v5990_v7  ;;  %v6162_v7 = vadd.f32 %v6102_v0, %v5809_v57  ;;  %v6178_v57 = vadd.f32 %v6102_v0, %v5862_v48  ;;  %v1016_v48 = vadd.f32 %v6102_v0, %v5815_v61 }
0x156b   :  { %v1160_v61 = vadd.f32 %v6102_v0, %v5817_v62 }
0x156c   :  { %v2854_v52 = vsel %vm2628_vm6, %v6142_v35, 0.0 }
0x156d   :  { %2855 = vadd.xlane.f32.xlu1 %v2854_v52 }
0x1579   :  { %239 = vrot.lane.b32.xlu0 %v236_v39, %s5398_s0 }
0x1581   :  { %387 = vrot.lane.b32.xlu0 %v6149_v30, %s5397_s24 }
0x1586   :  { %313 = vrot.lane.b32.xlu1 %v305_v40, %s5398_s0  ;;  %v945_v40 = vadd.f32 %v6102_v0, %v5864_v49  ;;  %v1294_v49 = vadd.f32 %v6102_v0, %v5819_v10 }
0x1589   :  { %459 = vrot.lane.b32.xlu0 %v6156_v28, %s5399_s25 }
0x158e   :  { %600 = vrot.lane.b32.xlu1 %v6162_v7, %s7259_s4 }
0x1591   :  { %533 = vrot.lane.b32.xlu0 %v6168_v11, %s7231_s26 }
0x1596   :  { %679 = vrot.lane.b32.xlu1 %v671_v56, %s7259_s4  ;;  %s7306_s4 = smov 4  }
0x1599   :  { %674 = vrot.lane.b32.xlu0 %v671_v56, %s7229_s28 }
0x159e   :  { %804 = vrot.lane.b32.xlu1 %v6178_v57, %s7257_s29 }
0x15a1   :  { %740 = vrot.lane.b32.xlu0 %v732_v45, %s7229_s28  ;;  %s7238_s28 = smov 14  }
0x15a6   :  { %880 = vrot.lane.b32.xlu1 %v872_v47, %s7257_s29 }
0x15a9   :  { %875 = vrot.lane.b32.xlu0 %v872_v47, %s7227_s30  ;;  %v309_v47 = vpop.permute.xlu2 %308 }
0x15ae   :  { %1019 = vrot.lane.b32.xlu1 %v1016_v48, %s7235_s21 }
0x15b1   :  { %953 = vrot.lane.b32.xlu0 %v945_v40, %s7227_s30  ;;  %s7249_s30 = smov 11  }
0x15b6   :  { %1097 = vrot.lane.b32.xlu1 %v1089_v58, %s7235_s21  ;;  %s7237_s21 = smov 17  }
0x15b9   :  { %1092 = vrot.lane.b32.xlu0 %v1089_v58, %s7225_s5 }
0x15be   :  { %1236 = vrot.lane.b32.xlu1 %v1233_v60, %s7233_s2 }
0x15c1   :  { %1168 = vrot.lane.b32.xlu0 %v1160_v61, %s7225_s5  ;;  %s7255_s5 = smov 8  }
0x15c6   :  { %1302 = vrot.lane.b32.xlu1 %v1294_v49, %s7233_s2  ;;  %s7253_s2 = smov 124  }
0x15c9   :  { %1297 = vrot.lane.b32.xlu0 %v1294_v49, %s7223_s22 }
0x15d1   :  { %1371 = vrot.lane.b32.xlu0 %v1363_v50, %s7223_s22  ;;  %s5409_s22 = smov 5  }
0x15d8   :  { %v2853_v53 = vpop.xlane.xlu0 %2852 }
0x15d9   :  { %v2857_v39 = vmul.f32 %v2853_v53, %v6005_v32 }
0x15db   :  { %v6214_v62 = vsub.f32 %v6137_v8, %v2857_v39 }
0x15dd   :  { %v2861_v44 = vmul.f32 %v6214_v62, %v6214_v62 }
0x15df   :  { %v2863_v10 = vsel %vm2624_vm5, %v2861_v44, 0.0 }
0x15e0   :  { %v2856_v17 = vpop.xlane.xlu1 %2855  ;;  %2864 = vadd.xlane.f32.xlu2 %v2863_v10 }
0x15e1   :  { %v2858_v1 = vmul.f32 %v2856_v17, %v6005_v32 }
0x15e3   :  { %v6221_v52 = vsub.f32 %v6142_v35, %v2858_v1 }
0x15e5   :  { %v2862_v54 = vmul.f32 %v6221_v52, %v6221_v52 }
0x15e7   :  { %v2866_v0 = vsel %vm2628_vm6, %v2862_v54, 0.0 }
0x15e8   :  { %2867 = vadd.xlane.f32.xlu2 %v2866_v0 }
0x15eb   :  { %v240_v56 = vpop.permute.xlu0 %239 }
0x15ec   :  { %243 = vst.msk [vmem:[#allocation2] sm:$0x1] %vm242_vm1, %v240_v56 }
0x15ed   :  { %312 = vst.msk [vmem:[#allocation2] sm:$0x1] %vm311_vm2, %v309_v47  ;;  %v5219_v47 = vld [vmem:[%s7202_s13] ss:$0 sm:$0xff] }
0x15f3   :  { %v388_v58 = vpop.permute.xlu0 %387 }
0x15f8   :  { %v314_v49 = vpop.permute.xlu1 %313 }
0x15f9   :  { %316 = vst.msk [vmem:[#allocation3] sm:$0x1] %vm311_vm2, %v314_v49 }
0x15fa   :  { %390 = vst.msk [vmem:[#allocation3] sm:$0x1] %vm7278_vm3, %v388_v58 }
0x15fb   :  { %v460_v53 = vpop.permute.xlu0 %459 }
0x15fc   :  { %462 = vst.msk [vmem:[#allocation3] sm:$0x1] %vm7247_vm7, %v460_v53 }
0x1600   :  { %382 = vrot.lane.b32.xlu2 %v6149_v30, %s5399_s25  ;;  %v2905_v30 = vld [vmem:[%s7204_s15] sm:$0xff]  ;;  %v601_v1 = vpop.permute.xlu1 %600 }
0x1601   :  { %2931 = vmatpush.msrb.mxu1 %v2905_v30 }
0x1603   :  { %v534_v39 = vpop.permute.xlu0 %533 }
0x1604   :  { %536 = vst.msk [vmem:[#allocation3] sm:$0x1] %vm7240_vm8, %v534_v39  ;;  %v5220_v39 = vld [vmem:[%s7203_s14] ss:$0 sm:$0xff] }
0x1608   :  { %454 = vrot.lane.b32.xlu2 %v6156_v28, %s7231_s26  ;;  %s7251_s26 = smov 126  }
0x160b   :  { %v675_v54 = vpop.permute.xlu0 %674 }
0x1610   :  { %528 = vrot.lane.b32.xlu2 %v6168_v11, %s5409_s22 }
0x1618   :  { %605 = vrot.lane.b32.xlu2 %v6162_v7, %s5409_s22 }
0x1620   :  { %735 = vrot.lane.b32.xlu2 %v732_v45, %s7255_s5 }
0x1628   :  { %809 = vrot.lane.b32.xlu2 %v6178_v57, %s7255_s5 }
0x1630   :  { %948 = vrot.lane.b32.xlu2 %v945_v40, %s7249_s30 }
0x1638   :  { %1024 = vrot.lane.b32.xlu2 %v1016_v48, %s7249_s30  ;;  %s7261_s30 = smov 122  }
0x1640   :  { %1163 = vrot.lane.b32.xlu2 %v1160_v61, %s7238_s28 }
0x1648   :  { %1241 = vrot.lane.b32.xlu2 %v1233_v60, %s7238_s28  ;;  %s7264_s28 = smov 114  }
0x1650   :  { %1366 = vrot.lane.b32.xlu2 %v1363_v50, %s7237_s21  ;;  %s7310_s21 = smov 16  }
0x1653   :  { %v2865_v28 = vpop.xlane.xlu2 %2864 }
0x1654   :  { %v2869_v7 = vmul.f32 %v2865_v28, %v6005_v32 }
0x1656   :  { %v2871_v11 = vadd.f32 1e-05, %v2869_v7 }
0x1658   :  { %5327 = vrsqrt.f32 %v2871_v11  ;;  %vm2879_vm10 = vweird.f32 %v2871_v11 }
0x165b   :  { %v2868_v57 = vpop.xlane.xlu2 %2867 }
0x165c   :  { %v2870_v45 = vmul.f32 %v2868_v57, %v6005_v32 }
0x165e   :  { %v5328_v48 = vpop.eup %5327  ;;  %v2872_v40 = vadd.f32 1e-05, %v2870_v45 }
0x165f   :  { %v2874_v61 = vmul.f32 %v5328_v48, %v2871_v11  ;;  %vm2880_vm9 = vweird.f32 %v5328_v48 }
0x1660   :  { %5329 = vrsqrt.f32 %v2872_v40  ;;  %vm2881_vm11 = vmor %vm2879_vm10, %vm2880_vm9  ;;  %vm2889_vm13 = vweird.f32 %v2872_v40  ;;  %vm7246_vm10 = vcmask 49200  }
0x1661   :  { %v2875_v60 = vmul.f32 %v5328_v48, %v2874_v61  ;;  %v680_v61 = vpop.permute.xlu1 %679 }
0x1663   :  { %v2876_v44 = vmul.f32 0.5, %v2875_v60  ;;  %v383_v10 = vpop.permute.xlu2 %382 }
0x1664   :  { %386 = vst.msk [vmem:[#allocation2] sm:$0x1] %vm7278_vm3, %v383_v10 }
0x1665   :  { %v2877_v17 = vsub.f32 1.5, %v2876_v44 }
0x1666   :  { %v5330_v50 = vpop.eup %5329 }
0x1667   :  { %v2878_v0 = vmul.f32 %v5328_v48, %v2877_v17  ;;  %v2884_v56 = vmul.f32 %v5330_v50, %v2872_v40  ;;  %vm2890_vm12 = vweird.f32 %v5330_v50 }
0x1668   :  { %vm2891_vm9 = vmor %vm2889_vm13, %vm2890_vm12  ;;  %vm7242_vm12 = vcmask 65600   ;;  %vm7243_vm13 = vcmask 73800  }
0x1669   :  { %v2882_v58 = vsel %vm2881_vm11, %v5328_v48, %v2878_v0  ;;  %v2885_v49 = vmul.f32 %v5330_v50, %v2884_v56  ;;  %v741_v48 = vpop.permute.xlu0 %740  ;;  %vm7241_vm11 = vcmask 57400   ;;  %v805_v40 = vpop.permute.xlu1 %804 }
0x166a   :  { %v2893_v53 = vmul.f32 %v2882_v58, %v6214_v62 }
0x166b   :  { %v2886_v30 = vmul.f32 0.5, %v2885_v49  ;;  %v455_v28 = vpop.permute.xlu2 %454  ;;  %v6280_v49 = vld [vmem:[%s7206_s7] sm:$0xff] }
0x166c   :  { %v2898_v7 = vmul.f32 %v5219_v47, %v2893_v53  ;;  %458 = vst.msk [vmem:[#allocation2] sm:$0x1] %vm7247_vm7, %v455_v28  ;;  %vm7263_vm7 = vcmask 139400  }
0x166d   :  { %v2887_v11 = vsub.f32 1.5, %v2886_v30 }
0x166e   :  { %v2903_v57 = vadd.f32 %v5220_v39, %v2898_v7 }
0x166f   :  { %v2888_v45 = vmul.f32 %v5330_v50, %v2887_v11 }
0x1670   :  { %5040 = vmatmul.msk.f32.vlgmr.msrb.gmra.mxu1 %vm2624_vm5, %v2903_v57 }
0x1671   :  { %v2892_v62 = vsel %vm2891_vm9, %v5330_v50, %v2888_v45  ;;  %v876_v0 = vpop.permute.xlu0 %875  ;;  %vm7245_vm9 = vcmask 82000   ;;  %v881_v50 = vpop.permute.xlu1 %880 }
0x1672   :  { %v2894_v60 = vmul.f32 %v2892_v62, %v6221_v52 }
0x1673   :  { %v529_v44 = vpop.permute.xlu2 %528 }
0x1674   :  { %532 = vst.msk [vmem:[#allocation2] sm:$0x1] %vm7240_vm8, %v529_v44  ;;  %v2899_v10 = vmul.f32 %v5219_v47, %v2894_v60  ;;  %vm7244_vm8 = vcmask 90200  }
0x1675   :  { %604 = vst.msk [vmem:[#allocation2] sm:$0x1] %vm7246_vm10, %v601_v1 }
0x1676   :  { %v2904_v17 = vadd.f32 %v5220_v39, %v2899_v10  ;;  %678 = vst.msk [vmem:[#allocation2] sm:$0x1] %vm7241_vm11, %v675_v54  ;;  %v6283_v39 = vrot.slane %v6280_v49, 4 }
0x1678   :  { %5041 = vmatmul.msk.f32.gmra.mxu1 %vm2624_vm5, %v2904_v17  ;;  %v2944_v17 = vld [vmem:[%s7207_s17 + $0x18] sm:$0xff] }
0x1679   :  { %v954_v1 = vpop.permute.xlu0 %953  ;;  %v1020_v47 = vpop.permute.xlu1 %1019  ;;  %2968 = vmatpush.msrb.mxu2 %v2944_v17 }
0x167b   :  { %v606_v56 = vpop.permute.xlu2 %605 }
0x167c   :  { %608 = vst.msk [vmem:[#allocation3] sm:$0x1] %vm7246_vm10, %v606_v56  ;;  %vm7267_vm10 = vcmask 131200   ;;  %v2941_v56 = vld [vmem:[%s7207_s17] sm:$0xff] }
0x167d   :  { %682 = vst.msk [vmem:[#allocation3] sm:$0x1] %vm7241_vm11, %v680_v61  ;;  %vm7277_vm11 = vcmask 98400  }
0x167e   :  { %743 = vst.msk [vmem:[#allocation3] sm:$0x1] %vm7242_vm12, %v741_v48 }
0x1681   :  { %v1093_v58 = vpop.permute.xlu0 %1092  ;;  %v1098_v30 = vpop.permute.xlu1 %1097 }
0x1683   :  { %v736_v52 = vpop.permute.xlu2 %735 }
0x1684   :  { %739 = vst.msk [vmem:[#allocation2] sm:$0x1] %vm7242_vm12, %v736_v52  ;;  %vm7248_vm12 = vcmask 106600   ;;  %v5221_v52 = vld [vmem:[%s7205_s16] ss:$0 sm:$0xff] }
0x1685   :  { %808 = vst.msk [vmem:[#allocation2] sm:$0x1] %vm7243_vm13, %v805_v40  ;;  %v2943_v40 = vld [vmem:[%s7207_s17 + $0x10] sm:$0xff] }
0x1686   :  { %879 = vst.msk [vmem:[#allocation2] sm:$0x1] %vm7245_vm9, %v876_v0  ;;  %2969 = vmatpush.msrb.mxu2 %v2943_v40  ;;  %v2942_v0 = vld [vmem:[%s7207_s17 + $0x8] sm:$0xff] }
0x1688   :  { %2970 = vmatpush.msrb.mxu2 %v2942_v0 }
0x1689   :  { %v1169_v28 = vpop.permute.xlu0 %1168  ;;  %v1237_v11 = vpop.permute.xlu1 %1236 }
0x168a   :  { %2971 = vmatpush.msrb.mxu2 %v2941_v56 }
0x168b   :  { %v810_v54 = vpop.permute.xlu2 %809 }
0x168c   :  { %812 = vst.msk [vmem:[#allocation3] sm:$0x1] %vm7243_vm13, %v810_v54  ;;  %vm2993_vm13 = vcmask 1043456  }
0x168d   :  { %883 = vst.msk [vmem:[#allocation3] sm:$0x1] %vm7245_vm9, %v881_v50  ;;  %5044 = vmatpush.msk.msrb.mxu3 %vm2993_vm13, %v6283_v39  ;;  %5046 = vmatpush.msk.msra.mxu0 %vm2993_vm13, %v6280_v49  ;;  %vm7268_vm9 = vcmask 123000  }
0x168e   :  { %956 = vst.msk [vmem:[#allocation3] sm:$0x1] %vm7244_vm8, %v954_v1  ;;  %5052 = vmatpush.msk.msra.mxu1 %vm2993_vm13, %v6283_v39  ;;  %5054 = vmatpush.msk.msra.mxu2 %vm2993_vm13, %v6280_v49 }
0x168f   :  { %5048 = vmatpush.msk.msra.mxu3 %vm2993_vm13, %v6283_v39  ;;  %5050 = vmatpush.msk.msrb.mxu0 %vm2993_vm13, %v6280_v49 }
0x1690   :  { %5060 = vmatpush.msk.msrb.mxu1 %vm2993_vm13, %v6283_v39 }
0x1691   :  { %v1298_v57 = vpop.permute.xlu0 %1297  ;;  %v1303_v48 = vpop.permute.xlu1 %1302 }
0x1693   :  { %v949_v53 = vpop.permute.xlu2 %948 }
0x1694   :  { %952 = vst.msk [vmem:[#allocation2] sm:$0x1] %vm7244_vm8, %v949_v53  ;;  %vm7276_vm8 = vcmask 114800  }
0x1695   :  { %1023 = vst.msk [vmem:[#allocation2] sm:$0x1] %vm7277_vm11, %v1020_v47 }
0x1696   :  { %1096 = vst.msk [vmem:[#allocation2] sm:$0x1] %vm7248_vm12, %v1093_v58 }
0x1699   :  { %v1372_v62 = vpop.permute.xlu0 %1371 }
0x169b   :  { %v1025_v7 = vpop.permute.xlu2 %1024 }
0x169c   :  { %1027 = vst.msk [vmem:[#allocation3] sm:$0x1] %vm7277_vm11, %v1025_v7 }
0x169d   :  { %1100 = vst.msk [vmem:[#allocation3] sm:$0x1] %vm7248_vm12, %v1098_v30  ;;  %vm7266_vm12 = vcmask 31744  }
0x169e   :  { %1171 = vst.msk [vmem:[#allocation3] sm:$0x1] %vm7276_vm8, %v1169_v28 }
0x16a3   :  { %v1164_v45 = vpop.permute.xlu2 %1163 }
0x16a4   :  { %1167 = vst.msk [vmem:[#allocation2] sm:$0x1] %vm7276_vm8, %v1164_v45 }
0x16a5   :  { %1240 = vst.msk [vmem:[#allocation2] sm:$0x1] %vm7268_vm9, %v1237_v11 }
0x16a6   :  { %1301 = vst.msk [vmem:[#allocation2] sm:$0x1] %vm7267_vm10, %v1298_v57 }
0x16ab   :  { %v1242_v61 = vpop.permute.xlu2 %1241 }
0x16ac   :  { %1244 = vst.msk [vmem:[#allocation3] sm:$0x1] %vm7268_vm9, %v1242_v61  ;;  %vm7271_vm9 = vcmask 60419  }
0x16ad   :  { %1305 = vst.msk [vmem:[#allocation3] sm:$0x1] %vm7267_vm10, %v1303_v48  ;;  %vm7270_vm10 = vcmask 59394  }
0x16ae   :  { %1374 = vst.msk [vmem:[#allocation3] sm:$0x1] %vm7263_vm7, %v1372_v62 }
0x16b3   :  { %v1367_v60 = vpop.permute.xlu2 %1366 }
0x16b4   :  { %1370 = vst.msk [vmem:[#allocation2] sm:$0x1] %vm7263_vm7, %v1367_v60  ;;  %vm2949_vm7 = vcmask 261120  }
0x16b5   :  { %v2986_v44 = vld [vmem:[#allocation3] sm:$0x1] }
0x16b6   :  { %3048 = vrot.lane.b32.xlu1 %v2986_v44, %s7251_s26  ;;  %5045 = vmatmul.msk.f32.vlgmr.msrb.gmra.mxu3 %vm7266_vm12, %v2986_v44 }
0x16b7   :  { %5056 = vmatpush.msk.msrb.mxu3 %vm2993_vm13, %v6283_v39 }
0x16bb   :  { %v2985_v10 = vld [vmem:[#allocation2] sm:$0x1] }
0x16bc   :  { %3072 = vrot.lane.b32.xlu0 %v2985_v10, %s7251_s26  ;;  %3127 = vrot.lane.b32.xlu2 %v2985_v10, %s7253_s2  ;;  %s5417_s26 = smov 118  }
0x16bd   :  { %5047 = vmatmul.msk.f32.vlgmr.msra.gmra.mxu0 %vm7266_vm12, %v2985_v10 }
0x16be   :  { %3103 = vrot.lane.b32.xlu1 %v2986_v44, %s7253_s2  ;;  %5058 = vmatpush.msk.msra.mxu0 %vm2993_vm13, %v6280_v49  ;;  %s5418_s2 = smov 116  }
0x16c4   :  { %3237 = vrot.lane.b32.xlu0 %v2985_v10, %s5394_s27  ;;  %3158 = vrot.lane.b32.xlu2 %v2986_v44, %s7261_s30 }
0x16c6   :  { %3182 = vrot.lane.b32.xlu1 %v2985_v10, %s7261_s30  ;;  %s7307_s30 = smov 10  }
0x16cc   :  { %3268 = vrot.lane.b32.xlu0 %v2986_v44, %s5417_s26  ;;  %3213 = vrot.lane.b32.xlu2 %v2986_v44, %s5394_s27 }
0x16ce   :  { %3347 = vrot.lane.b32.xlu1 %v2985_v10, %s5418_s2 }
0x16d4   :  { %3323 = vrot.lane.b32.xlu0 %v2986_v44, %s5418_s2  ;;  %3292 = vrot.lane.b32.xlu2 %v2985_v10, %s5417_s26 }
0x16d6   :  { %3378 = vrot.lane.b32.xlu1 %v2986_v44, %s7264_s28 }
0x16dc   :  { %3402 = vrot.lane.b32.xlu2 %v2985_v10, %s7264_s28  ;;  %s7305_s28 = smov 7  }
0x16ed   :  { %v2933_v50 = vpop.f32.mrf.mxu1 }
0x16ee   :  { %v2934_v1 = vadd.f32 %v5221_v52, %v2933_v50  ;;  %v6383_v50 = vld [vmem:[%s7209_s8] sm:$0x1] }
0x16f0   :  { %v2939_v54 = vmax.f32 %v2934_v1, 0.0 }
0x16f2   :  { %5042 = vmatmul.msk.f32.vlgmr.msrb.gmra.mxu2 %vm2949_vm7, %v2939_v54 }
0x16f3   :  { %5062 = vmatpush.msk.msrb.mxu2 %vm2993_vm13, %v6280_v49 }
0x16f5   :  { %v2936_v47 = vpop.f32.mrf.mxu1 }
0x16f6   :  { %v2937_v58 = vadd.f32 %v5221_v52, %v2936_v47  ;;  %v5222_v52 = vld [vmem:[%s7208_s18] ss:$0 sm:$0xff] }
0x16f8   :  { %v2940_v53 = vmax.f32 %v2937_v58, 0.0 }
0x16fa   :  { %5043 = vmatmul.msk.f32.gmra.mxu2 %vm2949_vm7, %v2940_v53 }
0x1716   :  { %v3128_v30 = vpop.permute.xlu2 %3127 }
0x1717   :  { %5055 = vmatmul.msk.f32.vlgmr.msra.gmra.mxu2 %vm7266_vm12, %v3128_v30  ;;  %v5385_v30 = vld [vmem:[%s7197_s1] sm:$0xff] }
0x1718   :  { %5070 = vmatpush.msk.msra.mxu2 %vm2993_vm13, %v6280_v49 }
0x171e   :  { %v3159_v7 = vpop.permute.xlu2 %3158 }
0x1726   :  { %v3214_v45 = vpop.permute.xlu2 %3213 }
0x1728   :  { %v3049_v28 = vpop.permute.xlu1 %3048 }
0x1729   :  { %5049 = vmatmul.msk.f32.vlgmr.msra.gmra.mxu3 %vm7266_vm12, %v3049_v28 }
0x172a   :  { %5064 = vmatpush.msk.msra.mxu3 %vm2993_vm13, %v6283_v39 }
0x172e   :  { %v3073_v11 = vpop.permute.xlu0 %3072  ;;  %v3293_v62 = vpop.permute.xlu2 %3292 }
0x172f   :  { %5051 = vmatmul.msk.f32.vlgmr.msrb.gmra.mxu0 %vm7266_vm12, %v3073_v11 }
0x1730   :  { %v3104_v57 = vpop.permute.xlu1 %3103  ;;  %5066 = vmatpush.msk.msrb.mxu0 %vm2993_vm13, %v6280_v49 }
0x1731   :  { %5053 = vmatmul.msk.f32.vlgmr.msra.gmra.mxu1 %vm7266_vm12, %v3104_v57  ;;  %5057 = vmatmul.msk.f32.vlgmr.msrb.gmra.mxu3 %vm7266_vm12, %v3159_v7 }
0x1732   :  { %5068 = vmatpush.msk.msra.mxu1 %vm2993_vm13, %v6283_v39  ;;  %5072 = vmatpush.msk.msrb.mxu3 %vm2993_vm13, %v6283_v39 }
0x1736   :  { %v3238_v61 = vpop.permute.xlu0 %3237  ;;  %v3403_v17 = vpop.permute.xlu2 %3402 }
0x1737   :  { %5063 = vmatmul.msk.f32.vlgmr.msrb.gmra.mxu2 %vm7266_vm12, %v3238_v61 }
0x1738   :  { %v3183_v48 = vpop.permute.xlu1 %3182 }
0x1739   :  { %5059 = vmatmul.msk.f32.vlgmr.msra.gmra.mxu0 %vm7266_vm12, %v3183_v48  ;;  %5061 = vmatmul.msk.f32.vlgmr.msrb.gmra.mxu1 %vm7266_vm12, %v3214_v45  ;;  %v3013_v0 = vpop.f32.mrf.mxu3 }
0x173a   :  { %5074 = vmatpush.msk.msra.mxu0 %vm2993_vm13, %v6280_v49  ;;  %v3038_v49 = vpop.f32.mrf.mxu0 }
0x173b   :  { %v3039_v56 = vadd.f32 %v3038_v49, %v3013_v0 }
0x173d   :  { %v3041_v54 = vadd.f32 %v3039_v56, %v6383_v50 }
0x173e   :  { %v3269_v60 = vpop.permute.xlu0 %3268 }
0x173f   :  { %5065 = vmatmul.msk.f32.vlgmr.msra.gmra.mxu3 %vm7266_vm12, %v3269_v60  ;;  %v3043_v53 = vrot.slane %v3041_v54, 7 }
0x1740   :  { %v3348_v44 = vpop.permute.xlu1 %3347 }
0x1741   :  { %5067 = vmatmul.msk.f32.vlgmr.msrb.gmra.mxu0 %vm7266_vm12, %v3293_v62  ;;  %5071 = vmatmul.msk.f32.vlgmr.msra.gmra.mxu2 %vm7266_vm12, %v3348_v44 }
0x1746   :  { %v3324_v10 = vpop.permute.xlu0 %3323 }
0x1747   :  { %5069 = vmatmul.msk.f32.vlgmr.msra.gmra.mxu1 %vm7266_vm12, %v3324_v10 }
0x1748   :  { %v3379_v40 = vpop.permute.xlu1 %3378 }
0x1749   :  { %5073 = vmatmul.msk.f32.vlgmr.msrb.gmra.mxu3 %vm7266_vm12, %v3379_v40  ;;  %5075 = vmatmul.msk.f32.vlgmr.msra.gmra.mxu0 %vm7266_vm12, %v3403_v17  ;;  %vm7269_vm12 = vcmask 58369  }
0x1775   :  { %v2973_v1 = vpop.f32.mrf.mxu2 }
0x1776   :  { %v2974_v47 = vadd.f32 %v5222_v52, %v2973_v1 }
0x1778   :  { %v2979_v58 = vadd.f32 %v2974_v47, %v6137_v8 }
0x177a   :  { %v2981_v28 = vadd.f32 %v5385_v30, %v2979_v58 }
0x177c   :  { %v2983_v7 = vadd.f32 %v5385_v30, %v2981_v28  ;;  %v3045_v11 = vadd.f32 %v3043_v53, %v2981_v28 }
0x177d   :  { %v2976_v57 = vpop.f32.mrf.mxu2 }
0x177e   :  { %2984 = vst.msk [vmem:[#allocation4] sm:$0x1] %vm2628_vm6, %v2983_v7 }
0x177f   :  { %3047 = vst.msk [vmem:[#allocation4] sm:$0x2] %vm7269_vm12, %v3045_v11  ;;  %vm7272_vm12 = vcmask 61444  }
0x179a   :  { %v3148_v62 = vpop.f32.mrf.mxu2 }
0x17ac   :  { %v3069_v45 = vpop.f32.mrf.mxu3  ;;  %v3093_v61 = vpop.f32.mrf.mxu0 }
0x17ad   :  { %v3094_v48 = vadd.f32 %v3093_v61, %v3069_v45 }
0x17ae   :  { %v3124_v60 = vpop.f32.mrf.mxu1 }
0x17af   :  { %v3096_v8 = vadd.f32 %v3094_v48, %v6383_v50  ;;  %v3149_v44 = vadd.f32 %v3148_v62, %v3124_v60 }
0x17b1   :  { %v3098_v10 = vrot.slane %v3096_v8, 6  ;;  %v3151_v17 = vadd.f32 %v3149_v44, %v6383_v50 }
0x17b3   :  { %v3100_v40 = vadd.f32 %v3098_v10, %v2981_v28  ;;  %v3153_v0 = vrot.slane %v3151_v17, 5 }
0x17b4   :  { %v3179_v56 = vpop.f32.mrf.mxu3 }
0x17b5   :  { %3102 = vst.msk [vmem:[#allocation4] sm:$0x4] %vm7270_vm10, %v3100_v40  ;;  %v3155_v49 = vadd.f32 %v3153_v0, %v2981_v28  ;;  %vm7275_vm10 = vcmask 62469   ;;  %v2977_v0 = vadd.f32 %v5222_v52, %v2976_v57  ;;  %v5386_v52 = vld [vmem:[%s7197_s1 + $0x8] sm:$0x1] }
0x17b6   :  { %v3203_v1 = vpop.f32.mrf.mxu0  ;;  %v3234_v58 = vpop.f32.mrf.mxu1 }
0x17b7   :  { %3157 = vst.msk [vmem:[#allocation4] sm:$0x8] %vm7271_vm9, %v3155_v49  ;;  %v3204_v54 = vadd.f32 %v3203_v1, %v3179_v56  ;;  %vm7274_vm9 = vcmask 63494  }
0x17b9   :  { %v3206_v47 = vadd.f32 %v3204_v54, %v6383_v50 }
0x17ba   :  { %v3258_v53 = vpop.f32.mrf.mxu2 }
0x17bb   :  { %v3208_v30 = vrot.slane %v3206_v47, 4  ;;  %v3259_v7 = vadd.f32 %v3258_v53, %v3234_v58  ;;  %v2980_v47 = vadd.f32 %v2977_v0, %v6142_v35 }
0x17bd   :  { %v3210_v11 = vadd.f32 %v3208_v30, %v2981_v28  ;;  %v3261_v45 = vadd.f32 %v3259_v7, %v6383_v50  ;;  %v2982_v57 = vadd.f32 %v5386_v52, %v2980_v47 }
0x17be   :  { %v3313_v62 = vpop.f32.mrf.mxu0 }
0x17bf   :  { %3212 = vst.msk [vmem:[#allocation4] sm:$0x10] %vm7272_vm12, %v3210_v11  ;;  %v3263_v61 = vrot.slane %v3261_v45, 3  ;;  %vm7273_vm12 = vcmask 64519  }
0x17c1   :  { %v3265_v48 = vadd.f32 %v3263_v61, %v2981_v28 }
0x17c2   :  { %v3289_v60 = vpop.f32.mrf.mxu3 }
0x17c3   :  { %3267 = vst.msk [vmem:[#allocation4] sm:$0x20] %vm7275_vm10, %v3265_v48  ;;  %v3314_v8 = vadd.f32 %v3313_v62, %v3289_v60 }
0x17c4   :  { %v3344_v44 = vpop.f32.mrf.mxu1  ;;  %v3368_v10 = vpop.f32.mrf.mxu2 }
0x17c5   :  { %v3316_v17 = vadd.f32 %v3314_v8, %v6383_v50  ;;  %v3369_v40 = vadd.f32 %v3368_v10, %v3344_v44 }
0x17c6   :  { %v3423_v53 = vpop.f32.mrf.mxu0 }
0x17c7   :  { %v3318_v49 = vrot.slane %v3316_v17, 2  ;;  %v3371_v56 = vadd.f32 %v3369_v40, %v6383_v50 }
0x17c9   :  { %v3320_v1 = vadd.f32 %v3318_v49, %v2981_v28  ;;  %v3373_v54 = vrot.slane %v3371_v56, 1  ;;  %v5078_v56 = vld [vmem:[%s7200_s11 + $0x8] sm:$0xff] }
0x17ca   :  { %3512 = vmatpush.msrb.mxu1 %v5078_v56 }
0x17cb   :  { %3322 = vst.msk [vmem:[#allocation4] sm:$0x40] %vm7274_vm9, %v3320_v1  ;;  %v3375_v58 = vadd.f32 %v3373_v54, %v2981_v28 }
0x17cc   :  { %v3399_v30 = vpop.f32.mrf.mxu3 }
0x17cd   :  { %3377 = vst.msk [vmem:[#allocation4] sm:$0x80] %vm7273_vm12, %v3375_v58  ;;  %v3424_v7 = vadd.f32 %v3423_v53, %v3399_v30 }
0x17cf   :  { %v3426_v11 = vadd.f32 %v3424_v7, %v6383_v50 }
0x17d1   :  { %v3427_v45 = vadd.f32 %v3426_v11, %v2982_v57 }
0x17d3   :  { %3428 = vst.msk [vmem:[#allocation4 + $0x8] sm:$0x1] %vm2628_vm6, %v3427_v45 }
0x17d4   :  { %v6410_v61 = vld [vmem:[#allocation4] sm:$0xff] }
0x17d5   :  { %v3435_v35 = vsel %vm2624_vm5, %v6410_v61, 0.0 }
0x17d6   :  { %3436 = vadd.xlane.f32.xlu0 %v3435_v35 }
0x17da   :  { %v6414_v28 = vld [vmem:[#allocation4 + $0x8] sm:$0x1] }
0x17db   :  { %v3438_v48 = vsel %vm2628_vm6, %v6414_v28, 0.0 }
0x17dc   :  { %3439 = vadd.xlane.f32.xlu1 %v3438_v48 }
0x1849   :  { %v3437_v62 = vpop.xlane.xlu0 %3436 }
0x184a   :  { %v3441_v60 = vmul.f32 %v3437_v62, %v6005_v32 }
0x184c   :  { %v3443_v50 = vsub.f32 %v6410_v61, %v3441_v60 }
0x184e   :  { %v3445_v8 = vmul.f32 %v3443_v50, %v3443_v50 }
0x184f   :  { %v3440_v44 = vpop.xlane.xlu1 %3439 }
0x1850   :  { %v3442_v10 = vmul.f32 %v3440_v44, %v6005_v32  ;;  %v3447_v17 = vsel %vm2624_vm5, %v3445_v8, 0.0  ;;  %v5223_v8 = vld [vmem:[%s7198_s9 + $0x1] ss:$0 sm:$0xff] }
0x1851   :  { %3448 = vadd.xlane.f32.xlu2 %v3447_v17  ;;  %v5224_v17 = vld [vmem:[%s7199_s10 + $0x1] ss:$0 sm:$0xff] }
0x1852   :  { %v3444_v40 = vsub.f32 %v6414_v28, %v3442_v10 }
0x1854   :  { %v3446_v0 = vmul.f32 %v3444_v40, %v3444_v40 }
0x1856   :  { %v3450_v49 = vsel %vm2628_vm6, %v3446_v0, 0.0 }
0x1857   :  { %3451 = vadd.xlane.f32.xlu0 %v3450_v49 }
0x18c4   :  { %v3449_v1 = vpop.xlane.xlu2 %3448 }
0x18c5   :  { %v3453_v54 = vmul.f32 %v3449_v1, %v6005_v32 }
0x18c7   :  { %v3455_v47 = vadd.f32 1e-05, %v3453_v54 }
0x18c9   :  { %5331 = vrsqrt.f32 %v3455_v47  ;;  %vm3463_vm9 = vweird.f32 %v3455_v47 }
0x18ca   :  { %v3452_v58 = vpop.xlane.xlu0 %3451 }
0x18cb   :  { %v3454_v53 = vmul.f32 %v3452_v58, %v6005_v32 }
0x18cd   :  { %v3456_v30 = vadd.f32 1e-05, %v3454_v53 }
0x18cf   :  { %v5332_v7 = vpop.eup %5331  ;;  %5333 = vrsqrt.f32 %v3456_v30  ;;  %vm3473_vm11 = vweird.f32 %v3456_v30 }
0x18d0   :  { %v3458_v52 = vmul.f32 %v5332_v7, %v3455_v47  ;;  %vm3464_vm12 = vweird.f32 %v5332_v7 }
0x18d1   :  { %vm3465_vm10 = vmor %vm3463_vm9, %vm3464_vm12 }
0x18d2   :  { %v3459_v57 = vmul.f32 %v5332_v7, %v3458_v52 }
0x18d4   :  { %v3460_v11 = vmul.f32 0.5, %v3459_v57 }
0x18d5   :  { %v5334_v45 = vpop.eup %5333 }
0x18d6   :  { %v3461_v35 = vsub.f32 1.5, %v3460_v11  ;;  %v3468_v48 = vmul.f32 %v5334_v45, %v3456_v30  ;;  %vm3474_vm8 = vweird.f32 %v5334_v45  ;;  %v6449_v30 = vld [vmem:[%s7197_s1 + $0x10] sm:$0xff] }
0x18d7   :  { %vm3475_vm3 = vmor %vm3473_vm11, %vm3474_vm8  ;;  %v3794_v11 = vsel %vm2624_vm5, %v6449_v30, 0.0 }
0x18d8   :  { %v3462_v62 = vmul.f32 %v5332_v7, %v3461_v35  ;;  %v3469_v60 = vmul.f32 %v5334_v45, %v3468_v48  ;;  %3795 = vadd.xlane.f32.xlu0 %v3794_v11 }
0x18da   :  { %v3466_v44 = vsel %vm3465_vm10, %v5332_v7, %v3462_v62  ;;  %v3470_v10 = vmul.f32 0.5, %v3469_v60 }
0x18db   :  { %v3477_v0 = vmul.f32 %v3466_v44, %v3443_v50  ;;  %v6442_v50 = vld [vmem:[%s7197_s1 + $0x18] sm:$0x1] }
0x18dc   :  { %v3471_v49 = vsub.f32 1.5, %v3470_v10 }
0x18dd   :  { %v3482_v56 = vmul.f32 %v5223_v8, %v3477_v0 }
0x18de   :  { %v3472_v1 = vmul.f32 %v5334_v45, %v3471_v49 }
0x18df   :  { %v3487_v54 = vadd.f32 %v5224_v17, %v3482_v56 }
0x18e0   :  { %v3476_v47 = vsel %vm3475_vm3, %v5334_v45, %v3472_v1 }
0x18e1   :  { %v3478_v58 = vmul.f32 %v3476_v47, %v3444_v40  ;;  %5079 = vmatmul.msk.f32.vlgmr.msrb.gmra.mxu1 %vm2624_vm5, %v3487_v54  ;;  %v3797_v40 = vsel %vm2628_vm6, %v6442_v50, 0.0 }
0x18e3   :  { %v3483_v53 = vmul.f32 %v5223_v8, %v3478_v58 }
0x18e5   :  { %v3488_v52 = vadd.f32 %v5224_v17, %v3483_v53 }
0x18e9   :  { %5080 = vmatmul.msk.f32.gmra.mxu1 %vm2624_vm5, %v3488_v52 }
0x194b   :  { %v3796_v10 = vpop.xlane.xlu0 %3795 }
0x194c   :  { %v3800_v17 = vmul.f32 %v3796_v10, %v6005_v32 }
0x194e   :  { %v6467_v0 = vsub.f32 %v6449_v30, %v3800_v17 }
0x1950   :  { %v3804_v49 = vmul.f32 %v6467_v0, %v6467_v0 }
0x1952   :  { %v3806_v56 = vsel %vm2624_vm5, %v3804_v49, 0.0 }
0x195e   :  { %v3514_v7 = vpop.f32.mrf.mxu1 }
0x195f   :  { %3522 = vrot.lane.b32.xlu2 %v3514_v7, %s5394_s27 }
0x1966   :  { %v3517_v57 = vpop.f32.mrf.mxu1 }
0x1967   :  { %3524 = vrot.lane.b32.xlu1 %v3517_v57, %s5394_s27 }
0x1988   :  { %3807 = vadd.xlane.f32.xlu2 %v3806_v56 }
0x1991   :  { %3798 = vadd.xlane.f32.xlu1 %v3797_v40 }
0x19aa   :  { %3581 = vrot.lane.b32.xlu1 %v3514_v7, %s5395_s23 }
0x19b9   :  { %v3523_v35 = vpop.permute.xlu2 %3522 }
0x19d9   :  { %v3525_v45 = vpop.permute.xlu1 %3524 }
0x19da   :  { %5081 = vmatpush.xpose.msk.msrb.mxu2 %vm2624_vm5, %v3525_v45 }
0x19de   :  { %5082 = vmatpush.xpose.msk.msrb.mxu2 %vm2624_vm5, %v3523_v35 }
0x19e1   :  { %5083 = vmatmul.msk.f32.vlgmr.msrb.gmra.mxu2 %vm2624_vm5, %v3514_v7 }
0x19e9   :  { %5084 = vmatmul.msk.f32.gmra.mxu2 %vm2624_vm5, %v3517_v57 }
0x19fb   :  { %v3808_v56 = vpop.xlane.xlu2 %3807 }
0x1a04   :  { %v3799_v48 = vpop.xlane.xlu1 %3798 }
0x1a05   :  { %v3801_v62 = vmul.f32 %v3799_v48, %v6005_v32 }
0x1a07   :  { %v6460_v60 = vsub.f32 %v6442_v50, %v3801_v62 }
0x1a09   :  { %v3805_v8 = vmul.f32 %v6460_v60, %v6460_v60 }
0x1a0b   :  { %v3809_v44 = vsel %vm2628_vm6, %v3805_v8, 0.0 }
0x1a0c   :  { %3810 = vadd.xlane.f32.xlu0 %v3809_v44 }
0x1a64   :  { %v3551_v1 = vpop.f32.mrf.mxu2 }
0x1a65   :  { %v3557_v54 = vmul.f32 0.35355338, %v3551_v1  ;;  %v3812_v1 = vmul.f32 %v3808_v56, %v6005_v32 }
0x1a67   :  { %v3559_v47 = vsel %vm2756_vm14, %v3557_v54, -inf }
0x1a68   :  { %3560 = vmax.xlane.f32.xlu0 %v3559_v47  ;;  %v3814_v47 = vadd.f32 1e-05, %v3812_v1 }
0x1a6a   :  { %vm3822_vm3 = vweird.f32 %v3814_v47 }
0x1a6c   :  { %v3554_v58 = vpop.f32.mrf.mxu2 }
0x1a6d   :  { %v3558_v53 = vmul.f32 0.35355338, %v3554_v58 }
0x1a6f   :  { %v3562_v52 = vsel %vm2760_vm15, %v3558_v53, -inf }
0x1a70   :  { %3563 = vmax.xlane.f32.xlu0 %v3562_v52 }
0x1a7f   :  { %v3811_v7 = vpop.xlane.xlu0 %3810 }
0x1a80   :  { %v3813_v58 = vmul.f32 %v3811_v7, %v6005_v32 }
0x1a84   :  { %3583 = vrot.lane.b32.xlu0 %v3517_v57, %s5395_s23  ;;  %v3582_v57 = vpop.permute.xlu1 %3581 }
0x1adb   :  { %v3561_v40 = vpop.xlane.xlu0 %3560 }
0x1adc   :  { %v3565_v11 = vsub.f32 %v3557_v54, %v3561_v40  ;;  %v3848_v54 = vld [vmem:[%s7200_s11] sm:$0xff] }
0x1ade   :  { %v3567_v45 = vmul.f32 1.442695, %v3565_v11 }
0x1ae0   :  { %5335 = vpow2.f32 %v3567_v45 }
0x1ae3   :  { %v3564_v35 = vpop.xlane.xlu0 %3563 }
0x1ae4   :  { %v3566_v48 = vsub.f32 %v3558_v53, %v3564_v35  ;;  %v3815_v53 = vadd.f32 1e-05, %v3813_v58 }
0x1ae6   :  { %v5336_v62 = vpop.eup %5335  ;;  %v3569_v8 = vmul.f32 1.442695, %v3566_v48  ;;  %vm3832_vm11 = vweird.f32 %v3815_v53 }
0x1ae7   :  { %v3571_v44 = vsel %vm2756_vm14, %v5336_v62, 0.0 }
0x1ae8   :  { %5337 = vpow2.f32 %v3569_v8  ;;  %3572 = vadd.xlane.f32.xlu0 %v3571_v44 }
0x1ae9   :  { %5339 = vrsqrt.f32 %v3814_v47 }
0x1aea   :  { %5341 = vrsqrt.f32 %v3815_v53 }
0x1aee   :  { %v5338_v10 = vpop.eup %5337 }
0x1aef   :  { %v3574_v17 = vsel %vm2760_vm15, %v5338_v10, 0.0  ;;  %v5340_v52 = vpop.eup %5339 }
0x1af0   :  { %3575 = vadd.xlane.f32.xlu0 %v3574_v17  ;;  %v3817_v40 = vmul.f32 %v5340_v52, %v3814_v47  ;;  %v5342_v45 = vpop.eup %5341  ;;  %vm3823_vm8 = vweird.f32 %v5340_v52 }
0x1af1   :  { %v3827_v48 = vmul.f32 %v5342_v45, %v3815_v53  ;;  %vm3824_vm10 = vmor %vm3822_vm3, %vm3823_vm8  ;;  %vm3833_vm12 = vweird.f32 %v5342_v45 }
0x1af2   :  { %v3818_v11 = vmul.f32 %v5340_v52, %v3817_v40  ;;  %vm3834_vm9 = vmor %vm3832_vm11, %vm3833_vm12 }
0x1af3   :  { %v3828_v44 = vmul.f32 %v5342_v45, %v3827_v48 }
0x1af4   :  { %v3819_v8 = vmul.f32 0.5, %v3818_v11 }
0x1af5   :  { %v3829_v1 = vmul.f32 0.5, %v3828_v44 }
0x1af6   :  { %v3584_v49 = vpop.permute.xlu0 %3583  ;;  %v3820_v17 = vsub.f32 1.5, %v3819_v8 }
0x1af7   :  { %5085 = vmatpush.msk.msra.mxu3 %vm2791_vm0, %v3584_v49 }
0x1af8   :  { %v3821_v7 = vmul.f32 %v5340_v52, %v3820_v17  ;;  %v5088_v17 = vld [vmem:[%s7201_s12 + $0x8] sm:$0xff] }
0x1af9   :  { %3609 = vmatpush.msra.mxu3 %v3582_v57  ;;  %3640 = vmatpush.msrb.mxu0 %v5088_v17 }
0x1afa   :  { %v3825_v58 = vsel %vm3824_vm10, %v5340_v52, %v3821_v7  ;;  %v5226_v52 = vld [vmem:[%s7199_s10] ss:$0 sm:$0xff] }
0x1afb   :  { %3870 = vmatpush.msrb.mxu3 %v3848_v54  ;;  %v3830_v54 = vsub.f32 1.5, %v3829_v1  ;;  %v3836_v11 = vmul.f32 %v3825_v58, %v6467_v0 }
0x1afd   :  { %v3831_v48 = vmul.f32 %v5342_v45, %v3830_v54 }
0x1aff   :  { %v3835_v8 = vsel %vm3834_vm9, %v5342_v45, %v3831_v48 }
0x1b00   :  { %v3837_v53 = vmul.f32 %v3835_v8, %v6460_v60 }
0x1b5b   :  { %v3573_v35 = vpop.xlane.xlu0 %3572 }
0x1b5c   :  { %5343 = vrcp.f32 %v3573_v35 }
0x1b62   :  { %v5344_v49 = vpop.eup %5343 }
0x1b63   :  { %v3579_v57 = vmul.f32 %v5344_v49, %v5336_v62  ;;  %v3576_v56 = vpop.xlane.xlu0 %3575  ;;  %v5225_v62 = vld [vmem:[%s7198_s9] ss:$0 sm:$0xff] }
0x1b64   :  { %5345 = vrcp.f32 %v3576_v56  ;;  %v3841_v47 = vmul.f32 %v5225_v62, %v3836_v11  ;;  %v3842_v0 = vmul.f32 %v5225_v62, %v3837_v53 }
0x1b65   :  { %5086 = vmatmul.msk.f32.vlgmr.msra.gmra.mxu3 %vm2756_vm14, %v3579_v57 }
0x1b66   :  { %v3846_v44 = vadd.f32 %v5226_v52, %v3841_v47 }
0x1b6a   :  { %v5346_v40 = vpop.eup %5345 }
0x1b6b   :  { %v3580_v35 = vmul.f32 %v5346_v40, %v5338_v10  ;;  %v3847_v10 = vadd.f32 %v5226_v52, %v3842_v0 }
0x1b6d   :  { %5087 = vmatmul.msk.f32.gmra.mxu3 %vm2756_vm14, %v3580_v35 }
0x1b75   :  { %5106 = vmatmul.msk.f32.vlgmr.msrb.gmra.mxu3 %vm2624_vm5, %v3846_v44 }
0x1b7d   :  { %5107 = vmatmul.msk.f32.gmra.mxu3 %vm2624_vm5, %v3847_v10 }
0x1be8   :  { %v3611_v49 = vpop.f32.mrf.mxu3 }
0x1be9   :  { %5089 = vmatmul.msk.f32.vlgmr.msrb.gmra.mxu0 %vm2624_vm5, %v3611_v49 }
0x1bf0   :  { %v3614_v45 = vpop.f32.mrf.mxu3 }
0x1bf1   :  { %5090 = vmatmul.msk.f32.gmra.mxu0 %vm2624_vm5, %v3614_v45 }
0x1bf8   :  { %v6500_v57 = vpop.f32.mrf.mxu3 }
0x1bf9   :  { %3880 = vrot.lane.b32.xlu1 %v6500_v57, %s5394_s27 }
0x1c00   :  { %v3875_v60 = vpop.f32.mrf.mxu3 }
0x1c01   :  { %3882 = vrot.lane.b32.xlu2 %v3875_v60, %s5394_s27 }
0x1c5b   :  { %v3883_v56 = vpop.permute.xlu2 %3882 }
0x1c5c   :  { %5108 = vmatpush.xpose.msk.msra.mxu0 %vm2624_vm5, %v3883_v56 }
0x1c66   :  { %v3642_v1 = vpop.f32.mrf.mxu0 }
0x1c67   :  { %v6507_v7 = vadd.f32 %v3642_v1, %v6410_v61 }
0x1c69   :  { %v3654_v54 = vsel %vm2624_vm5, %v6507_v7, 0.0 }
0x1c6a   :  { %3655 = vadd.xlane.f32.xlu2 %v3654_v54 }
0x1c6b   :  { %v3881_v58 = vpop.permute.xlu1 %3880 }
0x1c6c   :  { %5109 = vmatpush.xpose.msk.msra.mxu0 %vm2624_vm5, %v3881_v58 }
0x1c6e   :  { %v3645_v40 = vpop.f32.mrf.mxu0 }
0x1c6f   :  { %v6513_v11 = vadd.f32 %v3645_v40, %v6414_v28  ;;  %5110 = vmatmul.msk.f32.vlgmr.msra.gmra.mxu0 %vm2624_vm5, %v6500_v57 }
0x1c71   :  { %v3657_v35 = vsel %vm2628_vm6, %v6513_v11, 0.0 }
0x1c72   :  { %3658 = vadd.xlane.f32.xlu1 %v3657_v35 }
0x1c77   :  { %5111 = vmatmul.msk.f32.gmra.mxu0 %vm2624_vm5, %v3875_v60 }
0x1cdd   :  { %v3656_v47 = vpop.xlane.xlu2 %3655 }
0x1cde   :  { %v3660_v8 = vmul.f32 %v3656_v47, %v6005_v32 }
0x1ce0   :  { %v3662_v53 = vsub.f32 %v6507_v7, %v3660_v8  ;;  %v5093_v8 = vld [vmem:[%s7204_s15 + $0x8] sm:$0xff] }
0x1ce1   :  { %3736 = vmatpush.msra.mxu1 %v5093_v8  ;;  %v5227_v8 = vld [vmem:[%s7202_s13 + $0x1] ss:$0 sm:$0xff] }
0x1ce2   :  { %v3664_v17 = vmul.f32 %v3662_v53, %v3662_v53 }
0x1ce4   :  { %v3666_v45 = vsel %vm2624_vm5, %v3664_v17, 0.0 }
0x1ce5   :  { %v3659_v0 = vpop.xlane.xlu1 %3658 }
0x1ce6   :  { %v3661_v10 = vmul.f32 %v3659_v0, %v6005_v32 }
0x1ce8   :  { %v3663_v49 = vsub.f32 %v6513_v11, %v3661_v10 }
0x1cea   :  { %v3665_v56 = vmul.f32 %v3663_v49, %v3663_v49 }
0x1cec   :  { %v3909_v61 = vpop.f32.mrf.mxu0  ;;  %v3669_v1 = vsel %vm2628_vm6, %v3665_v56, 0.0 }
0x1ced   :  { %v3915_v48 = vmul.f32 0.35355338, %v3909_v61 }
0x1cef   :  { %v3917_v62 = vsel %vm2756_vm14, %v3915_v48, -inf }
0x1cf0   :  { %3918 = vmax.xlane.f32.xlu0 %v3917_v62 }
0x1cf4   :  { %v3912_v52 = vpop.f32.mrf.mxu0 }
0x1cf5   :  { %v3916_v28 = vmul.f32 0.35355338, %v3912_v52 }
0x1cf7   :  { %v3920_v44 = vsel %vm2760_vm15, %v3916_v28, -inf }
0x1cf8   :  { %3921 = vmax.xlane.f32.xlu0 %v3920_v44 }
0x1d00   :  { %3667 = vadd.xlane.f32.xlu0 %v3666_v45 }
0x1d08   :  { %3670 = vadd.xlane.f32.xlu0 %v3669_v1 }
0x1d1c   :  { %3941 = vrot.lane.b32.xlu0 %v3875_v60, %s5395_s23 }
0x1d63   :  { %v3919_v54 = vpop.xlane.xlu0 %3918 }
0x1d64   :  { %v3923_v58 = vsub.f32 %v3915_v48, %v3919_v54 }
0x1d66   :  { %v3925_v40 = vmul.f32 1.442695, %v3923_v58 }
0x1d68   :  { %5347 = vpow2.f32 %v3925_v40 }
0x1d6b   :  { %v3922_v35 = vpop.xlane.xlu0 %3921 }
0x1d6c   :  { %v3924_v61 = vsub.f32 %v3916_v28, %v3922_v35 }
0x1d6e   :  { %v6529_v62 = vpop.eup %5347  ;;  %v3927_v47 = vmul.f32 1.442695, %v3924_v61 }
0x1d6f   :  { %v3929_v52 = vsel %vm2756_vm14, %v6529_v62, 0.0 }
0x1d70   :  { %5349 = vpow2.f32 %v3927_v47  ;;  %3930 = vadd.xlane.f32.xlu2 %v3929_v52 }
0x1d73   :  { %v3668_v60 = vpop.xlane.xlu0 %3667 }
0x1d74   :  { %v3672_v48 = vmul.f32 %v3668_v60, %v6005_v32 }
0x1d76   :  { %v6537_v44 = vpop.eup %5349  ;;  %v3674_v0 = vadd.f32 1e-05, %v3672_v48  ;;  %v5228_v48 = vld [vmem:[%s7203_s14 + $0x1] ss:$0 sm:$0xff] }
0x1d77   :  { %v3932_v28 = vsel %vm2760_vm15, %v6537_v44, 0.0 }
0x1d78   :  { %5351 = vrsqrt.f32 %v3674_v0  ;;  %3933 = vadd.xlane.f32.xlu1 %v3932_v28  ;;  %vm3682_vm8 = vweird.f32 %v3674_v0 }
0x1d7b   :  { %v3671_v10 = vpop.xlane.xlu0 %3670 }
0x1d7c   :  { %v3673_v17 = vmul.f32 %v3671_v10, %v6005_v32 }
0x1d7e   :  { %v5352_v45 = vpop.eup %5351  ;;  %v3675_v56 = vadd.f32 1e-05, %v3673_v17 }
0x1d7f   :  { %v3677_v1 = vmul.f32 %v5352_v45, %v3674_v0  ;;  %vm3683_vm3 = vweird.f32 %v5352_v45 }
0x1d80   :  { %5353 = vrsqrt.f32 %v3675_v56  ;;  %vm3684_vm10 = vmor %vm3682_vm8, %vm3683_vm3  ;;  %vm3692_vm12 = vweird.f32 %v3675_v56 }
0x1d81   :  { %v3678_v54 = vmul.f32 %v5352_v45, %v3677_v1 }
0x1d83   :  { %v3679_v58 = vmul.f32 0.5, %v3678_v54 }
0x1d85   :  { %v3680_v40 = vsub.f32 1.5, %v3679_v58 }
0x1d86   :  { %v5354_v35 = vpop.eup %5353 }
0x1d87   :  { %v3681_v61 = vmul.f32 %v5352_v45, %v3680_v40  ;;  %v3687_v47 = vmul.f32 %v5354_v35, %v3675_v56  ;;  %vm3693_vm11 = vweird.f32 %v5354_v35 }
0x1d88   :  { %3939 = vrot.lane.b32.xlu2 %v6500_v57, %s5395_s23  ;;  %vm3694_vm9 = vmor %vm3692_vm12, %vm3693_vm11 }
0x1d89   :  { %v3685_v52 = vsel %vm3684_vm10, %v5352_v45, %v3681_v61  ;;  %v3688_v60 = vmul.f32 %v5354_v35, %v3687_v47  ;;  %vm7314_vm10 = vcmask 32800  }
0x1d8a   :  { %v3696_v28 = vmul.f32 %v3685_v52, %v3662_v53  ;;  %v6557_v53 = vld [vmem:[%s7196_s6] sm:$0x1]  ;;  %s7300_s6 = smov 6  }
0x1d8b   :  { %v3689_v10 = vmul.f32 0.5, %v3688_v60  ;;  %v1571_v61 = vadd.f32 %v6557_v53, %v5891_v16  ;;  %v6576_v16 = vadd.f32 %v6557_v53, %v6079_v15  ;;  %v6594_v15 = vadd.f32 %v6557_v53, %v6083_v21  ;;  %v5099_v60 = vld [vmem:[%s7207_s17 + $0x30] sm:$0xff] }
0x1d8c   :  { %v3701_v17 = vmul.f32 %v5227_v8, %v3696_v28  ;;  %v6609_v21 = vadd.f32 %v6557_v53, %v6130_v20  ;;  %v6620_v20 = vadd.f32 %v6557_v53, %v6132_v4  ;;  %v5097_v4 = vld [vmem:[%s7207_s17 + $0x20] sm:$0xff]  ;;  %v6636_v28 = vadd.f32 %v6557_v53, %v5876_v12 }
0x1d8d   :  { %v3690_v1 = vsub.f32 1.5, %v3689_v10 }
0x1d8e   :  { %v3706_v0 = vadd.f32 %v5228_v48, %v3701_v17  ;;  %v3942_v54 = vpop.permute.xlu0 %3941 }
0x1d8f   :  { %v3691_v58 = vmul.f32 %v5354_v35, %v3690_v1  ;;  %5112 = vmatpush.msk.msrb.mxu1 %vm2791_vm0, %v3942_v54  ;;  %v6645_v1 = vadd.f32 %v6557_v53, %v6089_v37 }
0x1d90   :  { %1443 = vrot.lane.b32.xlu2 %v5826_v27, %s5396_s3  ;;  %5095 = vmatmul.msk.f32.vlgmr.msra.gmra.mxu1 %vm2624_vm5, %v3706_v0  ;;  %v1643_v27 = vadd.f32 %v6557_v53, %v6120_v6  ;;  %v6582_v6 = vadd.f32 %v6557_v53, %v6124_v34  ;;  %s7301_s3 = smov 9   ;;  %v6600_v34 = vadd.f32 %v6557_v53, %v6085_v2 }
0x1d91   :  { %v3695_v57 = vsel %vm3694_vm9, %v5354_v35, %v3691_v58 }
0x1d92   :  { %v3697_v45 = vmul.f32 %v3695_v57, %v3663_v49  ;;  %v6570_v49 = vadd.f32 %v6557_v53, %v6122_v38  ;;  %v6588_v38 = vadd.f32 %v6557_v53, %v6126_v36  ;;  %v5100_v36 = vld [vmem:[%s7207_s17 + $0x38] sm:$0xff] }
0x1d93   :  { %3774 = vmatpush.msra.mxu2 %v5100_v36 }
0x1d94   :  { %v3702_v40 = vmul.f32 %v5227_v8, %v3697_v45 }
0x1d95   :  { %3775 = vmatpush.msra.mxu2 %v5099_v60 }
0x1d96   :  { %v3707_v56 = vadd.f32 %v5228_v48, %v3702_v40 }
0x1d98   :  { %1574 = vrot.lane.b32.xlu2 %v1571_v61, %s5397_s24  ;;  %5096 = vmatmul.msk.f32.gmra.mxu1 %vm2624_vm5, %v3707_v56 }
0x1da0   :  { %1578 = vrot.lane.b32.xlu2 %v1571_v61, %s5398_s0 }
0x1da8   :  { %1646 = vrot.lane.b32.xlu2 %v1643_v27, %s5399_s25 }
0x1db0   :  { %1650 = vrot.lane.b32.xlu2 %v1643_v27, %s5397_s24  ;;  %s7302_s24 = smov 12   ;;  %v3975_v27 = vld [vmem:[%s7201_s12] sm:$0xff] }
0x1db8   :  { %1788 = vrot.lane.b32.xlu2 %v6570_v49, %s5409_s22 }
0x1dc0   :  { %1858 = vrot.lane.b32.xlu2 %v6576_v16, %s7300_s6 }
0x1dc8   :  { %1934 = vrot.lane.b32.xlu2 %v6582_v6, %s7300_s6  ;;  %s7303_s6 = smov 15  }
0x1dd0   :  { %2058 = vrot.lane.b32.xlu2 %v6588_v38, %s7301_s3 }
0x1dd8   :  { %2132 = vrot.lane.b32.xlu2 %v6594_v15, %s7301_s3 }
0x1de0   :  { %2270 = vrot.lane.b32.xlu2 %v6600_v34, %s7302_s24 }
0x1de3   :  { %v3931_v35 = vpop.xlane.xlu2 %3930 }
0x1de4   :  { %5355 = vrcp.f32 %v3931_v35  ;;  %v6666_v35 = vld [vmem:[%s7206_s7] sm:$0xff]  ;;  %s7347_s7 = smov 122  }
0x1de8   :  { %2346 = vrot.lane.b32.xlu2 %v6609_v21, %s7302_s24  ;;  %s7313_s24 = smov 17  }
0x1dea   :  { %v5356_v47 = vpop.eup %5355 }
0x1deb   :  { %v3937_v2 = vmul.f32 %v5356_v47, %v6529_v62  ;;  %v3940_v8 = vpop.permute.xlu2 %3939  ;;  %v3934_v52 = vpop.xlane.xlu1 %3933  ;;  %v5098_v62 = vld [vmem:[%s7207_s17 + $0x28] sm:$0xff] }
0x1dec   :  { %5357 = vrcp.f32 %v3934_v52  ;;  %3967 = vmatpush.msrb.mxu1 %v3940_v8  ;;  %3776 = vmatpush.msra.mxu2 %v5098_v62 }
0x1ded   :  { %5113 = vmatmul.msk.f32.vlgmr.msrb.gmra.mxu1 %vm2756_vm14, %v3937_v2  ;;  %v5230_v2 = vld [vmem:[%s7208_s18 + $0x1] ss:$0 sm:$0xff] }
0x1dee   :  { %5121 = vmatpush.msk.msra.mxu1 %vm2993_vm13, %v6283_v39  ;;  %3777 = vmatpush.msra.mxu2 %v5097_v4 }
0x1df0   :  { %5129 = vmatpush.msk.msrb.mxu1 %vm2993_vm13, %v6283_v39  ;;  %2484 = vrot.lane.b32.xlu2 %v6620_v20, %s7303_s6 }
0x1df1   :  { %3997 = vmatpush.msrb.mxu2 %v3975_v27 }
0x1df2   :  { %v5358_v48 = vpop.eup %5357 }
0x1df3   :  { %v1444_v10 = vpop.permute.xlu2 %1443  ;;  %v3938_v17 = vmul.f32 %v5358_v48, %v6537_v44  ;;  %v5229_v44 = vld [vmem:[%s7205_s16 + $0x1] ss:$0 sm:$0xff] }
0x1df4   :  { %1446 = vst.msk [vmem:[#allocation3 + $0x1] sm:$0x1] %vm171_vm4, %v1444_v10  ;;  %vm7304_vm4 = vcmask 24600  }
0x1df5   :  { %1511 = vst.msk [vmem:[#allocation3 + $0x1] sm:$0x1] %vm242_vm1, %v6636_v28  ;;  %5114 = vmatmul.msk.f32.gmra.mxu1 %vm2756_vm14, %v3938_v17 }
0x1df8   :  { %2548 = vrot.lane.b32.xlu2 %v6645_v1, %s7303_s6  ;;  %s7311_s6 = smov 11  }
0x1dfb   :  { %v6649_v0 = vpop.permute.xlu2 %1574 }
0x1e03   :  { %v1579_v12 = vpop.permute.xlu2 %1578 }
0x1e04   :  { %1581 = vst.msk [vmem:[#allocation3 + $0x1] sm:$0x1] %vm311_vm2, %v1579_v12 }
0x1e0b   :  { %v6655_v54 = vpop.permute.xlu2 %1646 }
0x1e0d   :  { %v3738_v58 = vpop.f32.mrf.mxu1 }
0x1e0e   :  { %v3739_v57 = vadd.f32 %v5229_v44, %v3738_v58 }
0x1e10   :  { %v3744_v45 = vmax.f32 %v3739_v57, 0.0 }
0x1e12   :  { %5102 = vmatmul.msk.f32.vlgmr.msra.gmra.mxu2 %vm2949_vm7, %v3744_v45 }
0x1e13   :  { %v1651_v37 = vpop.permute.xlu2 %1650  ;;  %5123 = vmatpush.msk.msra.mxu2 %vm2993_vm13, %v6666_v35 }
0x1e14   :  { %1653 = vst.msk [vmem:[#allocation3 + $0x1] sm:$0x1] %vm7304_vm4, %v1651_v37 }
0x1e15   :  { %v3741_v40 = vpop.f32.mrf.mxu1 }
0x1e16   :  { %v3742_v61 = vadd.f32 %v5229_v44, %v3741_v40 }
0x1e18   :  { %v3745_v56 = vmax.f32 %v3742_v61, 0.0 }
0x1e1a   :  { %5103 = vmatmul.msk.f32.gmra.mxu2 %vm2949_vm7, %v3745_v56 }
0x1e6a   :  { %v3969_v36 = vpop.f32.mrf.mxu1 }
0x1e6b   :  { %5115 = vmatmul.msk.f32.vlgmr.msrb.gmra.mxu2 %vm2624_vm5, %v3969_v36  ;;  %v1713_v36 = vadd.f32 %v6557_v53, %v6077_v5  ;;  %v2197_v5 = vadd.f32 %v6557_v53, %v6128_v31  ;;  %v2609_v31 = vadd.f32 %v6557_v53, %v6134_v23 }
0x1e6c   :  { %5131 = vmatpush.msk.msrb.mxu2 %vm2993_vm13, %v6666_v35 }
0x1e72   :  { %v3972_v47 = vpop.f32.mrf.mxu1 }
0x1e73   :  { %5116 = vmatmul.msk.f32.gmra.mxu2 %vm2624_vm5, %v3972_v47  ;;  %v1987_v47 = vadd.f32 %v6557_v53, %v6081_v22  ;;  %v2409_v22 = vadd.f32 %v6557_v53, %v6087_v14  ;;  %v4063_v14 = vld [vmem:[%s7204_s15] sm:$0xff] }
0x1e74   :  { %4089 = vmatpush.msra.mxu3 %v4063_v14 }
0x1e76   :  { %5125 = vmatpush.msk.msrb.mxu3 %vm2993_vm13, %v6283_v39 }
0x1e95   :  { %v3779_v8 = vpop.f32.mrf.mxu2 }
0x1e96   :  { %v3780_v52 = vadd.f32 %v5230_v2, %v3779_v8 }
0x1e98   :  { %v3785_v60 = vadd.f32 %v3780_v52, %v6507_v7 }
0x1e9a   :  { %3787 = vst.msk [vmem:[%s7210_s20] sm:$0xff] %vm2624_vm5, %v3785_v60  ;;  %v5231_v60 = vld [vmem:[%s7202_s13] ss:$0 sm:$0xff] }
0x1e9d   :  { %v3782_v62 = vpop.f32.mrf.mxu2 }
0x1e9e   :  { %v3783_v4 = vadd.f32 %v5230_v2, %v3782_v62 }
0x1ea0   :  { %v3786_v48 = vadd.f32 %v3783_v4, %v6513_v11 }
0x1ea2   :  { %3788 = vst.msk [vmem:[%s7210_s20 + $0x8] sm:$0x1] %vm2628_vm6, %v3786_v48  ;;  %v5232_v48 = vld [vmem:[%s7203_s14] ss:$0 sm:$0xff] }
0x1eee   :  { %v3999_v10 = vpop.f32.mrf.mxu2 }
0x1eef   :  { %v6688_v17 = vadd.f32 %v6449_v30, %v3999_v10 }
0x1ef1   :  { %v4009_v7 = vsel %vm2624_vm5, %v6688_v17, 0.0 }
0x1ef2   :  { %4010 = vadd.xlane.f32.xlu1 %v4009_v7 }
0x1ef6   :  { %v4002_v12 = vpop.f32.mrf.mxu2 }
0x1ef7   :  { %v6693_v44 = vadd.f32 %v6442_v50, %v4002_v12  ;;  %v1789_v12 = vpop.permute.xlu2 %1788 }
0x1ef9   :  { %v4012_v11 = vsel %vm2628_vm6, %v6693_v44, 0.0 }
0x1efa   :  { %4013 = vadd.xlane.f32.xlu1 %v4012_v11 }
0x1f65   :  { %v4011_v58 = vpop.xlane.xlu1 %4010 }
0x1f66   :  { %v4015_v57 = vmul.f32 %v4011_v58, %v6005_v32 }
0x1f68   :  { %v6699_v45 = vsub.f32 %v6688_v17, %v4015_v57 }
0x1f6a   :  { %v4019_v30 = vmul.f32 %v6699_v45, %v6699_v45 }
0x1f6c   :  { %v4021_v37 = vsel %vm2624_vm5, %v4019_v30, 0.0 }
0x1f6d   :  { %4022 = vadd.xlane.f32.xlu0 %v4021_v37  ;;  %v4014_v40 = vpop.xlane.xlu1 %4013 }
0x1f6e   :  { %v4016_v50 = vmul.f32 %v4014_v40, %v6005_v32 }
0x1f70   :  { %v6706_v61 = vsub.f32 %v6693_v44, %v4016_v50 }
0x1f72   :  { %v4020_v56 = vmul.f32 %v6706_v61, %v6706_v61 }
0x1f74   :  { %v4024_v27 = vsel %vm2628_vm6, %v4020_v56, 0.0  ;;  %v1859_v56 = vpop.permute.xlu2 %1858 }
0x1f75   :  { %4025 = vadd.xlane.f32.xlu1 %v4024_v27 }
0x1f81   :  { %1720 = vrot.lane.b32.xlu0 %v1713_v36, %s5399_s25  ;;  %s7309_s25 = smov 8  }
0x1f89   :  { %1930 = vrot.lane.b32.xlu0 %v6582_v6, %s7305_s28 }
0x1f8e   :  { %1507 = vrot.lane.b32.xlu1 %v6636_v28, %s5398_s0  ;;  %s7308_s0 = smov 13  }
0x1f91   :  { %1994 = vrot.lane.b32.xlu0 %v1987_v47, %s7305_s28 }
0x1f96   :  { %1716 = vrot.lane.b32.xlu1 %v1713_v36, %s7306_s4 }
0x1f99   :  { %2128 = vrot.lane.b32.xlu0 %v6594_v15, %s7307_s30 }
0x1f9e   :  { %1792 = vrot.lane.b32.xlu1 %v6570_v49, %s7306_s4  ;;  %s7348_s4 = smov 114  }
0x1fa1   :  { %2204 = vrot.lane.b32.xlu0 %v2197_v5, %s7307_s30  ;;  %s7343_s30 = smov 126  }
0x1fa6   :  { %1862 = vrot.lane.b32.xlu1 %v6576_v16, %s5409_s22  ;;  %s7312_s22 = smov 14  }
0x1fa9   :  { %2342 = vrot.lane.b32.xlu0 %v6609_v21, %s7308_s0 }
0x1fae   :  { %1990 = vrot.lane.b32.xlu1 %v1987_v47, %s7309_s25 }
0x1fb1   :  { %2416 = vrot.lane.b32.xlu0 %v2409_v22, %s7308_s0  ;;  %s7345_s0 = smov 124  }
0x1fb6   :  { %2062 = vrot.lane.b32.xlu1 %v6588_v38, %s7309_s25 }
0x1fb9   :  { %2544 = vrot.lane.b32.xlu0 %v6645_v1, %s7310_s21 }
0x1fbe   :  { %2200 = vrot.lane.b32.xlu1 %v2197_v5, %s7311_s6 }
0x1fc1   :  { %2616 = vrot.lane.b32.xlu0 %v2609_v31, %s7310_s21 }
0x1fc6   :  { %2274 = vrot.lane.b32.xlu1 %v6600_v34, %s7311_s6 }
0x1fce   :  { %2412 = vrot.lane.b32.xlu1 %v2409_v22, %s7312_s22 }
0x1fd6   :  { %2488 = vrot.lane.b32.xlu1 %v6620_v20, %s7312_s22 }
0x1fde   :  { %2612 = vrot.lane.b32.xlu1 %v2609_v31, %s7313_s24 }
0x1fe0   :  { %v4023_v23 = vpop.xlane.xlu0 %4022 }
0x1fe1   :  { %v4027_v53 = vmul.f32 %v4023_v23, %v6005_v32 }
0x1fe3   :  { %v4029_v49 = vadd.f32 1e-05, %v4027_v53 }
0x1fe5   :  { %5359 = vrsqrt.f32 %v4029_v49  ;;  %vm4037_vm8 = vweird.f32 %v4029_v49 }
0x1fe8   :  { %v4026_v16 = vpop.xlane.xlu1 %4025 }
0x1fe9   :  { %v4028_v6 = vmul.f32 %v4026_v16, %v6005_v32 }
0x1feb   :  { %v5360_v38 = vpop.eup %5359  ;;  %v4030_v15 = vadd.f32 1e-05, %v4028_v6 }
0x1fec   :  { %v4032_v34 = vmul.f32 %v5360_v38, %v4029_v49  ;;  %vm4038_vm3 = vweird.f32 %v5360_v38 }
0x1fed   :  { %5361 = vrsqrt.f32 %v4030_v15  ;;  %vm4039_vm11 = vmor %vm4037_vm8, %vm4038_vm3  ;;  %vm4047_vm9 = vweird.f32 %v4030_v15  ;;  %vm7315_vm3 = vcmask 24600  }
0x1fee   :  { %v4033_v21 = vmul.f32 %v5360_v38, %v4032_v34  ;;  %vm7316_vm8 = vmmov %vm7314_vm10 }
0x1ff0   :  { %v4034_v20 = vmul.f32 0.5, %v4033_v21 }
0x1ff2   :  { %v4035_v28 = vsub.f32 1.5, %v4034_v20 }
0x1ff3   :  { %v5362_v1 = vpop.eup %5361  ;;  %v1721_v2 = vpop.permute.xlu0 %1720 }
0x1ff4   :  { %v4036_v8 = vmul.f32 %v5360_v38, %v4035_v28  ;;  %v4042_v52 = vmul.f32 %v5362_v1, %v4030_v15  ;;  %1723 = vst.msk [vmem:[#allocation3 + $0x1] sm:$0x1] %vm7314_vm10, %v1721_v2  ;;  %vm4048_vm12 = vweird.f32 %v5362_v1  ;;  %vm7317_vm10 = vcmask 41000  }
0x1ff5   :  { %vm4049_vm4 = vmor %vm4047_vm9, %vm4048_vm12 }
0x1ff6   :  { %v4040_v62 = vsel %vm4039_vm11, %v5360_v38, %v4036_v8  ;;  %v4043_v4 = vmul.f32 %v5362_v1, %v4042_v52  ;;  %vm7318_vm11 = vcmask 49200  }
0x1ff7   :  { %v4051_v10 = vmul.f32 %v4040_v62, %v6699_v45  ;;  %vm7321_vm12 = vmmov %vm7318_vm11 }
0x1ff8   :  { %v4044_v7 = vmul.f32 0.5, %v4043_v4 }
0x1ff9   :  { %v4056_v11 = vmul.f32 %v5231_v60, %v4051_v10  ;;  %v4101_v10 = vld [vmem:[%s7207_s17 + $0x10] sm:$0xff] }
0x1ffa   :  { %v4045_v58 = vsub.f32 1.5, %v4044_v7  ;;  %v4100_v7 = vld [vmem:[%s7207_s17 + $0x8] sm:$0xff] }
0x1ffb   :  { %v4061_v57 = vadd.f32 %v5232_v48, %v4056_v11  ;;  %v1931_v36 = vpop.permute.xlu0 %1930  ;;  %v5233_v11 = vld [vmem:[%s7205_s16] ss:$0 sm:$0xff] }
0x1ffc   :  { %v4046_v30 = vmul.f32 %v5362_v1, %v4045_v58 }
0x1ffd   :  { %5117 = vmatmul.msk.f32.vlgmr.msra.gmra.mxu3 %vm2624_vm5, %v4061_v57 }
0x1ffe   :  { %v4050_v37 = vsel %vm4049_vm4, %v5362_v1, %v4046_v30  ;;  %5133 = vmatpush.msk.msra.mxu3 %vm2993_vm13, %v6283_v39  ;;  %vm7323_vm4 = vcmask 65600  }
0x1fff   :  { %v4052_v40 = vmul.f32 %v4050_v37, %v6706_v61  ;;  %v1935_v61 = vpop.permute.xlu2 %1934 }
0x2000   :  { %v1508_v50 = vpop.permute.xlu1 %1507 }
0x2001   :  { %1510 = vst.msk [vmem:[#allocation2 + $0x1] sm:$0x1] %vm242_vm1, %v1508_v50  ;;  %v4057_v45 = vmul.f32 %v5231_v60, %v4052_v40  ;;  %vm7319_vm1 = vcmask 57400  }
0x2002   :  { %1577 = vst.msk [vmem:[#allocation2 + $0x1] sm:$0x1] %vm311_vm2, %v6649_v0  ;;  %vm7320_vm2 = vmmov %vm7317_vm10 }
0x2003   :  { %1649 = vst.msk [vmem:[#allocation2 + $0x1] sm:$0x1] %vm7315_vm3, %v6655_v54  ;;  %v4062_v27 = vadd.f32 %v5232_v48, %v4057_v45  ;;  %v1995_v5 = vpop.permute.xlu0 %1994  ;;  %vm7322_vm9 = vmmov %vm7319_vm1  ;;  %v4102_v48 = vld [vmem:[%s7207_s17 + $0x18] sm:$0xff] }
0x2004   :  { %vm7324_vm3 = vmmov %vm7323_vm4  ;;  %4125 = vmatpush.msrb.mxu0 %v4102_v48 }
0x2005   :  { %5118 = vmatmul.msk.f32.gmra.mxu3 %vm2624_vm5, %v4062_v27 }
0x2006   :  { %4126 = vmatpush.msrb.mxu0 %v4101_v10 }
0x2007   :  { %v2059_v22 = vpop.permute.xlu2 %2058 }
0x2008   :  { %v1717_v47 = vpop.permute.xlu1 %1716  ;;  %4127 = vmatpush.msrb.mxu0 %v4100_v7 }
0x2009   :  { %1719 = vst.msk [vmem:[#allocation2 + $0x1] sm:$0x1] %vm7316_vm8, %v1717_v47  ;;  %vm7325_vm8 = vcmask 73800  }
0x200a   :  { %1791 = vst.msk [vmem:[#allocation2 + $0x1] sm:$0x1] %vm7317_vm10, %v1789_v12  ;;  %vm7326_vm10 = vcmask 82000   ;;  %v4099_v12 = vld [vmem:[%s7207_s17] sm:$0xff] }
0x200b   :  { %1861 = vst.msk [vmem:[#allocation2 + $0x1] sm:$0x1] %vm7318_vm11, %v1859_v56  ;;  %v2129_v54 = vpop.permute.xlu0 %2128  ;;  %vm7327_vm11 = vmmov %vm7325_vm8  ;;  %4128 = vmatpush.msrb.mxu0 %v4099_v12 }
0x200c   :  { %1933 = vst.msk [vmem:[#allocation2 + $0x1] sm:$0x1] %vm7319_vm1, %v1931_v36  ;;  %vm7328_vm1 = vmmov %vm7326_vm10 }
0x200d   :  { %5127 = vmatpush.msk.msra.mxu0 %vm2993_vm13, %v6666_v35 }
0x200f   :  { %v2133_v23 = vpop.permute.xlu2 %2132 }
0x2010   :  { %v1793_v0 = vpop.permute.xlu1 %1792 }
0x2011   :  { %1795 = vst.msk [vmem:[#allocation3 + $0x1] sm:$0x1] %vm7320_vm2, %v1793_v0  ;;  %vm7329_vm2 = vcmask 90200  }
0x2013   :  { %v2205_v53 = vpop.permute.xlu0 %2204 }
0x2017   :  { %v2271_v16 = vpop.permute.xlu2 %2270 }
0x2018   :  { %v1863_v31 = vpop.permute.xlu1 %1862 }
0x2019   :  { %1865 = vst.msk [vmem:[#allocation3 + $0x1] sm:$0x1] %vm7321_vm12, %v1863_v31  ;;  %vm7330_vm12 = vmmov %vm7329_vm2 }
0x201a   :  { %1937 = vst.msk [vmem:[#allocation3 + $0x1] sm:$0x1] %vm7322_vm9, %v1935_v61  ;;  %vm7331_vm9 = vcmask 98400  }
0x201b   :  { %1997 = vst.msk [vmem:[#allocation3 + $0x1] sm:$0x1] %vm7323_vm4, %v1995_v5  ;;  %v2343_v6 = vpop.permute.xlu0 %2342  ;;  %vm7332_vm4 = vcmask 106600  }
0x201f   :  { %v2347_v15 = vpop.permute.xlu2 %2346 }
0x2020   :  { %v1991_v14 = vpop.permute.xlu1 %1990 }
0x2021   :  { %1993 = vst.msk [vmem:[#allocation2 + $0x1] sm:$0x1] %vm7324_vm3, %v1991_v14  ;;  %vm7333_vm3 = vmmov %vm7331_vm9 }
0x2022   :  { %2061 = vst.msk [vmem:[#allocation2 + $0x1] sm:$0x1] %vm7325_vm8, %v2059_v22  ;;  %vm7334_vm8 = vmmov %vm7332_vm4 }
0x2023   :  { %2131 = vst.msk [vmem:[#allocation2 + $0x1] sm:$0x1] %vm7326_vm10, %v2129_v54  ;;  %v2417_v34 = vpop.permute.xlu0 %2416  ;;  %vm7335_vm10 = vcmask 114800  }
0x2027   :  { %v2485_v20 = vpop.permute.xlu2 %2484 }
0x2028   :  { %v2063_v49 = vpop.permute.xlu1 %2062 }
0x2029   :  { %2065 = vst.msk [vmem:[#allocation3 + $0x1] sm:$0x1] %vm7327_vm11, %v2063_v49  ;;  %vm7336_vm11 = vmmov %vm7335_vm10 }
0x202a   :  { %2135 = vst.msk [vmem:[#allocation3 + $0x1] sm:$0x1] %vm7328_vm1, %v2133_v23  ;;  %vm7337_vm1 = vcmask 123000  }
0x202b   :  { %2207 = vst.msk [vmem:[#allocation3 + $0x1] sm:$0x1] %vm7329_vm2, %v2205_v53  ;;  %v2545_v28 = vpop.permute.xlu0 %2544  ;;  %vm7338_vm2 = vcmask 131200  }
0x202f   :  { %v2549_v8 = vpop.permute.xlu2 %2548 }
0x2030   :  { %v2201_v38 = vpop.permute.xlu1 %2200 }
0x2031   :  { %2203 = vst.msk [vmem:[#allocation2 + $0x1] sm:$0x1] %vm7330_vm12, %v2201_v38  ;;  %vm7339_vm12 = vmmov %vm7337_vm1  ;;  %v5389_v38 = vld [vmem:[%s7209_s8] sm:$0x1] }
0x2032   :  { %2273 = vst.msk [vmem:[#allocation2 + $0x1] sm:$0x1] %vm7331_vm9, %v2271_v16  ;;  %vm7340_vm9 = vmmov %vm7338_vm2  ;;  %v5234_v16 = vld [vmem:[%s7208_s18] ss:$0 sm:$0xff] }
0x2033   :  { %2345 = vst.msk [vmem:[#allocation2 + $0x1] sm:$0x1] %vm7332_vm4, %v2343_v6  ;;  %v2617_v52 = vpop.permute.xlu0 %2616  ;;  %vm7341_vm4 = vcmask 139400  }
0x2038   :  { %v2275_v21 = vpop.permute.xlu1 %2274 }
0x2039   :  { %2277 = vst.msk [vmem:[#allocation3 + $0x1] sm:$0x1] %vm7333_vm3, %v2275_v21  ;;  %vm7342_vm3 = vmmov %vm7341_vm4 }
0x203a   :  { %2349 = vst.msk [vmem:[#allocation3 + $0x1] sm:$0x1] %vm7334_vm8, %v2347_v15  ;;  %vm7344_vm8 = vcmask 31744  }
0x203b   :  { %2419 = vst.msk [vmem:[#allocation3 + $0x1] sm:$0x1] %vm7335_vm10, %v2417_v34  ;;  %vm7346_vm10 = vmmov %vm7344_vm8 }
0x2040   :  { %v2413_v1 = vpop.permute.xlu1 %2412 }
0x2041   :  { %2415 = vst.msk [vmem:[#allocation2 + $0x1] sm:$0x1] %vm7336_vm11, %v2413_v1  ;;  %vm7349_vm11 = vmmov %vm7344_vm8 }
0x2042   :  { %2487 = vst.msk [vmem:[#allocation2 + $0x1] sm:$0x1] %vm7337_vm1, %v2485_v20  ;;  %vm7350_vm1 = vmmov %vm7344_vm8 }
0x2043   :  { %2547 = vst.msk [vmem:[#allocation2 + $0x1] sm:$0x1] %vm7338_vm2, %v2545_v28  ;;  %vm7351_vm2 = vmmov %vm7350_vm1  ;;  %v5390_v28 = vld [vmem:[%s7197_s1 + $0x10] sm:$0xff] }
0x2048   :  { %v2489_v2 = vpop.permute.xlu1 %2488 }
0x2049   :  { %2491 = vst.msk [vmem:[#allocation3 + $0x1] sm:$0x1] %vm7339_vm12, %v2489_v2  ;;  %vm7352_vm12 = vmmov %vm7350_vm1 }
0x204a   :  { %2551 = vst.msk [vmem:[#allocation3 + $0x1] sm:$0x1] %vm7340_vm9, %v2549_v8  ;;  %vm7353_vm9 = vmmov %vm7350_vm1 }
0x204b   :  { %2619 = vst.msk [vmem:[#allocation3 + $0x1] sm:$0x1] %vm7341_vm4, %v2617_v52  ;;  %vm7354_vm4 = vmmov %vm7350_vm1 }
0x2050   :  { %v2613_v60 = vpop.permute.xlu1 %2612 }
0x2051   :  { %2615 = vst.msk [vmem:[#allocation2 + $0x1] sm:$0x1] %vm7342_vm3, %v2613_v60  ;;  %vm7355_vm3 = vmmov %vm7350_vm1 }
0x2052   :  { %v4143_v62 = vld [vmem:[#allocation3 + $0x1] sm:$0x1] }
0x2053   :  { %4196 = vrot.lane.b32.xlu2 %v4143_v62, %s7343_s30  ;;  %5122 = vmatmul.msk.f32.vlgmr.msra.gmra.mxu1 %vm7344_vm8, %v4143_v62  ;;  %vm7356_vm8 = vmmov %vm7350_vm1 }
0x2054   :  { %5137 = vmatpush.msk.msra.mxu1 %vm2993_vm13, %v6283_v39 }
0x2058   :  { %v4142_v4 = vld [vmem:[#allocation2 + $0x1] sm:$0x1] }
0x2059   :  { %4220 = vrot.lane.b32.xlu0 %v4142_v4, %s7343_s30  ;;  %4274 = vrot.lane.b32.xlu1 %v4142_v4, %s7345_s0  ;;  %s5423_s30 = smov 96  }
0x205a   :  { %5124 = vmatmul.msk.f32.vlgmr.msra.gmra.mxu2 %vm7346_vm10, %v4142_v4  ;;  %vm7357_vm10 = vmmov %vm7350_vm1 }
0x205b   :  { %4250 = vrot.lane.b32.xlu2 %v4143_v62, %s7345_s0  ;;  %5139 = vmatpush.msk.msra.mxu2 %vm2993_vm13, %v6666_v35  ;;  %s5424_s0 = smov 32  }
0x2061   :  { %4382 = vrot.lane.b32.xlu0 %v4142_v4, %s5394_s27  ;;  %4304 = vrot.lane.b32.xlu1 %v4143_v62, %s7347_s7 }
0x2063   :  { %4328 = vrot.lane.b32.xlu2 %v4142_v4, %s7347_s7 }
0x2069   :  { %4412 = vrot.lane.b32.xlu0 %v4143_v62, %s5417_s26  ;;  %4358 = vrot.lane.b32.xlu1 %v4143_v62, %s5394_s27 }
0x206b   :  { %4490 = vrot.lane.b32.xlu2 %v4142_v4, %s5418_s2 }
0x2071   :  { %4466 = vrot.lane.b32.xlu0 %v4143_v62, %s5418_s2  ;;  %4436 = vrot.lane.b32.xlu1 %v4142_v4, %s5417_s26 }
0x2073   :  { %4520 = vrot.lane.b32.xlu2 %v4143_v62, %s7348_s4 }
0x2079   :  { %4544 = vrot.lane.b32.xlu1 %v4142_v4, %s7348_s4  ;;  %s5422_s4 = smov 80  }
0x2080   :  { %v4091_v58 = vpop.f32.mrf.mxu3 }
0x2081   :  { %v4092_v57 = vadd.f32 %v5233_v11, %v4091_v58 }
0x2083   :  { %v4097_v30 = vmax.f32 %v4092_v57, 0.0 }
0x2085   :  { %5119 = vmatmul.msk.f32.vlgmr.msrb.gmra.mxu0 %vm2949_vm7, %v4097_v30 }
0x2086   :  { %5135 = vmatpush.msk.msrb.mxu0 %vm2993_vm13, %v6666_v35 }
0x2088   :  { %v4094_v37 = vpop.f32.mrf.mxu3 }
0x2089   :  { %v4095_v40 = vadd.f32 %v5233_v11, %v4094_v37 }
0x208b   :  { %v4098_v50 = vmax.f32 %v4095_v40, 0.0 }
0x208d   :  { %5120 = vmatmul.msk.f32.gmra.mxu0 %vm2949_vm7, %v4098_v50 }
0x20ad   :  { %v4197_v45 = vpop.permute.xlu2 %4196 }
0x20ae   :  { %5126 = vmatmul.msk.f32.vlgmr.msrb.gmra.mxu3 %vm7349_vm11, %v4197_v45  ;;  %vm7358_vm11 = vmmov %vm7350_vm1 }
0x20af   :  { %5141 = vmatpush.msk.msrb.mxu3 %vm2993_vm13, %v6283_v39 }
0x20b5   :  { %v4251_v56 = vpop.permute.xlu2 %4250 }
0x20b6   :  { %5130 = vmatmul.msk.f32.vlgmr.msrb.gmra.mxu1 %vm7350_vm1, %v4251_v56 }
0x20b7   :  { %5145 = vmatpush.msk.msrb.mxu1 %vm2993_vm13, %v6283_v39 }
0x20bd   :  { %v4329_v47 = vpop.permute.xlu2 %4328 }
0x20c5   :  { %v4491_v0 = vpop.permute.xlu2 %4490 }
0x20cb   :  { %v4221_v27 = vpop.permute.xlu0 %4220  ;;  %v4275_v36 = vpop.permute.xlu1 %4274 }
0x20cc   :  { %5128 = vmatmul.msk.f32.vlgmr.msra.gmra.mxu0 %vm7351_vm2, %v4221_v27  ;;  %5132 = vmatmul.msk.f32.vlgmr.msrb.gmra.mxu2 %vm7352_vm12, %v4275_v36  ;;  %vm7359_vm2 = vmmov %vm7350_vm1 }
0x20cd   :  { %5147 = vmatpush.msk.msrb.mxu2 %vm2993_vm13, %v6666_v35  ;;  %5143 = vmatpush.msk.msra.mxu0 %vm2993_vm13, %v6666_v35  ;;  %v4521_v23 = vpop.permute.xlu2 %4520  ;;  %vm7360_vm12 = vmmov %vm7350_vm1 }
0x20d0   :  { %v4164_v53 = vpop.f32.mrf.mxu1 }
0x20d3   :  { %v4383_v61 = vpop.permute.xlu0 %4382  ;;  %v4305_v5 = vpop.permute.xlu1 %4304 }
0x20d4   :  { %5134 = vmatmul.msk.f32.vlgmr.msra.gmra.mxu3 %vm7353_vm9, %v4305_v5  ;;  %5136 = vmatmul.msk.f32.vlgmr.msrb.gmra.mxu0 %vm7354_vm4, %v4329_v47  ;;  %vm7362_vm9 = vcmask 58369   ;;  %vm7363_vm4 = vcmask 59394  }
0x20d5   :  { %5140 = vmatmul.msk.f32.vlgmr.msra.gmra.mxu2 %vm7355_vm3, %v4383_v61  ;;  %5149 = vmatpush.msk.msra.mxu3 %vm2993_vm13, %v6283_v39  ;;  %vm7364_vm3 = vcmask 60419  }
0x20d6   :  { %5151 = vmatpush.msk.msrb.mxu0 %vm2993_vm13, %v6666_v35  ;;  %vm7361_vm13 = vmmov %vm7350_vm1 }
0x20db   :  { %v4413_v22 = vpop.permute.xlu0 %4412  ;;  %v4359_v54 = vpop.permute.xlu1 %4358 }
0x20dc   :  { %5138 = vmatmul.msk.f32.vlgmr.msra.gmra.mxu1 %vm7356_vm8, %v4359_v54  ;;  %5142 = vmatmul.msk.f32.vlgmr.msrb.gmra.mxu3 %vm7357_vm10, %v4413_v22  ;;  %vm7365_vm8 = vcmask 61444   ;;  %vm7366_vm10 = vcmask 62469  }
0x20dd   :  { %5148 = vmatmul.msk.f32.vlgmr.msrb.gmra.mxu2 %vm7358_vm11, %v4491_v0  ;;  %v4187_v35 = vpop.f32.mrf.mxu2  ;;  %vm7367_vm11 = vcmask 63494  }
0x20de   :  { %v4188_v49 = vadd.f32 %v4187_v35, %v4164_v53 }
0x20e0   :  { %v4190_v15 = vadd.f32 %v5389_v38, %v4188_v49 }
0x20e2   :  { %v4192_v20 = vrot.slane %v4190_v15, 7 }
0x20e3   :  { %v4467_v31 = vpop.permute.xlu0 %4466  ;;  %v4437_v14 = vpop.permute.xlu1 %4436 }
0x20e4   :  { %5144 = vmatmul.msk.f32.vlgmr.msra.gmra.mxu0 %vm7350_vm1, %v4437_v14  ;;  %5146 = vmatmul.msk.f32.vlgmr.msrb.gmra.mxu1 %vm7359_vm2, %v4467_v31  ;;  %vm7368_vm1 = vcmask 64519  }
0x20e5   :  { %5150 = vmatmul.msk.f32.vlgmr.msra.gmra.mxu3 %vm7360_vm12, %v4521_v23 }
0x20eb   :  { %v4545_v39 = vpop.permute.xlu1 %4544 }
0x20ec   :  { %5152 = vmatmul.msk.f32.vlgmr.msrb.gmra.mxu0 %vm7361_vm13, %v4545_v39 }
0x2102   :  { %v4130_v6 = vpop.f32.mrf.mxu0 }
0x2103   :  { %v4131_v34 = vadd.f32 %v5234_v16, %v4130_v6 }
0x2105   :  { %v4136_v21 = vadd.f32 %v4131_v34, %v6688_v17 }
0x2107   :  { %v4138_v1 = vadd.f32 %v5390_v28, %v4136_v21 }
0x2109   :  { %v4140_v2 = vadd.f32 %v5390_v28, %v4138_v1  ;;  %v4194_v8 = vadd.f32 %v4192_v20, %v4138_v1 }
0x210a   :  { %v4133_v52 = vpop.f32.mrf.mxu0 }
0x210b   :  { %4141 = vst.msk [vmem:[#allocation4] sm:$0x1] %vm2628_vm6, %v4140_v2  ;;  %v4134_v53 = vadd.f32 %v5234_v16, %v4133_v52 }
0x210c   :  { %4195 = vst.msk [vmem:[#allocation4] sm:$0x2] %vm7362_vm9, %v4194_v8 }
0x210d   :  { %v4137_v21 = vadd.f32 %v4134_v53, %v6693_v44  ;;  %v5235_v53 = vld [vmem:[%s7198_s9 + $0x1] ss:$0 sm:$0xff] }
0x2131   :  { %v4217_v60 = vpop.f32.mrf.mxu3 }
0x2133   :  { %v4271_v7 = vpop.f32.mrf.mxu1 }
0x2149   :  { %v4241_v62 = vpop.f32.mrf.mxu0 }
0x214a   :  { %v4242_v4 = vadd.f32 %v4241_v62, %v4217_v60  ;;  %v5391_v62 = vld [vmem:[%s7197_s1 + $0x18] sm:$0x1] }
0x214b   :  { %v4139_v16 = vadd.f32 %v5391_v62, %v4137_v21 }
0x214c   :  { %v4244_v48 = vadd.f32 %v5389_v38, %v4242_v4 }
0x214e   :  { %v4246_v10 = vrot.slane %v4244_v48, 6 }
0x214f   :  { %v4295_v17 = vpop.f32.mrf.mxu2 }
0x2150   :  { %v4248_v12 = vadd.f32 %v4246_v10, %v4138_v1  ;;  %v4296_v11 = vadd.f32 %v4295_v17, %v4271_v7 }
0x2151   :  { %v4349_v37 = vpop.f32.mrf.mxu0 }
0x2152   :  { %4249 = vst.msk [vmem:[#allocation4] sm:$0x4] %vm7363_vm4, %v4248_v12  ;;  %v4298_v58 = vadd.f32 %v5389_v38, %v4296_v11 }
0x2154   :  { %v4300_v57 = vrot.slane %v4298_v58, 5 }
0x2156   :  { %v4302_v30 = vadd.f32 %v4300_v57, %v4138_v1 }
0x2157   :  { %v4325_v40 = vpop.f32.mrf.mxu3 }
0x2158   :  { %4303 = vst.msk [vmem:[#allocation4] sm:$0x8] %vm7364_vm3, %v4302_v30  ;;  %v4350_v50 = vadd.f32 %v4349_v37, %v4325_v40  ;;  %v4403_v45 = vpop.f32.mrf.mxu2 }
0x2159   :  { %v4379_v56 = vpop.f32.mrf.mxu1 }
0x215a   :  { %v4352_v27 = vadd.f32 %v5389_v38, %v4350_v50  ;;  %v4404_v36 = vadd.f32 %v4403_v45, %v4379_v56  ;;  %v5155_v50 = vld [vmem:[%s7200_s11 + $0x8] sm:$0xff] }
0x215b   :  { %4651 = vmatpush.msra.mxu1 %v5155_v50 }
0x215c   :  { %v4354_v47 = vrot.slane %v4352_v27, 4  ;;  %v4406_v61 = vadd.f32 %v5389_v38, %v4404_v36 }
0x215e   :  { %v4356_v5 = vadd.f32 %v4354_v47, %v4138_v1  ;;  %v4408_v0 = vrot.slane %v4406_v61, 3 }
0x215f   :  { %v4433_v22 = vpop.f32.mrf.mxu3 }
0x2160   :  { %4357 = vst.msk [vmem:[#allocation4] sm:$0x10] %vm7365_vm8, %v4356_v5  ;;  %v4410_v54 = vadd.f32 %v4408_v0, %v4138_v1  ;;  %v4511_v31 = vpop.f32.mrf.mxu2  ;;  %vm213_vm8 = vcmask 254080  }
0x2161   :  { %v4457_v14 = vpop.f32.mrf.mxu0  ;;  %v4487_v23 = vpop.f32.mrf.mxu1 }
0x2162   :  { %4411 = vst.msk [vmem:[#allocation4] sm:$0x20] %vm7366_vm10, %v4410_v54  ;;  %v4458_v39 = vadd.f32 %v4457_v14, %v4433_v22  ;;  %v4512_v35 = vadd.f32 %v4511_v31, %v4487_v23  ;;  %vm282_vm10 = vcmask 385280  }
0x2164   :  { %v4460_v49 = vadd.f32 %v5389_v38, %v4458_v39  ;;  %v4514_v6 = vadd.f32 %v5389_v38, %v4512_v35 }
0x2166   :  { %v4462_v15 = vrot.slane %v4460_v49, 2  ;;  %v4516_v34 = vrot.slane %v4514_v6, 1 }
0x2168   :  { %v4464_v20 = vadd.f32 %v4462_v15, %v4138_v1  ;;  %v4518_v28 = vadd.f32 %v4516_v34, %v4138_v1  ;;  %v4541_v2 = vpop.f32.mrf.mxu3  ;;  %v5236_v15 = vld [vmem:[%s7199_s10 + $0x1] ss:$0 sm:$0xff] }
0x2169   :  { %v4565_v8 = vpop.f32.mrf.mxu0 }
0x216a   :  { %4465 = vst.msk [vmem:[#allocation4] sm:$0x40] %vm7367_vm11, %v4464_v20  ;;  %v4566_v60 = vadd.f32 %v4565_v8, %v4541_v2 }
0x216b   :  { %4519 = vst.msk [vmem:[#allocation4] sm:$0x80] %vm7368_vm1, %v4518_v28  ;;  %vm356_vm1 = vcmask 516480  }
0x216c   :  { %v4568_v52 = vadd.f32 %v5389_v38, %v4566_v60 }
0x216e   :  { %v4569_v4 = vadd.f32 %v4568_v52, %v4139_v16 }
0x2170   :  { %4570 = vst.msk [vmem:[#allocation4 + $0x8] sm:$0x1] %vm2628_vm6, %v4569_v4 }
0x2172   :  { %v6893_v48 = vld [vmem:[#allocation4] sm:$0xff] }
0x2173   :  { %v4575_v44 = vsel %vm2624_vm5, %v6893_v48, 0.0 }
0x2174   :  { %4576 = vadd.xlane.f32.xlu0 %v4575_v44 }
0x2177   :  { %v6897_v1 = vld [vmem:[#allocation4 + $0x8] sm:$0x1] }
0x2178   :  { %v4578_v10 = vsel %vm2628_vm6, %v6897_v1, 0.0 }
0x2179   :  { %4579 = vadd.xlane.f32.xlu2 %v4578_v10 }
0x21e7   :  { %v4577_v7 = vpop.xlane.xlu0 %4576 }
0x21e8   :  { %v4581_v17 = vmul.f32 %v4577_v7, %v6005_v32 }
0x21ea   :  { %v4583_v38 = vsub.f32 %v6893_v48, %v4581_v17 }
0x21ec   :  { %v4580_v12 = vpop.xlane.xlu2 %4579  ;;  %v4585_v11 = vmul.f32 %v4583_v38, %v4583_v38 }
0x21ed   :  { %v4582_v58 = vmul.f32 %v4580_v12, %v6005_v32 }
0x21ee   :  { %v4587_v57 = vsel %vm2624_vm5, %v4585_v11, 0.0 }
0x21ef   :  { %v4584_v30 = vsub.f32 %v6897_v1, %v4582_v58  ;;  %4588 = vadd.xlane.f32.xlu1 %v4587_v57 }
0x21f1   :  { %v4586_v37 = vmul.f32 %v4584_v30, %v4584_v30 }
0x21f3   :  { %v4590_v40 = vsel %vm2628_vm6, %v4586_v37, 0.0 }
0x21f4   :  { %4591 = vadd.xlane.f32.xlu2 %v4590_v40 }
0x2262   :  { %v4589_v45 = vpop.xlane.xlu1 %4588 }
0x2263   :  { %v4593_v56 = vmul.f32 %v4589_v45, %v6005_v32 }
0x2265   :  { %v4595_v27 = vadd.f32 1e-05, %v4593_v56 }
0x2267   :  { %5363 = vrsqrt.f32 %v4595_v27  ;;  %v4592_v36 = vpop.xlane.xlu2 %4591  ;;  %vm4603_vm12 = vweird.f32 %v4595_v27 }
0x2268   :  { %v4594_v47 = vmul.f32 %v4592_v36, %v6005_v32 }
0x226a   :  { %v4596_v61 = vadd.f32 1e-05, %v4594_v47 }
0x226c   :  { %5365 = vrsqrt.f32 %v4596_v61  ;;  %vm4613_vm4 = vweird.f32 %v4596_v61 }
0x226d   :  { %v5364_v5 = vpop.eup %5363 }
0x226e   :  { %v4598_v0 = vmul.f32 %v5364_v5, %v4595_v27  ;;  %vm4604_vm2 = vweird.f32 %v5364_v5 }
0x226f   :  { %vm4605_vm13 = vmor %vm4603_vm12, %vm4604_vm2  ;;  %vm428_vm2 = vcmask 647680  }
0x2270   :  { %v4599_v22 = vmul.f32 %v5364_v5, %v4598_v0 }
0x2272   :  { %v5366_v54 = vpop.eup %5365  ;;  %v4600_v31 = vmul.f32 0.5, %v4599_v22 }
0x2273   :  { %v4608_v14 = vmul.f32 %v5366_v54, %v4596_v61  ;;  %vm4614_vm9 = vweird.f32 %v5366_v54 }
0x2274   :  { %v4601_v23 = vsub.f32 1.5, %v4600_v31  ;;  %vm4615_vm3 = vmor %vm4613_vm4, %vm4614_vm9  ;;  %vm502_vm9 = vcmask 778880   ;;  %vm574_vm4 = vcmask 910080  }
0x2275   :  { %v4609_v39 = vmul.f32 %v5366_v54, %v4608_v14 }
0x2276   :  { %v4602_v35 = vmul.f32 %v5364_v5, %v4601_v23 }
0x2277   :  { %v4610_v49 = vmul.f32 0.5, %v4609_v39  ;;  %v5165_v39 = vld [vmem:[%s7201_s12 + $0x8] sm:$0xff]  ;;  %s5420_s12 = smov 48  }
0x2278   :  { %v4606_v6 = vsel %vm4605_vm13, %v5364_v5, %v4602_v35  ;;  %4778 = vmatpush.msra.mxu0 %v5165_v39 }
0x2279   :  { %v4617_v34 = vmul.f32 %v4606_v6, %v4583_v38  ;;  %v4611_v21 = vsub.f32 1.5, %v4610_v49 }
0x227b   :  { %v4622_v20 = vmul.f32 %v5235_v53, %v4617_v34  ;;  %v4612_v28 = vmul.f32 %v5366_v54, %v4611_v21 }
0x227d   :  { %v4627_v2 = vadd.f32 %v5236_v15, %v4622_v20  ;;  %v4616_v8 = vsel %vm4615_vm3, %v5366_v54, %v4612_v28  ;;  %v4941_v28 = vrot.slane %v5657_v51, 9  ;;  %v4951_v51 = vrot.slane %v5721_v46, 9 }
0x227e   :  { %v4618_v60 = vmul.f32 %v4616_v8, %v4584_v30  ;;  %vm648_vm3 = vcmask 1041280  }
0x227f   :  { %5156 = vmatmul.msk.f32.vlgmr.msra.gmra.mxu1 %vm2624_vm5, %v4627_v2 }
0x2280   :  { %v4623_v62 = vmul.f32 %v5235_v53, %v4618_v60 }
0x2282   :  { %v4628_v16 = vadd.f32 %v5236_v15, %v4623_v62 }
0x2287   :  { %5157 = vmatmul.msk.f32.gmra.mxu1 %vm2624_vm5, %v4628_v16  ;;  %v7369_v16 = vmax.f32 %v5624_v24, 0.0  ;;  %v7372_v24 = vmax.f32 %v5946_v18, 0.0  ;;  %v7375_v18 = vld [vmem:[#allocation8_spill] sm:$0xff] }
0x22fc   :  { %v4653_v52 = vpop.f32.mrf.mxu1 }
0x22fd   :  { %4661 = vrot.lane.b32.xlu1 %v4653_v52, %s5394_s27 }
0x2304   :  { %v4656_v4 = vpop.f32.mrf.mxu1 }
0x2305   :  { %4663 = vrot.lane.b32.xlu0 %v4656_v4, %s5394_s27  ;;  %s5421_s27 = smov 64  }
0x236f   :  { %v4662_v10 = vpop.permute.xlu1 %4661 }
0x2377   :  { %v4664_v44 = vpop.permute.xlu0 %4663 }
0x2378   :  { %5158 = vmatpush.xpose.msk.msra.mxu2 %vm2624_vm5, %v4664_v44 }
0x237c   :  { %5159 = vmatpush.xpose.msk.msra.mxu2 %vm2624_vm5, %v4662_v10  ;;  %v7371_v10 = vmax.f32 %v5708_v33, 0.0  ;;  %v4992_v33 = vrot.slane %v5894_v43, 9  ;;  %v7378_v43 = vld [vmem:[#allocation13_spill] sm:$0xff] }
0x237f   :  { %5160 = vmatmul.msk.f32.vlgmr.msra.gmra.mxu2 %vm2624_vm5, %v4653_v52 }
0x2387   :  { %5161 = vmatmul.msk.f32.gmra.mxu2 %vm2624_vm5, %v4656_v4 }
0x2402   :  { %v4690_v7 = vpop.f32.mrf.mxu2 }
0x2403   :  { %v4696_v17 = vmul.f32 0.35355338, %v4690_v7  ;;  %v4956_v7 = vrot.slane %v7371_v10, 9 }
0x2405   :  { %v4698_v38 = vsel %vm2756_vm14, %v4696_v17, -inf }
0x2406   :  { %4699 = vmax.xlane.f32.xlu2 %v4698_v38  ;;  %v4966_v38 = vrot.slane %v7375_v18, 9 }
0x240a   :  { %v4693_v12 = vpop.f32.mrf.mxu2 }
0x240b   :  { %v4697_v11 = vmul.f32 0.35355338, %v4693_v12  ;;  %v5017_v12 = vrot.slane %v7378_v43, 9 }
0x240d   :  { %v4701_v58 = vsel %vm2760_vm15, %v4697_v11, -inf }
0x240e   :  { %4702 = vmax.xlane.f32.xlu2 %v4701_v58  ;;  %v7380_v58 = vld [vmem:[#allocation12_spill] sm:$0xff] }
0x2426   :  { %4722 = vrot.lane.b32.xlu2 %v4656_v4, %s5395_s23  ;;  %v7370_v4 = vmax.f32 %v5835_v29, 0.0  ;;  %v7373_v29 = vld [vmem:[#allocation11_spill] sm:$0xff] }
0x2428   :  { %v4987_v44 = vrot.slane %v7370_v4, 9 }
0x242e   :  { %4720 = vrot.lane.b32.xlu2 %v4653_v52, %s5395_s23  ;;  %v4936_v52 = vrot.slane %v7369_v16, 9 }
0x2479   :  { %v4700_v57 = vpop.xlane.xlu2 %4699 }
0x247a   :  { %v4704_v30 = vsub.f32 %v4696_v17, %v4700_v57  ;;  %v5007_v17 = vrot.slane %v7372_v24, 9  ;;  %v7381_v57 = vld [vmem:[#allocation9_spill] sm:$0xff] }
0x247c   :  { %v4706_v37 = vmul.f32 1.442695, %v4704_v30  ;;  %v7382_v30 = vmax.f32 %v7381_v57, 0.0 }
0x247e   :  { %5367 = vpow2.f32 %v4706_v37  ;;  %v4976_v37 = vrot.slane %v7382_v30, 9 }
0x2481   :  { %v4703_v40 = vpop.xlane.xlu2 %4702 }
0x2482   :  { %v4705_v50 = vsub.f32 %v4697_v11, %v4703_v40  ;;  %v7379_v11 = vld [vmem:[#allocation14_spill] sm:$0xff] }
0x2483   :  { %v7383_v40 = vld [vmem:[#allocation10_spill] sm:$0xff] }
0x2484   :  { %v5368_v45 = vpop.eup %5367  ;;  %v4708_v56 = vmul.f32 1.442695, %v4705_v50  ;;  %v4971_v50 = vrot.slane %v7383_v40, 9 }
0x2485   :  { %v4710_v27 = vsel %vm2756_vm14, %v5368_v45, 0.0 }
0x2486   :  { %5369 = vpow2.f32 %v4708_v56  ;;  %4711 = vadd.xlane.f32.xlu0 %v4710_v27 }
0x2489   :  { %v4723_v36 = vpop.permute.xlu2 %4722 }
0x248a   :  { %5162 = vmatpush.msk.msrb.mxu3 %vm2791_vm0, %v4723_v36  ;;  %v2453_v36 = vld [vmem:[#allocation1 + $0x3] ss:$4 sm:$0xff] }
0x248c   :  { %v5370_v47 = vpop.eup %5369 }
0x248d   :  { %v4713_v61 = vsel %vm2760_vm15, %v5370_v47, 0.0 }
0x248e   :  { %4714 = vadd.xlane.f32.xlu1 %v4713_v61  ;;  %v5170_v61 = vld [vmem:[%s7204_s15 + $0x8] sm:$0xff] }
0x248f   :  { %4870 = vmatpush.msrb.mxu1 %v5170_v61  ;;  %v5174_v61 = vld [vmem:[%s7207_s17 + $0x20] sm:$0xff] }
0x2491   :  { %v4721_v5 = vpop.permute.xlu2 %4720 }
0x2492   :  { %4748 = vmatpush.msrb.mxu3 %v4721_v5 }
0x24f9   :  { %v4712_v0 = vpop.xlane.xlu0 %4711 }
0x24fa   :  { %5371 = vrcp.f32 %v4712_v0 }
0x2500   :  { %v5372_v22 = vpop.eup %5371 }
0x2501   :  { %v4718_v54 = vmul.f32 %v5372_v22, %v5368_v45  ;;  %v4715_v31 = vpop.xlane.xlu1 %4714  ;;  %v7384_v45 = vld [vmem:[#allocation15_spill] sm:$0xff] }
0x2502   :  { %5373 = vrcp.f32 %v4715_v31  ;;  %v7385_v56 = vmax.f32 %v7384_v45, 0.0 }
0x2503   :  { %5163 = vmatmul.msk.f32.vlgmr.msrb.gmra.mxu3 %vm2756_vm14, %v4718_v54 }
0x2504   :  { %v5027_v27 = vrot.slane %v7385_v56, 9 }
0x2508   :  { %v5374_v14 = vpop.eup %5373 }
0x2509   :  { %v4719_v23 = vmul.f32 %v5374_v14, %v5370_v47  ;;  %v5022_v47 = vrot.slane %v2453_v36, 9  ;;  %v5176_v36 = vld [vmem:[%s7207_s17 + $0x30] sm:$0xff] }
0x250b   :  { %5164 = vmatmul.msk.f32.gmra.mxu3 %vm2756_vm14, %v4719_v23 }
0x2586   :  { %v4750_v35 = vpop.f32.mrf.mxu3 }
0x2587   :  { %5166 = vmatmul.msk.f32.vlgmr.msra.gmra.mxu0 %vm2624_vm5, %v4750_v35 }
0x258e   :  { %v4753_v53 = vpop.f32.mrf.mxu3 }
0x258f   :  { %5167 = vmatmul.msk.f32.gmra.mxu0 %vm2624_vm5, %v4753_v53 }
0x2604   :  { %v4780_v49 = vpop.f32.mrf.mxu0 }
0x2605   :  { %v6941_v6 = vadd.f32 %v4780_v49, %v6893_v48  ;;  %v4961_v48 = vrot.slane %v5739_v3, 9  ;;  %v5002_v3 = vrot.slane %v5959_v63, 9 }
0x2607   :  { %v4790_v15 = vsel %vm2624_vm5, %v6941_v6, 0.0 }
0x2608   :  { %4791 = vadd.xlane.f32.xlu2 %v4790_v15 }
0x260c   :  { %v4783_v34 = vpop.f32.mrf.mxu0 }
0x260d   :  { %v6946_v21 = vadd.f32 %v4783_v34, %v6897_v1  ;;  %v4997_v1 = vrot.slane %v5914_v13, 9 }
0x260f   :  { %v4793_v20 = vsel %vm2628_vm6, %v6946_v21, 0.0 }
0x2610   :  { %4794 = vadd.xlane.f32.xlu0 %v4793_v20 }
0x2620   :  { %353 = vrot.lane.b32.xlu2 %v4941_v28, %s5420_s12 }
0x2628   :  { %920 = vrot.lane.b32.xlu2 %v4961_v48, %s5420_s12 }
0x2630   :  { %425 = vrot.lane.b32.xlu2 %v5666_v59, %s5421_s27 }
0x2638   :  { %2242 = vrot.lane.b32.xlu2 %v6022_v26, %s5421_s27 }
0x2640   :  { %1760 = vrot.lane.b32.xlu2 %v4997_v1, %s5422_s4  ;;  %v5237_v1 = vld [vmem:[%s7202_s13 + $0x1] ss:$0 sm:$0xff] }
0x2648   :  { %1135 = vrot.lane.b32.xlu2 %v5766_v41, %s5423_s30 }
0x2650   :  { %645 = vrot.lane.b32.xlu2 %v4951_v51, %s5395_s23 }
0x2658   :  { %1902 = vrot.lane.b32.xlu2 %v5002_v3, %s5395_s23  ;;  %v5238_v3 = vld [vmem:[%s7203_s14 + $0x1] ss:$0 sm:$0xff] }
0x267b   :  { %v4792_v59 = vpop.xlane.xlu2 %4791 }
0x267c   :  { %v4796_v26 = vmul.f32 %v4792_v59, %v6005_v32 }
0x267e   :  { %v6968_v13 = vsub.f32 %v6941_v6, %v4796_v26 }
0x2680   :  { %v4800_v2 = vmul.f32 %v6968_v13, %v6968_v13 }
0x2682   :  { %v4802_v8 = vsel %vm2624_vm5, %v4800_v2, 0.0 }
0x2683   :  { %4803 = vadd.xlane.f32.xlu1 %v4802_v8  ;;  %v4795_v41 = vpop.xlane.xlu0 %4794  ;;  %v354_v31 = vpop.permute.xlu2 %353 }
0x2684   :  { %v4797_v46 = vmul.f32 %v4795_v41, %v6005_v32 }
0x2686   :  { %v6975_v60 = vsub.f32 %v6946_v21, %v4797_v46 }
0x2688   :  { %v4801_v63 = vmul.f32 %v6975_v60, %v6975_v60 }
0x268a   :  { %v4805_v62 = vsel %vm2628_vm6, %v4801_v63, 0.0 }
0x268b   :  { %4806 = vadd.xlane.f32.xlu0 %v4805_v62  ;;  %v921_v20 = vpop.permute.xlu2 %920 }
0x269c   :  { %210 = vrot.lane.b32.xlu1 %v4936_v52, %s7310_s21 }
0x269f   :  { %279 = vrot.lane.b32.xlu0 %v5646_v42, %s5424_s0  ;;  %v5012_v42 = vrot.slane %v5995_v19, 9  ;;  %v7377_v19 = vld [vmem:[#allocation6_spill] sm:$0xff] }
0x26a4   :  { %1479 = vrot.lane.b32.xlu1 %v4987_v44, %s7310_s21 }
0x26a7   :  { %776 = vrot.lane.b32.xlu0 %v4956_v7, %s7310_s21 }
0x26ac   :  { %847 = vrot.lane.b32.xlu1 %v5730_v55, %s5424_s0  ;;  %v7374_v55 = vld [vmem:[#allocation7_spill] sm:$0xff] }
0x26af   :  { %2030 = vrot.lane.b32.xlu0 %v5007_v17, %s7310_s21 }
0x26b4   :  { %2100 = vrot.lane.b32.xlu1 %v5968_v9, %s5424_s0  ;;  %v7376_v9 = vld [vmem:[#allocation5_spill] sm:$0xff] }
0x26b7   :  { %1546 = vrot.lane.b32.xlu0 %v5879_v25, %s5424_s0  ;;  %v4946_v25 = vrot.slane %v7376_v9, 9 }
0x26bc   :  { %2172 = vrot.lane.b32.xlu1 %v5012_v42, %s5420_s12 }
0x26bf   :  { %1618 = vrot.lane.b32.xlu0 %v4992_v33, %s5420_s12 }
0x26c4   :  { %1688 = vrot.lane.b32.xlu1 %v7373_v29, %s5421_s27 }
0x26c7   :  { %991 = vrot.lane.b32.xlu0 %v7374_v55, %s5421_s27 }
0x26cc   :  { %1064 = vrot.lane.b32.xlu1 %v4966_v38, %s5422_s4 }
0x26cf   :  { %499 = vrot.lane.b32.xlu0 %v4946_v25, %s5422_s4 }
0x26d4   :  { %571 = vrot.lane.b32.xlu1 %v7377_v19, %s5423_s30 }
0x26d7   :  { %2314 = vrot.lane.b32.xlu0 %v5017_v12, %s5422_s4  ;;  %v5177_v12 = vld [vmem:[%s7207_s17 + $0x38] sm:$0xff] }
0x26d8   :  { %4906 = vmatpush.msrb.mxu2 %v5177_v12 }
0x26da   :  { %4907 = vmatpush.msrb.mxu2 %v5176_v36 }
0x26dc   :  { %2384 = vrot.lane.b32.xlu1 %v7379_v11, %s5423_s30 }
0x26df   :  { %1830 = vrot.lane.b32.xlu0 %v7380_v58, %s5423_s30 }
0x26e4   :  { %1338 = vrot.lane.b32.xlu1 %v4976_v37, %s7310_s21 }
0x26e7   :  { %1208 = vrot.lane.b32.xlu0 %v4971_v50, %s5395_s23 }
0x26ec   :  { %2584 = vrot.lane.b32.xlu1 %v5027_v27, %s7310_s21 }
0x26ef   :  { %2456 = vrot.lane.b32.xlu0 %v5022_v47, %s5395_s23  ;;  %v5175_v47 = vld [vmem:[%s7207_s17 + $0x28] sm:$0xff] }
0x26f0   :  { %4908 = vmatpush.msrb.mxu2 %v5175_v47 }
0x26f2   :  { %4909 = vmatpush.msrb.mxu2 %v5174_v61 }
0x26f6   :  { %v4804_v5 = vpop.xlane.xlu1 %4803 }
0x26f7   :  { %v4808_v0 = vmul.f32 %v4804_v5, %v6005_v32  ;;  %v5239_v5 = vld [vmem:[%s7205_s16 + $0x1] ss:$0 sm:$0xff] }
0x26f9   :  { %v4810_v22 = vadd.f32 1e-05, %v4808_v0 }
0x26fb   :  { %5375 = vrsqrt.f32 %v4810_v22  ;;  %vm4818_vm15 = vweird.f32 %v4810_v22 }
0x26fe   :  { %v4807_v54 = vpop.xlane.xlu0 %4806 }
0x26ff   :  { %v4809_v14 = vmul.f32 %v4807_v54, %v6005_v32 }
0x2701   :  { %v5376_v23 = vpop.eup %5375  ;;  %v4811_v39 = vadd.f32 1e-05, %v4809_v14 }
0x2702   :  { %v4813_v35 = vmul.f32 %v5376_v23, %v4810_v22  ;;  %vm4819_vm14 = vweird.f32 %v5376_v23 }
0x2703   :  { %5377 = vrsqrt.f32 %v4811_v39  ;;  %vm4820_vm0 = vmor %vm4818_vm15, %vm4819_vm14  ;;  %vm4828_vm12 = vweird.f32 %v4811_v39 }
0x2704   :  { %v4814_v53 = vmul.f32 %v5376_v23, %v4813_v35 }
0x2706   :  { %v4815_v49 = vmul.f32 0.5, %v4814_v53 }
0x2708   :  { %v4816_v15 = vsub.f32 1.5, %v4815_v49 }
0x2709   :  { %v5378_v34 = vpop.eup %5377 }
0x270a   :  { %v4817_v28 = vmul.f32 %v5376_v23, %v4816_v15  ;;  %v4823_v48 = vmul.f32 %v5378_v34, %v4811_v39  ;;  %vm4829_vm11 = vweird.f32 %v5378_v34  ;;  %v5240_v39 = vld [vmem:[%s7208_s18 + $0x1] ss:$0 sm:$0xff] }
0x270b   :  { %vm4830_vm13 = vmor %vm4828_vm12, %vm4829_vm11 }
0x270c   :  { %v4821_v51 = vsel %vm4820_vm0, %v5376_v23, %v4817_v28  ;;  %v4824_v32 = vmul.f32 %v5378_v34, %v4823_v48 }
0x270d   :  { %v4832_v59 = vmul.f32 %v4821_v51, %v6968_v13  ;;  %v426_v13 = vpop.permute.xlu2 %425 }
0x270e   :  { %v4825_v26 = vmul.f32 0.5, %v4824_v32  ;;  %v211_v2 = vpop.permute.xlu1 %210 }
0x270f   :  { %v4837_v8 = vmul.f32 %v5237_v1, %v4832_v59  ;;  %214 = vst.msk [vmem:[%s7195_s19] sm:$0x1] %vm213_vm8, %v211_v2 }
0x2710   :  { %v4826_v41 = vsub.f32 1.5, %v4825_v26 }
0x2711   :  { %v4842_v46 = vadd.f32 %v5238_v3, %v4837_v8  ;;  %v280_v63 = vpop.permute.xlu0 %279 }
0x2712   :  { %v4827_v62 = vmul.f32 %v5378_v34, %v4826_v41  ;;  %283 = vst.msk [vmem:[%s7195_s19] sm:$0x1] %vm282_vm10, %v280_v63 }
0x2713   :  { %357 = vst.msk [vmem:[%s7195_s19] sm:$0x1] %vm356_vm1, %v354_v31  ;;  %5172 = vmatmul.msk.f32.vlgmr.msrb.gmra.mxu1 %vm2624_vm5, %v4842_v46 }
0x2714   :  { %v4831_v16 = vsel %vm4830_vm13, %v5378_v34, %v4827_v62  ;;  %429 = vst.msk [vmem:[%s7195_s19] sm:$0x1] %vm428_vm2, %v426_v13 }
0x2715   :  { %v4833_v52 = vmul.f32 %v4831_v16, %v6975_v60  ;;  %v2243_v42 = vpop.permute.xlu2 %2242 }
0x2716   :  { %v1480_v4 = vpop.permute.xlu1 %1479 }
0x2717   :  { %1482 = vst.msk [vmem:[%s7195_s19 + $0x1] sm:$0x1] %vm213_vm8, %v1480_v4  ;;  %v4838_v44 = vmul.f32 %v5237_v1, %v4833_v52 }
0x2719   :  { %v777_v10 = vpop.permute.xlu0 %776  ;;  %v4843_v7 = vadd.f32 %v5238_v3, %v4838_v44 }
0x271a   :  { %779 = vst.msk [vmem:[%s7195_s19 + $0x2] sm:$0x1] %vm213_vm8, %v777_v10 }
0x271b   :  { %5173 = vmatmul.msk.f32.gmra.mxu1 %vm2624_vm5, %v4843_v7 }
0x271d   :  { %v1761_v18 = vpop.permute.xlu2 %1760 }
0x271e   :  { %v848_v24 = vpop.permute.xlu1 %847 }
0x271f   :  { %850 = vst.msk [vmem:[%s7195_s19 + $0x2] sm:$0x1] %vm282_vm10, %v848_v24 }
0x2720   :  { %923 = vst.msk [vmem:[%s7195_s19 + $0x2] sm:$0x1] %vm356_vm1, %v921_v20 }
0x2721   :  { %v2031_v60 = vpop.permute.xlu0 %2030 }
0x2722   :  { %2033 = vst.msk [vmem:[%s7195_s19 + $0x3] sm:$0x1] %vm213_vm8, %v2031_v60 }
0x2725   :  { %v1136_v25 = vpop.permute.xlu2 %1135 }
0x2726   :  { %v2101_v17 = vpop.permute.xlu1 %2100 }
0x2727   :  { %2103 = vst.msk [vmem:[%s7195_s19 + $0x3] sm:$0x1] %vm282_vm10, %v2101_v17 }
0x2729   :  { %v1547_v33 = vpop.permute.xlu0 %1546 }
0x272a   :  { %1549 = vst.msk [vmem:[%s7195_s19 + $0x1] sm:$0x1] %vm282_vm10, %v1547_v33 }
0x272d   :  { %v646_v58 = vpop.permute.xlu2 %645 }
0x272e   :  { %v2173_v29 = vpop.permute.xlu1 %2172 }
0x272f   :  { %2175 = vst.msk [vmem:[%s7195_s19 + $0x3] sm:$0x1] %vm356_vm1, %v2173_v29 }
0x2730   :  { %2245 = vst.msk [vmem:[%s7195_s19 + $0x3] sm:$0x1] %vm428_vm2, %v2243_v42 }
0x2731   :  { %v1619_v55 = vpop.permute.xlu0 %1618 }
0x2732   :  { %1621 = vst.msk [vmem:[%s7195_s19 + $0x1] sm:$0x1] %vm356_vm1, %v1619_v55 }
0x2735   :  { %v1903_v40 = vpop.permute.xlu2 %1902 }
0x2736   :  { %v1689_v38 = vpop.permute.xlu1 %1688 }
0x2737   :  { %1691 = vst.msk [vmem:[%s7195_s19 + $0x1] sm:$0x1] %vm428_vm2, %v1689_v38 }
0x2738   :  { %1763 = vst.msk [vmem:[%s7195_s19 + $0x1] sm:$0x1] %vm502_vm9, %v1761_v18 }
0x2739   :  { %v992_v9 = vpop.permute.xlu0 %991 }
0x273a   :  { %994 = vst.msk [vmem:[%s7195_s19 + $0x2] sm:$0x1] %vm428_vm2, %v992_v9 }
0x273e   :  { %v1065_v19 = vpop.permute.xlu1 %1064 }
0x273f   :  { %1067 = vst.msk [vmem:[%s7195_s19 + $0x2] sm:$0x1] %vm502_vm9, %v1065_v19 }
0x2740   :  { %1138 = vst.msk [vmem:[%s7195_s19 + $0x2] sm:$0x1] %vm574_vm4, %v1136_v25 }
0x2741   :  { %v500_v43 = vpop.permute.xlu0 %499 }
0x2742   :  { %503 = vst.msk [vmem:[%s7195_s19] sm:$0x1] %vm502_vm9, %v500_v43 }
0x2746   :  { %v572_v11 = vpop.permute.xlu1 %571 }
0x2747   :  { %575 = vst.msk [vmem:[%s7195_s19] sm:$0x1] %vm574_vm4, %v572_v11 }
0x2748   :  { %649 = vst.msk [vmem:[%s7195_s19] sm:$0x1] %vm648_vm3, %v646_v58 }
0x2749   :  { %v2315_v57 = vpop.permute.xlu0 %2314 }
0x274a   :  { %2317 = vst.msk [vmem:[%s7195_s19 + $0x3] sm:$0x1] %vm502_vm9, %v2315_v57 }
0x274e   :  { %v2385_v30 = vpop.permute.xlu1 %2384 }
0x274f   :  { %2387 = vst.msk [vmem:[%s7195_s19 + $0x3] sm:$0x1] %vm574_vm4, %v2385_v30 }
0x2751   :  { %v1831_v37 = vpop.permute.xlu0 %1830 }
0x2752   :  { %1833 = vst.msk [vmem:[%s7195_s19 + $0x1] sm:$0x1] %vm574_vm4, %v1831_v37 }
0x2753   :  { %1905 = vst.msk [vmem:[%s7195_s19 + $0x1] sm:$0x1] %vm648_vm3, %v1903_v40 }
0x2756   :  { %v1339_v50 = vpop.permute.xlu1 %1338 }
0x2757   :  { %1341 = vst.msk [vmem:[%s7195_s19 + $0x4] sm:$0x1] %vm213_vm8, %v1339_v50 }
0x2759   :  { %v1209_v45 = vpop.permute.xlu0 %1208 }
0x275a   :  { %1211 = vst.msk [vmem:[%s7195_s19 + $0x2] sm:$0x1] %vm648_vm3, %v1209_v45 }
0x275e   :  { %v2585_v56 = vpop.permute.xlu1 %2584 }
0x275f   :  { %2587 = vst.msk [vmem:[%s7195_s19 + $0x5] sm:$0x1] %vm213_vm8, %v2585_v56 }
0x2761   :  { %v2457_v27 = vpop.permute.xlu0 %2456 }
0x2762   :  { %2459 = vst.msk [vmem:[%s7195_s19 + $0x3] sm:$0x1] %vm648_vm3, %v2457_v27 }
0x2790   :  { %v4872_v0 = vpop.f32.mrf.mxu1 }
0x2791   :  { %v4873_v22 = vadd.f32 %v5239_v5, %v4872_v0 }
0x2793   :  { %v4878_v54 = vmax.f32 %v4873_v22, 0.0 }
0x2795   :  { %5179 = vmatmul.msk.f32.vlgmr.msrb.gmra.mxu2 %vm2949_vm7, %v4878_v54 }
0x2798   :  { %v4875_v31 = vpop.f32.mrf.mxu1 }
0x2799   :  { %v4876_v14 = vadd.f32 %v5239_v5, %v4875_v31 }
0x279b   :  { %v4879_v23 = vmax.f32 %v4876_v14, 0.0 }
0x279d   :  { %5180 = vmatmul.msk.f32.gmra.mxu2 %vm2949_vm7, %v4879_v23 }
0x2818   :  { %v4911_v35 = vpop.f32.mrf.mxu2 }
0x2819   :  { %v4912_v53 = vadd.f32 %v5240_v39, %v4911_v35 }
0x281b   :  { %v4917_v49 = vadd.f32 %v4912_v53, %v6941_v6 }
0x281d   :  { %5181 = vst.msk [vmem:[%s7210_s20 + $0x10] sm:$0xff] %vm2624_vm5, %v4917_v49 }
0x2820   :  { %v4914_v15 = vpop.f32.mrf.mxu2 }
0x2821   :  { %v4915_v34 = vadd.f32 %v5240_v39, %v4914_v15 }
0x2823   :  { %v4918_v20 = vadd.f32 %v4915_v34, %v6946_v21 }
0x2825   :  { %5182 = vst.msk [vmem:[%s7210_s20 + $0x18] sm:$0x1] %vm2628_vm6, %v4918_v20 }

</bundles_post_ra>
